<compile_context>
chip_gen: v7x
topology: tpu7x:2x2x1
jax: 0.10.0
libtpu: 0.0.40
codegen_flags: <defaults>
</compile_context>

<pallas_src>
import functools
import math

import jax
import jax.numpy as jnp
import numpy as np
from jax.experimental import pallas as pl
from jax.experimental.pallas import tpu as pltpu

_LANE = 128
_SUB = 8
# Python float literal (NOT a jnp scalar: that would be captured as a constant
# by pallas_call tracing and fail).
_NEG = -1e30


def _round_up(x, m):
    return ((x + m - 1) // m) * m


def _circle_loss_kernel(emb_a_ref, emb_t_ref, lab_col_ref, lab_row_ref,
                        npos_ref, nneg_ref,
                        loss_ref, cnt_ref,
                        m_p, s_p, m_n, s_n,
                        *, m, gamma, batch_size, n_valid, tile_a, tile_j):
    i = pl.program_id(0)          # anchor-row tile  ("parallel")
    j = pl.program_id(1)          # column tile      ("arbitrary", reduction)
    last_j = pl.num_programs(1) - 1

    @pl.when(j == 0)
    def _init():
        m_p[...] = jnp.full_like(m_p, _NEG)
        m_n[...] = jnp.full_like(m_n, _NEG)
        s_p[...] = jnp.zeros_like(s_p)
        s_n[...] = jnp.zeros_like(s_n)

    # Similarity tile on the MXU: (TA, D) @ (D, TJ) -> (TA, TJ), f32 acc.
    # RHS arrives pre-transposed from the wrapper -> no per-tile transpose.
    S = jax.lax.dot_general(emb_a_ref[...], emb_t_ref[...],
                            (((1,), (0,)), ((), ())),
                            preferred_element_type=jnp.float32)

    row_g = i * tile_a + jax.lax.broadcasted_iota(jnp.int32, (tile_a, 1), 0)
    col_g = j * tile_j + jax.lax.broadcasted_iota(jnp.int32, (1, tile_j), 1)
    col_valid = col_g < n_valid                                   # (1, TJ)

    same = lab_col_ref[...] == lab_row_ref[...]                   # (TA, TJ)
    match = jnp.logical_and(same, col_valid)
    pos_mask = jnp.logical_and(match, row_g != col_g)
    neg_mask = jnp.logical_xor(match, col_valid)                  # col_valid & ~same

    # Fused circle-loss logit (each element is pos OR neg, never both):
    #   pos: -g*max(op-S,0)*(S-dp) == g*min(S-op,0)*(S-dp)
    #   neg:  g*max(S-on,0)*(S-dn)
    op_ = 1.0 + m
    on_ = -m
    delta_p = 1.0 - m
    delta_n = m
    clip = jnp.where(pos_mask, jnp.minimum(S - op_, 0.0),
                     jnp.maximum(S - on_, 0.0))
    delta = jnp.where(pos_mask, delta_p, delta_n)
    logit = gamma * clip * (S - delta)

    lp = jnp.where(pos_mask, logit, _NEG)
    ln = jnp.where(neg_mask, logit, _NEG)

    # Online (flash-style) logsumexp, one exp pass per tile.  Explicitly masked
    # sums keep spurious exp(0)=1 terms out of the accumulators entirely.
    m_p_old = m_p[...]
    m_n_old = m_n[...]
    m_p_new = jnp.maximum(m_p_old, jnp.max(lp, axis=1, keepdims=True))
    m_n_new = jnp.maximum(m_n_old, jnp.max(ln, axis=1, keepdims=True))
    shift = jnp.where(pos_mask, m_p_new, m_n_new)
    e = jnp.exp(jnp.where(pos_mask, lp, ln) - shift)
    sum_p = jnp.sum(jnp.where(pos_mask, e, 0.0), axis=1, keepdims=True)
    sum_n = jnp.sum(jnp.where(neg_mask, e, 0.0), axis=1, keepdims=True)
    s_p[...] = s_p[...] * jnp.exp(m_p_old - m_p_new) + sum_p
    s_n[...] = s_n[...] * jnp.exp(m_n_old - m_n_new) + sum_n
    m_p[...] = m_p_new
    m_n[...] = m_n_new

    @pl.when(j == last_j)
    def _finalize():
        n_p = npos_ref[...]          # (TA, 1) precomputed in the wrapper
        n_n = nneg_ref[...]
        # logsumexp over unique pos/neg + log(count) == lse over duplicated
        # triplet logits (each positive repeated n_neg times and vice versa).
        lse_p = (m_p[...] + jnp.log(jnp.maximum(s_p[...], 1e-30))
                 + jnp.log(jnp.maximum(n_n, 1.0)))
        lse_n = (m_n[...] + jnp.log(jnp.maximum(s_n[...], 1e-30))
                 + jnp.log(jnp.maximum(n_p, 1.0)))
        z = lse_p + lse_n
        soft = jnp.maximum(z, 0.0) + jnp.log(1.0 + jnp.exp(-jnp.abs(z)))

        # anchor filter from get_all_triplets_indices:
        #   (a % 4 == 0 & a < batch_size) | (a > batch_size)
        anchor_ok = jnp.logical_or(
            jnp.logical_and(row_g % 4 == 0, row_g < batch_size),
            row_g > batch_size)
        valid = jnp.logical_and(anchor_ok, row_g < n_valid)
        valid = jnp.logical_and(valid,
                                jnp.logical_and(n_p > 0.5, n_n > 0.5))

        loss_sum = jnp.sum(jnp.where(valid, soft, 0.0))
        cnt_sum = jnp.sum(valid.astype(jnp.float32))
        # (1, 8, 128) blocks so the out BlockSpec is (8,128)-aligned.
        loss_ref[...] = jnp.full((1, _SUB, _LANE), loss_sum, jnp.float32)
        cnt_ref[...] = jnp.full((1, _SUB, _LANE), cnt_sum, jnp.float32)


def circle_loss(embeddings, labels, batch_size, m=0.4, gamma=80.0,
                use_bf16_mxu=True, tile_a=256, tile_j=512):
    """embeddings: (N, D) f32, labels: (N,) int, batch_size: python int."""
    N, D = embeddings.shape
    ta, tj = int(tile_a), int(tile_j)
    assert ta % _SUB == 0 and tj % _LANE == 0, "tiles must be (8,128)-aligned"

    # Pad N so the desired tiles always divide (no collapse to 128x128) and
    # there are >= 2 row tiles (v7x megacore shards the "parallel" axis).
    lcm = math.lcm(ta, tj)
    n_pad = max(_round_up(N, lcm), _round_up(2 * ta, lcm))
    d_pad = _round_up(D, _LANE)
    n_row = n_pad // ta
    n_col = n_pad // tj

    mxu_dtype = jnp.bfloat16 if use_bf16_mxu else jnp.float32
    emb = jnp.zeros((n_pad, d_pad), mxu_dtype).at[:N, :D].set(
        embeddings.astype(mxu_dtype))
    emb_t = emb.T                                  # one-time (d_pad, n_pad)

    lab = labels.astype(jnp.int32)
    lab_col = jnp.full((n_pad, 1), -1, jnp.int32).at[:N, 0].set(lab)
    lab_row = jnp.full((1, n_pad), -1, jnp.int32).at[0, :N].set(lab)

    # Precompute per-anchor positive / negative counts (diagonal excluded),
    # matching the kernel's previous in-kernel accumulation exactly.
    cnt_same = jnp.sum((lab[:, None] == lab[None, :]).astype(jnp.float32),
                       axis=1)
    npos = jnp.zeros((n_pad, 1), jnp.float32).at[:N, 0].set(cnt_same - 1.0)
    nneg = jnp.zeros((n_pad, 1), jnp.float32).at[:N, 0].set(
        jnp.float32(N) - cnt_same)

    kernel = functools.partial(
        _circle_loss_kernel, m=float(m), gamma=float(gamma),
        batch_size=int(batch_size), n_valid=int(N), tile_a=ta, tile_j=tj)

    esize = 2 if use_bf16_mxu else 4
    # Explicit VMEM budget: double-buffered embedding tiles + labels/counts/
    # outputs (lane/sublane padded) + per-row LSE state + headroom for the
    # (ta, tj) f32 temporaries inside the body.
    vmem_bytes = (2 * (ta * d_pad + d_pad * tj) * esize
                  + 2 * 4 * (3 * ta * _LANE + _SUB * tj + 2 * _SUB * _LANE)
                  + 4 * ta * _LANE * 4
                  + 16 * ta * tj * 4)
    vmem_limit = int(min(max(vmem_bytes + (4 << 20), 24 << 20), 64 << 20))

    cost = pl.CostEstimate(
        flops=2 * n_pad * n_pad * d_pad + 25 * n_pad * n_pad,
        transcendentals=n_pad * n_pad,
        bytes_accessed=(n_row + 1) * n_pad * d_pad * esize + 24 * n_pad)

    loss_parts, cnt_parts = pl.pallas_call(
        kernel,
        out_shape=(jax.ShapeDtypeStruct((n_row, _SUB, _LANE), jnp.float32),
                   jax.ShapeDtypeStruct((n_row, _SUB, _LANE), jnp.float32)),
        grid_spec=pltpu.PrefetchScalarGridSpec(
            num_scalar_prefetch=0,
            grid=(n_row, n_col),
            in_specs=[
                pl.BlockSpec((ta, d_pad), lambda i, j: (i, 0)),   # anchor rows
                pl.BlockSpec((d_pad, tj), lambda i, j: (0, j)),   # emb^T cols
                pl.BlockSpec((ta, 1), lambda i, j: (i, 0)),       # anchor labels
                pl.BlockSpec((1, tj), lambda i, j: (0, j)),       # column labels
                pl.BlockSpec((ta, 1), lambda i, j: (i, 0)),       # n_pos per anchor
                pl.BlockSpec((ta, 1), lambda i, j: (i, 0)),       # n_neg per anchor
            ],
            out_specs=[
                pl.BlockSpec((1, _SUB, _LANE), lambda i, j: (i, 0, 0)),
                pl.BlockSpec((1, _SUB, _LANE), lambda i, j: (i, 0, 0)),
            ],
            scratch_shapes=[pltpu.VMEM((ta, 1), jnp.float32)
                            for _ in range(4)]),
        compiler_params=pltpu.CompilerParams(
            dimension_semantics=("parallel", "arbitrary"),
            vmem_limit_bytes=vmem_limit),
        cost_estimate=cost,
    )(emb, emb_t, lab_col, lab_row, npos, nneg)

    total = jnp.sum(loss_parts[:, 0, 0])
    count = jnp.sum(cnt_parts[:, 0, 0])
    # num_triplets == 0  =>  loss == 0 (covers the `loss == 0` fallback, which
    # is sum(embeddings * 0) == 0.0 in the reference).
    return jnp.where(count > 0.5, total / jnp.maximum(count, 1.0),
                     jnp.float32(0.0))


# ----------------------------------------------------------------------------
# References (numpy, float64)
# ----------------------------------------------------------------------------
def _reference_circle_loss(emb, labels, batch_size, m=0.4, gamma=80.0):
    """Direct port of the PyTorch forward (explicit NxNxN triplet enumeration)."""
    emb = np.asarray(emb, np.float64)
    labels = np.asarray(labels)
    N = labels.shape[0]
    matches = (labels[:, None] == labels[None, :]).astype(np.int64)
    diffs = 1 - matches
    matches = matches - np.eye(N, dtype=np.int64)
    trip = matches[:, :, None] * diffs[:, None, :]
    a, p, n = np.nonzero(trip)
    fm = ((a % 4 == 0) & (a < batch_size)) | (a > batch_size)
    a, p, n = a[fm], p[fm], n[fm]
    if len(a) == 0:
        return 0.0
    sp = np.sum(emb[a] * emb[p], axis=1)
    sn = np.sum(emb[a] * emb[n], axis=1)
    op, on, dp, dn = 1.0 + m, -m, 1.0 - m, m

    def lse(x):
        mx = np.max(x)
        return mx + np.log(np.sum(np.exp(x - mx)))

    loss = 0.0
    ua = np.unique(a)
    for anc in ua:
        msk = a == anc
        spp, snn = sp[msk], sn[msk]
        ap = np.clip(op - spp, 0.0, None)
        an = np.clip(snn - on, 0.0, None)
        lp = -gamma * ap * (spp - dp)
        ln = gamma * an * (snn - dn)
        z = lse(ln) + lse(lp)
        loss += max(z, 0.0) + np.log(1.0 + np.exp(-abs(z)))
    return loss / len(ua)


def _reference_circle_loss_anchorwise(emb, labels, batch_size, m=0.4, gamma=80.0):
    """Same forward, per-anchor duplicated (p, n) pairs (no NxNxN tensor)."""
    emb = np.asarray(emb, np.float64)
    labels = np.asarray(labels)
    N = labels.shape[0]
    S = emb @ emb.T
    op, on, dp, dn = 1.0 + m, -m, 1.0 - m, m

    def lse(x):
        mx = np.max(x)
        return mx + np.log(np.sum(np.exp(x - mx)))

    losses = []
    idx = np.arange(N)
    for a in range(N):
        if not (((a % 4 == 0) and (a < batch_size)) or (a > batch_size)):
            continue
        pos = idx[(labels == labels[a]) & (idx != a)]
        neg = idx[labels != labels[a]]
        if len(pos) == 0 or len(neg) == 0:
            continue
        sp = np.repeat(S[a, pos], len(neg))
        sn = np.tile(S[a, neg], len(pos))
        ap = np.clip(op - sp, 0.0, None)
        an = np.clip(sn - on, 0.0, None)
        lp = -gamma * ap * (sp - dp)
        ln = gamma * an * (sn - dn)
        z = lse(ln) + lse(lp)
        losses.append(max(z, 0.0) + np.log(1.0 + np.exp(-abs(z))))
    if not losses:
        return 0.0
    return float(np.mean(losses))


if __name__ == "__main__":
    key = jax.random.PRNGKey(0)
    k1, k2 = jax.random.split(key)

    # Tolerances: the TPU MXU may execute the "f32" contraction via bf16
    # passes under default precision, so the f32-path check is kept at 1e-2.

    # ---- Test A: small spec check ----------------------------------------
    N_a, D_a = 16, 32
    bs_a = N_a
    emb_a = jax.random.normal(k1, (N_a, D_a), dtype=jnp.float32) * 0.2
    labels_a = jnp.array([0, 1, 2, 3] * 4, dtype=jnp.int32)
    ref_a = _reference_circle_loss(np.asarray(emb_a), np.asarray(labels_a), bs_a)

    out_a_f32 = jax.block_until_ready(
        circle_loss(emb_a, labels_a, bs_a, use_bf16_mxu=False))
    assert np.allclose(float(out_a_f32), float(ref_a), rtol=1e-2, atol=1e-2), \
        f"f32 mismatch (small): kernel={float(out_a_f32)} ref={float(ref_a)}"

    out_a_bf16 = jax.block_until_ready(
        circle_loss(emb_a, labels_a, bs_a, use_bf16_mxu=True))
    assert np.allclose(float(out_a_bf16), float(ref_a), rtol=4e-2, atol=4e-2), \
        f"bf16 mismatch (small): kernel={float(out_a_bf16)} ref={float(ref_a)}"

    # ---- Test B: default tiles, N not a multiple of the tile -------------
    N_b, D_b = 300, 72
    bs_b = N_b
    emb_b = jax.random.normal(k2, (N_b, D_b), dtype=jnp.float32) * 0.15
    labels_b = (jnp.arange(N_b, dtype=jnp.int32) % 7).astype(jnp.int32)
    ref_b = _reference_circle_loss_anchorwise(
        np.asarray(emb_b), np.asarray(labels_b), bs_b)

    out_b_f32 = jax.block_until_ready(
        circle_loss(emb_b, labels_b, bs_b, use_bf16_mxu=False))
    assert np.allclose(float(out_b_f32), float(ref_b), rtol=1e-2, atol=1e-2), \
        f"f32 mismatch (padded): kernel={float(out_b_f32)} ref={float(ref_b)}"

    out_b_bf16 = jax.block_until_ready(
        circle_loss(emb_b, labels_b, bs_b, use_bf16_mxu=True))
    assert np.allclose(float(out_b_bf16), float(ref_b), rtol=4e-2, atol=4e-2), \
        f"bf16 mismatch (padded): kernel={float(out_b_bf16)} ref={float(ref_b)}"

    # ---- Test C: forced multi row/col tiles (online LSE across tiles) ----
    out_c_f32 = jax.block_until_ready(
        circle_loss(emb_b, labels_b, bs_b, use_bf16_mxu=False,
                    tile_a=128, tile_j=128))
    assert np.allclose(float(out_c_f32), float(ref_b), rtol=1e-2, atol=1e-2), \
        f"f32 mismatch (multi-tile): kernel={float(out_c_f32)} ref={float(ref_b)}"

    print("KERNEL_OK")
</pallas_src>

<mosaic_0001>
module attributes {stable_mosaic.version = 11 : i64} {
  func.func @_circle_loss_kernel(%arg0: i32, %arg1: i32, %arg2: memref<256x128xf32, #tpu.memory_space<vmem>>, %arg3: memref<128x512xf32, #tpu.memory_space<vmem>>, %arg4: memref<256x1xi32, #tpu.memory_space<vmem>>, %arg5: memref<1x512xi32, #tpu.memory_space<vmem>>, %arg6: memref<256x1xf32, #tpu.memory_space<vmem>>, %arg7: memref<256x1xf32, #tpu.memory_space<vmem>>, %arg8: memref<1x8x128xf32, #tpu.memory_space<vmem>>, %arg9: memref<1x8x128xf32, #tpu.memory_space<vmem>>, %arg10: memref<256x1xf32, #tpu.memory_space<vmem>>, %arg11: memref<256x1xf32, #tpu.memory_space<vmem>>, %arg12: memref<256x1xf32, #tpu.memory_space<vmem>>, %arg13: memref<256x1xf32, #tpu.memory_space<vmem>>) attributes {dimension_semantics = [#tpu.dimension_semantics<parallel>, #tpu.dimension_semantics<arbitrary>], iteration_bounds = array<i64: 2, 1>, scalar_prefetch = 0 : i64, scratch_operands = 4 : i64, tpu.core_type = #tpu.core_type<tc>, window_params = [{transform_indices = @transform_0, window_bounds = array<i64: 256, 128>}, {transform_indices = @transform_1, window_bounds = array<i64: 128, 512>}, {transform_indices = @transform_2, window_bounds = array<i64: 256, 1>}, {transform_indices = @transform_3, window_bounds = array<i64: 1, 512>}, {transform_indices = @transform_4, window_bounds = array<i64: 256, 1>}, {transform_indices = @transform_5, window_bounds = array<i64: 256, 1>}, {transform_indices = @transform_6, window_bounds = array<i64: 1, 8, 128>}, {transform_indices = @transform_7, window_bounds = array<i64: 1, 8, 128>}]} {
    %c0_i32 = arith.constant 0 : i32
    %0 = arith.cmpi eq, %arg1, %c0_i32 : i32
    %1 = arith.extui %0 : i1 to i32
    %c0_i32_0 = arith.constant 0 : i32
    %2 = arith.cmpi ne, %1, %c0_i32_0 : i32
    scf.if %2 {
      %cst_41 = arith.constant -1.000000e+30 : f32
      %90 = vector.broadcast %cst_41 : f32 to vector<256x1xf32>
      %c0_42 = arith.constant 0 : index
      %c0_43 = arith.constant 0 : index
      %91 = vector.load %arg10[%c0_42, %c0_43] : memref<256x1xf32, #tpu.memory_space<vmem>>, vector<256x1xf32>
      tpu.vector_store %arg10[%c0_42, %c0_43], %90 {strides = array<i32>} : memref<256x1xf32, #tpu.memory_space<vmem>>, vector<256x1xf32>,
      %cst_44 = arith.constant -1.000000e+30 : f32
      %92 = vector.broadcast %cst_44 : f32 to vector<256x1xf32>
      %c0_45 = arith.constant 0 : index
      %c0_46 = arith.constant 0 : index
      %93 = vector.load %arg12[%c0_45, %c0_46] : memref<256x1xf32, #tpu.memory_space<vmem>>, vector<256x1xf32>
      tpu.vector_store %arg12[%c0_45, %c0_46], %92 {strides = array<i32>} : memref<256x1xf32, #tpu.memory_space<vmem>>, vector<256x1xf32>,
      %cst_47 = arith.constant 0.000000e+00 : f32
      %94 = vector.broadcast %cst_47 : f32 to vector<256x1xf32>
      %c0_48 = arith.constant 0 : index
      %c0_49 = arith.constant 0 : index
      %95 = vector.load %arg11[%c0_48, %c0_49] : memref<256x1xf32, #tpu.memory_space<vmem>>, vector<256x1xf32>
      tpu.vector_store %arg11[%c0_48, %c0_49], %94 {strides = array<i32>} : memref<256x1xf32, #tpu.memory_space<vmem>>, vector<256x1xf32>,
      %cst_50 = arith.constant 0.000000e+00 : f32
      %96 = vector.broadcast %cst_50 : f32 to vector<256x1xf32>
      %c0_51 = arith.constant 0 : index
      %c0_52 = arith.constant 0 : index
      %97 = vector.load %arg13[%c0_51, %c0_52] : memref<256x1xf32, #tpu.memory_space<vmem>>, vector<256x1xf32>
      tpu.vector_store %arg13[%c0_51, %c0_52], %96 {strides = array<i32>} : memref<256x1xf32, #tpu.memory_space<vmem>>, vector<256x1xf32>,
    } else {
    }
    %c0 = arith.constant 0 : index
    %c0_1 = arith.constant 0 : index
    %3 = vector.load %arg2[%c0, %c0_1] : memref<256x128xf32, #tpu.memory_space<vmem>>, vector<256x128xf32>
    %c0_2 = arith.constant 0 : index
    %c0_3 = arith.constant 0 : index
    %4 = vector.load %arg3[%c0_2, %c0_3] : memref<128x512xf32, #tpu.memory_space<vmem>>, vector<128x512xf32>
    %cst = arith.constant dense<0.000000e+00> : vector<256x512xf32>
    %5 = tpu.matmul %3, %4, %cst {dimension_numbers = #tpu.dot_dimension_numbers<[1], [0], [0], [1], [0, 0, 1, 1], [], []>} : vector<256x128xf32>, vector<128x512xf32>, vector<256x512xf32> -> vector<256x512xf32>
    %c256_i32 = arith.constant 256 : i32
    %6 = arith.muli %arg0, %c256_i32 : i32
    %7 = tpu.iota {dimensions = array<i32: 0>} : vector<256x1xi32>
    %8 = vector.broadcast %6 : i32 to vector<256x1xi32>
    %9 = arith.addi %8, %7 : vector<256x1xi32>
    %c512_i32 = arith.constant 512 : i32
    %10 = arith.muli %arg1, %c512_i32 : i32
    %11 = tpu.iota {dimensions = array<i32: 1>} : vector<1x512xi32>
    %12 = vector.broadcast %10 : i32 to vector<1x512xi32>
    %13 = arith.addi %12, %11 : vector<1x512xi32>
    %c16_i32 = arith.constant 16 : i32
    %14 = vector.broadcast %c16_i32 : i32 to vector<1x512xi32>
    %15 = arith.cmpi slt, %13, %14 : vector<1x512xi32>
    %c0_4 = arith.constant 0 : index
    %c0_5 = arith.constant 0 : index
    %16 = vector.load %arg4[%c0_4, %c0_5] : memref<256x1xi32, #tpu.memory_space<vmem>>, vector<256x1xi32>
    %c0_6 = arith.constant 0 : index
    %c0_7 = arith.constant 0 : index
    %17 = vector.load %arg5[%c0_6, %c0_7] : memref<1x512xi32, #tpu.memory_space<vmem>>, vector<1x512xi32>
    %18 = vector.broadcast %16 : vector<256x1xi32> to vector<256x512xi32>
    %19 = vector.broadcast %17 : vector<1x512xi32> to vector<256x512xi32>
    %20 = arith.cmpi eq, %18, %19 : vector<256x512xi32>
    %21 = vector.broadcast %15 : vector<1x512xi1> to vector<256x512xi1>
    %22 = arith.andi %20, %21 : vector<256x512xi1>
    %23 = vector.broadcast %9 : vector<256x1xi32> to vector<256x512xi32>
    %24 = vector.broadcast %13 : vector<1x512xi32> to vector<256x512xi32>
    %25 = arith.cmpi ne, %23, %24 : vector<256x512xi32>
    %26 = arith.andi %22, %25 : vector<256x512xi1>
    %27 = vector.broadcast %15 : vector<1x512xi1> to vector<256x512xi1>
    %28 = arith.xori %22, %27 : vector<256x512xi1>
    %cst_8 = arith.constant 1.400000e+00 : f32
    %29 = vector.broadcast %cst_8 : f32 to vector<256x512xf32>
    %30 = arith.subf %5, %29 : vector<256x512xf32>
    %cst_9 = arith.constant 0.000000e+00 : f32
    %31 = vector.broadcast %cst_9 : f32 to vector<256x512xf32>
    %32 = arith.minimumf %30, %31 : vector<256x512xf32>
    %cst_10 = arith.constant -4.000000e-01 : f32
    %33 = vector.broadcast %cst_10 : f32 to vector<256x512xf32>
    %34 = arith.subf %5, %33 : vector<256x512xf32>
    %cst_11 = arith.constant 0.000000e+00 : f32
    %35 = vector.broadcast %cst_11 : f32 to vector<256x512xf32>
    %36 = arith.maximumf %34, %35 : vector<256x512xf32>
    %37 = arith.select %26, %32, %36 : vector<256x512xi1>, vector<256x512xf32>
    %cst_12 = arith.constant 6.000000e-01 : f32
    %cst_13 = arith.constant 4.000000e-01 : f32
    %38 = vector.broadcast %cst_12 : f32 to vector<256x512xf32>
    %39 = vector.broadcast %cst_13 : f32 to vector<256x512xf32>
    %40 = arith.select %26, %38, %39 : vector<256x512xi1>, vector<256x512xf32>
    %cst_14 = arith.constant 8.000000e+01 : f32
    %41 = vector.broadcast %cst_14 : f32 to vector<256x512xf32>
    %42 = arith.mulf %41, %37 : vector<256x512xf32>
    %43 = arith.subf %5, %40 : vector<256x512xf32>
    %44 = arith.mulf %42, %43 : vector<256x512xf32>
    %cst_15 = arith.constant -1.000000e+30 : f32
    %45 = vector.broadcast %cst_15 : f32 to vector<256x512xf32>
    %46 = arith.select %26, %44, %45 : vector<256x512xi1>, vector<256x512xf32>
    %cst_16 = arith.constant -1.000000e+30 : f32
    %47 = vector.broadcast %cst_16 : f32 to vector<256x512xf32>
    %48 = arith.select %28, %44, %47 : vector<256x512xi1>, vector<256x512xf32>
    %c0_17 = arith.constant 0 : index
    %c0_18 = arith.constant 0 : index
    %49 = vector.load %arg10[%c0_17, %c0_18] : memref<256x1xf32, #tpu.memory_space<vmem>>, vector<256x1xf32>
    %c0_19 = arith.constant 0 : index
    %c0_20 = arith.constant 0 : index
    %50 = vector.load %arg12[%c0_19, %c0_20] : memref<256x1xf32, #tpu.memory_space<vmem>>, vector<256x1xf32>
    %cst_21 = arith.constant dense<0xFF800000> : vector<256xf32>
    %51 = vector.multi_reduction <maximumf>, %46, %cst_21 [1] : vector<256x512xf32> to vector<256xf32>
    %52 = vector.shape_cast %51 : vector<256xf32> to vector<256x1xf32>
    %53 = arith.maximumf %49, %52 : vector<256x1xf32>
    %cst_22 = arith.constant dense<0xFF800000> : vector<256xf32>
    %54 = vector.multi_reduction <maximumf>, %48, %cst_22 [1] : vector<256x512xf32> to vector<256xf32>
    %55 = vector.shape_cast %54 : vector<256xf32> to vector<256x1xf32>
    %56 = arith.maximumf %50, %55 : vector<256x1xf32>
    %57 = vector.shape_cast %53 : vector<256x1xf32> to vector<256x1xf32>
    %58 = vector.broadcast %57 : vector<256x1xf32> to vector<256x512xf32>
    %59 = vector.shape_cast %56 : vector<256x1xf32> to vector<256x1xf32>
    %60 = vector.broadcast %59 : vector<256x1xf32> to vector<256x512xf32>
    %61 = arith.select %26, %58, %60 : vector<256x512xi1>, vector<256x512xf32>
    %62 = arith.select %26, %46, %48 : vector<256x512xi1>, vector<256x512xf32>
    %63 = arith.subf %62, %61 : vector<256x512xf32>
    %64 = math.exp %63 : vector<256x512xf32>
    %cst_23 = arith.constant 0.000000e+00 : f32
    %65 = vector.broadcast %cst_23 : f32 to vector<256x512xf32>
    %66 = arith.select %26, %64, %65 : vector<256x512xi1>, vector<256x512xf32>
    %cst_24 = arith.constant dense<0.000000e+00> : vector<256xf32>
    %67 = vector.multi_reduction <add>, %66, %cst_24 [1] : vector<256x512xf32> to vector<256xf32>
    %68 = vector.shape_cast %67 : vector<256xf32> to vector<256x1xf32>
    %cst_25 = arith.constant 0.000000e+00 : f32
    %69 = vector.broadcast %cst_25 : f32 to vector<256x512xf32>
    %70 = arith.select %28, %64, %69 : vector<256x512xi1>, vector<256x512xf32>
    %cst_26 = arith.constant dense<0.000000e+00> : vector<256xf32>
    %71 = vector.multi_reduction <add>, %70, %cst_26 [1] : vector<256x512xf32> to vector<256xf32>
    %72 = vector.shape_cast %71 : vector<256xf32> to vector<256x1xf32>
    %c0_27 = arith.constant 0 : index
    %c0_28 = arith.constant 0 : index
    %73 = vector.load %arg11[%c0_27, %c0_28] : memref<256x1xf32, #tpu.memory_space<vmem>>, vector<256x1xf32>
    %74 = arith.subf %49, %53 : vector<256x1xf32>
    %75 = math.exp %74 : vector<256x1xf32>
    %76 = arith.mulf %73, %75 : vector<256x1xf32>
    %77 = arith.addf %76, %68 : vector<256x1xf32>
    %c0_29 = arith.constant 0 : index
    %c0_30 = arith.constant 0 : index
    %78 = vector.load %arg11[%c0_29, %c0_30] : memref<256x1xf32, #tpu.memory_space<vmem>>, vector<256x1xf32>
    tpu.vector_store %arg11[%c0_29, %c0_30], %77 {strides = array<i32>} : memref<256x1xf32, #tpu.memory_space<vmem>>, vector<256x1xf32>,
    %c0_31 = arith.constant 0 : index
    %c0_32 = arith.constant 0 : index
    %79 = vector.load %arg13[%c0_31, %c0_32] : memref<256x1xf32, #tpu.memory_space<vmem>>, vector<256x1xf32>
    %80 = arith.subf %50, %56 : vector<256x1xf32>
    %81 = math.exp %80 : vector<256x1xf32>
    %82 = arith.mulf %79, %81 : vector<256x1xf32>
    %83 = arith.addf %82, %72 : vector<256x1xf32>
    %c0_33 = arith.constant 0 : index
    %c0_34 = arith.constant 0 : index
    %84 = vector.load %arg13[%c0_33, %c0_34] : memref<256x1xf32, #tpu.memory_space<vmem>>, vector<256x1xf32>
    tpu.vector_store %arg13[%c0_33, %c0_34], %83 {strides = array<i32>} : memref<256x1xf32, #tpu.memory_space<vmem>>, vector<256x1xf32>,
    %c0_35 = arith.constant 0 : index
    %c0_36 = arith.constant 0 : index
    %85 = vector.load %arg10[%c0_35, %c0_36] : memref<256x1xf32, #tpu.memory_space<vmem>>, vector<256x1xf32>
    tpu.vector_store %arg10[%c0_35, %c0_36], %53 {strides = array<i32>} : memref<256x1xf32, #tpu.memory_space<vmem>>, vector<256x1xf32>,
    %c0_37 = arith.constant 0 : index
    %c0_38 = arith.constant 0 : index
    %86 = vector.load %arg12[%c0_37, %c0_38] : memref<256x1xf32, #tpu.memory_space<vmem>>, vector<256x1xf32>
    tpu.vector_store %arg12[%c0_37, %c0_38], %56 {strides = array<i32>} : memref<256x1xf32, #tpu.memory_space<vmem>>, vector<256x1xf32>,
    %c0_i32_39 = arith.constant 0 : i32
    %87 = arith.cmpi eq, %arg1, %c0_i32_39 : i32
    %88 = arith.extui %87 : i1 to i32
    %c0_i32_40 = arith.constant 0 : i32
    %89 = arith.cmpi ne, %88, %c0_i32_40 : i32
    scf.if %89 {
      %c0_41 = arith.constant 0 : index
      %c0_42 = arith.constant 0 : index
      %90 = vector.load %arg6[%c0_41, %c0_42] : memref<256x1xf32, #tpu.memory_space<vmem>>, vector<256x1xf32>
      %c0_43 = arith.constant 0 : index
      %c0_44 = arith.constant 0 : index
      %91 = vector.load %arg7[%c0_43, %c0_44] : memref<256x1xf32, #tpu.memory_space<vmem>>, vector<256x1xf32>
      %c0_45 = arith.constant 0 : index
      %c0_46 = arith.constant 0 : index
      %92 = vector.load %arg10[%c0_45, %c0_46] : memref<256x1xf32, #tpu.memory_space<vmem>>, vector<256x1xf32>
      %c0_47 = arith.constant 0 : index
      %c0_48 = arith.constant 0 : index
      %93 = vector.load %arg11[%c0_47, %c0_48] : memref<256x1xf32, #tpu.memory_space<vmem>>, vector<256x1xf32>
      %cst_49 = arith.constant 1.000000e-30 : f32
      %94 = vector.broadcast %cst_49 : f32 to vector<256x1xf32>
      %95 = arith.maximumf %93, %94 : vector<256x1xf32>
      %96 = math.log %95 : vector<256x1xf32>
      %97 = arith.addf %92, %96 : vector<256x1xf32>
      %cst_50 = arith.constant 1.000000e+00 : f32
      %98 = vector.broadcast %cst_50 : f32 to vector<256x1xf32>
      %99 = arith.maximumf %91, %98 : vector<256x1xf32>
      %100 = math.log %99 : vector<256x1xf32>
      %101 = arith.addf %97, %100 : vector<256x1xf32>
      %c0_51 = arith.constant 0 : index
      %c0_52 = arith.constant 0 : index
      %102 = vector.load %arg12[%c0_51, %c0_52] : memref<256x1xf32, #tpu.memory_space<vmem>>, vector<256x1xf32>
      %c0_53 = arith.constant 0 : index
      %c0_54 = arith.constant 0 : index
      %103 = vector.load %arg13[%c0_53, %c0_54] : memref<256x1xf32, #tpu.memory_space<vmem>>, vector<256x1xf32>
      %cst_55 = arith.constant 1.000000e-30 : f32
      %104 = vector.broadcast %cst_55 : f32 to vector<256x1xf32>
      %105 = arith.maximumf %103, %104 : vector<256x1xf32>
      %106 = math.log %105 : vector<256x1xf32>
      %107 = arith.addf %102, %106 : vector<256x1xf32>
      %cst_56 = arith.constant 1.000000e+00 : f32
      %108 = vector.broadcast %cst_56 : f32 to vector<256x1xf32>
      %109 = arith.maximumf %90, %108 : vector<256x1xf32>
      %110 = math.log %109 : vector<256x1xf32>
      %111 = arith.addf %107, %110 : vector<256x1xf32>
      %112 = arith.addf %101, %111 : vector<256x1xf32>
      %cst_57 = arith.constant 0.000000e+00 : f32
      %113 = vector.broadcast %cst_57 : f32 to vector<256x1xf32>
      %114 = arith.maximumf %112, %113 : vector<256x1xf32>
      %115 = math.absf %112 : vector<256x1xf32>
      %cst_58 = arith.constant 0.000000e+00 : f32
      %116 = vector.broadcast %cst_58 : f32 to vector<256x1xf32>
      %117 = arith.subf %116, %115 : vector<256x1xf32>
      %118 = math.exp %117 : vector<256x1xf32>
      %cst_59 = arith.constant 1.000000e+00 : f32
      %119 = vector.broadcast %cst_59 : f32 to vector<256x1xf32>
      %120 = arith.addf %119, %118 : vector<256x1xf32>
      %121 = math.log %120 : vector<256x1xf32>
      %122 = arith.addf %114, %121 : vector<256x1xf32>
      %c4_i32 = arith.constant 4 : i32
      %c0_i32_60 = arith.constant 0 : i32
      %123 = arith.cmpi eq, %c4_i32, %c0_i32_60 : i32
      %c1_i32 = arith.constant 1 : i32
      %124 = arith.select %123, %c1_i32, %c4_i32 : i32
      %125 = vector.broadcast %124 : i32 to vector<256x1xi32>
      %126 = arith.remsi %9, %125 : vector<256x1xi32>
      %c0_i32_61 = arith.constant 0 : i32
      %127 = vector.broadcast %c0_i32_61 : i32 to vector<256x1xi32>
      %128 = arith.cmpi ne, %126, %127 : vector<256x1xi32>
      %c0_i32_62 = arith.constant 0 : i32
      %129 = vector.broadcast %c0_i32_62 : i32 to vector<256x1xi32>
      %130 = arith.cmpi slt, %126, %129 : vector<256x1xi32>
      %c0_i32_63 = arith.constant 0 : i32
      %131 = arith.cmpi slt, %124, %c0_i32_63 : i32
      %132 = vector.broadcast %131 : i1 to vector<256x1xi1>
      %133 = vector.broadcast %132 : vector<256x1xi1> to vector<256x1xi1>
      %134 = arith.xori %130, %133 : vector<256x1xi1>
      %135 = arith.andi %134, %128 : vector<256x1xi1>
      %136 = vector.broadcast %124 : i32 to vector<256x1xi32>
      %137 = arith.addi %126, %136 : vector<256x1xi32>
      %138 = arith.select %135, %137, %126 : vector<256x1xi1>, vector<256x1xi32>
      %c0_i32_64 = arith.constant 0 : i32
      %139 = vector.broadcast %c0_i32_64 : i32 to vector<256x1xi32>
      %140 = arith.cmpi eq, %138, %139 : vector<256x1xi32>
      %c16_i32_65 = arith.constant 16 : i32
      %141 = vector.broadcast %c16_i32_65 : i32 to vector<256x1xi32>
      %142 = arith.cmpi slt, %9, %141 : vector<256x1xi32>
      %143 = arith.andi %140, %142 : vector<256x1xi1>
      %c16_i32_66 = arith.constant 16 : i32
      %144 = vector.broadcast %c16_i32_66 : i32 to vector<256x1xi32>
      %145 = arith.cmpi sgt, %9, %144 : vector<256x1xi32>
      %146 = arith.ori %143, %145 : vector<256x1xi1>
      %c16_i32_67 = arith.constant 16 : i32
      %147 = vector.broadcast %c16_i32_67 : i32 to vector<256x1xi32>
      %148 = arith.cmpi slt, %9, %147 : vector<256x1xi32>
      %149 = arith.andi %146, %148 : vector<256x1xi1>
      %cst_68 = arith.constant 5.000000e-01 : f32
      %150 = vector.broadcast %cst_68 : f32 to vector<256x1xf32>
      %151 = arith.cmpf ogt, %90, %150 : vector<256x1xf32>
      %cst_69 = arith.constant 5.000000e-01 : f32
      %152 = vector.broadcast %cst_69 : f32 to vector<256x1xf32>
      %153 = arith.cmpf ogt, %91, %152 : vector<256x1xf32>
      %154 = arith.andi %151, %153 : vector<256x1xi1>
      %155 = arith.andi %149, %154 : vector<256x1xi1>
      %cst_70 = arith.constant 0.000000e+00 : f32
      %156 = vector.broadcast %cst_70 : f32 to vector<256x1xf32>
      %157 = arith.select %155, %122, %156 : vector<256x1xi1>, vector<256x1xf32>
      %158 = vector.shape_cast %157 : vector<256x1xf32> to vector<1x256x1xf32>
      %cst_71 = arith.constant dense<0.000000e+00> : vector<1xf32>
      %159 = vector.multi_reduction <add>, %158, %cst_71 [1, 2] : vector<1x256x1xf32> to vector<1xf32>
      %160 = vector.shape_cast %159 : vector<1xf32> to vector<1x1x1xf32>
      %161 = vector.extract %160[0, 0, 0] : f32 from vector<1x1x1xf32>
      %162 = arith.extui %155 : vector<256x1xi1> to vector<256x1xi32>
      %163 = arith.sitofp %162 : vector<256x1xi32> to vector<256x1xf32>
      %164 = vector.shape_cast %163 : vector<256x1xf32> to vector<1x256x1xf32>
      %cst_72 = arith.constant dense<0.000000e+00> : vector<1xf32>
      %165 = vector.multi_reduction <add>, %164, %cst_72 [1, 2] : vector<1x256x1xf32> to vector<1xf32>
      %166 = vector.shape_cast %165 : vector<1xf32> to vector<1x1x1xf32>
      %167 = vector.extract %166[0, 0, 0] : f32 from vector<1x1x1xf32>
      %168 = vector.broadcast %161 : f32 to vector<1x8x128xf32>
      %c0_73 = arith.constant 0 : index
      %c0_74 = arith.constant 0 : index
      %c0_75 = arith.constant 0 : index
      %169 = vector.load %arg8[%c0_73, %c0_74, %c0_75] : memref<1x8x128xf32, #tpu.memory_space<vmem>>, vector<1x8x128xf32>
      tpu.vector_store %arg8[%c0_73, %c0_74, %c0_75], %168 {strides = array<i32>} : memref<1x8x128xf32, #tpu.memory_space<vmem>>, vector<1x8x128xf32>,
      %170 = vector.broadcast %167 : f32 to vector<1x8x128xf32>
      %c0_76 = arith.constant 0 : index
      %c0_77 = arith.constant 0 : index
      %c0_78 = arith.constant 0 : index
      %171 = vector.load %arg9[%c0_76, %c0_77, %c0_78] : memref<1x8x128xf32, #tpu.memory_space<vmem>>, vector<1x8x128xf32>
      tpu.vector_store %arg9[%c0_76, %c0_77, %c0_78], %170 {strides = array<i32>} : memref<1x8x128xf32, #tpu.memory_space<vmem>>, vector<1x8x128xf32>,
    } else {
    }
    return
  }
  func.func @transform_0(%arg0: i32, %arg1: i32) -> (i32, i32) {
    %c0_i32 = arith.constant 0 : i32
    %c0_i32_0 = arith.constant 0 : i32
    return %arg0, %c0_i32 : i32, i32
  }
  func.func @transform_1(%arg0: i32, %arg1: i32) -> (i32, i32) {
    %c0_i32 = arith.constant 0 : i32
    %c0_i32_0 = arith.constant 0 : i32
    return %c0_i32, %arg1 : i32, i32
  }
  func.func @transform_2(%arg0: i32, %arg1: i32) -> (i32, i32) {
    %c0_i32 = arith.constant 0 : i32
    %c0_i32_0 = arith.constant 0 : i32
    return %arg0, %c0_i32 : i32, i32
  }
  func.func @transform_3(%arg0: i32, %arg1: i32) -> (i32, i32) {
    %c0_i32 = arith.constant 0 : i32
    %c0_i32_0 = arith.constant 0 : i32
    return %c0_i32, %arg1 : i32, i32
  }
  func.func @transform_4(%arg0: i32, %arg1: i32) -> (i32, i32) {
    %c0_i32 = arith.constant 0 : i32
    %c0_i32_0 = arith.constant 0 : i32
    return %arg0, %c0_i32 : i32, i32
  }
  func.func @transform_5(%arg0: i32, %arg1: i32) -> (i32, i32) {
    %c0_i32 = arith.constant 0 : i32
    %c0_i32_0 = arith.constant 0 : i32
    return %arg0, %c0_i32 : i32, i32
  }
  func.func @transform_6(%arg0: i32, %arg1: i32) -> (i32, i32, i32) {
    %c0_i32 = arith.constant 0 : i32
    %c0_i32_0 = arith.constant 0 : i32
    %c0_i32_1 = arith.constant 0 : i32
    return %arg0, %c0_i32, %c0_i32_0 : i32, i32, i32
  }
  func.func @transform_7(%arg0: i32, %arg1: i32) -> (i32, i32, i32) {
    %c0_i32 = arith.constant 0 : i32
    %c0_i32_0 = arith.constant 0 : i32
    %c0_i32_1 = arith.constant 0 : i32
    return %arg0, %c0_i32, %c0_i32_0 : i32, i32, i32
  }
}

</mosaic_0001>

<bundles_post_ra>
// kernel: tpu_custom_call.1
= control target key start
LH: loop header
LB: loop body
LE: loop exit
PB: predicated region body
PF: predicated region fallthrough
CT: control target
= control target key end

     0   :  { %s17013_s0 = inlined_call_operand.vmem [shape: f32[512,128], index: 0, kind: input, shape index: {}]   ;;  %s17014_s1 = inlined_call_operand.vmem [shape: f32[128,512], index: 1, kind: input, shape index: {}]   ;;  %s17015_s2 = inlined_call_operand.vmem [shape: s32[512,1], index: 2, kind: input, shape index: {}]   ;;  %s17016_s3 = inlined_call_operand.vmem [shape: s32[1,512], index: 3, kind: input, shape index: {}]   ;;  %s17017_s4 = inlined_call_operand.vmem [shape: f32[512,1], index: 4, kind: input, shape index: {}]   ;;  %s17018_s5 = inlined_call_operand.vmem [shape: f32[512,1], index: 5, kind: input, shape index: {}]   ;;  %s17019_s6 = inlined_call_operand.hbm [shape: f32[2,8,128], index: 6, kind: output, shape index: {0}]   ;;  %s17020_s7 = inlined_call_operand.hbm [shape: f32[2,8,128], index: 7, kind: output, shape index: {1}]  }
   0x1   :  { %17698 = sst [smem:[#allocation273_spill]] %s17013_s0 }
   0x2   :  { %17699 = sst [smem:[#allocation274_spill]] %s17014_s1 }
   0x3   :  { %17700 = sst [smem:[#allocation275_spill]] %s17015_s2 }
   0x4   :  { %13 = vsyncpa [#allocation7], 0 }
   0x5   :  { %15 = vsyncpa [#allocation7 + $0x1], 0 }
   0x6   :  { %16 = vsyncpa [#allocation9], 0 }
   0x7   :  { %18 = vsyncpa [#allocation9 + $0x1], 0  ;;  %s9505_s24 = smov 0   ;;  %s9507_s25 = smov 0  }
   0x8   :  { %s9509_s26 = smov 0   ;;  %s9511_s27 = smov 0  }
   0x9   :  { %s9513_s28 = smov 0   ;;  %s9515_s29 = smov 0  }
   0xa LB: > { %s8101_s30 = sadd.s32 4294967295, %s9457_s29   ;;  %s8102_s8 = sadd.s32 4294967294, %s9457_s29   ;;  %s9457_s29 = sphi %s9515_s29, %s24_s29   ;;  %s9453_s28 = sphi %s9513_s28, %s20141_s28   ;;  %s9449_s27 = sphi %s9511_s27, %s20140_s27   ;;  %s9445_s26 = sphi %s9509_s26, %s20139_s26   ;;  %s9441_s25 = sphi %s9507_s25, %s20138_s25   ;;  %s9437_s24 = sphi %s9505_s24, %s20137_s24  }
   0xb   : > { %s36_s9 = sadd.s32 1, %s9453_s28  ;;  %s199_s10 = sadd.s32 1, %s9445_s26 }
   0xc   : > { %p38_p0 = scmp.ge.s32.totalorder %s36_s9, 2  ;;  %p209_p1 = scmp.ne.s32.totalorder %s9445_s26, %s9441_s25 }
   0xd   : > { %p210_p2 = scmp.eq.s32.totalorder %s8101_s30, 1  ;;  %p215_p3 = scmp.ne.s32.totalorder %s9441_s25, %s9437_s24 }
   0xe   : > { %s20143_s9 = smov (%p38_p0, %s36_s9), 0  ;;  %p216_p5 = scmp.eq.s32.totalorder %s8102_s8, 1 }
   0xf   : > { %p9545_p4 = por %p210_p2, %p209_p1  ;;  %s196_s12 = ssub.s32 %s9453_s28, %s20143_s9 }
  0x10   : > { %p8107_p6 = scmp.ge.s32.totalorder %s9457_s29, 1  ;;  %p197_p7 = scmp.eq.s32.totalorder %s196_s12, 0 }
  0x11   : > { %p9552_p8 = por %p216_p5, %p215_p3  ;;  %p313_p9 = scmp.lt.s32.totalorder %s9457_s29, 3 }
  0x12   : > { %s9558_s14 = scalar_select %p197_p7, %s9445_s26, %s199_s10  }
  0x13   : > { %p314_p10 = pnand %p8107_p6, %p313_p9 }
  0x15   : > { %317 = sbr.rel (%p314_p10) target bundleno = 1507 (0x5e3), region = 44 }
  0x1c   : > { %s17703_s1 = sld [smem:[#allocation274_spill]]  ;;  %s8110_s21 = sshll.u32 %s9449_s27, 5  ;;  %v17050_v7 = vmov 0.0   ;;  %v9460_v8 = vmov 0   ;;  %vm17025_vm0 = vcmask 7168   ;;  %v1153_v61 = vlaneseq }
  0x1d   : > { %702 = vmatprep.mubr.f32.mxu0 %v17050_v7  ;;  %p9580_p11 = scmp.lt.s32.totalorder %s8110_s21, 63  ;;  %8673 = vset.pattern.permute.xlu0 %v9460_v8  ;;  %s17705_s2 = sld [smem:[#allocation275_spill]]  ;;  %478 = vst.msk [vmem:[#allocation3] sm:$0xff] %vm17025_vm0, %v17050_v7  ;;  %479 = vst.msk [vmem:[#allocation3 + $0x8] sm:$0xff] %vm17025_vm0, %v17050_v7 }
  0x1e   : > { %8674 = vset.pattern.permute.xlu1 %v9460_v8  ;;  %959 = vmatprep.mubr.f32.mxu1 %v17050_v7  ;;  %s17706_s0 = sld [smem:[#allocation273_spill]]  ;;  %s8118_s18 = sshll.u32 %s9449_s27, 8  ;;  %480 = vst.msk [vmem:[#allocation3 + $0x10] sm:$0xff] %vm17025_vm0, %v17050_v7  ;;  %481 = vst.msk [vmem:[#allocation3 + $0x18] sm:$0xff] %vm17025_vm0, %v17050_v7 }
  0x1f   : > { %s20145_s21 = smov (!%p9580_p11, %s8110_s21), 63  ;;  %482 = vst.msk [vmem:[#allocation3 + $0x20] sm:$0xff] %vm17025_vm0, %v17050_v7  ;;  %483 = vst.msk [vmem:[#allocation3 + $0x28] sm:$0xff] %vm17025_vm0, %v17050_v7  ;;  %s8537_s30 = sshll.u32 %s9449_s27, 7 }
  0x20   : > { %s9617_s15 = sshll.u32 %s20145_s21, 3  ;;  %484 = vst.msk [vmem:[#allocation3 + $0x30] sm:$0xff] %vm17025_vm0, %v17050_v7  ;;  %485 = vst.msk [vmem:[#allocation3 + $0x38] sm:$0xff] %vm17025_vm0, %v17050_v7  ;;  %s16938_s10 = scalar_lea.hbm %s17019_s6, %s8537_s30 }
  0x21   : > { %486 = vst.msk [vmem:[#allocation3 + $0x40] sm:$0xff] %vm17025_vm0, %v17050_v7  ;;  %487 = vst.msk [vmem:[#allocation3 + $0x48] sm:$0xff] %vm17025_vm0, %v17050_v7  ;;  %s9852_s22 = scalar_lea.vmem %s17017_s4, %s9617_s15  ;;  %s9861_s8 = scalar_lea.vmem %s17018_s5, %s9617_s15 }
  0x22   : > { %v575_v0 = vld [vmem:[%s17703_s1 + $0x8] sm:$0xff]  ;;  %v574_v2 = vld [vmem:[%s17703_s1] sm:$0xff]  ;;  %488 = vst.msk [vmem:[#allocation3 + $0x50] sm:$0xff] %vm17025_vm0, %v17050_v7  ;;  %489 = vst.msk [vmem:[#allocation3 + $0x58] sm:$0xff] %vm17025_vm0, %v17050_v7 }
  0x23   : > { %v579_v1 = vld [vmem:[%s17703_s1 + $0x28] sm:$0xff]  ;;  %v578_v4 = vld [vmem:[%s17703_s1 + $0x20] sm:$0xff]  ;;  %s9629_s20 = scalar_lea.vmem %s17705_s2, %s9617_s15  ;;  %490 = vst.msk [vmem:[#allocation3 + $0x60] sm:$0xff] %vm17025_vm0, %v17050_v7  ;;  %491 = vst.msk [vmem:[#allocation3 + $0x68] sm:$0xff] %vm17025_vm0, %v17050_v7 }
  0x24   : > { %v8541_v3 = vpack.c.bf16 %v579_v1, %v575_v0  ;;  %v583_v5 = vld [vmem:[%s17703_s1 + $0x48] sm:$0xff]  ;;  %v8543_v9 = vpack.c.bf16 %v578_v4, %v574_v2  ;;  %v582_v11 = vld [vmem:[%s17703_s1 + $0x40] sm:$0xff]  ;;  %v1236_v34 = vld [vmem:[%s9629_s20 + $0x10] sm:$0xff]  ;;  %s9687_s17 = scalar_lea.vmem %s17706_s0, %s9617_s15  ;;  %v9699_v0 = vstv %s8118_s18  ;;  %492 = vst.msk [vmem:[#allocation3 + $0x70] sm:$0xff] %vm17025_vm0, %v17050_v7  ;;  %v9830_v1 = vshrl.u32 %v1153_v61, 7  ;;  %s16945_s0 = scalar_lea.hbm %s17020_s7, %s8537_s30 }
  0x25   : > { %v587_v6 = vld [vmem:[%s17703_s1 + $0x68] sm:$0xff]  ;;  %v586_v12 = vld [vmem:[%s17703_s1 + $0x60] sm:$0xff]  ;;  %1274 = vperm.xlu1 %8674, %v1236_v34   ;;  %v1237_v37 = vld [vmem:[%s9629_s20 + $0x18] sm:$0xff]  ;;  %493 = vst.msk [vmem:[#allocation3 + $0x78] sm:$0xff] %vm17025_vm0, %v17050_v7 }
  0x26   : > { %v8545_v10 = vpack.c.bf16 %v587_v6, %v583_v5  ;;  %v591_v13 = vld [vmem:[%s17703_s1 + $0x88] sm:$0xff]  ;;  %8542 = vmatprep.subr.bf16.mxu0 %v8541_v3  ;;  %v8547_v15 = vpack.c.bf16 %v586_v12, %v582_v11  ;;  %v590_v17 = vld [vmem:[%s17703_s1 + $0x80] sm:$0xff]  ;;  %v1240_v51 = vld [vmem:[%s9629_s20 + $0x30] sm:$0xff]  ;;  %494 = vst.msk [vmem:[#allocation3 + $0x80] sm:$0xff] %vm17025_vm0, %v17050_v7  ;;  %v9838_v3 = vadd.s32 %v9699_v0, %v9830_v1  ;;  %v1155_v6 = vadd.s32 8, %v9830_v1 }
  0x27   : > { %v595_v14 = vld [vmem:[%s17703_s1 + $0xa8] sm:$0xff]  ;;  %8544 = vmatpush1.bf16.msra.mxu0 %v8543_v9  ;;  %v594_v18 = vld [vmem:[%s17703_s1 + $0xa0] sm:$0xff]  ;;  %v1241_v53 = vld [vmem:[%s9629_s20 + $0x38] sm:$0xff]  ;;  %495 = vst.msk [vmem:[#allocation3 + $0x88] sm:$0xff] %vm17025_vm0, %v17050_v7  ;;  %v1156_v12 = vadd.s32 16, %v9830_v1 }
  0x28   : > { %8546 = vmatprep.subr.bf16.mxu0 %v8545_v10  ;;  %v8549_v16 = vpack.c.bf16 %v595_v14, %v591_v13  ;;  %v599_v19 = vld [vmem:[%s17703_s1 + $0xc8] sm:$0xff]  ;;  %v8551_v21 = vpack.c.bf16 %v594_v18, %v590_v17  ;;  %v598_v23 = vld [vmem:[%s17703_s1 + $0xc0] sm:$0xff]  ;;  %v9690_v60 = vld [vmem:[%s9629_s20 + $0x50] sm:$0xff]  ;;  %496 = vst.msk [vmem:[#allocation3 + $0x90] sm:$0xff] %vm17025_vm0, %v17050_v7  ;;  %v6960_v8 = vsub.s32 0, %v9838_v3  ;;  %v9846_v9 = vadd.s32 %v9699_v0, %v1155_v6 }
  0x29   : > { %v603_v20 = vld [vmem:[%s17703_s1 + $0xe8] sm:$0xff]  ;;  %v602_v24 = vld [vmem:[%s17703_s1 + $0xe0] sm:$0xff]  ;;  %1277 = vperm.xlu1 %8674, %v1237_v37   ;;  %v9697_v63 = vld [vmem:[%s9629_s20 + $0x58] sm:$0xff]  ;;  %497 = vst.msk [vmem:[#allocation3 + $0x98] sm:$0xff] %vm17025_vm0, %v17050_v7  ;;  %v9868_v17 = vadd.s32 %v9699_v0, %v1156_v12  ;;  %vm6959_vm1 = vcmp.lt.s32.totalorder %v9838_v3, 0  ;;  %vm7375_vm10 = vcmp.lt.s32.totalorder %v9838_v3, 16 }
  0x2a   : > { %v8553_v22 = vpack.c.bf16 %v603_v20, %v599_v19  ;;  %v607_v25 = vld [vmem:[%s17703_s1 + $0x108] sm:$0xff]  ;;  %v8555_v27 = vpack.c.bf16 %v602_v24, %v598_v23  ;;  %v606_v29 = vld [vmem:[%s17703_s1 + $0x100] sm:$0xff]  ;;  %498 = vst.msk [vmem:[#allocation3 + $0xa0] sm:$0xff] %vm17025_vm0, %v17050_v7  ;;  %499 = vst.msk [vmem:[#allocation3 + $0xa8] sm:$0xff] %vm17025_vm0, %v17050_v7  ;;  %v8471_v11 = vmin.u32 %v6960_v8, %v9838_v3  ;;  %vm6966_vm6 = vcmp.lt.s32.totalorder %v9846_v9, 0 }
  0x2b   : > { %8548 = vmatpush1.bf16.msra.mxu0 %v8547_v15  ;;  %v611_v26 = vld [vmem:[%s17703_s1 + $0x128] sm:$0xff]  ;;  %v610_v30 = vld [vmem:[%s17703_s1 + $0x120] sm:$0xff]  ;;  %500 = vst.msk [vmem:[#allocation3 + $0xb0] sm:$0xff] %vm17025_vm0, %v17050_v7  ;;  %501 = vst.msk [vmem:[#allocation3 + $0xb8] sm:$0xff] %vm17025_vm0, %v17050_v7  ;;  %v6967_v15 = vsub.s32 0, %v9846_v9  ;;  %vm7439_vm11 = vcmp.gt.s32.totalorder %v9838_v3, 16 }
  0x2c   : > { %8550 = vmatprep.subr.bf16.mxu0 %v8549_v16  ;;  %v8557_v28 = vpack.c.bf16 %v611_v26, %v607_v25  ;;  %v1234_v31 = vld [vmem:[%s9629_s20] sm:$0xff]  ;;  %v615_v32 = vld [vmem:[%s17703_s1 + $0x148] sm:$0xff]  ;;  %v8559_v36 = vpack.c.bf16 %v610_v30, %v606_v29  ;;  %502 = vst.msk [vmem:[#allocation3 + $0xc0] sm:$0xff] %vm17025_vm0, %v17050_v7  ;;  %503 = vst.msk [vmem:[#allocation3 + $0xc8] sm:$0xff] %vm17025_vm0, %v17050_v7  ;;  %v6963_v16 = vand.u32 3, %v8471_v11  ;;  %v6974_v25 = vsub.s32 0, %v9868_v17 }
  0x2d   : > { %v619_v33 = vld [vmem:[%s17703_s1 + $0x168] sm:$0xff]  ;;  %1268 = vperm.xlu0 %8673, %v1234_v31   ;;  %v614_v39 = vld [vmem:[%s17703_s1 + $0x140] sm:$0xff]  ;;  %504 = vst.msk [vmem:[#allocation3 + $0xd0] sm:$0xff] %vm17025_vm0, %v17050_v7  ;;  %505 = vst.msk [vmem:[#allocation3 + $0xd8] sm:$0xff] %vm17025_vm0, %v17050_v7  ;;  %v8472_v20 = vmin.u32 %v6967_v15, %v9846_v9  ;;  %v1158_v31 = vadd.s32 32, %v9830_v1  ;;  %vm6973_vm15 = vcmp.lt.s32.totalorder %v9868_v17, 0 }
  0x2e   : > { %v1235_v35 = vld [vmem:[%s9629_s20 + $0x8] sm:$0xff]  ;;  %v8561_v38 = vpack.c.bf16 %v619_v33, %v615_v32  ;;  %v618_v40 = vld [vmem:[%s17703_s1 + $0x160] sm:$0xff]  ;;  %506 = vst.msk [vmem:[#allocation3 + $0xe0] sm:$0xff] %vm17025_vm0, %v17050_v7  ;;  %507 = vst.msk [vmem:[#allocation3 + $0xe8] sm:$0xff] %vm17025_vm0, %v17050_v7  ;;  %v8473_v30 = vmin.u32 %v6974_v25, %v9868_v17  ;;  %v17723_v15 = vmov 0 }
  0x2f   : > { %8552 = vmatpush1.bf16.msra.mxu0 %v8551_v21  ;;  %v623_v41 = vld [vmem:[%s17703_s1 + $0x188] sm:$0xff]  ;;  %v1238_v43 = vld [vmem:[%s9629_s20 + $0x20] sm:$0xff]  ;;  %v8563_v44 = vpack.c.bf16 %v618_v40, %v614_v39  ;;  %508 = vst.msk [vmem:[#allocation3 + $0xf0] sm:$0xff] %vm17025_vm0, %v17050_v7  ;;  %509 = vst.msk [vmem:[#allocation3 + $0xf8] sm:$0xff] %vm17025_vm0, %v17050_v7  ;;  %v17707_v39 = vmov 0 }
  0x30   : > { %8554 = vmatprep.subr.bf16.mxu0 %v8553_v22  ;;  %v627_v42 = vld [vmem:[%s17703_s1 + $0x1a8] sm:$0xff]  ;;  %v622_v47 = vld [vmem:[%s17703_s1 + $0x180] sm:$0xff]  ;;  %510 = vst.msk [vmem:[#allocation5] sm:$0xff] %vm17025_vm0, %v17050_v7  ;;  %511 = vst.msk [vmem:[#allocation5 + $0x8] sm:$0xff] %vm17025_vm0, %v17050_v7  ;;  %v6964_v22 = vsub.s32 0, %v6963_v16 }
  0x31   : > { %1271 = vperm.xlu0 %8673, %v1235_v35   ;;  %v1239_v45 = vld [vmem:[%s9629_s20 + $0x28] sm:$0xff]  ;;  %v8565_v46 = vpack.c.bf16 %v627_v42, %v623_v41  ;;  %v626_v48 = vld [vmem:[%s17703_s1 + $0x1a0] sm:$0xff]  ;;  %512 = vst.msk [vmem:[#allocation5 + $0x10] sm:$0xff] %vm17025_vm0, %v17050_v7  ;;  %513 = vst.msk [vmem:[#allocation5 + $0x18] sm:$0xff] %vm17025_vm0, %v17050_v7  ;;  %v6977_v35 = vand.u32 3, %v8473_v30  ;;  %v17710_v41 = vmov 0  ;;  %v9908_v42 = vadd.s32 %v9699_v0, %v1158_v31 }
  0x32   : > { %v631_v49 = vld [vmem:[%s17703_s1 + $0x1c8] sm:$0xff]  ;;  %1283 = vperm.xlu1 %8674, %v1239_v45   ;;  %v8567_v52 = vpack.c.bf16 %v626_v48, %v622_v47  ;;  %v630_v55 = vld [vmem:[%s17703_s1 + $0x1c0] sm:$0xff]  ;;  %514 = vst.msk [vmem:[#allocation5 + $0x20] sm:$0xff] %vm17025_vm0, %v17050_v7  ;;  %515 = vst.msk [vmem:[#allocation5 + $0x28] sm:$0xff] %vm17025_vm0, %v17050_v7  ;;  %v6965_v29 = vsel %vm6959_vm1, %v6964_v22, %v6963_v16 }
  0x33   : > { %8556 = vmatpush1.bf16.msra.mxu0 %v8555_v27  ;;  %v635_v50 = vld [vmem:[%s17703_s1 + $0x1e8] sm:$0xff]  ;;  %v634_v56 = vld [vmem:[%s17703_s1 + $0x1e0] sm:$0xff]  ;;  %516 = vst.msk [vmem:[#allocation5 + $0x30] sm:$0xff] %vm17025_vm0, %v17050_v7  ;;  %517 = vst.msk [vmem:[#allocation5 + $0x38] sm:$0xff] %vm17025_vm0, %v17050_v7  ;;  %vm7183_vm7 = vcmp.ne.s32.totalorder %v6965_v29, 0  ;;  %vm7215_vm8 = vcmp.lt.s32.totalorder %v6965_v29, 0 }
  0x34   : > { %8558 = vmatprep.subr.bf16.mxu0 %v8557_v28  ;;  %v8569_v54 = vpack.c.bf16 %v635_v50, %v631_v49  ;;  %v1242_v57 = vld [vmem:[%s9629_s20 + $0x40] sm:$0xff]  ;;  %v8571_v58 = vpack.c.bf16 %v634_v56, %v630_v55  ;;  %v1243_v59 = vld [vmem:[%s9629_s20 + $0x48] sm:$0xff]  ;;  %518 = vst.msk [vmem:[#allocation5 + $0x40] sm:$0xff] %vm17025_vm0, %v17050_v7  ;;  %519 = vst.msk [vmem:[#allocation5 + $0x48] sm:$0xff] %vm17025_vm0, %v17050_v7  ;;  %v6970_v28 = vand.u32 3, %v8472_v20  ;;  %v7279_v32 = vadd.s32 4, %v6965_v29 }
  0x35   : > { %1280 = vperm.xlu0 %8673, %v1238_v43   ;;  %v9694_v62 = vld [vmem:[%s9687_s17] sm:$0xff]  ;;  %520 = vst.msk [vmem:[#allocation5 + $0x50] sm:$0xff] %vm17025_vm0, %v17050_v7  ;;  %521 = vst.msk [vmem:[#allocation5 + $0x58] sm:$0xff] %vm17025_vm0, %v17050_v7  ;;  %v543_v4 = vld [vmem:[%s9687_s17 + $0x8] sm:$0xff]  ;;  %v6988_v48 = vsub.s32 0, %v9908_v42  ;;  %v1157_v49 = vadd.s32 24, %v9830_v1 }
  0x36   : > { %1289 = vperm.xlu1 %8674, %v1241_v53   ;;  %522 = vst.msk [vmem:[#allocation5 + $0x60] sm:$0xff] %vm17025_vm0, %v17050_v7  ;;  %523 = vst.msk [vmem:[#allocation5 + $0x68] sm:$0xff] %vm17025_vm0, %v17050_v7  ;;  %v1246_v2 = vld [vmem:[%s9629_s20 + $0x60] sm:$0xff]  ;;  %v1247_v5 = vld [vmem:[%s9629_s20 + $0x68] sm:$0xff]  ;;  %v6971_v33 = vsub.s32 0, %v6970_v28 }
  0x37   : > { %8560 = vmatpush1.bf16.msra.mxu0 %v8559_v36  ;;  %524 = vst.msk [vmem:[#allocation5 + $0x70] sm:$0xff] %vm17025_vm0, %v17050_v7  ;;  %525 = vst.msk [vmem:[#allocation5 + $0x78] sm:$0xff] %vm17025_vm0, %v17050_v7  ;;  %v1248_v10 = vld [vmem:[%s9629_s20 + $0x70] sm:$0xff]  ;;  %v1249_v14 = vld [vmem:[%s9629_s20 + $0x78] sm:$0xff]  ;;  %v8475_v55 = vmin.u32 %v6988_v48, %v9908_v42 }
  0x38   : > { %8562 = vmatprep.subr.bf16.mxu0 %v8561_v38  ;;  %526 = vst.msk [vmem:[#allocation5 + $0x80] sm:$0xff] %vm17025_vm0, %v17050_v7  ;;  %527 = vst.msk [vmem:[#allocation5 + $0x88] sm:$0xff] %vm17025_vm0, %v17050_v7  ;;  %v544_v13 = vld [vmem:[%s9687_s17 + $0x10] sm:$0xff]  ;;  %v1250_v18 = vld [vmem:[%s9629_s20 + $0x80] sm:$0xff]  ;;  %v6972_v40 = vsel %vm6966_vm6, %v6971_v33, %v6970_v28  ;;  %v17729_v33 = vmov 0 }
  0x39   : > { %1286 = vperm.xlu0 %8673, %v1240_v51   ;;  %528 = vst.msk [vmem:[#allocation5 + $0x90] sm:$0xff] %vm17025_vm0, %v17050_v7  ;;  %529 = vst.msk [vmem:[#allocation5 + $0x98] sm:$0xff] %vm17025_vm0, %v17050_v7  ;;  %v5935_v19 = vld [vmem:[%s9852_s22] sm:$0xff]  ;;  %v5936_v23 = vld [vmem:[%s9852_s22 + $0x8] sm:$0xff]  ;;  %v7280_v45 = vadd.s32 4, %v6972_v40 }
  0x3a   : > { %1295 = vperm.xlu1 %8674, %v1243_v59   ;;  %530 = vst.msk [vmem:[#allocation5 + $0xa0] sm:$0xff] %vm17025_vm0, %v17050_v7  ;;  %531 = vst.msk [vmem:[#allocation5 + $0xa8] sm:$0xff] %vm17025_vm0, %v17050_v7  ;;  %v5967_v21 = vld [vmem:[%s9861_s8] sm:$0xff]  ;;  %vm7535_vm2 = vcmp.gt.f32.partialorder %v5935_v19, 0.5  ;;  %v5968_v24 = vld [vmem:[%s9861_s8 + $0x8] sm:$0xff]  ;;  %vm7536_vm4 = vcmp.gt.f32.partialorder %v5936_v23, 0.5 }
  0x3b   : > { %8564 = vmatpush1.bf16.msra.mxu0 %v8563_v44  ;;  %532 = vst.msk [vmem:[#allocation5 + $0xb0] sm:$0xff] %vm17025_vm0, %v17050_v7  ;;  %533 = vst.msk [vmem:[#allocation5 + $0xb8] sm:$0xff] %vm17025_vm0, %v17050_v7  ;;  %v545_v26 = vld [vmem:[%s9687_s17 + $0x18] sm:$0xff]  ;;  %v1251_v27 = vld [vmem:[%s9629_s20 + $0x88] sm:$0xff]  ;;  %vm7567_vm3 = vcmp.gt.f32.partialorder %v5967_v21, 0.5  ;;  %vm7568_vm5 = vcmp.gt.f32.partialorder %v5968_v24, 0.5 }
  0x3c   : > { %8566 = vmatprep.subr.bf16.mxu0 %v8565_v46  ;;  %534 = vst.msk [vmem:[#allocation5 + $0xc0] sm:$0xff] %vm17025_vm0, %v17050_v7  ;;  %535 = vst.msk [vmem:[#allocation5 + $0xc8] sm:$0xff] %vm17025_vm0, %v17050_v7  ;;  %v1252_v34 = vld [vmem:[%s9629_s20 + $0x90] sm:$0xff]  ;;  %v546_v36 = vld [vmem:[%s9687_s17 + $0x20] sm:$0xff]  ;;  %v6978_v44 = vsub.s32 0, %v6977_v35  ;;  %v17726_v23 = vmov 0 }
  0x3d   : > { %1292 = vperm.xlu0 %8673, %v1242_v57   ;;  %536 = vst.msk [vmem:[#allocation5 + $0xd0] sm:$0xff] %vm17025_vm0, %v17050_v7  ;;  %537 = vst.msk [vmem:[#allocation5 + $0xd8] sm:$0xff] %vm17025_vm0, %v17050_v7  ;;  %v1253_v37 = vld [vmem:[%s9629_s20 + $0x98] sm:$0xff]  ;;  %v1254_v43 = vld [vmem:[%s9629_s20 + $0xa0] sm:$0xff]  ;;  %v17741_v59 = vmov 0 }
  0x3e   : > { %538 = vst.msk [vmem:[#allocation5 + $0xe0] sm:$0xff] %vm17025_vm0, %v17050_v7  ;;  %539 = vst.msk [vmem:[#allocation5 + $0xe8] sm:$0xff] %vm17025_vm0, %v17050_v7  ;;  %1301 = vperm.xlu1 %8674, %v9697_v63   ;;  %v5937_v46 = vld [vmem:[%s9852_s22 + $0x10] sm:$0xff]  ;;  %v547_v50 = vld [vmem:[%s9687_s17 + $0x28] sm:$0xff]  ;;  %v6979_v53 = vsel %vm6973_vm15, %v6978_v44, %v6977_v35  ;;  %vm7440_vm15 = vcmp.gt.s32.totalorder %v9846_v9, 16  ;;  %v9945_v63 = vadd.s32 %v9699_v0, %v1157_v49 }
  0x3f   : > { %8568 = vmatpush1.bf16.msra.mxu0 %v8567_v52  ;;  %540 = vst.msk [vmem:[#allocation5 + $0xf0] sm:$0xff] %vm17025_vm0, %v17050_v7  ;;  %541 = vst.msk [vmem:[#allocation5 + $0xf8] sm:$0xff] %vm17025_vm0, %v17050_v7  ;;  %v5969_v47 = vld [vmem:[%s9861_s8 + $0x10] sm:$0xff]  ;;  %v1255_v51 = vld [vmem:[%s9629_s20 + $0xa8] sm:$0xff]  ;;  %v17713_v52 = vmov 0  ;;  %vm7537_vm6 = vcmp.gt.f32.partialorder %v5937_v46, 0.5 }
  0x40   : > { %8570 = vmatprep.subr.bf16.mxu0 %v8569_v54  ;;  %vm7247_vm9 = vmand %vm7215_vm8, %vm7183_vm7  ;;  %vm7569_vm7 = vcmp.gt.f32.partialorder %v5969_v47, 0.5  ;;  %v7281_v54 = vadd.s32 4, %v6979_v53  ;;  %v548_v56 = vld [vmem:[%s9687_s17 + $0x30] sm:$0xff]  ;;  %v5971_v6 = vld [vmem:[%s9861_s8 + $0x20] sm:$0xff]  ;;  %v6981_v11 = vsub.s32 0, %v9945_v63  ;;  %v17733_v47 = vmov 0 }
  0x41   : > { %1298 = vperm.xlu0 %8673, %v9690_v60   ;;  %v7311_v38 = vsel %vm7247_vm9, %v7279_v32, %v6965_v29  ;;  %vm9894_vm12 = vmand %vm7535_vm2, %vm7567_vm3  ;;  %vm7184_vm2 = vcmp.ne.s32.totalorder %v6972_v40, 0  ;;  %vm7185_vm9 = vcmp.ne.s32.totalorder %v6979_v53, 0  ;;  %v1256_v57 = vld [vmem:[%s9629_s20 + $0xb0] sm:$0xff]  ;;  %v5939_v60 = vld [vmem:[%s9852_s22 + $0x20] sm:$0xff] }
  0x42   : > { %1307 = vperm.xlu1 %8674, %v1247_v5   ;;  %v17708_v39 = vsel %vm9894_vm12, 4294967295, %v17707_v39  ;;  %vm7343_vm13 = vcmp.eq.s32.totalorder %v7311_v38, 0  ;;  %vm9902_vm14 = vmand %vm7536_vm4, %vm7568_vm5  ;;  %vm7216_vm4 = vcmp.lt.s32.totalorder %v6972_v40, 0  ;;  %v17718_v5 = vmov 0  ;;  %v549_v20 = vld [vmem:[%s9687_s17 + $0x38] sm:$0xff]  ;;  %v1259_v21 = vld [vmem:[%s9629_s20 + $0xc8] sm:$0xff] }
  0x43   : > { %8572 = vmatpush1.bf16.msra.mxu0 %v8571_v58  ;;  %17709 = vst [vmem:[#allocation12_spill] sm:$0xff] %v17708_v39  ;;  %v17711_v41 = vsel %vm9902_vm14, 4294967295, %v17710_v41  ;;  %vm7407_vm1 = vmand %vm7343_vm13, %vm7375_vm10  ;;  %vm7376_vm13 = vcmp.lt.s32.totalorder %v9846_v9, 16  ;;  %v8474_v19 = vmin.u32 %v6981_v11, %v9945_v63  ;;  %v5970_v30 = vld [vmem:[%s9861_s8 + $0x18] sm:$0xff]  ;;  %v1260_v31 = vld [vmem:[%s9629_s20 + $0xd0] sm:$0xff]  ;;  %v1177_v39 = vadd.s32 184, %v9830_v1 }
  0x44   : > { %17712 = vst [vmem:[#allocation13_spill] sm:$0xff] %v17711_v41  ;;  %vm7471_vm3 = vmor %vm7407_vm1, %vm7439_vm11  ;;  %vm7217_vm11 = vcmp.lt.s32.totalorder %v6979_v53, 0  ;;  %v1262_v48 = vld [vmem:[%s9629_s20 + $0xe0] sm:$0xff]  ;;  %v5941_v11 = vld [vmem:[%s9852_s22 + $0x30] sm:$0xff]  ;;  %v17954_v41 = vmov 0 }
  0x45   : > { %1304 = vperm.xlu0 %8673, %v1246_v2   ;;  %vm9922_vm5 = vmand %vm7471_vm3, %vm7375_vm10  ;;  %v1257_v2 = vld [vmem:[%s9629_s20 + $0xb8] sm:$0xff]  ;;  %v6984_v25 = vand.u32 3, %v8474_v19  ;;  %v5973_v12 = vld [vmem:[%s9861_s8 + $0x30] sm:$0xff] }
  0x46   : > { %703 = vmatmul.mubr.f32.vlgmr.msra.gmra.mrb[0].mxu0 %v9694_v62  ;;  %1313 = vperm.xlu1 %8674, %v1249_v14   ;;  %v17714_v52 = vsel %vm9922_vm5, 4294967295, %v17713_v52  ;;  %vm17021_vm8 = vmand %vm9922_vm5, %vm9894_vm12  ;;  %v6991_v62 = vand.u32 3, %v8475_v55  ;;  %v1258_v14 = vld [vmem:[%s9629_s20 + $0xc0] sm:$0xff]  ;;  %v1263_v55 = vld [vmem:[%s9629_s20 + $0xe8] sm:$0xff] }
  0x47   : > { %708 = vmatprep.mubr.f32.mxu0 %v17050_v7  ;;  %17715 = vst [vmem:[#allocation14_spill] sm:$0xff] %v17714_v52  ;;  %vm7248_vm10 = vmand %vm7216_vm4, %vm7184_vm2  ;;  %vm6987_vm4 = vcmp.lt.s32.totalorder %v9908_v42, 0  ;;  %v8503_v8 = vsel %vm17021_vm8, 1.0, %v17050_v7  ;;  %vm7441_vm8 = vcmp.gt.s32.totalorder %v9868_v17, 16  ;;  %v5940_v19 = vld [vmem:[%s9852_s22 + $0x28] sm:$0xff]  ;;  %v1180_v52 = vadd.s32 208, %v9830_v1 }
  0x48   : > { %v7312_v58 = vsel %vm7248_vm10, %v7280_v45, %v6972_v40  ;;  %vm9939_vm1 = vmand %vm7217_vm11, %vm7185_vm9  ;;  %vm7539_vm9 = vcmp.gt.f32.partialorder %v5939_v60, 0.5  ;;  %v7831_v22 = vsel %vm17025_vm0, %v8503_v8, 0.0  ;;  %v1265_v8 = vld [vmem:[%s9629_s20 + $0xf8] sm:$0xff] }
  0x49   : > { %1310 = vperm.xlu0 %8673, %v1248_v10   ;;  %vm7344_vm2 = vcmp.eq.s32.totalorder %v7312_v58, 0  ;;  %vm9953_vm3 = vmand %vm7537_vm6, %vm7569_vm7  ;;  %v6992_v10 = vsub.s32 0, %v6991_v62  ;;  %vm7571_vm6 = vcmp.gt.f32.partialorder %v5971_v6, 0.5  ;;  %v552_v6 = vld [vmem:[%s9687_s17 + $0x50] sm:$0xff] }
  0x4a   : > { %709 = vmatmul.mubr.f32.gmra.mrb[2].mxu0 %v543_v4  ;;  %1319 = vperm.xlu1 %8674, %v1251_v27   ;;  %v7313_v4 = vsel %vm9939_vm1, %v7281_v54, %v6979_v53  ;;  %v17719_v5 = vsel %vm9953_vm3, 4294967295, %v17718_v5  ;;  %vm7408_vm11 = vmand %vm7344_vm2, %vm7376_vm13  ;;  %vm7377_vm1 = vcmp.lt.s32.totalorder %v9868_v17, 16  ;;  %v1159_v27 = vadd.s32 40, %v9830_v1  ;;  %v551_v54 = vld [vmem:[%s9687_s17 + $0x48] sm:$0xff] }
  0x4b   : > { %714 = vmatprep.mubr.f32.mxu0 %v17050_v7  ;;  %17720 = vst [vmem:[#allocation15_spill] sm:$0xff] %v17719_v5  ;;  %vm7472_vm7 = vmor %vm7408_vm11, %vm7440_vm15  ;;  %vm9970_vm10 = vcmp.eq.s32.totalorder %v7313_v4, 0  ;;  %v6993_v16 = vsel %vm6987_vm4, %v6992_v10, %v6991_v62  ;;  %vm6980_vm4 = vcmp.lt.s32.totalorder %v9945_v63, 0  ;;  %vm7570_vm11 = vcmp.gt.f32.partialorder %v5970_v30, 0.5  ;;  %v1264_v62 = vld [vmem:[%s9629_s20 + $0xf0] sm:$0xff] }
  0x4c   : > { %vm9979_vm2 = vmand %vm7472_vm7, %vm7376_vm13  ;;  %v7283_v29 = vadd.s32 4, %v6993_v16  ;;  %v10050_v44 = vadd.s32 %v9699_v0, %v1159_v27  ;;  %v1162_v4 = vadd.s32 64, %v9830_v1 }
  0x4d   : > { %1316 = vperm.xlu0 %8673, %v1250_v18   ;;  %v17724_v15 = vsel %vm9979_vm2, 4294967295, %v17723_v15  ;;  %v5938_v18 = vld [vmem:[%s9852_s22 + $0x18] sm:$0xff]  ;;  %vm17022_vm13 = vmand %vm9979_vm2, %vm9902_vm14 }
  0x4e   : > { %715 = vmatmul.mubr.f32.gmra.mrb[4].mxu0 %v544_v13  ;;  %1325 = vperm.xlu1 %8674, %v1253_v37   ;;  %v1160_v13 = vadd.s32 48, %v9830_v1  ;;  %17725 = vst [vmem:[#allocation16_spill] sm:$0xff] %v17724_v15  ;;  %vm9998_vm15 = vmand %vm7539_vm9, %vm7571_vm6  ;;  %v8504_v24 = vsel %vm17022_vm13, 1.0, %v17050_v7  ;;  %vm7187_vm6 = vcmp.ne.s32.totalorder %v6993_v16, 0  ;;  %vm7219_vm13 = vcmp.lt.s32.totalorder %v6993_v16, 0  ;;  %v1261_v37 = vld [vmem:[%s9629_s20 + $0xd8] sm:$0xff] }
  0x4f   : > { %720 = vmatprep.mubr.f32.mxu0 %v17050_v7  ;;  %v17727_v23 = vsel %vm9998_vm15, 4294967295, %v17726_v23  ;;  %vm7409_vm7 = vmand %vm9970_vm10, %vm7377_vm1  ;;  %v7832_v28 = vsel %vm17025_vm0, %v8504_v24, 0.0  ;;  %vm17754_vm14 = vcmp.lt.s32.totalorder %v10050_v44, 0  ;;  %s9463_s20 = smov [#allocation6]  }
  0x50   : > { %17728 = vst [vmem:[#allocation17_spill] sm:$0xff] %v17727_v23  ;;  %vm7473_vm9 = vmor %vm7409_vm7, %vm7441_vm8  ;;  %v7833_v32 = vadd.f32 %v7832_v28, %v7831_v22 }
  0x51   : > { %1322 = vperm.xlu0 %8673, %v1252_v34   ;;  %vm10024_vm10 = vmand %vm7473_vm9, %vm7377_vm1  ;;  %v6985_v34 = vsub.s32 0, %v6984_v25 }
  0x52   : > { %721 = vmatmul.mubr.f32.gmra.mrb[6].mxu0 %v545_v26  ;;  %1331 = vperm.xlu1 %8674, %v1255_v51   ;;  %v10014_v26 = vadd.s32 %v9699_v0, %v1160_v13  ;;  %v17730_v33 = vsel %vm10024_vm10, 4294967295, %v17729_v33  ;;  %vm17023_vm8 = vmand %vm10024_vm10, %vm9953_vm3 }
  0x53   : > { %726 = vmatprep.mubr.f32.mxu0 %v17050_v7  ;;  %17731 = vst [vmem:[#allocation18_spill] sm:$0xff] %v17730_v33  ;;  %v8505_v38 = vsel %vm17023_vm8, 1.0, %v17050_v7  ;;  %vm7251_vm9 = vmand %vm7219_vm13, %vm7187_vm6  ;;  %v6986_v40 = vsel %vm6980_vm4, %v6985_v34, %v6984_v25  ;;  %vm17732_vm8 = vcmp.gt.f32.partialorder %v5938_v18, 0.5  ;;  %v17744_v18 = vmov 0  ;;  %v553_v25 = vld [vmem:[%s9687_s17 + $0x58] sm:$0xff] }
  0x54   : > { %v7002_v35 = vsub.s32 0, %v10014_v26  ;;  %v7834_v45 = vsel %vm17025_vm0, %v8505_v38, 0.0  ;;  %v7315_v46 = vsel %vm7251_vm9, %v7283_v29, %v6993_v16  ;;  %vm7186_vm1 = vcmp.ne.s32.totalorder %v6986_v40, 0  ;;  %vm10055_vm3 = vmand %vm17732_vm8, %vm7570_vm11  ;;  %v554_v38 = vld [vmem:[%s9687_s17 + $0x60] sm:$0xff] }
  0x55   : > { %1328 = vperm.xlu0 %8673, %v1254_v43   ;;  %vm7218_vm7 = vcmp.lt.s32.totalorder %v6986_v40, 0  ;;  %v17734_v47 = vsel %vm10055_vm3, 4294967295, %v17733_v47  ;;  %v10060_v49 = vadd.f32 %v7834_v45, %v7833_v32  ;;  %vm7347_vm13 = vcmp.eq.s32.totalorder %v7315_v46, 0  ;;  %v5943_v46 = vld [vmem:[%s9852_s22 + $0x40] sm:$0xff] }
  0x56   : > { %727 = vmatmul.mubr.f32.gmra.mrb[8].mxu0 %v546_v36  ;;  %1337 = vperm.xlu1 %8674, %v1257_v2   ;;  %v550_v36 = vld [vmem:[%s9687_s17 + $0x40] sm:$0xff]  ;;  %v8477_v43 = vmin.u32 %v7002_v35, %v10014_v26  ;;  %17735 = vst [vmem:[#allocation19_spill] sm:$0xff] %v17734_v47  ;;  %vm10062_vm4 = vmand %vm7218_vm7, %vm7186_vm1  ;;  %v7282_v51 = vadd.s32 4, %v6986_v40  ;;  %vm17738_vm11 = vcmp.lt.s32.totalorder %v9908_v42, 16  ;;  %vm7001_vm8 = vcmp.lt.s32.totalorder %v10014_v26, 0 }
  0x57   : > { %732 = vmatprep.mubr.f32.mxu0 %v17050_v7  ;;  %vm7411_vm6 = vmand %vm7347_vm13, %vm17738_vm11  ;;  %vm17739_vm9 = vcmp.gt.s32.totalorder %v9908_v42, 16  ;;  %vm7378_vm1 = vcmp.lt.s32.totalorder %v9945_v63, 16  ;;  %v10108_v16 = vadd.s32 %v9699_v0, %v1162_v4  ;;  %v17903_v47 = vmov 0 }
  0x58   : > { %v7005_v53 = vand.u32 3, %v8477_v43  ;;  %vm7475_vm7 = vmor %vm7411_vm6, %vm17739_vm9 }
  0x59   : > { %1334 = vperm.xlu0 %8673, %v1256_v57   ;;  %v7314_v57 = vsel %vm10062_vm4, %v7282_v51, %v6986_v40  ;;  %vm17740_vm0 = vmmov %vm17738_vm11  ;;  %vm7442_vm11 = vcmp.gt.s32.totalorder %v9945_v63, 16  ;;  %v7016_v24 = vsub.s32 0, %v10108_v16 }
  0x5a   : > { %733 = vmatmul.mubr.f32.gmra.mrb[10].mxu0 %v547_v50  ;;  %1343 = vperm.xlu1 %8674, %v1259_v21   ;;  %v7006_v58 = vsub.s32 0, %v7005_v53  ;;  %vm10080_vm10 = vmand %vm7475_vm7, %vm17740_vm0  ;;  %vm7346_vm13 = vcmp.eq.s32.totalorder %v7314_v57, 0  ;;  %v1161_v21 = vadd.s32 56, %v9830_v1  ;;  %v17760_v50 = vmov 0 }
  0x5b   : > { %738 = vmatprep.mubr.f32.mxu0 %v17050_v7  ;;  %v17742_v59 = vsel %vm10080_vm10, 4294967295, %v17741_v59  ;;  %vm17027_vm4 = vmand %vm10080_vm10, %vm9998_vm15  ;;  %vm17749_vm15 = vcmp.gt.f32.partialorder %v5973_v12, 0.5  ;;  %vm17750_vm10 = vcmp.gt.f32.partialorder %v5941_v11, 0.5  ;;  %v8479_v34 = vmin.u32 %v7016_v24, %v10108_v16  ;;  %v556_v11 = vld [vmem:[%s9687_s17 + $0x70] sm:$0xff] }
  0x5c   : > { %17743 = vst [vmem:[#allocation20_spill] sm:$0xff] %v17742_v59  ;;  %v7007_v2 = vsel %vm7001_vm8, %v7006_v58, %v7005_v53  ;;  %v8507_v10 = vsel %vm17027_vm4, 1.0, %v17050_v7  ;;  %vm7410_vm0 = vmand %vm7346_vm13, %vm7378_vm1  ;;  %vm17747_vm4 = vcmask 7168   ;;  %v17765_v58 = vmov 0 }
  0x5d   : > { %1340 = vperm.xlu0 %8673, %v1258_v14   ;;  %vm7189_vm6 = vcmp.ne.s32.totalorder %v7007_v2, 0  ;;  %vm7474_vm8 = vmor %vm7410_vm0, %vm7442_vm11  ;;  %vm7221_vm9 = vcmp.lt.s32.totalorder %v7007_v2, 0  ;;  %v7285_v13 = vadd.s32 4, %v7007_v2  ;;  %v7838_v27 = vsel %vm17747_vm4, %v8507_v10, 0.0 }
  0x5e   : > { %739 = vmatmul.mubr.f32.gmra.mrb[12].mxu0 %v548_v56  ;;  %1349 = vperm.xlu1 %8674, %v1261_v37   ;;  %v6995_v56 = vsub.s32 0, %v10050_v44  ;;  %vm10112_vm7 = vmand %vm7474_vm8, %vm7378_vm1  ;;  %vm7381_vm1 = vcmp.lt.s32.totalorder %v10014_v26, 16  ;;  %vm7445_vm8 = vcmp.gt.s32.totalorder %v10014_v26, 16  ;;  %v10156_v37 = vadd.s32 %v9699_v0, %v1161_v21 }
  0x5f   : > { %744 = vmatprep.mubr.f32.mxu0 %v17050_v7  ;;  %v17745_v18 = vsel %vm10112_vm7, 4294967295, %v17744_v18  ;;  %vm17031_vm0 = vmand %vm10112_vm7, %vm10055_vm3  ;;  %v7019_v40 = vand.u32 3, %v8479_v34  ;;  %vm7380_vm3 = vcmp.lt.s32.totalorder %v10050_v44, 16  ;;  %vm17764_vm7 = vcmp.gt.f32.partialorder %v5943_v46, 0.5 }
  0x60   : > { %v8476_v60 = vmin.u32 %v6995_v56, %v10050_v44  ;;  %17746 = vst [vmem:[#allocation21_spill] sm:$0xff] %v17745_v18  ;;  %v8506_v28 = vsel %vm17031_vm0, 1.0, %v17050_v7  ;;  %vm7253_vm11 = vmand %vm7221_vm9, %vm7189_vm6  ;;  %vm17756_vm0 = vcmp.gt.f32.partialorder %v5940_v19, 0.5  ;;  %v555_v56 = vld [vmem:[%s9687_s17 + $0x68] sm:$0xff]  ;;  %v17771_v12 = vmov 0 }
  0x61   : > { %1346 = vperm.xlu0 %8673, %v1260_v31   ;;  %vm17748_vm13 = vmmov %vm17747_vm4  ;;  %v7317_v30 = vsel %vm7253_vm11, %v7285_v13, %v7007_v2  ;;  %v17751_v31 = vmov 0  ;;  %v7020_v51 = vsub.s32 0, %v7019_v40  ;;  %v1163_v19 = vadd.s32 72, %v9830_v1 }
  0x62   : > { %745 = vmatmul.mubr.f32.gmra.mrb[14].mxu0 %v549_v20  ;;  %1355 = vperm.xlu1 %8674, %v1263_v55   ;;  %v6998_v14 = vand.u32 3, %v8476_v60  ;;  %v5972_v20 = vld [vmem:[%s9861_s8 + $0x28] sm:$0xff]  ;;  %v7836_v29 = vsel %vm17748_vm13, %v8506_v28, 0.0  ;;  %vm10141_vm4 = vmand %vm17750_vm10, %vm17749_vm15  ;;  %vm7349_vm6 = vcmp.eq.s32.totalorder %v7317_v30, 0  ;;  %v1164_v55 = vadd.s32 80, %v9830_v1 }
  0x63   : > { %750 = vmatprep.mubr.f32.mxu0 %v17050_v7  ;;  %v17752_v31 = vsel %vm10141_vm4, 4294967295, %v17751_v31  ;;  %v7837_v35 = vadd.f32 %v7836_v29, %v10060_v49  ;;  %vm17755_vm9 = vcmp.gt.f32.partialorder %v5972_v20, 0.5  ;;  %v7009_v49 = vsub.s32 0, %v10156_v37  ;;  %v557_v20 = vld [vmem:[%s9687_s17 + $0x78] sm:$0xff] }
  0x64   : > { %v6999_v22 = vsub.s32 0, %v6998_v14  ;;  %17753 = vst [vmem:[#allocation22_spill] sm:$0xff] %v17752_v31  ;;  %vm10151_vm13 = vmand %vm17756_vm0, %vm17755_vm9  ;;  %v10200_v4 = vadd.s32 %v9699_v0, %v1164_v55  ;;  %v10243_v30 = vadd.s32 %v9699_v0, %v1163_v19  ;;  %v17776_v34 = vmov 0 }
  0x65   : > { %1352 = vperm.xlu0 %8673, %v1262_v48   ;;  %v7839_v45 = vadd.f32 %v7838_v27, %v7837_v35  ;;  %v5975_v48 = vld [vmem:[%s9861_s8 + $0x40] sm:$0xff]  ;;  %v8478_v53 = vmin.u32 %v7009_v49, %v10156_v37  ;;  %v5974_v27 = vld [vmem:[%s9861_s8 + $0x38] sm:$0xff]  ;;  %v5945_v35 = vld [vmem:[%s9852_s22 + $0x50] sm:$0xff]  ;;  %v1166_v55 = vadd.s32 96, %v9830_v1  ;;  %v17869_v59 = vmov 0 }
  0x66   : > { %751 = vmatmul.mubr.f32.gmra.mrb[16].mxu0 %v550_v36  ;;  %1361 = vperm.xlu1 %8674, %v1265_v8   ;;  %v7000_v32 = vsel %vm17754_vm14, %v6999_v22, %v6998_v14  ;;  %v17757_v36 = vmov 0  ;;  %vm7413_vm14 = vmand %vm7349_vm6, %vm7381_vm1  ;;  %vm7575_vm10 = vcmp.gt.f32.partialorder %v5975_v48, 0.5  ;;  %v7030_v13 = vsub.s32 0, %v10200_v4 }
  0x67   : > { %756 = vmatprep.mubr.f32.mxu0 %v17050_v7  ;;  %v17758_v36 = vsel %vm10151_vm13, 4294967295, %v17757_v36  ;;  %vm7188_vm15 = vcmp.ne.s32.totalorder %v7000_v32, 0  ;;  %vm7477_vm11 = vmor %vm7413_vm14, %vm7445_vm8  ;;  %vm7220_vm0 = vcmp.lt.s32.totalorder %v7000_v32, 0  ;;  %v7284_v43 = vadd.s32 4, %v7000_v32 }
  0x68   : > { %17759 = vst [vmem:[#allocation23_spill] sm:$0xff] %v17758_v36  ;;  %vm10170_vm6 = vmand %vm7477_vm11, %vm7381_vm1  ;;  %vm17763_vm1 = vcmp.lt.s32.totalorder %v10108_v16, 0  ;;  %vm7444_vm11 = vcmp.gt.s32.totalorder %v10050_v44, 16  ;;  %v7012_v2 = vand.u32 3, %v8478_v53  ;;  %v8481_v29 = vmin.u32 %v7030_v13, %v10200_v4  ;;  %v558_v53 = vld [vmem:[%s9687_s17 + $0x80] sm:$0xff]  ;;  %v559_v13 = vld [vmem:[%s9687_s17 + $0x88] sm:$0xff] }
  0x69   : > { %1358 = vperm.xlu0 %8673, %v1264_v62   ;;  %v17761_v50 = vsel %vm10170_vm6, 4294967295, %v17760_v50  ;;  %vm7252_vm14 = vmand %vm7220_vm0, %vm7188_vm15  ;;  %v17781_v48 = vmov 0  ;;  %v17920_v18 = vmov 0 }
  0x6a   : > { %757 = vmatmul.mubr.f32.gmra.mrb[18].mxu0 %v551_v54  ;;  %17762 = vst [vmem:[#allocation24_spill] sm:$0xff] %v17761_v50  ;;  %v7021_v54 = vsel %vm17763_vm1, %v7020_v51, %v7019_v40  ;;  %v7316_v57 = vsel %vm7252_vm14, %v7284_v43, %v7000_v32  ;;  %vm10188_vm2 = vmand %vm17764_vm7, %vm7575_vm10  ;;  %vm7008_vm1 = vcmp.lt.s32.totalorder %v10156_v37, 0  ;;  %v7013_v10 = vsub.s32 0, %v7012_v2 }
  0x6b   : > { %762 = vmatprep.mubr.f32.mxu0 %v17050_v7  ;;  %vm7191_vm9 = vcmp.ne.s32.totalorder %v7021_v54, 0  ;;  %vm7223_vm8 = vcmp.lt.s32.totalorder %v7021_v54, 0  ;;  %v17766_v58 = vsel %vm10188_vm2, 4294967295, %v17765_v58  ;;  %vm7348_vm15 = vcmp.eq.s32.totalorder %v7316_v57, 0  ;;  %vm17770_vm7 = vmand %vm10170_vm6, %vm10141_vm4 }
  0x6c   : > { %17767 = vst [vmem:[#allocation25_spill] sm:$0xff] %v17766_v58  ;;  %vm10192_vm0 = vmand %vm7223_vm8, %vm7191_vm9  ;;  %v7287_v62 = vadd.s32 4, %v7021_v54  ;;  %vm7383_vm9 = vcmp.lt.s32.totalorder %v10108_v16, 16  ;;  %v7014_v14 = vsel %vm7008_vm1, %v7013_v10, %v7012_v2  ;;  %v7033_v40 = vand.u32 3, %v8481_v29  ;;  %v5944_v2 = vld [vmem:[%s9852_s22 + $0x48] sm:$0xff] }
  0x6d   : > { %vm7412_vm14 = vmand %vm7348_vm15, %vm7380_vm3  ;;  %v7286_v28 = vadd.s32 4, %v7014_v14  ;;  %v7023_v43 = vsub.s32 0, %v10243_v30  ;;  %vm17779_vm6 = vcmp.gt.f32.partialorder %v5974_v27, 0.5  ;;  %v17788_v10 = vmov 0 }
  0x6e   : > { %763 = vmatmul.mubr.f32.gmra.mrb[20].mxu0 %v552_v6  ;;  %v8509_v6 = vsel %vm17770_vm7, 1.0, %v17050_v7  ;;  %vm7476_vm10 = vmor %vm7412_vm14, %vm7444_vm11  ;;  %v7319_v8 = vsel %vm10192_vm0, %v7287_v62, %v7021_v54  ;;  %vm7447_vm11 = vcmp.gt.s32.totalorder %v10108_v16, 16  ;;  %vm7190_vm7 = vcmp.ne.s32.totalorder %v7014_v14, 0 }
  0x6f   : > { %768 = vmatprep.mubr.f32.mxu0 %v17050_v7  ;;  %vm10215_vm8 = vmand %vm7476_vm10, %vm7380_vm3  ;;  %vm7351_vm15 = vcmp.eq.s32.totalorder %v7319_v8, 0  ;;  %vm17774_vm3 = vcmask 7168   ;;  %vm7222_vm10 = vcmp.lt.s32.totalorder %v7014_v14, 0  ;;  %v7034_v49 = vsub.s32 0, %v7033_v40 }
  0x70   : > { %v17772_v12 = vsel %vm10215_vm8, 4294967295, %v17771_v12  ;;  %vm17036_vm0 = vmand %vm10215_vm8, %vm10151_vm13  ;;  %v7842_v21 = vsel %vm17774_vm3, %v8509_v6, 0.0  ;;  %v8480_v51 = vmin.u32 %v7023_v43, %v10243_v30  ;;  %v17784_v54 = vmov 0  ;;  %v5976_v6 = vld [vmem:[%s9861_s8 + $0x48] sm:$0xff] }
  0x71   : > { %17773 = vst [vmem:[#allocation26_spill] sm:$0xff] %v17772_v12  ;;  %v8508_v22 = vsel %vm17036_vm0, 1.0, %v17050_v7  ;;  %vm7415_vm14 = vmand %vm7351_vm15, %vm7383_vm9  ;;  %v10292_v8 = vadd.s32 %v9699_v0, %v1166_v55  ;;  %v17795_v27 = vmov 0  ;;  %v17862_v50 = vmov 0 }
  0x72   : > { %769 = vmatmul.mubr.f32.gmra.mrb[22].mxu0 %v553_v25  ;;  %vm17775_vm1 = vmmov %vm17774_vm3  ;;  %v5942_v25 = vld [vmem:[%s9852_s22 + $0x38] sm:$0xff]  ;;  %vm7029_vm3 = vcmp.lt.s32.totalorder %v10200_v4, 0  ;;  %v7026_v60 = vand.u32 3, %v8480_v51 }
  0x73   : > { %774 = vmatprep.mubr.f32.mxu0 %v17050_v7  ;;  %v7840_v24 = vsel %vm17775_vm1, %v8508_v22, 0.0  ;;  %vm7479_vm4 = vmor %vm7415_vm14, %vm7447_vm11  ;;  %vm7545_vm14 = vcmp.gt.f32.partialorder %v5945_v35, 0.5  ;;  %vm7446_vm1 = vcmp.gt.s32.totalorder %v10156_v37, 16  ;;  %vm17780_vm11 = vcmp.gt.f32.partialorder %v5942_v25, 0.5  ;;  %v560_v35 = vld [vmem:[%s9687_s17 + $0x90] sm:$0xff] }
  0x74   : > { %v7841_v32 = vadd.f32 %v7840_v24, %v7839_v45  ;;  %vm10248_vm15 = vmand %vm7479_vm4, %vm7383_vm9  ;;  %vm7382_vm9 = vcmp.lt.s32.totalorder %v10156_v37, 16  ;;  %v7035_v57 = vsel %vm7029_vm3, %v7034_v49, %v7033_v40  ;;  %vm17792_vm3 = vcmp.lt.s32.totalorder %v10243_v30, 0 }
  0x75   : > { %v17777_v34 = vsel %vm10248_vm15, 4294967295, %v17776_v34  ;;  %vm7254_vm4 = vmand %vm7222_vm10, %vm7190_vm7  ;;  %vm7225_vm8 = vcmp.lt.s32.totalorder %v7035_v57, 0  ;;  %v7289_v62 = vadd.s32 4, %v7035_v57  ;;  %v1165_v22 = vadd.s32 88, %v9830_v1 }
  0x76   : > { %775 = vmatmul.mubr.f32.gmra.mrb[24].mxu0 %v554_v38  ;;  %17778 = vst [vmem:[#allocation27_spill] sm:$0xff] %v17777_v34  ;;  %v5977_v38 = vld [vmem:[%s9861_s8 + $0x50] sm:$0xff]  ;;  %v7843_v45 = vadd.f32 %v7842_v21, %v7841_v32  ;;  %v7318_v46 = vsel %vm7254_vm4, %v7286_v28, %v7014_v14  ;;  %vm10266_vm13 = vmand %vm17780_vm11, %vm17779_vm6  ;;  %v7044_v14 = vsub.s32 0, %v10292_v8 }
  0x77   : > { %780 = vmatprep.mubr.f32.mxu0 %v17050_v7  ;;  %vm7577_vm0 = vcmp.gt.f32.partialorder %v5977_v38, 0.5  ;;  %v17782_v48 = vsel %vm10266_vm13, 4294967295, %v17781_v48  ;;  %vm7350_vm7 = vcmp.eq.s32.totalorder %v7318_v46, 0  ;;  %vm17787_vm6 = vmand %vm10248_vm15, %vm10188_vm2  ;;  %vm17794_vm2 = vcmp.gt.f32.partialorder %v5944_v2, 0.5 }
  0x78   : > { %17783 = vst [vmem:[#allocation28_spill] sm:$0xff] %v17782_v48  ;;  %vm10275_vm10 = vmand %vm7545_vm14, %vm7577_vm0  ;;  %vm7193_vm14 = vcmp.ne.s32.totalorder %v7035_v57, 0  ;;  %v8483_v32 = vmin.u32 %v7044_v14, %v10292_v8  ;;  %v17801_v46 = vmov 0  ;;  %v1170_v48 = vadd.s32 128, %v9830_v1 }
  0x79   : > { %v17785_v54 = vsel %vm10275_vm10, 4294967295, %v17784_v54  ;;  %vm7414_vm11 = vmand %vm7350_vm7, %vm7382_vm9  ;;  %vm7576_vm7 = vcmp.gt.f32.partialorder %v5976_v6, 0.5 }
  0x7a   : > { %781 = vmatmul.mubr.f32.gmra.mrb[26].mxu0 %v555_v56  ;;  %17786 = vst [vmem:[#allocation29_spill] sm:$0xff] %v17785_v54  ;;  %v8511_v56 = vsel %vm17787_vm6, 1.0, %v17050_v7  ;;  %vm7478_vm0 = vmor %vm7414_vm11, %vm7446_vm1  ;;  %v7047_v43 = vand.u32 3, %v8483_v32  ;;  %v10630_v36 = vadd.s32 %v9699_v0, %v1170_v48  ;;  %v17873_v48 = vmov 0 }
  0x7b   : > { %786 = vmatprep.mubr.f32.mxu0 %v17050_v7  ;;  %vm10296_vm6 = vmand %vm7478_vm0, %vm7382_vm9  ;;  %vm17791_vm9 = vcmask 7168   ;;  %v17182_v54 = vmov 0.4  }
  0x7c   : > { %v17789_v10 = vsel %vm10296_vm6, 4294967295, %v17788_v10  ;;  %vm17042_vm1 = vmand %vm10296_vm6, %vm10266_vm13  ;;  %v7846_v19 = vsel %vm17791_vm9, %v8511_v56, 0.0  ;;  %v7048_v49 = vsub.s32 0, %v7047_v43  ;;  %17865 = vst [vmem:[#allocation47_spill] sm:$0xff] %v10630_v36 }
  0x7d   : > { %17790 = vst [vmem:[#allocation30_spill] sm:$0xff] %v17789_v10  ;;  %vm7257_vm0 = vmand %vm7225_vm8, %vm7193_vm14  ;;  %v1169_v10 = vadd.s32 120, %v9830_v1 }
  0x7e   : > { %787 = vmatmul.mubr.f32.gmra.mrb[28].mxu0 %v556_v11  ;;  %v7027_v11 = vsub.s32 0, %v7026_v60  ;;  %vm17793_vm4 = vmmov %vm17791_vm9  ;;  %v7321_v25 = vsel %vm7257_vm0, %v7289_v62, %v7035_v57  ;;  %v17804_v57 = vmov 0  ;;  %v5979_v62 = vld [vmem:[%s9861_s8 + $0x60] sm:$0xff] }
  0x7f   : > { %792 = vmatprep.mubr.f32.mxu0 %v17050_v7  ;;  %vm10324_vm15 = vmand %vm17794_vm2, %vm7576_vm7  ;;  %vm17799_vm2 = vcmp.gt.s32.totalorder %v10200_v4, 16  ;;  %vm17809_vm6 = vcmp.gt.f32.partialorder %v5979_v62, 0.5  ;;  %v17820_v62 = vmov 0  ;;  %v10633_v12 = vadd.s32 %v9699_v0, %v1169_v10 }
  0x80   : > { %v7028_v21 = vsel %vm17792_vm3, %v7027_v11, %v7026_v60  ;;  %v17796_v27 = vsel %vm10324_vm15, 4294967295, %v17795_v27  ;;  %vm7384_vm3 = vcmp.lt.s32.totalorder %v10243_v30, 16  ;;  %v5947_v60 = vld [vmem:[%s9852_s22 + $0x60] sm:$0xff]  ;;  %v1167_v11 = vadd.s32 104, %v9830_v1 }
  0x81   : > { %vm7192_vm9 = vcmp.ne.s32.totalorder %v7028_v21, 0  ;;  %vm7224_vm11 = vcmp.lt.s32.totalorder %v7028_v21, 0  ;;  %17797 = vst [vmem:[#allocation31_spill] sm:$0xff] %v17796_v27  ;;  %v7288_v29 = vadd.s32 4, %v7028_v21  ;;  %v10475_v27 = vand.u32 127, %v1153_v61  ;;  %17866 = vst [vmem:[#allocation48_spill] sm:$0xff] %v10633_v12 }
  0x82   : > { %793 = vmatmul.mubr.f32.gmra.mrb[30].mxu0 %v557_v20  ;;  %v8510_v20 = vsel %vm17042_vm1, 1.0, %v17050_v7  ;;  %vm7353_vm1 = vcmp.eq.s32.totalorder %v7321_v25, 0  ;;  %vm7256_vm8 = vmand %vm7224_vm11, %vm7192_vm9  ;;  %vm7448_vm9 = vcmp.gt.s32.totalorder %v10243_v30, 16  ;;  %v17829_v61 = vmov 0 }
  0x83   : > { %798 = vmatprep.mubr.f32.mxu0 %v17050_v7  ;;  %v7844_v24 = vsel %vm17793_vm4, %v8510_v20, 0.0  ;;  %vm17798_vm4 = vcmp.lt.s32.totalorder %v10200_v4, 16  ;;  %v7320_v38 = vsel %vm7256_vm8, %v7288_v29, %v7028_v21  ;;  %v563_v29 = vld [vmem:[%s9687_s17 + $0xa8] sm:$0xff] }
  0x84   : > { %v7845_v28 = vadd.f32 %v7844_v24, %v7843_v45  ;;  %vm7417_vm14 = vmand %vm7353_vm1, %vm17798_vm4  ;;  %v10337_v45 = vadd.s32 %v9699_v0, %v1165_v22  ;;  %vm7352_vm1 = vcmp.eq.s32.totalorder %v7320_v38, 0  ;;  %v17811_v24 = vmov 0  ;;  %v5946_v38 = vld [vmem:[%s9852_s22 + $0x58] sm:$0xff] }
  0x85   : > { %vm7481_vm7 = vmor %vm7417_vm14, %vm17799_vm2 }
  0x86   : > { %799 = vmatmul.mubr.f32.gmra.mrb[32].mxu0 %v558_v53  ;;  %v7847_v40 = vadd.f32 %v7846_v19, %v7845_v28  ;;  %vm17800_vm11 = vmmov %vm17798_vm4  ;;  %vm7043_vm4 = vcmp.lt.s32.totalorder %v10292_v8, 0  ;;  %v7037_v51 = vsub.s32 0, %v10337_v45  ;;  %v561_v53 = vld [vmem:[%s9687_s17 + $0x98] sm:$0xff]  ;;  %v10393_v28 = vadd.s32 %v9699_v0, %v1167_v11  ;;  %v5948_v11 = vld [vmem:[%s9852_s22 + $0x68] sm:$0xff] }
  0x87   : > { %804 = vmatprep.mubr.f32.mxu0 %v17050_v7  ;;  %vm10341_vm0 = vmand %vm7481_vm7, %vm17800_vm11  ;;  %v7049_v55 = vsel %vm7043_vm4, %v7048_v49, %v7047_v43  ;;  %vm7451_vm4 = vcmp.gt.s32.totalorder %v10292_v8, 16 }
  0x88   : > { %v17802_v46 = vsel %vm10341_vm0, 4294967295, %v17801_v46  ;;  %vm7416_vm14 = vmand %vm7352_vm1, %vm7384_vm3  ;;  %v8482_v56 = vmin.u32 %v7037_v51, %v10337_v45  ;;  %vm7195_vm11 = vcmp.ne.s32.totalorder %v7049_v55, 0  ;;  %vm7227_vm8 = vcmp.lt.s32.totalorder %v7049_v55, 0  ;;  %v564_v51 = vld [vmem:[%s9687_s17 + $0xb0] sm:$0xff] }
  0x89   : > { %17803 = vst [vmem:[#allocation32_spill] sm:$0xff] %v17802_v46  ;;  %vm7480_vm2 = vmor %vm7416_vm14, %vm7448_vm9  ;;  %v7291_v2 = vadd.s32 4, %v7049_v55  ;;  %vm7387_vm14 = vcmp.lt.s32.totalorder %v10292_v8, 16  ;;  %vm17807_vm9 = vcmask 7168   ;;  %v7051_v43 = vsub.s32 0, %v10393_v28 }
  0x8a   : > { %805 = vmatmul.mubr.f32.gmra.mrb[34].mxu0 %v559_v13  ;;  %vm10359_vm7 = vmand %vm7480_vm2, %vm7384_vm3  ;;  %v7040_v6 = vand.u32 3, %v8482_v56  ;;  %v562_v13 = vld [vmem:[%s9687_s17 + $0xa0] sm:$0xff]  ;;  %vm7036_vm2 = vcmp.lt.s32.totalorder %v10337_v45, 0 }
  0x8b   : > { %810 = vmatprep.mubr.f32.mxu0 %v17050_v7  ;;  %v17805_v57 = vsel %vm10359_vm7, 4294967295, %v17804_v57  ;;  %vm17046_vm1 = vmand %vm10359_vm7, %vm10324_vm15  ;;  %vm17810_vm15 = vcmp.gt.f32.partialorder %v5947_v60, 0.5  ;;  %v8484_v49 = vmin.u32 %v7051_v43, %v10393_v28  ;;  %v565_v60 = vld [vmem:[%s9687_s17 + $0xb8] sm:$0xff]  ;;  %v571_v43 = vld [vmem:[%s9687_s17 + $0xe8] sm:$0xff] }
  0x8c   : > { %17806 = vst [vmem:[#allocation33_spill] sm:$0xff] %v17805_v57  ;;  %v8512_v14 = vsel %vm17046_vm1, 1.0, %v17050_v7  ;;  %vm7259_vm3 = vmand %vm7227_vm8, %vm7195_vm11  ;;  %v7041_v21 = vsub.s32 0, %v7040_v6 }
  0x8d   : > { %v7848_v19 = vsel %vm17807_vm9, %v8512_v14, 0.0  ;;  %v7323_v20 = vsel %vm7259_vm3, %v7291_v2, %v7049_v55  ;;  %vm10386_vm1 = vmand %vm17810_vm15, %vm17809_vm6  ;;  %vm7546_vm6 = vcmp.gt.f32.partialorder %v5946_v38, 0.5  ;;  %v17817_v55 = vmov 0  ;;  %v566_v14 = vld [vmem:[%s9687_s17 + $0xc0] sm:$0xff]  ;;  %v569_v38 = vld [vmem:[%s9687_s17 + $0xd8] sm:$0xff] }
  0x8e   : > { %811 = vmatmul.mubr.f32.gmra.mrb[36].mxu0 %v560_v35  ;;  %v10382_v22 = vadd.f32 %v7848_v19, %v7847_v40  ;;  %vm7355_vm13 = vcmp.eq.s32.totalorder %v7323_v20, 0  ;;  %v17812_v24 = vsel %vm10386_vm1, 4294967295, %v17811_v24  ;;  %v7042_v25 = vsel %vm7036_vm2, %v7041_v21, %v7040_v6  ;;  %v5978_v40 = vld [vmem:[%s9861_s8 + $0x58] sm:$0xff] }
  0x8f   : > { %816 = vmatprep.mubr.f32.mxu0 %v17050_v7  ;;  %17813 = vst [vmem:[#allocation35_spill] sm:$0xff] %v17812_v24  ;;  %vm7419_vm8 = vmand %vm7355_vm13, %vm7387_vm14  ;;  %vm7194_vm9 = vcmp.ne.s32.totalorder %v7042_v25, 0  ;;  %vm7226_vm3 = vcmp.lt.s32.totalorder %v7042_v25, 0  ;;  %v7290_v32 = vadd.s32 4, %v7042_v25  ;;  %v17814_v35 = vmov 0 }
  0x90   : > { %17808 = vst [vmem:[#allocation34_spill] sm:$0xff] %v10382_v22  ;;  %vm7483_vm11 = vmor %vm7419_vm8, %vm7451_vm4  ;;  %vm7578_vm4 = vcmp.gt.f32.partialorder %v5978_v40, 0.5  ;;  %vm7386_vm8 = vcmp.lt.s32.totalorder %v10337_v45, 16  ;;  %v7054_v56 = vand.u32 3, %v8484_v49  ;;  %vm7050_vm13 = vcmp.lt.s32.totalorder %v10393_v28, 0  ;;  %v570_v40 = vld [vmem:[%s9687_s17 + $0xe0] sm:$0xff] }
  0x91   : > { %vm10399_vm15 = vmand %vm7483_vm11, %vm7387_vm14  ;;  %vm7450_vm14 = vcmp.gt.s32.totalorder %v10337_v45, 16  ;;  %v17823_v21 = vmov 0  ;;  %v572_v49 = vld [vmem:[%s9687_s17 + $0xf0] sm:$0xff]  ;;  %v17854_v22 = vmov 0  ;;  %v1182_v24 = vadd.s32 224, %v9830_v1 }
  0x92   : > { %817 = vmatmul.mubr.f32.gmra.mrb[38].mxu0 %v561_v53  ;;  %v17815_v35 = vsel %vm10399_vm15, 4294967295, %v17814_v35  ;;  %vm7258_vm2 = vmand %vm7226_vm3, %vm7194_vm9  ;;  %v7055_v2 = vsub.s32 0, %v7054_v56  ;;  %vm17872_vm15 = vcmp.ne.s32.totalorder %v9846_v9, %v10475_v27  ;;  %v17881_v9 = vmov 0 }
  0x93   : > { %822 = vmatprep.mubr.f32.mxu0 %v17050_v7  ;;  %17816 = vst [vmem:[#allocation36_spill] sm:$0xff] %v17815_v35  ;;  %v7322_v53 = vsel %vm7258_vm2, %v7290_v32, %v7042_v25  ;;  %vm10415_vm7 = vmand %vm7546_vm6, %vm7578_vm4  ;;  %v567_v25 = vld [vmem:[%s9687_s17 + $0xc8] sm:$0xff]  ;;  %v568_v32 = vld [vmem:[%s9687_s17 + $0xd0] sm:$0xff]  ;;  %v17997_v35 = vmov 0 }
  0x94   : > { %vm7354_vm11 = vcmp.eq.s32.totalorder %v7322_v53, 0  ;;  %v17818_v55 = vsel %vm10415_vm7, 4294967295, %v17817_v55  ;;  %v7056_v6 = vsel %vm7050_vm13, %v7055_v2, %v7054_v56  ;;  %vm7452_vm13 = vcmp.gt.s32.totalorder %v10393_v28, 16 }
  0x95   : > { %17819 = vst [vmem:[#allocation37_spill] sm:$0xff] %v17818_v55  ;;  %vm7418_vm9 = vmand %vm7354_vm11, %vm7386_vm8  ;;  %vm7196_vm4 = vcmp.ne.s32.totalorder %v7056_v6, 0  ;;  %v7292_v19 = vadd.s32 4, %v7056_v6  ;;  %vm7548_vm11 = vcmp.gt.f32.partialorder %v5948_v11, 0.5  ;;  %v17972_v55 = vmov 0 }
  0x96   : > { %823 = vmatmul.mubr.f32.gmra.mrb[40].mxu0 %v562_v13  ;;  %vm7482_vm3 = vmor %vm7418_vm9, %vm7450_vm14  ;;  %v5980_v13 = vld [vmem:[%s9861_s8 + $0x68] sm:$0xff]  ;;  %vm7228_vm14 = vcmp.lt.s32.totalorder %v7056_v6, 0 }
  0x97   : > { %828 = vmatprep.mubr.f32.mxu0 %v17050_v7  ;;  %vm10426_vm2 = vmand %vm7482_vm3, %vm7386_vm8  ;;  %vm7580_vm9 = vcmp.gt.f32.partialorder %v5980_v13, 0.5  ;;  %vm7388_vm3 = vcmp.lt.s32.totalorder %v10393_v28, 16 }
  0x98   : > { %v17821_v62 = vsel %vm10426_vm2, 4294967295, %v17820_v62  ;;  %vm7260_vm8 = vmand %vm7228_vm14, %vm7196_vm4 }
  0x99   : > { %17822 = vst [vmem:[#allocation38_spill] sm:$0xff] %v17821_v62  ;;  %v7324_v20 = vsel %vm7260_vm8, %v7292_v19, %v7056_v6  ;;  %vm10440_vm12 = vmand %vm7548_vm11, %vm7580_vm9 }
  0x9a   : > { %829 = vmatmul.mubr.f32.gmra.mrb[42].mxu0 %v563_v29  ;;  %vm7356_vm6 = vcmp.eq.s32.totalorder %v7324_v20, 0  ;;  %v17824_v21 = vsel %vm10440_vm12, 4294967295, %v17823_v21  ;;  %v17826_v29 = vmov 0 }
  0x9b   : > { %834 = vmatprep.mubr.f32.mxu0 %v17050_v7  ;;  %17825 = vst [vmem:[#allocation39_spill] sm:$0xff] %v17824_v21  ;;  %vm7420_vm4 = vmand %vm7356_vm6, %vm7388_vm3  ;;  %vm17088_vm6 = vcmp.lt.s32.totalorder %v10475_v27, 16  ;;  %v1171_v21 = vadd.s32 136, %v9830_v1 }
  0x9c   : > { %vm7484_vm14 = vmor %vm7420_vm4, %vm7452_vm13 }
  0x9d   : > { %vm10446_vm5 = vmand %vm7484_vm14, %vm7388_vm3 }
  0x9e   : > { %835 = vmatmul.mubr.f32.gmra.mrb[44].mxu0 %v564_v51  ;;  %v17827_v29 = vsel %vm10446_vm5, 4294967295, %v17826_v29  ;;  %v573_v51 = vld [vmem:[%s9687_s17 + $0xf8] sm:$0xff] }
  0x9f   : > { %840 = vmatprep.mubr.f32.mxu0 %v17050_v7  ;;  %17828 = vst [vmem:[#allocation40_spill] sm:$0xff] %v17827_v29  ;;  %v1174_v29 = vadd.s32 160, %v9830_v1 }
  0xa1   : > { %v10682_v10 = vadd.s32 %v9699_v0, %v1174_v29  ;;  %v1175_v29 = vadd.s32 168, %v9830_v1 }
  0xa2   : > { %841 = vmatmul.mubr.f32.gmra.mrb[46].mxu0 %v565_v60 }
  0xa3   : > { %846 = vmatprep.mubr.f32.mxu0 %v17050_v7  ;;  %17885 = vst [vmem:[#allocation54_spill] sm:$0xff] %v10682_v10  ;;  %v10858_v15 = vadd.s32 %v9699_v0, %v1175_v29 }
  0xa4   : > { %v1275_v60 = vpop.permute.xlu1 %1274 }
  0xa5   : > { %17958 = vst [vmem:[#allocation70_spill] sm:$0xff] %v10858_v15 }
  0xa6   : > { %847 = vmatmul.mubr.f32.gmra.mrb[48].mxu0 %v566_v14 }
  0xa7   : > { %852 = vmatprep.mubr.f32.mxu0 %v17050_v7 }
  0xa8   : > { %v1278_v6 = vpop.permute.xlu1 %1277 }
  0xaa   : > { %853 = vmatmul.mubr.f32.gmra.mrb[50].mxu0 %v567_v25 }
  0xab   : > { %858 = vmatprep.mubr.f32.mxu0 %v17050_v7 }
  0xac   : > { %v1269_v53 = vpop.permute.xlu0 %1268 }
  0xae   : > { %859 = vmatmul.mubr.f32.gmra.mrb[52].mxu0 %v568_v32 }
  0xaf   : > { %864 = vmatprep.mubr.f32.mxu0 %v17050_v7 }
  0xb0   : > { %v1272_v56 = vpop.permute.xlu0 %1271 }
  0xb1   : > { %v1284_v13 = vpop.permute.xlu1 %1283 }
  0xb2   : > { %865 = vmatmul.mubr.f32.gmra.mrb[54].mxu0 %v569_v38 }
  0xb3   : > { %870 = vmatprep.mubr.f32.mxu0 %v17050_v7 }
  0xb4   : > { %v1281_v2 = vpop.permute.xlu0 %1280 }
  0xb5   : > { %v1290_v19 = vpop.permute.xlu1 %1289 }
  0xb6   : > { %871 = vmatmul.mubr.f32.gmra.mrb[56].mxu0 %v570_v40 }
  0xb7   : > { %876 = vmatprep.mubr.f32.mxu0 %v17050_v7 }
  0xb8   : > { %v1287_v11 = vpop.permute.xlu0 %1286 }
  0xb9   : > { %v1296_v25 = vpop.permute.xlu1 %1295 }
  0xba   : > { %877 = vmatmul.mubr.f32.gmra.mrb[58].mxu0 %v571_v43  ;;  %v1365_v43 = vsub.s32 0, %v9830_v1 }
  0xbb   : > { %882 = vmatprep.mubr.f32.mxu0 %v17050_v7 }
  0xbc   : > { %v1293_v14 = vpop.permute.xlu0 %1292 }
  0xbd   : > { %v1302_v38 = vpop.permute.xlu1 %1301 }
  0xbe   : > { %883 = vmatmul.mubr.f32.gmra.mrb[60].mxu0 %v572_v49  ;;  %v1266_v49 = vld [vmem:[%s17016_s3] sm:$0xf] }
  0xbf   : > { %888 = vmatprep.mubr.f32.mxu0 %v17050_v7  ;;  %v10477_v57 = vrot.slane %v1266_v49, %v1365_v43  ;;  %v1168_v43 = vadd.s32 112, %v9830_v1 }
  0xc0   : > { %v1299_v20 = vpop.permute.xlu0 %1298 }
  0xc1   : > { %vm1379_vm11 = vcmp.eq.s32.totalorder %v1269_v53, %v10477_v57  ;;  %vm1383_vm9 = vcmp.eq.s32.totalorder %v1272_v56, %v10477_v57  ;;  %vm1387_vm3 = vcmp.eq.s32.totalorder %v1275_v60, %v10477_v57  ;;  %vm1395_vm13 = vcmp.eq.s32.totalorder %v1281_v2, %v10477_v57 }
  0xc2   : > { %889 = vmatmul.mubr.f32.gmra.mrb[62].mxu0 %v573_v51  ;;  %v10470_v51 = vpop.permute.xlu1 %1307  ;;  %vm1391_vm4 = vcmp.eq.s32.totalorder %v1278_v6, %v10477_v57  ;;  %vm1403_vm14 = vcmp.eq.s32.totalorder %v1287_v11, %v10477_v57  ;;  %vm10492_vm8 = vmand %vm1379_vm11, %vm17088_vm6  ;;  %v17831_v53 = vmov 0  ;;  %v17833_v56 = vmov 0 }
  0xc3   : > { %v17830_v61 = vsel %vm10492_vm8, 4294967295, %v17829_v61  ;;  %vm10498_vm12 = vmand %vm1383_vm9, %vm17088_vm6  ;;  %vm1399_vm7 = vcmp.eq.s32.totalorder %v1284_v13, %v10477_v57  ;;  %v17835_v60 = vmov 0  ;;  %v17837_v2 = vmov 0 }
  0xc4   : > { %v1305_v32 = vpop.permute.xlu0 %1304  ;;  %v17832_v53 = vsel %vm10498_vm12, 4294967295, %v17831_v53  ;;  %vm10504_vm5 = vmand %vm1387_vm3, %vm17088_vm6  ;;  %vm1411_vm2 = vcmp.eq.s32.totalorder %v1293_v14, %v10477_v57  ;;  %v17839_v6 = vmov 0  ;;  %v17841_v11 = vmov 0 }
  0xc5   : > { %v17834_v56 = vsel %vm10504_vm5, 4294967295, %v17833_v56  ;;  %vm10511_vm11 = vmand %vm1395_vm13, %vm17088_vm6  ;;  %vm1419_vm10 = vcmp.eq.s32.totalorder %v1299_v20, %v10477_v57  ;;  %v17843_v14 = vmov 0  ;;  %v17846_v20 = vmov 0 }
  0xc6   : > { %v10483_v58 = vpop.permute.xlu1 %1313  ;;  %v17836_v60 = vsel %vm10511_vm11, 4294967295, %v17835_v60  ;;  %vm10517_vm9 = vmand %vm1391_vm4, %vm17088_vm6  ;;  %v10603_v31 = vadd.s32 %v9699_v0, %v1168_v43 }
  0xc7   : > { %v17838_v2 = vsel %vm10517_vm9, 4294967295, %v17837_v2  ;;  %vm10524_vm3 = vmand %vm1403_vm14, %vm17088_vm6  ;;  %vm17868_vm14 = vcmp.ne.s32.totalorder %v9838_v3, %v10475_v27  ;;  %v17877_v3 = vmov 0 }
  0xc8   : > { %v1311_v40 = vpop.permute.xlu0 %1310  ;;  %v17840_v6 = vsel %vm10524_vm3, 4294967295, %v17839_v6  ;;  %vm10535_vm4 = vmand %vm1399_vm7, %vm17088_vm6  ;;  %vm1415_vm7 = vcmp.eq.s32.totalorder %v1296_v25, %v10477_v57  ;;  %v17848_v25 = vmov 0  ;;  %17857 = vst [vmem:[#allocation44_spill] sm:$0xff] %v10603_v31 }
  0xc9   : > { %v17842_v11 = vsel %vm10535_vm4, 4294967295, %v17841_v11  ;;  %vm10548_vm13 = vmand %vm1411_vm2, %vm17088_vm6  ;;  %vm17845_vm2 = vcmp.eq.s32.totalorder %v1290_v19, %v10477_v57  ;;  %v1172_v19 = vadd.s32 144, %v9830_v1 }
  0xca   : > { %v10540_v13 = vpop.permute.xlu1 %1319  ;;  %v17844_v14 = vsel %vm10548_vm13, 4294967295, %v17843_v14  ;;  %vm10566_vm0 = vmand %vm17845_vm2, %vm17088_vm6  ;;  %vm1427_vm13 = vcmp.eq.s32.totalorder %v1305_v32, %v10477_v57  ;;  %v17851_v32 = vmov 0 }
  0xcb   : > { %v17847_v20 = vsel %vm10566_vm0, 4294967295, %v17846_v20  ;;  %vm10573_vm4 = vmand %vm1419_vm10, %vm17088_vm6  ;;  %vm1435_vm10 = vcmp.eq.s32.totalorder %v1311_v40, %v10477_v57  ;;  %v17859_v40 = vmov 0 }
  0xcc   : > { %v10472_v7 = vpop.permute.xlu0 %1316  ;;  %v17849_v25 = vsel %vm10573_vm4, 4294967295, %v17848_v25  ;;  %vm10585_vm1 = vmand %vm1415_vm7, %vm17088_vm6 }
  0xcd   : > { %17850 = vst [vmem:[#allocation41_spill] sm:$0xff] %v17849_v25  ;;  %v17852_v32 = vsel %vm10585_vm1, 4294967295, %v17851_v32  ;;  %vm10598_vm2 = vmand %vm1427_vm13, %vm17088_vm6  ;;  %vm17858_vm13 = vcmp.eq.s32.totalorder %v1302_v38, %v10477_v57  ;;  %v10638_v38 = vadd.s32 %v9699_v0, %v1172_v19  ;;  %v1173_v19 = vadd.s32 152, %v9830_v1 }
  0xce   : > { %17853 = vst [vmem:[#allocation42_spill] sm:$0xff] %v17852_v32  ;;  %v17855_v22 = vsel %vm10598_vm2, 4294967295, %v17854_v22  ;;  %vm10617_vm2 = vmand %vm17858_vm13, %vm17088_vm6  ;;  %v1326_v43 = vpop.permute.xlu1 %1325  ;;  %vm17876_vm13 = vcmp.ne.s32.totalorder %v9868_v17, %v10475_v27  ;;  %v10679_v17 = vadd.s32 %v9699_v0, %v1171_v21  ;;  %v17891_v21 = vmov 0 }
  0xcf   : > { %17856 = vst [vmem:[#allocation43_spill] sm:$0xff] %v17855_v22  ;;  %v17860_v40 = vsel %vm10617_vm2, 4294967295, %v17859_v40  ;;  %vm10625_vm1 = vmand %vm1435_vm10, %vm17088_vm6  ;;  %v10842_v5 = vadd.s32 %v9699_v0, %v1173_v19 }
  0xd0   : > { %v10487_v34 = vpop.permute.xlu0 %1322  ;;  %17861 = vst [vmem:[#allocation45_spill] sm:$0xff] %v17860_v40  ;;  %v17863_v50 = vsel %vm10625_vm1, 4294967295, %v17862_v50  ;;  %17867 = vst [vmem:[#allocation49_spill] sm:$0xff] %v10638_v38 }
  0xd1   : > { %17864 = vst [vmem:[#allocation46_spill] sm:$0xff] %v17863_v50  ;;  %vm10645_vm10 = vmand %vm10492_vm8, %vm17868_vm14  ;;  %vm17879_vm14 = vcmp.lt.s32.totalorder %v10475_v27, 16  ;;  %vm17880_vm8 = vcmp.eq.s32.totalorder %v10470_v51, %v10477_v57  ;;  %v17887_v51 = vmov 0 }
  0xd2   : > { %v17870_v59 = vsel %vm10645_vm10, 4294967295, %v17869_v59  ;;  %vm10654_vm7 = vmand %vm10498_vm12, %vm17872_vm15  ;;  %17884 = vst [vmem:[#allocation53_spill] sm:$0xff] %v10679_v17  ;;  %v1332_v33 = vpop.permute.xlu1 %1331 }
  0xd3   : > { %17871 = vst [vmem:[#allocation50_spill] sm:$0xff] %v17870_v59  ;;  %v17874_v48 = vsel %vm10654_vm7, 4294967295, %v17873_v48  ;;  %vm10663_vm6 = vmand %vm10504_vm5, %vm17876_vm13  ;;  %vm17886_vm13 = vcmp.ne.s32.totalorder %v9908_v42, %v10475_v27  ;;  %vm17893_vm5 = vcmp.ne.s32.totalorder %v10014_v26, %v10475_v27  ;;  %v17894_v42 = vmov 0 }
  0xd4   : > { %v10554_v49 = vpop.permute.xlu0 %1328  ;;  %17875 = vst [vmem:[#allocation51_spill] sm:$0xff] %v17874_v48  ;;  %v17878_v3 = vsel %vm10663_vm6, 4294967295, %v17877_v3  ;;  %vm10672_vm10 = vmand %vm17880_vm8, %vm17879_vm14  ;;  %vm17890_vm14 = vcmp.ne.s32.totalorder %v9945_v63, %v10475_v27  ;;  %v17898_v63 = vmov 0  ;;  %v1176_v26 = vadd.s32 176, %v9830_v1 }
  0xd5   : > { %v17882_v9 = vsel %vm10672_vm10, 4294967295, %v17881_v9  ;;  %vm10690_vm8 = vmand %vm10511_vm11, %vm17886_vm13  ;;  %vm17896_vm11 = vcmp.lt.s32.totalorder %v10475_v27, 16  ;;  %vm17902_vm13 = vnez %v17842_v11  ;;  %17951 = vst [vmem:[#allocation67_spill] sm:$0xff] %v10842_v5 }
  0xd6   : > { %17883 = vst [vmem:[#allocation52_spill] sm:$0xff] %v17882_v9  ;;  %v17888_v51 = vsel %vm10690_vm8, 4294967295, %v17887_v51  ;;  %vm10699_vm15 = vmand %vm10517_vm9, %vm17890_vm14  ;;  %vm17897_vm14 = vcmp.eq.s32.totalorder %v10472_v7, %v10477_v57  ;;  %v17908_v7 = vmov 0  ;;  %vm17911_vm8 = vcmp.ne.s32.totalorder %v10156_v37, %v10475_v27  ;;  %v1338_v62 = vpop.permute.xlu1 %1337 }
  0xd7   : > { %17889 = vst [vmem:[#allocation55_spill] sm:$0xff] %v17888_v51  ;;  %v17892_v21 = vsel %vm10699_vm15, 4294967295, %v17891_v21  ;;  %vm10708_vm12 = vmand %vm10524_vm3, %vm17893_vm5  ;;  %vm17901_vm5 = vcmp.ne.s32.totalorder %v10050_v44, %v10475_v27  ;;  %v17912_v44 = vmov 0  ;;  %v1178_v37 = vadd.s32 192, %v9830_v1 }
  0xd8   : > { %v1335_v23 = vpop.permute.xlu0 %1334  ;;  %v17895_v42 = vsel %vm10708_vm12, 4294967295, %v17894_v42  ;;  %vm10719_vm9 = vmand %vm17897_vm14, %vm17896_vm11  ;;  %vm17906_vm11 = vcmp.ne.s32.totalorder %v10108_v16, %v10475_v27  ;;  %vm17907_vm14 = vnez %v17844_v14  ;;  %v17916_v16 = vmov 0 }
  0xd9   : > { %v17899_v63 = vsel %vm10719_vm9, 4294967295, %v17898_v63  ;;  %vm10732_vm3 = vmand %vm17902_vm13, %vm17901_vm5  ;;  %vm17914_vm5 = vcmp.lt.s32.totalorder %v10475_v27, 16  ;;  %vm17915_vm13 = vcmp.eq.s32.totalorder %v10483_v58, %v10477_v57  ;;  %v17925_v58 = vmov 0 }
  0xda   : > { %17900 = vst [vmem:[#allocation56_spill] sm:$0xff] %v17899_v63  ;;  %v17904_v47 = vsel %vm10732_vm3, 4294967295, %v17903_v47  ;;  %vm10741_vm12 = vmand %vm17907_vm14, %vm17906_vm11  ;;  %vm17928_vm11 = vcmp.ne.s32.totalorder %v10292_v8, %v10475_v27  ;;  %v17939_v8 = vmov 0  ;;  %v10890_v29 = vadd.s32 %v9699_v0, %v1178_v37 }
  0xdb   : > { %17905 = vst [vmem:[#allocation57_spill] sm:$0xff] %v17904_v47  ;;  %v17909_v7 = vsel %vm10741_vm12, 4294967295, %v17908_v7  ;;  %vm10750_vm15 = vmand %vm10566_vm0, %vm17911_vm8  ;;  %vm17919_vm8 = vcmp.ne.s32.totalorder %v10200_v4, %v10475_v27  ;;  %vm17929_vm12 = vnez %v17855_v22  ;;  %v17930_v4 = vmov 0 }
  0xdc   : > { %17910 = vst [vmem:[#allocation58_spill] sm:$0xff] %v17909_v7  ;;  %v17913_v44 = vsel %vm10750_vm15, 4294967295, %v17912_v44  ;;  %vm10759_vm3 = vmand %vm17915_vm13, %vm17914_vm5  ;;  %vm17923_vm13 = vcmp.ne.s32.totalorder %v10243_v30, %v10475_v27  ;;  %vm17924_vm5 = vnez %v17852_v32  ;;  %v17935_v30 = vmov 0  ;;  %v1341_v19 = vpop.permute.xlu0 %1340 }
  0xdd   : > { %v17917_v16 = vsel %vm10759_vm3, 4294967295, %v17916_v16  ;;  %vm10771_vm14 = vmand %vm10573_vm4, %vm17919_vm8  ;;  %17970 = vst [vmem:[#allocation73_spill] sm:$0xff] %v10890_v29  ;;  %v17980_v37 = vmov 0  ;;  %v11065_v9 = vadd.s32 %v9699_v0, %v1182_v24  ;;  %v18031_v24 = vmov 0 }
  0xde   : > { %17918 = vst [vmem:[#allocation59_spill] sm:$0xff] %v17917_v16  ;;  %v17921_v18 = vsel %vm10771_vm14, 4294967295, %v17920_v18  ;;  %vm10780_vm0 = vmand %vm17924_vm5, %vm17923_vm13  ;;  %vm17933_vm5 = vcmp.lt.s32.totalorder %v10475_v27, 16  ;;  %vm17934_vm14 = vcmp.eq.s32.totalorder %v10487_v34, %v10477_v57  ;;  %vm17942_vm13 = vcmp.ne.s32.totalorder %v10603_v31, %v10475_v27 }
  0xdf   : > { %17922 = vst [vmem:[#allocation60_spill] sm:$0xff] %v17921_v18  ;;  %v17926_v58 = vsel %vm10780_vm0, 4294967295, %v17925_v58  ;;  %vm10789_vm15 = vmand %vm17929_vm12, %vm17928_vm11  ;;  %vm17938_vm11 = vcmp.ne.s32.totalorder %v10337_v45, %v10475_v27  ;;  %v17943_v34 = vmov 0  ;;  %vm17947_vm12 = vcmp.eq.s32.totalorder %v10540_v13, %v10477_v57 }
  0xe0   : > { %17927 = vst [vmem:[#allocation61_spill] sm:$0xff] %v17926_v58  ;;  %v17931_v4 = vsel %vm10789_vm15, 4294967295, %v17930_v4  ;;  %vm10804_vm0 = vmand %vm17934_vm14, %vm17933_vm5  ;;  %v17948_v45 = vmov 0  ;;  %v10855_v13 = vadd.s32 %v9699_v0, %v1176_v26  ;;  %v17963_v26 = vmov 0 }
  0xe1   : > { %17932 = vst [vmem:[#allocation62_spill] sm:$0xff] %v17931_v4  ;;  %v17936_v30 = vsel %vm10804_vm0, 4294967295, %v17935_v30  ;;  %vm10813_vm8 = vmand %vm10617_vm2, %vm17938_vm11  ;;  %v18001_v31 = vmov 0  ;;  %v18022_v16 = vmov 0 }
  0xe2   : > { %17937 = vst [vmem:[#allocation63_spill] sm:$0xff] %v17936_v30  ;;  %v17940_v8 = vsel %vm10813_vm8, 4294967295, %v17939_v8  ;;  %vm10822_vm4 = vmand %vm10625_vm1, %vm17942_vm13  ;;  %vm17966_vm13 = vcmp.ne.s32.totalorder %v10633_v12, %v10475_v27  ;;  %v10978_v12 = vsel %vm10663_vm6, 0.6, %v17182_v54  ;;  %vm18012_vm6 = vnez %v17909_v7 }
  0xe3   : > { %17941 = vst [vmem:[#allocation64_spill] sm:$0xff] %v17940_v8  ;;  %v17944_v34 = vsel %vm10822_vm4, 4294967295, %v17943_v34  ;;  %vm17946_vm11 = vmmov %vm17933_vm5  ;;  %v11070_v40 = vsel %vm10813_vm8, 0.6, %v17182_v54 }
  0xe4   : > { %17945 = vst [vmem:[#allocation65_spill] sm:$0xff] %v17944_v34  ;;  %vm10835_vm2 = vmand %vm17947_vm12, %vm17946_vm11  ;;  %vm17959_vm11 = vcmp.ne.s32.totalorder %v10393_v28, %v10475_v27  ;;  %v17967_v28 = vmov 0 }
  0xe5   : > { %v17949_v45 = vsel %vm10835_vm2, 4294967295, %v17948_v45  ;;  %vm17952_vm14 = vmmov %vm17933_vm5  ;;  %vm17953_vm5 = vcmp.eq.s32.totalorder %v10554_v49, %v10477_v57  ;;  %17957 = vst [vmem:[#allocation69_spill] sm:$0xff] %v10855_v13  ;;  %v17960_v49 = vmov 0 }
  0xe6   : > { %17950 = vst [vmem:[#allocation66_spill] sm:$0xff] %v17949_v45  ;;  %vm10849_vm1 = vmand %vm17953_vm5, %vm17952_vm14  ;;  %vm17962_vm5 = vcmp.ne.s32.totalorder %v10630_v36, %v10475_v27  ;;  %v1347_v36 = vpop.permute.xlu0 %1346 }
  0xe7   : > { %v17955_v41 = vsel %vm10849_vm1, 4294967295, %v17954_v41  ;;  %vm10866_vm14 = vmand %vm10672_vm10, %vm17959_vm11  ;;  %vm1467_vm11 = vcmp.eq.s32.totalorder %v1335_v23, %v10477_v57  ;;  %v17976_v23 = vmov 0  ;;  %18026 = vst [vmem:[#allocation88_spill] sm:$0xff] %v11065_v9 }
  0xe8   : > { %17956 = vst [vmem:[#allocation68_spill] sm:$0xff] %v17955_v41  ;;  %v17961_v49 = vsel %vm10866_vm14, 4294967295, %v17960_v49  ;;  %vm10875_vm12 = vmand %vm10719_vm9, %vm17962_vm5  ;;  %vm17971_vm5 = vcmp.ne.s32.totalorder %v10638_v38, %v10475_v27  ;;  %v17993_v38 = vmov 0 }
  0xe9   : > { %v17964_v26 = vsel %vm10875_vm12, 4294967295, %v17963_v26  ;;  %vm10884_vm4 = vmand %vm10759_vm3, %vm17966_vm13  ;;  %vm1463_vm13 = vcmp.eq.s32.totalorder %v1332_v33, %v10477_v57  ;;  %vm17975_vm3 = vcmp.ne.s32.totalorder %v10679_v17, %v10475_v27  ;;  %vm17979_vm12 = vcmp.ne.s32.totalorder %v10682_v10, %v10475_v27  ;;  %18027 = vst [vmem:[#allocation89_spill] sm:$0xff] %v11070_v40 }
  0xea   : > { %17965 = vst [vmem:[#allocation71_spill] sm:$0xff] %v17964_v26  ;;  %v17968_v28 = vsel %vm10884_vm4, 4294967295, %v17967_v28  ;;  %vm10898_vm9 = vmand %vm10804_vm0, %vm17971_vm5  ;;  %vm1719_vm0 = vcmp.ne.s32.totalorder %v10842_v5, %v10475_v27  ;;  %vm17984_vm4 = vcmp.eq.s32.totalorder %v1326_v43, %v10477_v57  ;;  %v17985_v33 = vmov 0 }
  0xeb   : > { %17969 = vst [vmem:[#allocation72_spill] sm:$0xff] %v17968_v28  ;;  %v17973_v55 = vsel %vm10898_vm9, 4294967295, %v17972_v55  ;;  %vm10908_vm10 = vmand %vm10835_vm2, %vm17975_vm3  ;;  %vm17983_vm9 = vcmp.lt.s32.totalorder %v10475_v27, 16  ;;  %vm1731_vm2 = vcmp.ne.s32.totalorder %v10855_v13, %v10475_v27  ;;  %v17989_v10 = vmov 0 }
  0xec   : > { %17974 = vst [vmem:[#allocation74_spill] sm:$0xff] %v17973_v55  ;;  %v17977_v23 = vsel %vm10908_vm10, 4294967295, %v17976_v23  ;;  %vm10917_vm5 = vmand %vm10849_vm1, %vm17979_vm12  ;;  %v10942_v5 = vadd.s32 %v9699_v0, %v1177_v39  ;;  %v1179_v43 = vadd.s32 200, %v9830_v1  ;;  %v10954_v17 = vadd.s32 %v9699_v0, %v1180_v52 }
  0xed   : > { %17978 = vst [vmem:[#allocation75_spill] sm:$0xff] %v17977_v23  ;;  %v17981_v37 = vsel %vm10917_vm5, 4294967295, %v17980_v37  ;;  %vm10927_vm3 = vmand %vm17984_vm4, %vm17983_vm9  ;;  %v1181_v39 = vadd.s32 216, %v9830_v1  ;;  %v10973_v52 = vsel %vm10654_vm7, 0.6, %v17182_v54  ;;  %vm18005_vm1 = vnez %v17888_v51 }
  0xee   : > { %17982 = vst [vmem:[#allocation76_spill] sm:$0xff] %v17981_v37  ;;  %v17986_v33 = vsel %vm10927_vm3, 4294967295, %v17985_v33  ;;  %vm17988_vm10 = vmmov %vm17983_vm9  ;;  %v11062_v50 = vadd.s32 %v9699_v0, %v1179_v43  ;;  %v1344_v43 = vpop.permute.xlu1 %1343  ;;  %vm18042_vm8 = vnez %v17964_v26 }
  0xef   : > { %17987 = vst [vmem:[#allocation77_spill] sm:$0xff] %v17986_v33  ;;  %vm10935_vm12 = vmand %vm1467_vm11, %vm17988_vm10  ;;  %vm1471_vm10 = vcmp.eq.s32.totalorder %v1338_v62, %v10477_v57  ;;  %v10998_v33 = vsel %vm18005_vm1, 0.6, %v17182_v54  ;;  %vm18010_vm1 = vnez %v17904_v47  ;;  %v11088_v4 = vadd.s32 %v9699_v0, %v1181_v39  ;;  %v624_v62 = vld [vmem:[%s17703_s1 + $0x190] sm:$0xff] }
  0xf0   : > { %v17990_v10 = vsel %vm10935_vm12, 4294967295, %v17989_v10  ;;  %17992 = vst [vmem:[#allocation79_spill] sm:$0xff] %v10942_v5  ;;  %vm10947_vm4 = vmand %vm1463_vm13, %vm17983_vm9  ;;  %vm18000_vm9 = vnez %v17870_v59  ;;  %vm18004_vm13 = vnez %v17892_v21 }
  0xf1   : > { %17991 = vst [vmem:[#allocation78_spill] sm:$0xff] %v17990_v10  ;;  %v17994_v38 = vsel %vm10947_vm4, 4294967295, %v17993_v38  ;;  %17996 = vst [vmem:[#allocation81_spill] sm:$0xff] %v10954_v17  ;;  %v10968_v46 = vsel %vm18000_vm9, 0.6, %v17182_v54 }
  0xf2   : > { %17995 = vst [vmem:[#allocation80_spill] sm:$0xff] %v17994_v38  ;;  %vm10960_vm11 = vmand %vm10927_vm3, %vm1719_vm0  ;;  %v10993_v41 = vsel %vm18004_vm13, 0.6, %v17182_v54  ;;  %vm18006_vm3 = vnez %v17895_v42  ;;  %v11018_v10 = vsel %vm18010_vm1, 0.6, %v17182_v54  ;;  %v18015_v38 = vmov 0 }
  0xf3   : > { %v17998_v35 = vsel %vm10960_vm11, 4294967295, %v17997_v35  ;;  %vm10985_vm0 = vmand %vm10935_vm12, %vm1731_vm2  ;;  %v11003_v13 = vsel %vm18006_vm3, 0.6, %v17182_v54  ;;  %vm18007_vm2 = vcmp.ne.s32.totalorder %v10858_v15, %v10475_v27  ;;  %vm18011_vm3 = vnez %v17913_v44  ;;  %18025 = vst [vmem:[#allocation87_spill] sm:$0xff] %v11062_v50 }
  0xf4   : > { %17999 = vst [vmem:[#allocation82_spill] sm:$0xff] %v17998_v35  ;;  %v18002_v31 = vsel %vm10985_vm0, 4294967295, %v18001_v31  ;;  %vm11010_vm12 = vmand %vm10947_vm4, %vm18007_vm2  ;;  %v11023_v30 = vsel %vm18011_vm3, 0.6, %v17182_v54  ;;  %v11028_v15 = vsel %vm18012_vm6, 0.6, %v17182_v54  ;;  %vm18014_vm4 = vcmp.eq.s32.totalorder %v1341_v19, %v10477_v57 }
  0xf5   : > { %18003 = vst [vmem:[#allocation83_spill] sm:$0xff] %v18002_v31  ;;  %vm18013_vm2 = vcmp.lt.s32.totalorder %v10475_v27, 16  ;;  %vm18018_vm3 = vnez %v17926_v58  ;;  %vm18019_vm6 = vnez %v17921_v18  ;;  %v11053_v19 = vsel %vm10789_vm15, 0.6, %v17182_v54  ;;  %18034 = vst [vmem:[#allocation92_spill] sm:$0xff] %v11088_v4 }
  0xf6   : > { %vm11034_vm13 = vmand %vm18014_vm4, %vm18013_vm2  ;;  %v11043_v45 = vsel %vm18018_vm3, 0.6, %v17182_v54  ;;  %v11048_v63 = vsel %vm18019_vm6, 0.6, %v17182_v54  ;;  %18020 = vst [vmem:[#allocation85_spill] sm:$0xff] %v11053_v19  ;;  %vm18028_vm1 = vnez %v17944_v34  ;;  %vm18030_vm15 = vcmp.eq.s32.totalorder %v1347_v36, %v10477_v57  ;;  %v1353_v36 = vpop.permute.xlu0 %1352 }
  0xf7   : > { %v18016_v38 = vsel %vm11034_vm13, 4294967295, %v18015_v38  ;;  %vm18021_vm4 = vmmov %vm18013_vm2  ;;  %v11075_v25 = vsel %vm18028_vm1, 0.6, %v17182_v54  ;;  %vm18035_vm1 = vcmp.ne.s32.totalorder %v10890_v29, %v10475_v27  ;;  %v18036_v54 = vmov 0 }
  0xf8   : > { %18017 = vst [vmem:[#allocation84_spill] sm:$0xff] %v18016_v38  ;;  %vm11057_vm2 = vmand %vm1471_vm10, %vm18021_vm4  ;;  %v18045_v29 = vmov 0 }
  0xf9   : > { %v18023_v16 = vsel %vm11057_vm2, 4294967295, %v18022_v16  ;;  %18029 = vst [vmem:[#allocation90_spill] sm:$0xff] %v11075_v25  ;;  %vm11083_vm6 = vmand %vm18030_vm15, %vm18021_vm4  ;;  %v18039_v25 = vmov 0.4   ;;  %vm18040_vm4 = vnez %v17968_v28 }
  0xfa   : > { %18024 = vst [vmem:[#allocation86_spill] sm:$0xff] %v18023_v16  ;;  %v18032_v24 = vsel %vm11083_vm6, 4294967295, %v18031_v24  ;;  %vm11095_vm10 = vmand %vm11034_vm13, %vm18035_vm1  ;;  %v11103_v40 = vsel %vm10866_vm14, 0.6, %v18039_v25  ;;  %v11113_v39 = vsel %vm18042_vm8, 0.6, %v18039_v25  ;;  %vm18044_vm1 = vcmp.ne.s32.totalorder %v10942_v5, %v10475_v27 }
  0xfb   : > { %18033 = vst [vmem:[#allocation91_spill] sm:$0xff] %v18032_v24  ;;  %v18037_v54 = vsel %vm11095_vm10, 4294967295, %v18036_v54  ;;  %18043 = vst [vmem:[#allocation95_spill] sm:$0xff] %v11113_v39  ;;  %vm18050_vm8 = vcmp.ne.s32.totalorder %v10954_v17, %v10475_v27  ;;  %v18051_v5 = vmov 0  ;;  %vm18054_vm13 = vnez %v17977_v23 }
  0xfc   : > { %18038 = vst [vmem:[#allocation93_spill] sm:$0xff] %v18037_v54  ;;  %vm11120_vm15 = vmand %vm11057_vm2, %vm18044_vm1  ;;  %v11145_v16 = vsel %vm18054_vm13, 0.6, %v18039_v25  ;;  %v11150_v17 = vsel %vm10917_vm5, 0.6, %v18039_v25  ;;  %v18059_v24 = vmov 0  ;;  %vm1755_vm1 = vcmp.ne.s32.totalorder %v11065_v9, %v10475_v27 }
  0xfd   : > { %v18046_v29 = vsel %vm11120_vm15, 4294967295, %v18045_v29  ;;  %vm11135_vm14 = vmand %vm11083_vm6, %vm18050_vm8  ;;  %18055 = vst [vmem:[#allocation99_spill] sm:$0xff] %v11145_v16  ;;  %vm18057_vm8 = vcmp.lt.s32.totalorder %v10475_v27, 16  ;;  %vm18058_vm6 = vcmp.eq.s32.totalorder %v1344_v43, %v10477_v57  ;;  %v11176_v39 = vsel %vm10960_vm11, 0.6, %v18039_v25 }
  0xfe   : > { %18047 = vst [vmem:[#allocation96_spill] sm:$0xff] %v18046_v29  ;;  %v18052_v5 = vsel %vm11135_vm14, 4294967295, %v18051_v5  ;;  %18056 = vst [vmem:[#allocation100_spill] sm:$0xff] %v11150_v17  ;;  %v18064_v17 = vmov 0  ;;  %v11218_v54 = vsel %vm11120_vm15, 0.6, %v18039_v25 }
  0xff   : > { %18053 = vst [vmem:[#allocation98_spill] sm:$0xff] %v18052_v5  ;;  %vm11156_vm2 = vmand %vm18058_vm6, %vm18057_vm8 }
 0x100   : > { %v18060_v24 = vsel %vm11156_vm2, 4294967295, %v18059_v24  ;;  %vm18062_vm5 = vmmov %vm18057_vm8  ;;  %vm18074_vm8 = vcmp.ne.s32.totalorder %v11062_v50, %v10475_v27  ;;  %18078 = vst [vmem:[#allocation107_spill] sm:$0xff] %v11218_v54  ;;  %v11223_v50 = vsel %vm11135_vm14, 0.6, %v18039_v25  ;;  %v11237_v54 = vadd.s32 248, %v9830_v1 }
 0x101   : > { %18061 = vst [vmem:[#allocation101_spill] sm:$0xff] %v18060_v24  ;;  %vm18068_vm6 = vmmov %vm18062_vm5  ;;  %vm18117_vm14 = vcmp.ne.s32.totalorder %v11088_v4, %v10475_v27  ;;  %v18135_v4 = vmov 0 }
 0x102   : > { %18079 = vst [vmem:[#allocation108_spill] sm:$0xff] %v11223_v50 }
 0x119   : > { %v704_v22 = vpop.f32.mrb[0].mxu0 }
 0x11a   : > { %v8119_v19 = vadd.f32 -1.4, %v704_v22  ;;  %v8247_v32 = vadd.f32 0.4, %v704_v22  ;;  %v706_v34 = vpop.f32.mrb[1].mxu0  ;;  %v2923_v37 = vsub.f32 %v704_v22, %v10968_v46 }
 0x11b   : > { %v11108_v34 = vsel %vm18040_vm4, 0.6, %v18039_v25  ;;  %vm18048_vm4 = vnez %v17973_v55  ;;  %v11194_v22 = vsel %vm11010_vm12, 0.6, %v18039_v25 }
 0x11c   : > { %18041 = vst [vmem:[#allocation94_spill] sm:$0xff] %v11108_v34  ;;  %v2155_v38 = vmin.f32 %v8119_v19, 0.0  ;;  %v2411_v28 = vmax.f32 %v8247_v32, 0.0  ;;  %v11128_v34 = vsel %vm18048_vm4, 0.6, %v18039_v25  ;;  %v1184_v19 = vadd.s32 240, %v9830_v1 }
 0x11d   : > { %18049 = vst [vmem:[#allocation97_spill] sm:$0xff] %v11128_v34  ;;  %v710_v32 = vpop.f32.mrb[2].mxu0  ;;  %vm18063_vm4 = vcmp.eq.s32.totalorder %v1353_v36, %v10477_v57  ;;  %v11213_v36 = vadd.s32 232, %v9830_v1 }
 0x11e   : > { %v2539_v55 = vsel %vm18000_vm9, %v2155_v38, %v2411_v28  ;;  %v8123_v34 = vadd.f32 -1.4, %v710_v32  ;;  %v8251_v16 = vadd.f32 0.4, %v710_v32  ;;  %v712_v23 = vpop.f32.mrb[3].mxu0  ;;  %vm11168_vm13 = vmand %vm18063_vm4, %vm18062_vm5  ;;  %vm18069_vm5 = vnez %v17830_v61 }
 0x11f   : > { %v18065_v17 = vsel %vm11168_vm13, 4294967295, %v18064_v17  ;;  %v2795_v43 = vmul.f32 80.0, %v2539_v55  ;;  %v11181_v38 = vsel %vm10985_vm0, 0.6, %v18039_v25  ;;  %vm11187_vm4 = vmxor %vm18069_vm5, %vm18068_vm6  ;;  %v18070_v28 = vmov 0 }
 0x120   : > { %18066 = vst [vmem:[#allocation102_spill] sm:$0xff] %v18065_v17  ;;  %18067 = vst [vmem:[#allocation103_spill] sm:$0xff] %v11181_v38  ;;  %v18071_v28 = vsel %vm11187_vm4, 4294967295, %v18070_v28  ;;  %v2159_v55 = vmin.f32 %v8123_v34, 0.0  ;;  %v2415_v46 = vmax.f32 %v8251_v16, 0.0  ;;  %v18075_v61 = vmov 0 }
 0x121   : > { %18072 = vst [vmem:[#allocation104_spill] sm:$0xff] %v18071_v28  ;;  %v11199_v23 = vsel %vm11095_vm10, 0.6, %v18039_v25  ;;  %vm11206_vm6 = vmand %vm11156_vm2, %vm18074_vm8  ;;  %v11210_v16 = vmul.f32 %v2923_v37, %v2795_v43  ;;  %v716_v34 = vpop.f32.mrb[4].mxu0  ;;  %v18080_v37 = vmov 0  ;;  %v2927_v50 = vsub.f32 %v710_v32, %v10973_v52 }
 0x122   : > { %18073 = vst [vmem:[#allocation105_spill] sm:$0xff] %v11199_v23  ;;  %v18076_v61 = vsel %vm11206_vm6, 4294967295, %v18075_v61  ;;  %vm11230_vm5 = vmand %vm11168_vm13, %vm1755_vm1  ;;  %v2543_v43 = vsel %vm10654_vm7, %v2159_v55, %v2415_v46  ;;  %v8127_v24 = vadd.f32 -1.4, %v716_v34  ;;  %v8255_v23 = vadd.f32 0.4, %v716_v34 }
 0x123   : > { %18077 = vst [vmem:[#allocation106_spill] sm:$0xff] %v11210_v16  ;;  %v18081_v37 = vsel %vm11230_vm5, 4294967295, %v18080_v37  ;;  %v718_v5 = vpop.f32.mrb[5].mxu0  ;;  %v2799_v29 = vmul.f32 80.0, %v2543_v43  ;;  %v11243_v9 = vsel %vm11187_vm4, %v11210_v16, -1e+30  ;;  %vm18086_vm1 = vnez %v17878_v3 }
 0x124   : > { %18082 = vst [vmem:[#allocation109_spill] sm:$0xff] %v18081_v37  ;;  %18083 = vst [vmem:[#allocation110_spill] sm:$0xff] %v11243_v9  ;;  %v3179_v17 = vsel %vm18000_vm9, %v11210_v16, -1e+30  ;;  %v2163_v38 = vmin.f32 %v8127_v24, 0.0  ;;  %v2419_v55 = vmax.f32 %v8255_v23, 0.0  ;;  %vm18088_vm4 = vnez %v17832_v53 }
 0x125   : > { %v3691_v46 = vmax.f32 %v11243_v9, -1e+30  ;;  %v3499_v31 = vmax.f32 %v3179_v17, -1e+30  ;;  %v11249_v1 = vmul.f32 %v2927_v50, %v2799_v29  ;;  %v722_v5 = vpop.f32.mrb[6].mxu0  ;;  %v11266_v17 = vadd.s32 %v9699_v0, %v1184_v19 }
 0x126   : > { %v11254_v52 = vsel %vm11206_vm6, 0.6, %v18039_v25  ;;  %v11259_v32 = vsel %vm11230_vm5, 0.6, %v18039_v25  ;;  %v2547_v50 = vsel %vm18086_vm1, %v2163_v38, %v2419_v55  ;;  %v8131_v29 = vadd.f32 -1.4, %v722_v5  ;;  %v1350_v55 = vpop.permute.xlu1 %1349 }
 0x127   : > { %18084 = vst [vmem:[#allocation111_spill] sm:$0xff] %v11249_v1  ;;  %18085 = vst [vmem:[#allocation112_spill] sm:$0xff] %v11266_v17  ;;  %v8259_v23 = vadd.f32 0.4, %v722_v5  ;;  %v724_v43 = vpop.f32.mrb[7].mxu0  ;;  %vm18087_vm8 = vcmp.lt.s32.totalorder %v10475_v27, 16  ;;  %v2931_v24 = vsub.f32 %v716_v34, %v10978_v12  ;;  %vm18095_vm9 = vnez %v17834_v56 }
 0x128   : > { %vm11274_vm13 = vmxor %vm18088_vm4, %vm18087_vm8  ;;  %v18089_v28 = vmov 0  ;;  %v2803_v37 = vmul.f32 80.0, %v2547_v50  ;;  %v3692_v9 = vmax.f32 %v3691_v46, -1e+30  ;;  %v3500_v19 = vmax.f32 %v3499_v31, -1e+30 }
 0x129   : > { %v18090_v28 = vsel %vm11274_vm13, 4294967295, %v18089_v28  ;;  %v2167_v16 = vmin.f32 %v8131_v29, 0.0  ;;  %v2423_v59 = vmax.f32 %v8259_v23, 0.0  ;;  %v11282_v38 = vsel %vm11274_vm13, %v11249_v1, -1e+30  ;;  %v728_v12 = vpop.f32.mrb[8].mxu0  ;;  %vm18094_vm4 = vmmov %vm18087_vm8 }
 0x12a   : > { %18091 = vst [vmem:[#allocation113_spill] sm:$0xff] %v18090_v28  ;;  %18092 = vst [vmem:[#allocation114_spill] sm:$0xff] %v11282_v38  ;;  %v3183_v53 = vsel %vm10654_vm7, %v11249_v1, -1e+30  ;;  %v11289_v50 = vmul.f32 %v2931_v24, %v2803_v37  ;;  %v3693_v34 = vmax.f32 %v3692_v9, -1e+30  ;;  %vm18093_vm13 = vnez %v17892_v21  ;;  %v1359_v37 = vpop.permute.xlu0 %1358 }
 0x12b   : > { %v3501_v31 = vmax.f32 %v3500_v19, -1e+30  ;;  %v2551_v29 = vsel %vm18093_vm13, %v2167_v16, %v2423_v59  ;;  %v8135_v23 = vadd.f32 -1.4, %v728_v12  ;;  %v8263_v43 = vadd.f32 0.4, %v728_v12  ;;  %vm11302_vm2 = vmxor %vm18095_vm9, %vm18094_vm4 }
 0x12c   : > { %v730_v28 = vpop.f32.mrb[9].mxu0  ;;  %v18096_v9 = vmov 0  ;;  %v2807_v24 = vmul.f32 80.0, %v2551_v29  ;;  %v2935_v19 = vsub.f32 %v722_v5, %v10993_v41  ;;  %3694 = vmax.xlane.f32.xlu1 %v3693_v34  ;;  %v3696_v46 = vmax.f32 %v11282_v38, -1e+30  ;;  %vm18105_vm9 = vmmov %vm18087_vm8 }
 0x12d   : > { %v18097_v9 = vsel %vm11302_vm2, 4294967295, %v18096_v9  ;;  %3502 = vmax.xlane.f32.xlu0 %v3501_v31  ;;  %v3504_v59 = vmax.f32 %v3183_v53, -1e+30  ;;  %v2171_v16 = vmin.f32 %v8135_v23, 0.0  ;;  %v2427_v1 = vmax.f32 %v8263_v43, 0.0  ;;  %v734_v29 = vpop.f32.mrb[10].mxu0 }
 0x12e   : > { %18098 = vst [vmem:[#allocation115_spill] sm:$0xff] %v18097_v9  ;;  %v11311_v28 = vsel %vm11302_vm2, %v11289_v50, -1e+30  ;;  %v3187_v56 = vsel %vm18086_vm1, %v11289_v50, -1e+30  ;;  %v11316_v48 = vmul.f32 %v2935_v19, %v2807_v24  ;;  %vm18100_vm4 = vnez %v17888_v51  ;;  %v736_v43 = vpop.f32.mrb[11].mxu0 }
 0x12f   : > { %v3697_v41 = vmax.f32 %v3696_v46, -1e+30  ;;  %v3505_v5 = vmax.f32 %v3504_v59, -1e+30  ;;  %v2555_v34 = vsel %vm18100_vm4, %v2171_v16, %v2427_v1  ;;  %v8139_v31 = vadd.f32 -1.4, %v734_v29 }
 0x130   : > { %18099 = vst [vmem:[#allocation116_spill] sm:$0xff] %v11316_v48  ;;  %v8267_v23 = vadd.f32 0.4, %v734_v29  ;;  %v2811_v9 = vmul.f32 80.0, %v2555_v34  ;;  %v2939_v24 = vsub.f32 %v728_v12, %v10998_v33  ;;  %vm18101_vm2 = vnez %v17838_v2 }
 0x131   : > { %v3698_v19 = vmax.f32 %v3697_v41, -1e+30  ;;  %v3506_v38 = vmax.f32 %v3505_v5, -1e+30  ;;  %vm11330_vm7 = vmxor %vm18101_vm2, %vm18087_vm8  ;;  %v18102_v46 = vmov 0  ;;  %v2175_v59 = vmin.f32 %v8139_v31, 0.0 }
 0x132   : > { %v18103_v46 = vsel %vm11330_vm7, 4294967295, %v18102_v46  ;;  %v2431_v53 = vmax.f32 %v8267_v23, 0.0  ;;  %v3701_v1 = vmax.f32 %v11311_v28, -1e+30  ;;  %v3509_v16 = vmax.f32 %v3187_v56, -1e+30 }
 0x133   : > { %18104 = vst [vmem:[#allocation117_spill] sm:$0xff] %v18103_v46  ;;  %vm18106_vm1 = vcmp.eq.s32.totalorder %v1350_v55, %v10477_v57  ;;  %v18107_v33 = vmov 0  ;;  %v11347_v2 = vadd.s32 %v9699_v0, %v11213_v36  ;;  %3699 = vmax.xlane.f32.xlu0 %v3698_v19  ;;  %3507 = vmax.xlane.f32.xlu1 %v3506_v38  ;;  %v11349_v12 = vpop.f32.mrb[12].mxu0  ;;  %v3191_v56 = vsel %vm18093_vm13, %v11316_v48, -1e+30 }
 0x134   : > { %vm11339_vm5 = vmand %vm18106_vm1, %vm18105_vm9  ;;  %v11357_v55 = vsel %vm11330_vm7, %v11316_v48, -1e+30  ;;  %v11359_v41 = vmul.f32 %v2939_v24, %v2811_v9  ;;  %vm18112_vm2 = vnez %v17904_v47  ;;  %v8143_v36 = vadd.f32 -1.4, %v11349_v12  ;;  %v742_v34 = vpop.f32.mrb[13].mxu0 }
 0x135   : > { %v18108_v33 = vsel %vm11339_vm5, 4294967295, %v18107_v33  ;;  %18109 = vst [vmem:[#allocation118_spill] sm:$0xff] %v11347_v2  ;;  %18110 = vst [vmem:[#allocation119_spill] sm:$0xff] %v11357_v55  ;;  %v2559_v5 = vsel %vm18112_vm2, %v2175_v59, %v2431_v53  ;;  %v8271_v38 = vadd.f32 0.4, %v11349_v12  ;;  %v18115_v31 = vmov 0 }
 0x136   : > { %18111 = vst [vmem:[#allocation120_spill] sm:$0xff] %v11359_v41  ;;  %vm18113_vm1 = vmmov %vm18087_vm8  ;;  %vm18114_vm8 = vcmp.eq.s32.totalorder %v1359_v37, %v10477_v57  ;;  %v2815_v23 = vmul.f32 80.0, %v2559_v5  ;;  %v3702_v43 = vmax.f32 %v3701_v1, -1e+30  ;;  %v3510_v9 = vmax.f32 %v3509_v16, -1e+30 }
 0x137   : > { %vm11369_vm9 = vmand %vm18114_vm8, %vm18113_vm1  ;;  %v18118_v24 = vmov 0  ;;  %v2179_v37 = vmin.f32 %v8143_v36, 0.0  ;;  %v2435_v19 = vmax.f32 %v8271_v38, 0.0  ;;  %v3514_v59 = vmax.f32 %v3191_v56, -1e+30  ;;  %v11388_v46 = vpop.f32.mrb[14].mxu0  ;;  %v1356_v36 = vpop.permute.xlu1 %1355 }
 0x138   : > { %v18116_v31 = vsel %vm11369_vm9, 4294967295, %v18115_v31  ;;  %vm11382_vm7 = vmand %vm11339_vm5, %vm18117_vm14  ;;  %v3706_v1 = vmax.f32 %v11357_v55, -1e+30  ;;  %v2943_v16 = vsub.f32 %v734_v29, %v11018_v10  ;;  %v3703_v5 = vmax.f32 %v3702_v43, -1e+30  ;;  %v748_v43 = vpop.f32.mrb[15].mxu0 }
 0x139   : > { %v18119_v24 = vsel %vm11382_vm7, 4294967295, %v18118_v24  ;;  %v3511_v34 = vmax.f32 %v3510_v9, -1e+30  ;;  %vm18120_vm1 = vcmp.ne.s32.totalorder %v11266_v17, %v10475_v27  ;;  %v18121_v53 = vmov 0 }
 0x13a   : > { %vm11395_vm14 = vmand %vm11369_vm9, %vm18120_vm1  ;;  %v11401_v56 = vadd.s32 %v9699_v0, %v11237_v54  ;;  %vm18125_vm8 = vnez %v17895_v42  ;;  %v8147_v29 = vadd.f32 -1.4, %v11388_v46  ;;  %v8275_v38 = vadd.f32 0.4, %v11388_v46  ;;  %3704 = vmax.xlane.f32.xlu1 %v3703_v5 }
 0x13b   : > { %v18122_v53 = vsel %vm11395_vm14, 4294967295, %v18121_v53  ;;  %v2563_v10 = vsel %vm18125_vm8, %v2179_v37, %v2435_v19  ;;  %vm18126_vm13 = vcmp.lt.s32.totalorder %v10475_v27, 16  ;;  %vm18127_vm1 = vnez %v17836_v60  ;;  %3512 = vmax.xlane.f32.xlu0 %v3511_v34 }
 0x13c   : > { %18123 = vst [vmem:[#allocation121_spill] sm:$0xff] %v18122_v53  ;;  %18124 = vst [vmem:[#allocation122_spill] sm:$0xff] %v11401_v56  ;;  %v18128_v9 = vmov 0  ;;  %v11417_v0 = vmul.f32 %v2943_v16, %v2815_v23  ;;  %v3515_v54 = vmax.f32 %v3514_v59, -1e+30  ;;  %v2183_v43 = vmin.f32 %v8147_v29, 0.0 }
 0x13d   : > { %vm11411_vm9 = vmxor %vm18127_vm1, %vm18126_vm13  ;;  %v3707_v37 = vmax.f32 %v3706_v1, -1e+30  ;;  %v11422_v19 = vsel %vm11382_vm7, 0.6, %v18039_v25  ;;  %v2439_v60 = vmax.f32 %v8275_v38, 0.0  ;;  %v2819_v16 = vmul.f32 80.0, %v2563_v10 }
 0x13e   : > { %v18129_v9 = vsel %vm11411_vm9, 4294967295, %v18128_v9  ;;  %18131 = vst [vmem:[#allocation124_spill] sm:$0xff] %v11417_v0  ;;  %v3195_v17 = vsel %vm18100_vm4, %v11359_v41, -1e+30  ;;  %v11430_v23 = vsel %vm11411_vm9, %v11359_v41, -1e+30  ;;  %v2947_v29 = vsub.f32 %v11349_v12, %v11003_v13  ;;  %vm18133_vm1 = vmmov %vm18126_vm13  ;;  %v1362_v12 = vpop.permute.xlu1 %1361 }
 0x13f   : > { %18130 = vst [vmem:[#allocation123_spill] sm:$0xff] %v18129_v9  ;;  %18132 = vst [vmem:[#allocation125_spill] sm:$0xff] %v11430_v23  ;;  %v3516_v5 = vmax.f32 %v3515_v54, -1e+30  ;;  %v11432_v59 = vpop.f32.mrb[16].mxu0  ;;  %vm18134_vm5 = vnez %v17842_v11  ;;  %vm18138_vm4 = vnez %v17913_v44  ;;  %vm18145_vm7 = vnez %v17840_v6 }
 0x140   : > { %v11437_v1 = vsel %vm11395_vm14, 0.6, %v18039_v25  ;;  %v8151_v10 = vadd.f32 -1.4, %v11432_v59  ;;  %v8279_v38 = vadd.f32 0.4, %v11432_v59  ;;  %vm11452_vm9 = vmxor %vm18134_vm5, %vm18133_vm1  ;;  %v2567_v34 = vsel %vm18138_vm4, %v2183_v43, %v2439_v60 }
 0x141   : > { %v754_v54 = vpop.f32.mrb[17].mxu0  ;;  %v18136_v4 = vsel %vm11452_vm9, 4294967295, %v18135_v4  ;;  %3517 = vmax.xlane.f32.xlu0 %v3516_v5  ;;  %v3708_v9 = vmax.f32 %v3707_v37, -1e+30  ;;  %v3519_v41 = vmax.f32 %v3195_v17, -1e+30  ;;  %v11467_v48 = vmul.f32 %v2947_v29, %v2819_v16  ;;  %vm18144_vm5 = vmmov %vm18126_vm13 }
 0x142   : > { %18137 = vst [vmem:[#allocation126_spill] sm:$0xff] %v18136_v4  ;;  %v3711_v13 = vmax.f32 %v11430_v23, -1e+30  ;;  %v2187_v51 = vmin.f32 %v8151_v10, 0.0  ;;  %v2443_v55 = vmax.f32 %v8279_v38, 0.0  ;;  %v11469_v60 = vpop.f32.mrb[18].mxu0  ;;  %vm18140_vm1 = vnez %v17909_v7  ;;  %vm11494_vm6 = vmxor %vm18145_vm7, %vm18144_vm5 }
 0x143   : > { %v3199_v54 = vsel %vm18112_vm2, %v11417_v0, -1e+30  ;;  %v11465_v11 = vsel %vm11452_vm9, %v11417_v0, -1e+30  ;;  %v3520_v43 = vmax.f32 %v3519_v41, -1e+30  ;;  %vm18141_vm9 = vcmp.eq.s32.totalorder %v1356_v36, %v10477_v57 }
 0x144   : > { %18139 = vst [vmem:[#allocation127_spill] sm:$0xff] %v11465_v11  ;;  %v3712_v17 = vmax.f32 %v3711_v13, -1e+30  ;;  %v2571_v5 = vsel %vm18140_vm1, %v2187_v51, %v2443_v55  ;;  %v8155_v10 = vadd.f32 -1.4, %v11469_v60  ;;  %v760_v29 = vpop.f32.mrb[19].mxu0  ;;  %vm11485_vm14 = vmand %vm18141_vm9, %vm18126_vm13  ;;  %vm1503_vm2 = vcmp.eq.s32.totalorder %v1362_v12, %v10477_v57 }
 0x145   : > { %v8283_v16 = vadd.f32 0.4, %v11469_v60  ;;  %v18142_v41 = vmov 0  ;;  %v2823_v38 = vmul.f32 80.0, %v2567_v34  ;;  %3709 = vmax.xlane.f32.xlu0 %v3708_v9  ;;  %v3521_v13 = vmax.f32 %v3520_v43, -1e+30  ;;  %vm18153_vm13 = vmmov %vm18144_vm5 }
 0x146   : > { %v18143_v41 = vsel %vm11485_vm14, 4294967295, %v18142_v41  ;;  %v3713_v37 = vmax.f32 %v3712_v17, -1e+30  ;;  %v18146_v51 = vmov 0  ;;  %v2191_v55 = vmin.f32 %v8155_v10, 0.0  ;;  %v11501_v9 = vpop.f32.mrb[20].mxu0  ;;  %vm11528_vm5 = vmand %vm1503_vm2, %vm18153_vm13 }
 0x147   : > { %v18147_v51 = vsel %vm11494_vm6, 4294967295, %v18146_v51  ;;  %v2447_v36 = vmax.f32 %v8283_v16, 0.0  ;;  %v3524_v29 = vmax.f32 %v3199_v54, -1e+30  ;;  %v3716_v4 = vmax.f32 %v11465_v11, -1e+30  ;;  %3522 = vmax.xlane.f32.xlu1 %v3521_v13 }
 0x148   : > { %18148 = vst [vmem:[#allocation128_spill] sm:$0xff] %v18147_v51  ;;  %v2951_v0 = vsub.f32 %v11388_v46, %v11023_v30  ;;  %v2827_v34 = vmul.f32 80.0, %v2571_v5  ;;  %v3203_v6 = vsel %vm18125_vm8, %v11467_v48, -1e+30  ;;  %v11509_v43 = vsel %vm11494_vm6, %v11467_v48, -1e+30 }
 0x149   : > { %vm18149_vm7 = vcmp.ne.s32.totalorder %v11347_v2, %v10475_v27  ;;  %v18150_v30 = vmov 0  ;;  %v2955_v46 = vsub.f32 %v11432_v59, %v11028_v15  ;;  %v3525_v54 = vmax.f32 %v3524_v29, -1e+30  ;;  %v766_v59 = vpop.f32.mrb[21].mxu0 }
 0x14a   : > { %vm11516_vm9 = vmand %vm11485_vm14, %vm18149_vm7  ;;  %v8159_v17 = vadd.f32 -1.4, %v11501_v9  ;;  %v8287_v5 = vadd.f32 0.4, %v11501_v9  ;;  %v18154_v10 = vmov 0  ;;  %v11532_v16 = vmul.f32 %v2951_v0, %v2823_v38  ;;  %v11539_v23 = vpop.f32.mrb[22].mxu0 }
 0x14b   : > { %v18151_v30 = vsel %vm11516_vm9, 4294967295, %v18150_v30  ;;  %v18155_v10 = vsel %vm11528_vm5, 4294967295, %v18154_v10  ;;  %v2575_v13 = vsel %vm18018_vm3, %v2191_v55, %v2447_v36  ;;  %v3717_v2 = vmax.f32 %v3716_v4, -1e+30  ;;  %3714 = vmax.xlane.f32.xlu1 %v3713_v37  ;;  %v772_v36 = vpop.f32.mrb[23].mxu0 }
 0x14c   : > { %18152 = vst [vmem:[#allocation129_spill] sm:$0xff] %v18151_v30  ;;  %18156 = vst [vmem:[#allocation130_spill] sm:$0xff] %v11532_v16  ;;  %v3529_v15 = vmax.f32 %v3203_v6, -1e+30  ;;  %v3526_v29 = vmax.f32 %v3525_v54, -1e+30  ;;  %v2959_v57 = vsub.f32 %v11469_v60, %v11043_v45  ;;  %vm18157_vm2 = vcmp.ne.s32.totalorder %v11401_v56, %v10475_v27 }
 0x14d   : > { %v2195_v51 = vmin.f32 %v8159_v17, 0.0  ;;  %v2451_v11 = vmax.f32 %v8287_v5, 0.0  ;;  %v3721_v47 = vmax.f32 %v11509_v43, -1e+30  ;;  %v11544_v0 = vsel %vm11516_vm9, 0.6, %v18039_v25  ;;  %vm11555_vm7 = vmand %vm11528_vm5, %vm18157_vm2 }
 0x14e   : > { %v3530_v12 = vmax.f32 %v3529_v15, -1e+30  ;;  %v18158_v45 = vmov 0  ;;  %v11559_v60 = vmul.f32 %v2955_v46, %v2827_v34  ;;  %v2831_v37 = vmul.f32 80.0, %v2575_v13  ;;  %3527 = vmax.xlane.f32.xlu0 %v3526_v29  ;;  %v11581_v29 = vpop.f32.mrb[24].mxu0 }
 0x14f   : > { %v18159_v45 = vsel %vm11555_vm7, 4294967295, %v18158_v45  ;;  %v8163_v38 = vadd.f32 -1.4, %v11539_v23  ;;  %v8291_v55 = vadd.f32 0.4, %v11539_v23  ;;  %vm18161_vm6 = vnez %v17847_v20 }
 0x150   : > { %18160 = vst [vmem:[#allocation131_spill] sm:$0xff] %v18159_v45  ;;  %vm11567_vm8 = vmxor %vm18161_vm6, %vm18153_vm13  ;;  %v18162_v6 = vmov 0  ;;  %vm18165_vm2 = vnez %v17921_v18  ;;  %v3718_v34 = vmax.f32 %v3717_v2, -1e+30  ;;  %v3531_v46 = vmax.f32 %v3530_v12, -1e+30 }
 0x151   : > { %v18163_v6 = vsel %vm11567_vm8, 4294967295, %v18162_v6  ;;  %v2579_v54 = vsel %vm18165_vm2, %v2195_v51, %v2451_v11  ;;  %v3722_v17 = vmax.f32 %v3721_v47, -1e+30  ;;  %v2199_v5 = vmin.f32 %v8163_v38, 0.0  ;;  %vm18168_vm6 = vmmov %vm18153_vm13 }
 0x152   : > { %18164 = vst [vmem:[#allocation132_spill] sm:$0xff] %v18163_v6  ;;  %v2455_v13 = vmax.f32 %v8291_v55, 0.0  ;;  %v3207_v15 = vsel %vm18138_vm4, %v11532_v16, -1e+30  ;;  %v11579_v20 = vsel %vm11567_vm8, %v11532_v16, -1e+30  ;;  %3532 = vmax.xlane.f32.xlu1 %v3531_v46  ;;  %v11592_v11 = vmul.f32 %v2959_v57, %v2831_v37  ;;  %3719 = vmax.xlane.f32.xlu0 %v3718_v34 }
 0x153   : > { %18166 = vst [vmem:[#allocation133_spill] sm:$0xff] %v11579_v20  ;;  %v3534_v59 = vmax.f32 %v3207_v15, -1e+30  ;;  %v11586_v2 = vsel %vm11555_vm7, 0.6, %v18039_v25  ;;  %v2835_v51 = vmul.f32 80.0, %v2579_v54  ;;  %vm18169_vm13 = vnez %v17844_v14 }
 0x154   : > { %18167 = vst [vmem:[#allocation134_spill] sm:$0xff] %v11592_v11  ;;  %v8167_v12 = vadd.f32 -1.4, %v11581_v29  ;;  %v8295_v38 = vadd.f32 0.4, %v11581_v29  ;;  %v778_v55 = vpop.f32.mrb[25].mxu0  ;;  %vm11600_vm8 = vmxor %vm18169_vm13, %vm18168_vm6  ;;  %vm18173_vm5 = vnez %v17940_v8 }
 0x155   : > { %v18170_v25 = vmov 0  ;;  %v2583_v36 = vsel %vm18173_vm5, %v2199_v5, %v2455_v13  ;;  %v3723_v57 = vmax.f32 %v3722_v17, -1e+30  ;;  %v3535_v37 = vmax.f32 %v3534_v59, -1e+30  ;;  %v11617_v5 = vpop.f32.mrb[26].mxu0 }
 0x156   : > { %v18171_v25 = vsel %vm11600_vm8, 4294967295, %v18170_v25  ;;  %v3726_v54 = vmax.f32 %v11579_v20, -1e+30  ;;  %v2203_v34 = vmin.f32 %v8167_v12, 0.0  ;;  %v2459_v46 = vmax.f32 %v8295_v38, 0.0  ;;  %v18177_v20 = vld [vmem:[#allocation62_spill] sm:$0xff] }
 0x157   : > { %18172 = vst [vmem:[#allocation135_spill] sm:$0xff] %v18171_v25  ;;  %v3211_v15 = vsel %vm18140_vm1, %v11559_v60, -1e+30  ;;  %v11613_v14 = vsel %vm11600_vm8, %v11559_v60, -1e+30  ;;  %3724 = vmax.xlane.f32.xlu1 %v3723_v57  ;;  %v2963_v17 = vsub.f32 %v11501_v9, %v11048_v63  ;;  %v2839_v38 = vmul.f32 80.0, %v2583_v36 }
 0x158   : > { %18174 = vst [vmem:[#allocation136_spill] sm:$0xff] %v11613_v14  ;;  %v3536_v55 = vmax.f32 %v3535_v37, -1e+30  ;;  %v3727_v47 = vmax.f32 %v3726_v54, -1e+30  ;;  %v784_v54 = vpop.f32.mrb[27].mxu0  ;;  %vm18178_vm6 = vnez %v18177_v20 }
 0x159   : > { %v3539_v4 = vmax.f32 %v3211_v15, -1e+30  ;;  %v3731_v13 = vmax.f32 %v11613_v14, -1e+30  ;;  %v3215_v59 = vsel %vm18018_vm3, %v11592_v11, -1e+30  ;;  %v11627_v15 = vmul.f32 %v2963_v17, %v2835_v51 }
 0x15a   : > { %3537 = vmax.xlane.f32.xlu0 %v3536_v55  ;;  %v3728_v57 = vmax.f32 %v3727_v47, -1e+30  ;;  %v8171_v63 = vadd.f32 -1.4, %v11617_v5  ;;  %v8299_v9 = vadd.f32 0.4, %v11617_v5  ;;  %v2587_v16 = vsel %vm18178_vm6, %v2203_v34, %v2459_v46 }
 0x15b   : > { %v3540_v37 = vmax.f32 %v3539_v4, -1e+30  ;;  %18175 = vst [vmem:[#allocation137_spill] sm:$0xff] %v11627_v15  ;;  %v3732_v56 = vmax.f32 %v3731_v13, -1e+30  ;;  %v18176_v25 = vld [vmem:[#allocation89_spill] sm:$0xff] }
 0x15c   : > { %v2967_v6 = vsub.f32 %v11539_v23, %v18176_v25  ;;  %v3544_v12 = vmax.f32 %v3215_v59, -1e+30  ;;  %v11635_v36 = vpop.f32.mrb[28].mxu0  ;;  %vm18179_vm13 = vcmp.lt.s32.totalorder %v10475_v27, 16  ;;  %v18180_v4 = vld [vmem:[#allocation42_spill] sm:$0xff]  ;;  %v18182_v47 = vmov 0 }
 0x15d   : > { %v3541_v7 = vmax.f32 %v3540_v37, -1e+30  ;;  %vm18181_vm8 = vnez %v18180_v4  ;;  %v2207_v51 = vmin.f32 %v8171_v63, 0.0  ;;  %v2463_v55 = vmax.f32 %v8299_v9, 0.0  ;;  %v18185_v25 = vld [vmem:[#allocation85_spill] sm:$0xff] }
 0x15e   : > { %vm11641_vm1 = vmxor %vm18181_vm8, %vm18179_vm13  ;;  %v3733_v17 = vmax.f32 %v3732_v56, -1e+30  ;;  %v8175_v23 = vadd.f32 -1.4, %v11635_v36  ;;  %v2971_v34 = vsub.f32 %v11581_v29, %v18185_v25  ;;  %3729 = vmax.xlane.f32.xlu0 %v3728_v57  ;;  %v3545_v46 = vmax.f32 %v3544_v12, -1e+30 }
 0x15f   : > { %v18183_v47 = vsel %vm11641_vm1, 4294967295, %v18182_v47  ;;  %3542 = vmax.xlane.f32.xlu1 %v3541_v7  ;;  %v8303_v13 = vadd.f32 0.4, %v11635_v36  ;;  %v11652_v59 = vsel %vm11641_vm1, %v11592_v11, -1e+30  ;;  %v11654_v37 = vmul.f32 %v2967_v6, %v2839_v38  ;;  %v790_v29 = vpop.f32.mrb[29].mxu0  ;;  %vm18188_vm8 = vmmov %vm18179_vm13 }
 0x160   : > { %18184 = vst [vmem:[#allocation89_spill] sm:$0xff] %v18183_v47  ;;  %18186 = vst [vmem:[#allocation42_spill] sm:$0xff] %v11652_v59  ;;  %v2843_v54 = vmul.f32 80.0, %v2587_v16  ;;  %v3736_v56 = vmax.f32 %v11652_v59, -1e+30  ;;  %v18189_v7 = vld [vmem:[#allocation41_spill] sm:$0xff]  ;;  %vm18194_vm1 = vnez %v17961_v49 }
 0x161   : > { %18187 = vst [vmem:[#allocation85_spill] sm:$0xff] %v11654_v37  ;;  %v3219_v63 = vsel %vm18165_vm2, %v11627_v15, -1e+30  ;;  %vm18190_vm13 = vnez %v18189_v7  ;;  %v18191_v12 = vmov 0  ;;  %v2591_v6 = vsel %vm18194_vm1, %v2207_v51, %v2463_v55  ;;  %v11670_v25 = vpop.f32.mrb[30].mxu0  ;;  %v18230_v8 = vld [vmem:[#allocation97_spill] sm:$0xff] }
 0x162   : > { %vm11664_vm4 = vmxor %vm18190_vm13, %vm18188_vm8  ;;  %v3546_v38 = vmax.f32 %v3545_v46, -1e+30  ;;  %v2211_v16 = vmin.f32 %v8175_v23, 0.0  ;;  %v3549_v57 = vmax.f32 %v3219_v63, -1e+30  ;;  %v2467_v9 = vmax.f32 %v8303_v13, 0.0 }
 0x163   : > { %v18192_v12 = vsel %vm11664_vm4, 4294967295, %v18191_v12  ;;  %v3737_v4 = vmax.f32 %v3736_v56, -1e+30  ;;  %v11675_v29 = vsel %vm11664_vm4, %v11627_v15, -1e+30  ;;  %v2975_v51 = vsub.f32 %v11617_v5, %v11103_v40  ;;  %3734 = vmax.xlane.f32.xlu1 %v3733_v17  ;;  %v796_v46 = vpop.f32.mrb[31].mxu0 }
 0x164   : > { %18193 = vst [vmem:[#allocation41_spill] sm:$0xff] %v18192_v12  ;;  %18195 = vst [vmem:[#allocation138_spill] sm:$0xff] %v11675_v29  ;;  %3547 = vmax.xlane.f32.xlu0 %v3546_v38  ;;  %v3550_v55 = vmax.f32 %v3549_v57, -1e+30  ;;  %v8179_v23 = vadd.f32 -1.4, %v11670_v25  ;;  %v11684_v13 = vmul.f32 %v2971_v34, %v2843_v54 }
 0x165   : > { %v2847_v56 = vmul.f32 80.0, %v2591_v6  ;;  %v3738_v63 = vmax.f32 %v3737_v4, -1e+30  ;;  %v8307_v12 = vadd.f32 0.4, %v11670_v25  ;;  %v11688_v7 = vpop.f32.mrb[32].mxu0 }
 0x166   : > { %18196 = vst [vmem:[#allocation139_spill] sm:$0xff] %v11684_v13  ;;  %v3551_v47 = vmax.f32 %v3550_v55, -1e+30  ;;  %v2215_v14 = vmin.f32 %v8179_v23, 0.0  ;;  %v3741_v58 = vmax.f32 %v11675_v29, -1e+30 }
 0x167   : > { %v18197_v5 = vld [vmem:[#allocation65_spill] sm:$0xff]  ;;  %v2471_v34 = vmax.f32 %v8307_v12, 0.0  ;;  %v3223_v54 = vsel %vm18173_vm5, %v11654_v37, -1e+30  ;;  %v8183_v6 = vadd.f32 -1.4, %v11688_v7 }
 0x168   : > { %vm18198_vm8 = vnez %v18197_v5  ;;  %v802_v38 = vpop.f32.mrb[33].mxu0  ;;  %vm18199_vm13 = vcmp.lt.s32.totalorder %v10475_v27, 16  ;;  %v18200_v57 = vld [vmem:[#allocation45_spill] sm:$0xff]  ;;  %v18202_v4 = vmov 0  ;;  %v18205_v55 = vld [vmem:[#allocation90_spill] sm:$0xff]  ;;  %3739 = vmax.xlane.f32.xlu0 %v3738_v63  ;;  %3552 = vmax.xlane.f32.xlu1 %v3551_v47  ;;  %v18206_v46 = vld [vmem:[#allocation72_spill] sm:$0xff] }
 0x169   : > { %v2595_v17 = vsel %vm18198_vm8, %v2211_v16, %v2467_v9  ;;  %vm18201_vm4 = vnez %v18200_v57  ;;  %v2979_v23 = vsub.f32 %v11635_v36, %v18205_v55  ;;  %v3742_v12 = vmax.f32 %v3741_v58, -1e+30 }
 0x16a   : > { %vm11704_vm3 = vmxor %vm18201_vm4, %vm18199_vm13  ;;  %v3554_v16 = vmax.f32 %v3223_v54, -1e+30  ;;  %v8311_v9 = vadd.f32 0.4, %v11688_v7  ;;  %vm18207_vm2 = vnez %v18206_v46  ;;  %v2219_v40 = vmin.f32 %v8183_v6, 0.0  ;;  %v9268_v46 = vld [vmem:[%s9852_s22 + $0x38] sm:$0xff] }
 0x16b   : > { %v18203_v4 = vsel %vm11704_vm3, 4294967295, %v18202_v4  ;;  %v2599_v38 = vsel %vm18207_vm2, %v2215_v14, %v2471_v34  ;;  %v11716_v57 = vsel %vm11704_vm3, %v11654_v37, -1e+30  ;;  %v3227_v29 = vsel %vm18178_vm6, %v11684_v13, -1e+30  ;;  %v11724_v14 = vpop.f32.mrb[34].mxu0 }
 0x16c   : > { %18204 = vst [vmem:[#allocation65_spill] sm:$0xff] %v18203_v4  ;;  %18208 = vst [vmem:[#allocation45_spill] sm:$0xff] %v11716_v57  ;;  %v2851_v36 = vmul.f32 80.0, %v2595_v17  ;;  %v3743_v63 = vmax.f32 %v3742_v12, -1e+30  ;;  %v2475_v58 = vmax.f32 %v8311_v9, 0.0  ;;  %v11721_v54 = vmul.f32 %v2975_v51, %v2847_v56 }
 0x16d   : > { %v3555_v47 = vmax.f32 %v3554_v16, -1e+30  ;;  %v3746_v55 = vmax.f32 %v11716_v57, -1e+30  ;;  %v3559_v15 = vmax.f32 %v3227_v29, -1e+30  ;;  %vm18209_vm4 = vnez %v17964_v26 }
 0x16e   : > { %v2855_v6 = vmul.f32 80.0, %v2599_v38  ;;  %3744 = vmax.xlane.f32.xlu1 %v3743_v63  ;;  %v2603_v17 = vsel %vm18209_vm4, %v2219_v40, %v2475_v58  ;;  %v8187_v12 = vadd.f32 -1.4, %v11724_v14  ;;  %v808_v51 = vpop.f32.mrb[35].mxu0  ;;  %v18210_v56 = vld [vmem:[#allocation43_spill] sm:$0xff]  ;;  %v18212_v29 = vmov 0 }
 0x16f   : > { %v3556_v4 = vmax.f32 %v3555_v47, -1e+30  ;;  %vm18211_vm3 = vnez %v18210_v56  ;;  %v18215_v16 = vld [vmem:[#allocation94_spill] sm:$0xff]  ;;  %v2859_v38 = vmul.f32 80.0, %v2603_v17  ;;  %v3747_v63 = vmax.f32 %v3746_v55, -1e+30 }
 0x170   : > { %vm11737_vm14 = vmxor %vm18211_vm3, %vm18199_vm13  ;;  %v2983_v9 = vsub.f32 %v11670_v25, %v18215_v16  ;;  %v3560_v47 = vmax.f32 %v3559_v15, -1e+30  ;;  %v11743_v34 = vmul.f32 %v2979_v23, %v2851_v36  ;;  %v2223_v40 = vmin.f32 %v8187_v12, 0.0  ;;  %v11751_v56 = vpop.f32.mrb[36].mxu0  ;;  %v18217_v57 = vld [vmem:[#allocation95_spill] sm:$0xff]  ;;  %v18220_v16 = vld [vmem:[#allocation52_spill] sm:$0xff] }
 0x171   : > { %v18213_v29 = vsel %vm11737_vm14, 4294967295, %v18212_v29  ;;  %3557 = vmax.xlane.f32.xlu0 %v3556_v4  ;;  %v8315_v58 = vadd.f32 0.4, %v11724_v14  ;;  %v11749_v51 = vsel %vm11737_vm14, %v11684_v13, -1e+30  ;;  %v2987_v37 = vsub.f32 %v11688_v7, %v18217_v57  ;;  %v814_v12 = vpop.f32.mrb[37].mxu0  ;;  %vm18219_vm3 = vmmov %vm18199_vm13 }
 0x172   : > { %18214 = vst [vmem:[#allocation90_spill] sm:$0xff] %v18213_v29  ;;  %18216 = vst [vmem:[#allocation72_spill] sm:$0xff] %v11749_v51  ;;  %v3748_v25 = vmax.f32 %v3747_v63, -1e+30  ;;  %v3561_v17 = vmax.f32 %v3560_v47, -1e+30  ;;  %v11756_v23 = vmul.f32 %v2983_v9, %v2855_v6  ;;  %vm18221_vm13 = vnez %v18220_v16 }
 0x173   : > { %v3751_v15 = vmax.f32 %v11749_v51, -1e+30  ;;  %v2479_v4 = vmax.f32 %v8315_v58, 0.0  ;;  %v3231_v36 = vsel %vm18194_vm1, %v11721_v54, -1e+30  ;;  %vm11766_vm14 = vmxor %vm18221_vm13, %vm18219_vm3  ;;  %v18222_v7 = vmov 0 }
 0x174   : > { %18218 = vst [vmem:[#allocation43_spill] sm:$0xff] %v11756_v23  ;;  %v8191_v55 = vadd.f32 -1.4, %v11751_v56  ;;  %v18223_v7 = vsel %vm11766_vm14, 4294967295, %v18222_v7  ;;  %3562 = vmax.xlane.f32.xlu1 %v3561_v17  ;;  %v3564_v6 = vmax.f32 %v3231_v36, -1e+30  ;;  %v11789_v13 = vmul.f32 %v2987_v37, %v2859_v38 }
 0x175   : > { %18224 = vst [vmem:[#allocation94_spill] sm:$0xff] %v18223_v7  ;;  %v3752_v57 = vmax.f32 %v3751_v15, -1e+30  ;;  %v8319_v9 = vadd.f32 0.4, %v11751_v56  ;;  %3749 = vmax.xlane.f32.xlu0 %v3748_v25  ;;  %v18225_v47 = vld [vmem:[#allocation75_spill] sm:$0xff]  ;;  %v2995_v18 = vsub.f32 %v11751_v56, %v18230_v8 }
 0x176   : > { %vm18226_vm5 = vnez %v18225_v47  ;;  %v2227_v12 = vmin.f32 %v8191_v55, 0.0  ;;  %v11780_v16 = vsel %vm11766_vm14, %v11721_v54, -1e+30  ;;  %v3235_v17 = vsel %vm18198_vm8, %v11743_v34, -1e+30  ;;  %v11785_v15 = vpop.f32.mrb[38].mxu0 }
 0x177   : > { %v2607_v58 = vsel %vm18226_vm5, %v2223_v40, %v2479_v4  ;;  %18227 = vst [vmem:[#allocation95_spill] sm:$0xff] %v11780_v16  ;;  %v18228_v36 = vld [vmem:[#allocation99_spill] sm:$0xff]  ;;  %v3753_v63 = vmax.f32 %v3752_v57, -1e+30  ;;  %v3565_v25 = vmax.f32 %v3564_v6, -1e+30 }
 0x178   : > { %v2991_v29 = vsub.f32 %v11724_v14, %v18228_v36  ;;  %v2483_v51 = vmax.f32 %v8319_v9, 0.0  ;;  %18229 = vst [vmem:[#allocation52_spill] sm:$0xff] %v11789_v13  ;;  %v3756_v40 = vmax.f32 %v11780_v16, -1e+30  ;;  %v3569_v4 = vmax.f32 %v3235_v17, -1e+30 }
 0x179   : > { %v8195_v55 = vadd.f32 -1.4, %v11785_v15  ;;  %v2863_v7 = vmul.f32 80.0, %v2607_v58  ;;  %3754 = vmax.xlane.f32.xlu1 %v3753_v63  ;;  %v3566_v20 = vmax.f32 %v3565_v25, -1e+30  ;;  %v820_v11 = vpop.f32.mrb[39].mxu0 }
 0x17a   : > { %v8323_v59 = vadd.f32 0.4, %v11785_v15  ;;  %v18231_v14 = vld [vmem:[#allocation46_spill] sm:$0xff]  ;;  %v18233_v37 = vmov 0  ;;  %v3757_v6 = vmax.f32 %v3756_v40, -1e+30 }
 0x17b   : > { %vm18232_vm13 = vnez %v18231_v14  ;;  %v18236_v38 = vld [vmem:[#allocation74_spill] sm:$0xff]  ;;  %v3570_v9 = vmax.f32 %v3569_v4, -1e+30  ;;  %v2231_v63 = vmin.f32 %v8195_v55, 0.0  ;;  %3567 = vmax.xlane.f32.xlu0 %v3566_v20  ;;  %v3239_v11 = vsel %vm18207_vm2, %v11756_v23, -1e+30 }
 0x17c   : > { %vm11800_vm14 = vmxor %vm18232_vm13, %vm18219_vm3  ;;  %vm18237_vm6 = vnez %v18236_v38  ;;  %v2487_v58 = vmax.f32 %v8323_v59, 0.0  ;;  %v11814_v56 = vpop.f32.mrb[40].mxu0  ;;  %v2999_v20 = vsub.f32 %v11785_v15, %v11176_v39  ;;  %v18238_v36 = vld [vmem:[#allocation59_spill] sm:$0xff]  ;;  %v18240_v25 = vmov 0 }
 0x17d   : > { %v18234_v37 = vsel %vm11800_vm14, 4294967295, %v18233_v37  ;;  %v2611_v57 = vsel %vm18237_vm6, %v2227_v12, %v2483_v51  ;;  %v11809_v8 = vsel %vm11800_vm14, %v11743_v34, -1e+30  ;;  %v3758_v12 = vmax.f32 %v3757_v6, -1e+30  ;;  %v18265_v26 = vld [vmem:[#allocation63_spill] sm:$0xff] }
 0x17e   : > { %18235 = vst [vmem:[#allocation99_spill] sm:$0xff] %v18234_v37  ;;  %v3571_v17 = vmax.f32 %v3570_v9, -1e+30  ;;  %v3761_v59 = vmax.f32 %v11809_v8, -1e+30  ;;  %vm18239_vm13 = vnez %v18238_v36  ;;  %v2615_v40 = vsel %vm10960_vm11, %v2231_v63, %v2487_v58  ;;  %v826_v36 = vpop.f32.mrb[41].mxu0 }
 0x17f   : > { %vm11827_vm14 = vmxor %vm18239_vm13, %vm18219_vm3  ;;  %v3574_v4 = vmax.f32 %v3239_v11, -1e+30  ;;  %v8199_v55 = vadd.f32 -1.4, %v11814_v56  ;;  %v8327_v14 = vadd.f32 0.4, %v11814_v56  ;;  %v11835_v6 = vmul.f32 %v2991_v29, %v2863_v7  ;;  %3759 = vmax.xlane.f32.xlu0 %v3758_v12 }
 0x180   : > { %v18241_v25 = vsel %vm11827_vm14, 4294967295, %v18240_v25  ;;  %v2867_v39 = vmul.f32 80.0, %v2611_v57  ;;  %3572 = vmax.xlane.f32.xlu1 %v3571_v17  ;;  %v3762_v15 = vmax.f32 %v3761_v59, -1e+30  ;;  %v11840_v9 = vsel %vm11827_vm14, %v11756_v23, -1e+30 }
 0x181   : > { %18242 = vst [vmem:[#allocation97_spill] sm:$0xff] %v18241_v25  ;;  %18243 = vst [vmem:[#allocation46_spill] sm:$0xff] %v11835_v6  ;;  %v3575_v51 = vmax.f32 %v3574_v4, -1e+30  ;;  %v2235_v37 = vmin.f32 %v8199_v55, 0.0  ;;  %v2491_v63 = vmax.f32 %v8327_v14, 0.0 }
 0x182   : > { %18244 = vst [vmem:[#allocation59_spill] sm:$0xff] %v11840_v9  ;;  %v3766_v58 = vmax.f32 %v11840_v9, -1e+30  ;;  %v2871_v11 = vmul.f32 80.0, %v2615_v40  ;;  %v3763_v16 = vmax.f32 %v3762_v15, -1e+30  ;;  %v11862_v15 = vmul.f32 %v2995_v18, %v2867_v39 }
 0x183   : > { %v3243_v29 = vsel %vm18209_vm4, %v11789_v13, -1e+30  ;;  %v11846_v7 = vpop.f32.mrb[42].mxu0  ;;  %v3576_v17 = vmax.f32 %v3575_v51, -1e+30  ;;  %v18245_v12 = vld [vmem:[#allocation76_spill] sm:$0xff] }
 0x184   : > { %vm18246_vm3 = vnez %v18245_v12  ;;  %v3767_v4 = vmax.f32 %v3766_v58, -1e+30  ;;  %v3579_v55 = vmax.f32 %v3243_v29, -1e+30  ;;  %vm18247_vm13 = vcmp.lt.s32.totalorder %v10475_v27, 16  ;;  %v18248_v40 = vld [vmem:[#allocation56_spill] sm:$0xff]  ;;  %3764 = vmax.xlane.f32.xlu1 %v3763_v16 }
 0x185   : > { %v2619_v59 = vsel %vm18246_vm3, %v2235_v37, %v2491_v63  ;;  %vm18249_vm14 = vnez %v18248_v40  ;;  %v18250_v14 = vmov 0  ;;  %18253 = vst [vmem:[#allocation140_spill] sm:$0xff] %v11862_v15  ;;  %v18254_v36 = vld [vmem:[#allocation100_spill] sm:$0xff]  ;;  %v8203_v51 = vadd.f32 -1.4, %v11846_v7  ;;  %v832_v63 = vpop.f32.mrb[43].mxu0  ;;  %3577 = vmax.xlane.f32.xlu0 %v3576_v17 }
 0x186   : > { %vm11858_vm1 = vmxor %vm18249_vm14, %vm18247_vm13  ;;  %v3003_v57 = vsub.f32 %v11814_v56, %v18254_v36  ;;  %v8331_v37 = vadd.f32 0.4, %v11846_v7  ;;  %v3768_v58 = vmax.f32 %v3767_v4, -1e+30  ;;  %v3580_v29 = vmax.f32 %v3579_v55, -1e+30 }
 0x187   : > { %v18251_v14 = vsel %vm11858_vm1, 4294967295, %v18250_v14  ;;  %v11871_v40 = vsel %vm11858_vm1, %v11789_v13, -1e+30  ;;  %v2875_v16 = vmul.f32 80.0, %v2619_v59  ;;  %v2239_v56 = vmin.f32 %v8203_v51, 0.0  ;;  %v11878_v25 = vpop.f32.mrb[44].mxu0  ;;  %vm18257_vm14 = vmmov %vm18247_vm13 }
 0x188   : > { %18252 = vst [vmem:[#allocation56_spill] sm:$0xff] %v18251_v14  ;;  %18255 = vst [vmem:[#allocation100_spill] sm:$0xff] %v11871_v40  ;;  %v2495_v39 = vmax.f32 %v8331_v37, 0.0  ;;  %v3771_v36 = vmax.f32 %v11871_v40, -1e+30  ;;  %v11880_v17 = vmul.f32 %v2999_v20, %v2871_v11  ;;  %v18258_v14 = vld [vmem:[#allocation66_spill] sm:$0xff] }
 0x189   : > { %v3581_v4 = vmax.f32 %v3580_v29, -1e+30  ;;  %v3247_v55 = vsel %vm18226_vm5, %v11835_v6, -1e+30  ;;  %v8207_v63 = vadd.f32 -1.4, %v11878_v25  ;;  %vm18259_vm13 = vnez %v18258_v14  ;;  %3769 = vmax.xlane.f32.xlu0 %v3768_v58 }
 0x18a   : > { %18256 = vst [vmem:[#allocation141_spill] sm:$0xff] %v11880_v17  ;;  %vm11890_vm1 = vmxor %vm18259_vm13, %vm18257_vm14  ;;  %v18260_v59 = vmov 0  ;;  %v2623_v51 = vsel %vm11010_vm12, %v2239_v56, %v2495_v39  ;;  %v3772_v20 = vmax.f32 %v3771_v36, -1e+30  ;;  %v3584_v11 = vmax.f32 %v3247_v55, -1e+30 }
 0x18b   : > { %v18261_v59 = vsel %vm11890_vm1, 4294967295, %v18260_v59  ;;  %v8335_v37 = vadd.f32 0.4, %v11878_v25  ;;  %3582 = vmax.xlane.f32.xlu1 %v3581_v4  ;;  %v3007_v29 = vsub.f32 %v11846_v7, %v11194_v22  ;;  %v2243_v18 = vmin.f32 %v8207_v63, 0.0  ;;  %v838_v55 = vpop.f32.mrb[45].mxu0  ;;  %v18281_v40 = vld [vmem:[#allocation68_spill] sm:$0xff] }
 0x18c   : > { %18262 = vst [vmem:[#allocation66_spill] sm:$0xff] %v18261_v59  ;;  %v11902_v14 = vsel %vm11890_vm1, %v11835_v6, -1e+30  ;;  %v3251_v9 = vsel %vm18237_vm6, %v11862_v15, -1e+30  ;;  %v2879_v22 = vmul.f32 80.0, %v2623_v51  ;;  %vm18266_vm13 = vnez %v18265_v26 }
 0x18d   : > { %18263 = vst [vmem:[#allocation142_spill] sm:$0xff] %v11902_v14  ;;  %v3773_v56 = vmax.f32 %v3772_v20, -1e+30  ;;  %v3585_v39 = vmax.f32 %v3584_v11, -1e+30  ;;  %v2499_v36 = vmax.f32 %v8335_v37, 0.0  ;;  %vm11922_vm1 = vmxor %vm18266_vm13, %vm18257_vm14 }
 0x18e   : > { %v3776_v7 = vmax.f32 %v11902_v14, -1e+30  ;;  %v3589_v4 = vmax.f32 %v3251_v9, -1e+30  ;;  %v842_v63 = vpop.f32.mrb[46].mxu0  ;;  %v18264_v20 = vld [vmem:[#allocation83_spill] sm:$0xff]  ;;  %v11926_v9 = vmul.f32 %v3003_v57, %v2875_v16 }
 0x18f   : > { %v3586_v23 = vmax.f32 %v3585_v39, -1e+30  ;;  %v2627_v11 = vsel %vm10985_vm0, %v2243_v18, %v2499_v36  ;;  %v8211_v37 = vadd.f32 -1.4, %v842_v63  ;;  %v8339_v55 = vadd.f32 0.4, %v842_v63  ;;  %3774 = vmax.xlane.f32.xlu1 %v3773_v56 }
 0x190   : > { %v18267_v51 = vmov 0  ;;  %18270 = vst [vmem:[#allocation63_spill] sm:$0xff] %v11926_v9  ;;  %v2883_v58 = vmul.f32 80.0, %v2627_v11  ;;  %v3777_v47 = vmax.f32 %v3776_v7, -1e+30  ;;  %v844_v39 = vpop.f32.mrb[47].mxu0 }
 0x191   : > { %v18268_v51 = vsel %vm11922_vm1, 4294967295, %v18267_v51  ;;  %v3590_v59 = vmax.f32 %v3589_v4, -1e+30  ;;  %3587 = vmax.xlane.f32.xlu0 %v3586_v23  ;;  %v2247_v14 = vmin.f32 %v8211_v37, 0.0  ;;  %v2503_v18 = vmax.f32 %v8339_v55, 0.0  ;;  %v18272_v57 = vld [vmem:[#allocation77_spill] sm:$0xff] }
 0x192   : > { %18269 = vst [vmem:[#allocation83_spill] sm:$0xff] %v18268_v51  ;;  %v11931_v36 = vsel %vm11922_vm1, %v11862_v15, -1e+30  ;;  %v3255_v26 = vsel %vm10960_vm11, %v11880_v17, -1e+30  ;;  %vm18273_vm13 = vnez %v18272_v57  ;;  %v18274_v16 = vmov 0 }
 0x193   : > { %18271 = vst [vmem:[#allocation143_spill] sm:$0xff] %v11931_v36  ;;  %vm11940_vm5 = vmxor %vm18273_vm13, %vm18257_vm14  ;;  %v18277_v23 = vld [vmem:[#allocation103_spill] sm:$0xff]  ;;  %v3778_v7 = vmax.f32 %v3777_v47, -1e+30  ;;  %v3591_v4 = vmax.f32 %v3590_v59, -1e+30  ;;  %v2631_v55 = vsel %vm11120_vm15, %v2247_v14, %v2503_v18  ;;  %v11960_v47 = vmul.f32 %v3007_v29, %v2879_v22 }
 0x194   : > { %v18275_v16 = vsel %vm11940_vm5, 4294967295, %v18274_v16  ;;  %v3011_v56 = vsub.f32 %v11878_v25, %v18277_v23  ;;  %v3781_v11 = vmax.f32 %v11931_v36, -1e+30  ;;  %v3594_v39 = vmax.f32 %v3255_v26, -1e+30  ;;  %v11949_v51 = vpop.f32.mrb[48].mxu0 }
 0x195   : > { %18276 = vst [vmem:[#allocation77_spill] sm:$0xff] %v18275_v16  ;;  %v11954_v57 = vsel %vm11940_vm5, %v11880_v17, -1e+30  ;;  %3592 = vmax.xlane.f32.xlu1 %v3591_v4  ;;  %v2887_v59 = vmul.f32 80.0, %v2631_v55  ;;  %v8215_v14 = vadd.f32 -1.4, %v11949_v51  ;;  %3779 = vmax.xlane.f32.xlu0 %v3778_v7  ;;  %vm18282_vm13 = vnez %v18281_v40 }
 0x196   : > { %18279 = vst [vmem:[#allocation103_spill] sm:$0xff] %v11954_v57  ;;  %v3782_v23 = vmax.f32 %v3781_v11, -1e+30  ;;  %v850_v18 = vpop.f32.mrb[49].mxu0  ;;  %v3595_v26 = vmax.f32 %v3594_v39, -1e+30  ;;  %v11973_v7 = vmul.f32 %v3011_v56, %v2883_v58  ;;  %vm11979_vm5 = vmxor %vm18282_vm13, %vm18257_vm14  ;;  %vm18289_vm14 = vnez %v18076_v61 }
 0x197   : > { %v8343_v6 = vadd.f32 0.4, %v11949_v51  ;;  %v3786_v16 = vmax.f32 %v11954_v57, -1e+30  ;;  %v18280_v25 = vld [vmem:[#allocation107_spill] sm:$0xff]  ;;  %v2251_v4 = vmin.f32 %v8215_v14, 0.0 }
 0x198   : > { %v3015_v29 = vsub.f32 %v842_v63, %v18280_v25  ;;  %v3783_v22 = vmax.f32 %v3782_v23, -1e+30  ;;  %v3259_v11 = vsel %vm18246_vm3, %v11926_v9, -1e+30  ;;  %v854_v55 = vpop.f32.mrb[50].mxu0  ;;  %v18283_v38 = vmov 0 }
 0x199   : > { %v3596_v39 = vmax.f32 %v3595_v26, -1e+30  ;;  %v2507_v18 = vmax.f32 %v8343_v6, 0.0  ;;  %v3787_v36 = vmax.f32 %v3786_v16, -1e+30  ;;  %v856_v15 = vpop.f32.mrb[51].mxu0 }
 0x19a   : > { %v18284_v38 = vsel %vm11979_vm5, 4294967295, %v18283_v38  ;;  %3784 = vmax.xlane.f32.xlu1 %v3783_v22  ;;  %v18286_v63 = vld [vmem:[#allocation105_spill] sm:$0xff]  ;;  %v3599_v23 = vmax.f32 %v3259_v11, -1e+30  ;;  %v8219_v14 = vadd.f32 -1.4, %v854_v55  ;;  %v11995_v26 = vmul.f32 %v3015_v29, %v2887_v59 }
 0x19b   : > { %18285 = vst [vmem:[#allocation96_spill] sm:$0xff] %v18284_v38  ;;  %v3019_v25 = vsub.f32 %v11949_v51, %v18286_v63  ;;  %v8347_v58 = vadd.f32 0.4, %v854_v55  ;;  %3597 = vmax.xlane.f32.xlu0 %v3596_v39  ;;  %v2635_v6 = vsel %vm11095_vm10, %v2251_v4, %v2507_v18  ;;  %v3788_v15 = vmax.f32 %v3787_v36, -1e+30  ;;  %v11997_v63 = vpop.f32.mrb[52].mxu0 }
 0x19c   : > { %v11990_v40 = vsel %vm11979_vm5, %v11926_v9, -1e+30  ;;  %v3263_v16 = vsel %vm11010_vm12, %v11960_v47, -1e+30  ;;  %v3600_v51 = vmax.f32 %v3599_v23, -1e+30  ;;  %v3023_v39 = vsub.f32 %v854_v55, %v11254_v52 }
 0x19d   : > { %18288 = vst [vmem:[#allocation107_spill] sm:$0xff] %v11990_v40  ;;  %v2255_v22 = vmin.f32 %v8219_v14, 0.0  ;;  %v2511_v11 = vmax.f32 %v8347_v58, 0.0  ;;  %v3791_v36 = vmax.f32 %v11990_v40, -1e+30  ;;  %v2891_v38 = vmul.f32 80.0, %v2635_v6 }
 0x19e   : > { %v3604_v4 = vmax.f32 %v3263_v16, -1e+30  ;;  %v8223_v18 = vadd.f32 -1.4, %v11997_v63  ;;  %v3601_v57 = vmax.f32 %v3600_v51, -1e+30 }
 0x19f   : > { %v2639_v17 = vsel %vm18289_vm14, %v2255_v22, %v2511_v11  ;;  %v8351_v59 = vadd.f32 0.4, %v11997_v63  ;;  %v862_v29 = vpop.f32.mrb[53].mxu0  ;;  %vm18290_vm13 = vcmp.lt.s32.totalorder %v10475_v27, 16  ;;  %v18291_v23 = vld [vmem:[#allocation80_spill] sm:$0xff]  ;;  %v18293_v14 = vmov 0  ;;  %3789 = vmax.xlane.f32.xlu0 %v3788_v15 }
 0x1a0   : > { %vm18292_vm5 = vnez %v18291_v23  ;;  %v2895_v52 = vmul.f32 80.0, %v2639_v17  ;;  %v3792_v55 = vmax.f32 %v3791_v36, -1e+30  ;;  %v3605_v58 = vmax.f32 %v3604_v4, -1e+30  ;;  %3602 = vmax.xlane.f32.xlu1 %v3601_v57  ;;  %v866_v11 = vpop.f32.mrb[54].mxu0 }
 0x1a1   : > { %vm12009_vm1 = vmxor %vm18292_vm5, %vm18290_vm13  ;;  %v2259_v6 = vmin.f32 %v8223_v18, 0.0  ;;  %v2515_v16 = vmax.f32 %v8351_v59, 0.0  ;;  %v3267_v22 = vsel %vm10985_vm0, %v11973_v7, -1e+30  ;;  %v18296_v4 = vld [vmem:[#allocation108_spill] sm:$0xff]  ;;  %v18298_v59 = vld [vmem:[#allocation78_spill] sm:$0xff] }
 0x1a2   : > { %v18294_v14 = vsel %vm12009_vm1, 4294967295, %v18293_v14  ;;  %v12016_v51 = vsel %vm12009_vm1, %v11960_v47, -1e+30  ;;  %v3793_v15 = vmax.f32 %v3792_v55, -1e+30  ;;  %v3027_v57 = vsub.f32 %v11997_v63, %v18296_v4  ;;  %vm18297_vm5 = vmmov %vm18290_vm13  ;;  %v18303_v23 = vld [vmem:[#allocation98_spill] sm:$0xff] }
 0x1a3   : > { %18295 = vst [vmem:[#allocation68_spill] sm:$0xff] %v18294_v14  ;;  %v3606_v36 = vmax.f32 %v3605_v58, -1e+30  ;;  %v3796_v18 = vmax.f32 %v12016_v51, -1e+30  ;;  %vm18299_vm13 = vnez %v18298_v59  ;;  %v18300_v29 = vmov 0 }
 0x1a4   : > { %vm12032_vm1 = vmxor %vm18299_vm13, %vm18297_vm5  ;;  %vm18304_vm11 = vnez %v18303_v23  ;;  %v3609_v12 = vmax.f32 %v3267_v22, -1e+30  ;;  %v8227_v17 = vadd.f32 -1.4, %v866_v11  ;;  %v8355_v55 = vadd.f32 0.4, %v866_v11  ;;  %3794 = vmax.xlane.f32.xlu1 %v3793_v15 }
 0x1a5   : > { %v18301_v29 = vsel %vm12032_vm1, 4294967295, %v18300_v29  ;;  %v2643_v14 = vsel %vm18304_vm11, %v2259_v6, %v2515_v16  ;;  %v12038_v58 = vmul.f32 %v3019_v25, %v2891_v38  ;;  %v12040_v40 = vmul.f32 %v3023_v39, %v2895_v52  ;;  %3607 = vmax.xlane.f32.xlu0 %v3606_v36  ;;  %v868_v59 = vpop.f32.mrb[55].mxu0 }
 0x1a6   : > { %18302 = vst [vmem:[#allocation105_spill] sm:$0xff] %v18301_v29  ;;  %v3797_v63 = vmax.f32 %v3796_v18, -1e+30  ;;  %v12045_v4 = vsel %vm12032_vm1, %v11973_v7, -1e+30  ;;  %v2263_v35 = vmin.f32 %v8227_v17, 0.0  ;;  %vm18306_vm5 = vnez %v18119_v24 }
 0x1a7   : > { %18305 = vst [vmem:[#allocation80_spill] sm:$0xff] %v12038_v58  ;;  %v3610_v9 = vmax.f32 %v3609_v12, -1e+30  ;;  %v2519_v13 = vmax.f32 %v8355_v55, 0.0  ;;  %v3801_v6 = vmax.f32 %v12045_v4, -1e+30  ;;  %v3031_v55 = vsub.f32 %v866_v11, %v11422_v19 }
 0x1a8   : > { %v2899_v16 = vmul.f32 80.0, %v2643_v14  ;;  %v3798_v22 = vmax.f32 %v3797_v63, -1e+30  ;;  %v3271_v38 = vsel %vm11120_vm15, %v11995_v26, -1e+30  ;;  %v12051_v25 = vpop.f32.mrb[56].mxu0 }
 0x1a9   : > { %v3611_v52 = vmax.f32 %v3610_v9, -1e+30  ;;  %v2647_v12 = vsel %vm18306_vm5, %v2263_v35, %v2519_v13  ;;  %v3802_v17 = vmax.f32 %v3801_v6, -1e+30  ;;  %v3614_v15 = vmax.f32 %v3271_v38, -1e+30 }
 0x1aa   : > { %vm18307_vm13 = vcmp.lt.s32.totalorder %v10475_v27, 16  ;;  %v18308_v14 = vld [vmem:[#allocation86_spill] sm:$0xff]  ;;  %v18310_v36 = vmov 0  ;;  %3799 = vmax.xlane.f32.xlu0 %v3798_v22  ;;  %v2903_v18 = vmul.f32 80.0, %v2647_v12  ;;  %v8231_v63 = vadd.f32 -1.4, %v12051_v25 }
 0x1ab   : > { %vm18309_vm1 = vnez %v18308_v14  ;;  %v8359_v9 = vadd.f32 0.4, %v12051_v25  ;;  %v874_v59 = vpop.f32.mrb[57].mxu0  ;;  %3612 = vmax.xlane.f32.xlu1 %v3611_v52  ;;  %v3803_v35 = vmax.f32 %v3802_v17, -1e+30  ;;  %v12079_v38 = vmul.f32 %v3027_v57, %v2899_v16  ;;  %v18314_v57 = vld [vmem:[#allocation84_spill] sm:$0xff] }
 0x1ac   : > { %vm12063_vm3 = vmxor %vm18309_vm1, %vm18307_vm13  ;;  %v3615_v13 = vmax.f32 %v3614_v15, -1e+30  ;;  %v2267_v19 = vmin.f32 %v8231_v63, 0.0  ;;  %v12082_v14 = vpop.f32.mrb[58].mxu0  ;;  %v3035_v17 = vsub.f32 %v12051_v25, %v11259_v32  ;;  %v3275_v15 = vsel %vm11095_vm10, %v12038_v58, -1e+30 }
 0x1ad   : > { %v18311_v36 = vsel %vm12063_vm3, 4294967295, %v18310_v36  ;;  %v12073_v6 = vsel %vm12063_vm3, %v11995_v26, -1e+30  ;;  %v2523_v11 = vmax.f32 %v8359_v9, 0.0  ;;  %v8235_v59 = vadd.f32 -1.4, %v12082_v14  ;;  %vm18313_vm1 = vmmov %vm18307_vm13 }
 0x1ae   : > { %18312 = vst [vmem:[#allocation108_spill] sm:$0xff] %v18311_v36  ;;  %v3806_v12 = vmax.f32 %v12073_v6, -1e+30  ;;  %v3616_v52 = vmax.f32 %v3615_v13, -1e+30  ;;  %vm18315_vm13 = vnez %v18314_v57  ;;  %v18316_v16 = vmov 0 }
 0x1af   : > { %vm12094_vm3 = vmxor %vm18315_vm13, %vm18313_vm1  ;;  %v18319_v63 = vld [vmem:[#allocation109_spill] sm:$0xff]  ;;  %v3619_v22 = vmax.f32 %v3275_v15, -1e+30  ;;  %v8363_v32 = vadd.f32 0.4, %v12082_v14  ;;  %v12101_v25 = vmul.f32 %v3031_v55, %v2903_v18  ;;  %3804 = vmax.xlane.f32.xlu1 %v3803_v35  ;;  %v2271_v39 = vmin.f32 %v8235_v59, 0.0 }
 0x1b0   : > { %v18317_v16 = vsel %vm12094_vm3, 4294967295, %v18316_v16  ;;  %vm18320_vm0 = vnez %v18319_v63  ;;  %v3807_v13 = vmax.f32 %v3806_v12, -1e+30  ;;  %3617 = vmax.xlane.f32.xlu0 %v3616_v52  ;;  %v12106_v57 = vsel %vm12094_vm3, %v12038_v58, -1e+30  ;;  %v880_v12 = vpop.f32.mrb[59].mxu0 }
 0x1b1   : > { %18318 = vst [vmem:[#allocation78_spill] sm:$0xff] %v18317_v16  ;;  %v2651_v9 = vsel %vm18320_vm0, %v2267_v19, %v2523_v11  ;;  %18321 = vst [vmem:[#allocation98_spill] sm:$0xff] %v12101_v25  ;;  %v3279_v36 = vsel %vm18289_vm14, %v12040_v40, -1e+30  ;;  %v3620_v19 = vmax.f32 %v3619_v22, -1e+30  ;;  %v3039_v18 = vsub.f32 %v12082_v14, %v11544_v0 }
 0x1b2   : > { %18322 = vst [vmem:[#allocation86_spill] sm:$0xff] %v12106_v57  ;;  %v3808_v29 = vmax.f32 %v3807_v13, -1e+30  ;;  %v2527_v11 = vmax.f32 %v8363_v32, 0.0  ;;  %v2907_v55 = vmul.f32 80.0, %v2651_v9  ;;  %v884_v15 = vpop.f32.mrb[60].mxu0 }
 0x1b3   : > { %v3811_v35 = vmax.f32 %v12106_v57, -1e+30  ;;  %v3624_v52 = vmax.f32 %v3279_v36, -1e+30  ;;  %v3621_v16 = vmax.f32 %v3620_v19, -1e+30 }
 0x1b4   : > { %v2655_v22 = vsel %vm11516_vm9, %v2271_v39, %v2527_v11  ;;  %v8239_v13 = vadd.f32 -1.4, %v884_v15  ;;  %v8367_v32 = vadd.f32 0.4, %v884_v15  ;;  %v18323_v12 = vld [vmem:[#allocation101_spill] sm:$0xff]  ;;  %v18325_v9 = vmov 0  ;;  %3809 = vmax.xlane.f32.xlu0 %v3808_v29 }
 0x1b5   : > { %vm18324_vm13 = vnez %v18323_v12  ;;  %v2911_v36 = vmul.f32 80.0, %v2655_v22  ;;  %v3812_v59 = vmax.f32 %v3811_v35, -1e+30  ;;  %v3625_v19 = vmax.f32 %v3624_v52, -1e+30  ;;  %v886_v57 = vpop.f32.mrb[61].mxu0  ;;  %3622 = vmax.xlane.f32.xlu1 %v3621_v16 }
 0x1b6   : > { %vm12126_vm3 = vmxor %vm18324_vm13, %vm18313_vm1  ;;  %v2275_v39 = vmin.f32 %v8239_v13, 0.0  ;;  %v2531_v11 = vmax.f32 %v8367_v32, 0.0  ;;  %v3283_v12 = vsel %vm18304_vm11, %v12079_v38, -1e+30  ;;  %v18328_v29 = vld [vmem:[#allocation91_spill] sm:$0xff]  ;;  %v18330_v0 = vmov 0 }
 0x1b7   : > { %v18326_v9 = vsel %vm12126_vm3, 4294967295, %v18325_v9  ;;  %v12135_v58 = vsel %vm12126_vm3, %v12040_v40, -1e+30  ;;  %vm18329_vm13 = vnez %v18328_v29  ;;  %v12148_v14 = vmul.f32 %v3035_v17, %v2907_v55  ;;  %v890_v13 = vpop.f32.mrb[62].mxu0 }
 0x1b8   : > { %18327 = vst [vmem:[#allocation84_spill] sm:$0xff] %v18326_v9  ;;  %vm12144_vm10 = vmxor %vm18329_vm13, %vm18313_vm1  ;;  %v3813_v16 = vmax.f32 %v3812_v59, -1e+30  ;;  %v3626_v57 = vmax.f32 %v3625_v19, -1e+30  ;;  %vm18334_vm3 = vnez %v18122_v53  ;;  %v3043_v59 = vsub.f32 %v884_v15, %v11437_v1  ;;  %v892_v9 = vpop.f32.mrb[63].mxu0 }
 0x1b9   : > { %v18331_v0 = vsel %vm12144_vm10, 4294967295, %v18330_v0  ;;  %18333 = vst [vmem:[#allocation91_spill] sm:$0xff] %v12148_v14  ;;  %v3816_v35 = vmax.f32 %v12135_v58, -1e+30  ;;  %v2659_v52 = vsel %vm18334_vm3, %v2275_v39, %v2531_v11  ;;  %v3629_v22 = vmax.f32 %v3283_v12, -1e+30 }
 0x1ba   : > { %18332 = vst [vmem:[#allocation101_spill] sm:$0xff] %v18331_v0  ;;  %v12156_v32 = vsel %vm12144_vm10, %v12079_v38, -1e+30  ;;  %3627 = vmax.xlane.f32.xlu0 %v3626_v57  ;;  %v2915_v55 = vmul.f32 80.0, %v2659_v52  ;;  %v8243_v29 = vadd.f32 -1.4, %v890_v13  ;;  %3814 = vmax.xlane.f32.xlu1 %v3813_v16  ;;  %v12168_v56 = vmul.f32 %v3039_v18, %v2911_v36 }
 0x1bb   : > { %v3817_v19 = vmax.f32 %v3816_v35, -1e+30  ;;  %v3630_v39 = vmax.f32 %v3629_v22, -1e+30  ;;  %v8371_v11 = vadd.f32 0.4, %v890_v13  ;;  %vm18336_vm13 = vnez %v18108_v33 }
 0x1bc   : > { %v3821_v12 = vmax.f32 %v12156_v32, -1e+30  ;;  %18335 = vst [vmem:[#allocation144_spill] sm:$0xff] %v12168_v56  ;;  %v2279_v57 = vmin.f32 %v8243_v29, 0.0  ;;  %v3287_v1 = vsel %vm18306_vm5, %v12101_v25, -1e+30  ;;  %vm12177_vm10 = vmxor %vm18336_vm13, %vm18313_vm1  ;;  %v3047_v35 = vsub.f32 %v890_v13, %v11586_v2 }
 0x1bd   : > { %v3818_v17 = vmax.f32 %v3817_v19, -1e+30  ;;  %v18337_v15 = vmov 0  ;;  %v3631_v9 = vmax.f32 %v3630_v39, -1e+30  ;;  %v2535_v16 = vmax.f32 %v8371_v11, 0.0 }
 0x1be   : > { %v18338_v15 = vsel %vm12177_vm10, 4294967295, %v18337_v15  ;;  %v3822_v18 = vmax.f32 %v3821_v12, -1e+30  ;;  %v12182_v36 = vmul.f32 %v3043_v59, %v2915_v55  ;;  %v3634_v52 = vmax.f32 %v3287_v1, -1e+30  ;;  %v18342_v19 = vld [vmem:[#allocation102_spill] sm:$0xff] }
 0x1bf   : > { %18339 = vst [vmem:[#allocation145_spill] sm:$0xff] %v18338_v15  ;;  %3819 = vmax.xlane.f32.xlu0 %v3818_v17  ;;  %v12187_v22 = vsel %vm12177_vm10, %v12101_v25, -1e+30  ;;  %v3291_v33 = vsel %vm18320_vm0, %v12148_v14, -1e+30  ;;  %vm18343_vm13 = vnez %v18342_v19  ;;  %v18344_v2 = vmov 0  ;;  %3632 = vmax.xlane.f32.xlu1 %v3631_v9 }
 0x1c0   : > { %18340 = vst [vmem:[#allocation146_spill] sm:$0xff] %v12182_v36  ;;  %18341 = vst [vmem:[#allocation147_spill] sm:$0xff] %v12187_v22  ;;  %v2663_v13 = vsel %vm11555_vm7, %v2279_v57, %v2535_v16  ;;  %v3823_v17 = vmax.f32 %v3822_v18, -1e+30  ;;  %v3826_v55 = vmax.f32 %v12187_v22, -1e+30 }
 0x1c1   : > { %vm12196_vm11 = vmxor %vm18343_vm13, %vm18313_vm1  ;;  %v3639_v59 = vmax.f32 %v3291_v33, -1e+30  ;;  %v2919_v29 = vmul.f32 80.0, %v2663_v13  ;;  %v3635_v39 = vmax.f32 %v3634_v52, -1e+30  ;;  %vm18348_vm13 = vnez %v18143_v41 }
 0x1c2   : > { %v18345_v2 = vsel %vm12196_vm11, 4294967295, %v18344_v2  ;;  %v12206_v11 = vsel %vm12196_vm11, %v12148_v14, -1e+30  ;;  %vm12216_vm10 = vmxor %vm18348_vm13, %vm18313_vm1  ;;  %v18349_v57 = vmov 0  ;;  %v3827_v1 = vmax.f32 %v3826_v55, -1e+30 }
 0x1c3   : > { %18346 = vst [vmem:[#allocation102_spill] sm:$0xff] %v18345_v2  ;;  %18347 = vst [vmem:[#allocation148_spill] sm:$0xff] %v12206_v11  ;;  %v18350_v57 = vsel %vm12216_vm10, 4294967295, %v18349_v57  ;;  %v3640_v9 = vmax.f32 %v3639_v59, -1e+30  ;;  %v12233_v19 = vmul.f32 %v3047_v35, %v2919_v29  ;;  %3824 = vmax.xlane.f32.xlu1 %v3823_v17  ;;  %vm18354_vm13 = vnez %v18116_v31 }
 0x1c4   : > { %18351 = vst [vmem:[#allocation149_spill] sm:$0xff] %v18350_v57  ;;  %v3831_v16 = vmax.f32 %v12206_v11, -1e+30  ;;  %v3636_v52 = vmax.f32 %v3635_v39, -1e+30  ;;  %vm12243_vm11 = vmxor %vm18354_vm13, %vm18313_vm1  ;;  %v18355_v59 = vmov 0 }
 0x1c5   : > { %v3295_v33 = vsel %vm11516_vm9, %v12168_v56, -1e+30  ;;  %v12231_v41 = vsel %vm12216_vm10, %v12168_v56, -1e+30  ;;  %18353 = vst [vmem:[#allocation151_spill] sm:$0xff] %v12233_v19  ;;  %v18356_v59 = vsel %vm12243_vm11, 4294967295, %v18355_v59  ;;  %vm18359_vm10 = vmmov %vm18313_vm1  ;;  %vm18360_vm1 = vnez %v18155_v10 }
 0x1c6   : > { %18352 = vst [vmem:[#allocation150_spill] sm:$0xff] %v12231_v41  ;;  %v3641_v13 = vmax.f32 %v3640_v9, -1e+30  ;;  %18357 = vst [vmem:[#allocation152_spill] sm:$0xff] %v18356_v59  ;;  %3637 = vmax.xlane.f32.xlu0 %v3636_v52  ;;  %v3644_v39 = vmax.f32 %v3295_v33, -1e+30 }
 0x1c7   : > { %v3299_v35 = vsel %vm18334_vm3, %v12182_v36, -1e+30  ;;  %v12250_v17 = vmax.f32 %v3831_v16, -1e+30  ;;  %v12255_v9 = vsel %vm12243_vm11, %v12182_v36, -1e+30  ;;  %vm12261_vm13 = vmxor %vm18360_vm1, %vm18359_vm10 }
 0x1c8   : > { %v3649_v29 = vmax.f32 %v3299_v35, -1e+30  ;;  %18358 = vst [vmem:[#allocation153_spill] sm:$0xff] %v12255_v9  ;;  %v18361_v31 = vmov 0  ;;  %v3828_v52 = vmax.f32 %v3827_v1, -1e+30  ;;  %3642 = vmax.xlane.f32.xlu1 %v3641_v13 }
 0x1c9   : > { %v18362_v31 = vsel %vm12261_vm13, 4294967295, %v18361_v31  ;;  %v3645_v33 = vmax.f32 %v3644_v39, -1e+30  ;;  %v3836_v55 = vmax.f32 %v12231_v41, -1e+30  ;;  %vm18365_vm10 = vcmask 7168  }
 0x1ca   : > { %18363 = vst [vmem:[#allocation154_spill] sm:$0xff] %v18362_v31  ;;  %v3650_v35 = vmax.f32 %v3649_v29, -1e+30  ;;  %v3303_v27 = vsel %vm11555_vm7, %v12233_v19, -1e+30  ;;  %3829 = vmax.xlane.f32.xlu0 %v3828_v52  ;;  %vm18366_vm1 = vmmov %vm18365_vm10  ;;  %v3503_v31 = vpop.xlane.xlu0 %3502 }
 0x1cb   : > { %v12276_v10 = vsel %vm12261_vm13, %v12233_v19, -1e+30  ;;  %v3646_v1 = vmax.f32 %v3645_v33, -1e+30  ;;  %v3833_v16 = vmax.f32 %v12250_v17, -1e+30  ;;  %vm18367_vm13 = vmmov %vm18366_vm1 }
 0x1cc   : > { %18364 = vst [vmem:[#allocation155_spill] sm:$0xff] %v12276_v10  ;;  %v12283_v13 = vmax.f32 %v3303_v27, -1e+30  ;;  %v12285_v29 = vmax.f32 %v3836_v55, -1e+30  ;;  %vm18368_vm11 = vmmov %vm18366_vm1 }
 0x1cd   : > { %v3841_v18 = vmax.f32 %v12255_v9, -1e+30  ;;  %3647 = vmax.xlane.f32.xlu1 %v3646_v1  ;;  %v12288_v12 = vmax.f32 %v3650_v35, -1e+30  ;;  %v9462_v52 = vmov -1e+30   ;;  %vm18369_vm7 = vmmov %vm18366_vm1 }
 0x1ce   : > { %v3655_v0 = vmax.f32 %v12283_v13, -1e+30  ;;  %446 = vst.msk [vmem:[#allocation4] sm:$0xff] %vm18365_vm10, %v9462_v52  ;;  %vm18370_vm3 = vmmov %vm18366_vm1  ;;  %3834 = vmax.xlane.f32.xlu0 %v3833_v16  ;;  %v3838_v55 = vmax.f32 %v12285_v29, -1e+30  ;;  %v3695_v29 = vpop.xlane.xlu1 %3694 }
 0x1cf   : > { %414 = vst.msk [vmem:[#allocation2] sm:$0xff] %vm18366_vm1, %v9462_v52  ;;  %vm18371_vm9 = vmmov %vm18366_vm1  ;;  %v3842_v33 = vmax.f32 %v3841_v18, -1e+30  ;;  %v3846_v35 = vmax.f32 %v12276_v10, -1e+30 }
 0x1d0   : > { %415 = vst.msk [vmem:[#allocation2 + $0x8] sm:$0xff] %vm18367_vm13, %v9462_v52  ;;  %vm18372_vm10 = vmmov %vm18366_vm1  ;;  %v3656_v27 = vmax.f32 %v3655_v0, -1e+30 }
 0x1d1   : > { %416 = vst.msk [vmem:[#allocation2 + $0x10] sm:$0xff] %vm18368_vm11, %v9462_v52  ;;  %vm18373_vm13 = vmmov %vm18366_vm1  ;;  %3652 = vmax.xlane.f32.xlu1 %v12288_v12  ;;  %v3843_v1 = vmax.f32 %v3842_v33, -1e+30  ;;  %v3847_v39 = vmax.f32 %v3846_v35, -1e+30  ;;  %v3700_v33 = vpop.xlane.xlu0 %3699 }
 0x1d2   : > { %417 = vst.msk [vmem:[#allocation2 + $0x18] sm:$0xff] %vm18369_vm7, %v9462_v52  ;;  %vm18374_vm11 = vmmov %vm18366_vm1  ;;  %3839 = vmax.xlane.f32.xlu0 %v3838_v55 }
 0x1d3   : > { %418 = vst.msk [vmem:[#allocation2 + $0x20] sm:$0xff] %vm18370_vm3, %v9462_v52  ;;  %vm18375_vm7 = vmmov %vm18366_vm1  ;;  %v3848_v16 = vmax.f32 %v3847_v39, -1e+30 }
 0x1d4   : > { %419 = vst.msk [vmem:[#allocation2 + $0x28] sm:$0xff] %vm18371_vm9, %v9462_v52  ;;  %vm18376_vm3 = vmmov %vm18366_vm1 }
 0x1d5   : > { %420 = vst.msk [vmem:[#allocation2 + $0x30] sm:$0xff] %vm18372_vm10, %v9462_v52  ;;  %vm18377_vm9 = vmmov %vm18366_vm1  ;;  %3657 = vmax.xlane.f32.xlu1 %v3656_v27  ;;  %v3513_v0 = vpop.xlane.xlu0 %3512 }
 0x1d6   : > { %421 = vst.msk [vmem:[#allocation2 + $0x38] sm:$0xff] %vm18366_vm1, %v9462_v52  ;;  %vm18378_vm10 = vmmov %vm18366_vm1  ;;  %3844 = vmax.xlane.f32.xlu0 %v3843_v1  ;;  %v12430_v17 = vld [vmem:[#allocation2] sm:$0xff] }
 0x1d7   : > { %422 = vst.msk [vmem:[#allocation2 + $0x40] sm:$0xff] %vm18373_vm13, %v9462_v52  ;;  %vm18379_vm13 = vmmov %vm18366_vm1  ;;  %v12436_v12 = vmax.f32 %v12430_v17, %v3503_v31  ;;  %v12448_v55 = vld [vmem:[#allocation2 + $0x8] sm:$0xff]  ;;  %v3508_v31 = vpop.xlane.xlu1 %3507 }
 0x1d8   : > { %423 = vst.msk [vmem:[#allocation2 + $0x48] sm:$0xff] %vm18374_vm11, %v9462_v52  ;;  %vm18380_vm11 = vmmov %vm18366_vm1  ;;  %v12454_v27 = vmax.f32 %v12448_v55, %v3508_v31  ;;  %v12466_v13 = vld [vmem:[#allocation2 + $0x10] sm:$0xff] }
 0x1d9   : > { %424 = vst.msk [vmem:[#allocation2 + $0x50] sm:$0xff] %vm18375_vm7, %v9462_v52  ;;  %vm18381_vm7 = vmmov %vm18366_vm1  ;;  %v12472_v1 = vmax.f32 %v12466_v13, %v3513_v0  ;;  %v12475_v59 = vld [vmem:[#allocation2 + $0x18] sm:$0xff] }
 0x1da   : > { %425 = vst.msk [vmem:[#allocation2 + $0x58] sm:$0xff] %vm18376_vm3, %v9462_v52  ;;  %vm18382_vm3 = vmmov %vm18366_vm1  ;;  %3849 = vmax.xlane.f32.xlu0 %v3848_v16  ;;  %v12495_v10 = vld [vmem:[#allocation2 + $0x20] sm:$0xff] }
 0x1db   : > { %426 = vst.msk [vmem:[#allocation2 + $0x60] sm:$0xff] %vm18377_vm9, %v9462_v52  ;;  %vm18383_vm9 = vmmov %vm18366_vm1  ;;  %v12515_v9 = vld [vmem:[#allocation2 + $0x28] sm:$0xff] }
 0x1dc   : > { %427 = vst.msk [vmem:[#allocation2 + $0x68] sm:$0xff] %vm18378_vm10, %v9462_v52  ;;  %vm18384_vm10 = vmmov %vm18366_vm1  ;;  %v12525_v41 = vld [vmem:[#allocation2 + $0x30] sm:$0xff] }
 0x1dd   : > { %428 = vst.msk [vmem:[#allocation2 + $0x70] sm:$0xff] %vm18366_vm1, %v9462_v52  ;;  %435 = vst.msk [vmem:[#allocation2 + $0xa8] sm:$0xff] %vm18366_vm1, %v9462_v52 }
 0x1de   : > { %429 = vst.msk [vmem:[#allocation2 + $0x78] sm:$0xff] %vm18379_vm13, %v9462_v52  ;;  %vm18385_vm13 = vmmov %vm18366_vm1 }
 0x1df   : > { %430 = vst.msk [vmem:[#allocation2 + $0x80] sm:$0xff] %vm18380_vm11, %v9462_v52  ;;  %vm18386_vm11 = vmmov %vm18366_vm1 }
 0x1e0   : > { %431 = vst.msk [vmem:[#allocation2 + $0x88] sm:$0xff] %vm18381_vm7, %v9462_v52  ;;  %vm18387_vm7 = vmmov %vm18366_vm1 }
 0x1e1   : > { %432 = vst.msk [vmem:[#allocation2 + $0x90] sm:$0xff] %vm18382_vm3, %v9462_v52  ;;  %vm18388_vm3 = vmmov %vm18366_vm1 }
 0x1e2   : > { %433 = vst.msk [vmem:[#allocation2 + $0x98] sm:$0xff] %vm18383_vm9, %v9462_v52  ;;  %vm18389_vm9 = vmmov %vm18366_vm1 }
 0x1e3   : > { %434 = vst.msk [vmem:[#allocation2 + $0xa0] sm:$0xff] %vm18384_vm10, %v9462_v52  ;;  %vm18390_vm10 = vmmov %vm18366_vm1 }
 0x1e4   : > { %436 = vst.msk [vmem:[#allocation2 + $0xb0] sm:$0xff] %vm18385_vm13, %v9462_v52  ;;  %vm18391_vm13 = vmmov %vm18366_vm1 }
 0x1e5   : > { %437 = vst.msk [vmem:[#allocation2 + $0xb8] sm:$0xff] %vm18386_vm11, %v9462_v52  ;;  %vm18392_vm11 = vmmov %vm18366_vm1 }
 0x1e6   : > { %438 = vst.msk [vmem:[#allocation2 + $0xc0] sm:$0xff] %vm18387_vm7, %v9462_v52  ;;  %vm18393_vm7 = vmmov %vm18366_vm1  ;;  %3885 = vperm.xlu1 %8674, %v12436_v12  }
 0x1e7   : > { %439 = vst.msk [vmem:[#allocation2 + $0xc8] sm:$0xff] %vm18388_vm3, %v9462_v52  ;;  %vm18394_vm3 = vmmov %vm18366_vm1 }
 0x1e8   : > { %440 = vst.msk [vmem:[#allocation2 + $0xd0] sm:$0xff] %vm18389_vm9, %v9462_v52  ;;  %vm18395_vm9 = vmmov %vm18366_vm1 }
 0x1e9   : > { %441 = vst.msk [vmem:[#allocation2 + $0xd8] sm:$0xff] %vm18390_vm10, %v9462_v52  ;;  %vm18396_vm10 = vmmov %vm18366_vm1 }
 0x1ea   : > { %442 = vst.msk [vmem:[#allocation2 + $0xe0] sm:$0xff] %vm18366_vm1, %v9462_v52  ;;  %450 = vst.msk [vmem:[#allocation4 + $0x20] sm:$0xff] %vm18366_vm1, %v9462_v52 }
 0x1eb   : > { %443 = vst.msk [vmem:[#allocation2 + $0xe8] sm:$0xff] %vm18391_vm13, %v9462_v52  ;;  %vm18397_vm13 = vmmov %vm18366_vm1 }
 0x1ec   : > { %444 = vst.msk [vmem:[#allocation2 + $0xf0] sm:$0xff] %vm18392_vm11, %v9462_v52  ;;  %vm18398_vm11 = vmmov %vm18366_vm1 }
 0x1ed   : > { %445 = vst.msk [vmem:[#allocation2 + $0xf8] sm:$0xff] %vm18393_vm7, %v9462_v52  ;;  %vm18399_vm7 = vmmov %vm18366_vm1 }
 0x1ee   : > { %447 = vst.msk [vmem:[#allocation4 + $0x8] sm:$0xff] %vm18394_vm3, %v9462_v52  ;;  %vm18400_vm3 = vmmov %vm18366_vm1 }
 0x1ef   : > { %448 = vst.msk [vmem:[#allocation4 + $0x10] sm:$0xff] %vm18395_vm9, %v9462_v52  ;;  %vm18401_vm9 = vmmov %vm18366_vm1 }
 0x1f0   : > { %449 = vst.msk [vmem:[#allocation4 + $0x18] sm:$0xff] %vm18396_vm10, %v9462_v52  ;;  %vm18402_vm10 = vmmov %vm18366_vm1  ;;  %3890 = vperm.xlu0 %8673, %v12454_v27  }
 0x1f1   : > { %451 = vst.msk [vmem:[#allocation4 + $0x28] sm:$0xff] %vm18397_vm13, %v9462_v52  ;;  %vm18403_vm13 = vmmov %vm18366_vm1  ;;  %v12509_v45 = vld [vmem:[#allocation4 + $0x20] sm:$0xff] }
 0x1f2   : > { %452 = vst.msk [vmem:[#allocation4 + $0x30] sm:$0xff] %vm18398_vm11, %v9462_v52  ;;  %vm18404_vm11 = vmmov %vm18366_vm1 }
 0x1f3   : > { %453 = vst.msk [vmem:[#allocation4 + $0x38] sm:$0xff] %vm18399_vm7, %v9462_v52  ;;  %vm18405_vm7 = vmmov %vm18366_vm1 }
 0x1f4   : > { %454 = vst.msk [vmem:[#allocation4 + $0x40] sm:$0xff] %vm18400_vm3, %v9462_v52  ;;  %vm18406_vm3 = vmmov %vm18366_vm1  ;;  %3895 = vperm.xlu0 %8673, %v12472_v1  }
 0x1f5   : > { %455 = vst.msk [vmem:[#allocation4 + $0x48] sm:$0xff] %vm18401_vm9, %v9462_v52  ;;  %vm18407_vm9 = vmmov %vm18366_vm1  ;;  %v12446_v39 = vld [vmem:[#allocation4 + $0x8] sm:$0xff] }
 0x1f6   : > { %456 = vst.msk [vmem:[#allocation4 + $0x50] sm:$0xff] %vm18402_vm10, %v9462_v52  ;;  %vm18408_vm10 = vmmov %vm18366_vm1  ;;  %v12451_v35 = vmax.f32 %v12446_v39, %v3700_v33  ;;  %v3705_v33 = vpop.xlane.xlu1 %3704 }
 0x1f7   : > { %457 = vst.msk [vmem:[#allocation4 + $0x58] sm:$0xff] %vm18366_vm1, %v9462_v52  ;;  %464 = vst.msk [vmem:[#allocation4 + $0x90] sm:$0xff] %vm18366_vm1, %v9462_v52  ;;  %v12489_v2 = vld [vmem:[#allocation4 + $0x18] sm:$0xff] }
 0x1f8   : > { %458 = vst.msk [vmem:[#allocation4 + $0x60] sm:$0xff] %vm18403_vm13, %v9462_v52  ;;  %vm18409_vm13 = vmmov %vm18366_vm1  ;;  %v12531_v56 = vld [vmem:[#allocation4 + $0x28] sm:$0xff] }
 0x1f9   : > { %459 = vst.msk [vmem:[#allocation4 + $0x68] sm:$0xff] %vm18404_vm11, %v9462_v52  ;;  %vm18410_vm11 = vmmov %vm18366_vm1 }
 0x1fa   : > { %460 = vst.msk [vmem:[#allocation4 + $0x70] sm:$0xff] %vm18405_vm7, %v9462_v52  ;;  %vm18411_vm7 = vmmov %vm18366_vm1 }
 0x1fb   : > { %461 = vst.msk [vmem:[#allocation4 + $0x78] sm:$0xff] %vm18406_vm3, %v9462_v52  ;;  %vm18412_vm3 = vmmov %vm18366_vm1 }
 0x1fc   : > { %462 = vst.msk [vmem:[#allocation4 + $0x80] sm:$0xff] %vm18407_vm9, %v9462_v52  ;;  %vm18413_vm9 = vmmov %vm18366_vm1 }
 0x1fd   : > { %463 = vst.msk [vmem:[#allocation4 + $0x88] sm:$0xff] %vm18408_vm10, %v9462_v52  ;;  %vm18414_vm10 = vmmov %vm18366_vm1 }
 0x1fe   : > { %465 = vst.msk [vmem:[#allocation4 + $0x98] sm:$0xff] %vm18409_vm13, %v9462_v52  ;;  %vm18415_vm13 = vmmov %vm18366_vm1 }
 0x1ff   : > { %466 = vst.msk [vmem:[#allocation4 + $0xa0] sm:$0xff] %vm18410_vm11, %v9462_v52  ;;  %vm18416_vm11 = vmmov %vm18366_vm1 }
 0x200   : > { %467 = vst.msk [vmem:[#allocation4 + $0xa8] sm:$0xff] %vm18411_vm7, %v9462_v52  ;;  %vm18417_vm7 = vmmov %vm18366_vm1 }
 0x201   : > { %468 = vst.msk [vmem:[#allocation4 + $0xb0] sm:$0xff] %vm18412_vm3, %v9462_v52  ;;  %vm18418_vm3 = vmmov %vm18366_vm1 }
 0x202   : > { %469 = vst.msk [vmem:[#allocation4 + $0xb8] sm:$0xff] %vm18413_vm9, %v9462_v52  ;;  %vm18419_vm9 = vmmov %vm18366_vm1 }
 0x203   : > { %470 = vst.msk [vmem:[#allocation4 + $0xc0] sm:$0xff] %vm18414_vm10, %v9462_v52  ;;  %vm18420_vm10 = vmmov %vm18366_vm1 }
 0x204   : > { %471 = vst.msk [vmem:[#allocation4 + $0xc8] sm:$0xff] %vm18366_vm1, %v9462_v52  ;;  %18424 = vst [vmem:[#allocation156_spill] sm:$0xff] %v12472_v1 }
 0x205   : > { %472 = vst.msk [vmem:[#allocation4 + $0xd0] sm:$0xff] %vm18415_vm13, %v9462_v52  ;;  %vm18421_vm13 = vmmov %vm18366_vm1 }
 0x206   : > { %473 = vst.msk [vmem:[#allocation4 + $0xd8] sm:$0xff] %vm18416_vm11, %v9462_v52  ;;  %vm18422_vm11 = vmmov %vm18366_vm1 }
 0x207   : > { %474 = vst.msk [vmem:[#allocation4 + $0xe0] sm:$0xff] %vm18417_vm7, %v9462_v52  ;;  %vm18423_vm7 = vmmov %vm18366_vm1 }
 0x208   : > { %475 = vst.msk [vmem:[#allocation4 + $0xe8] sm:$0xff] %vm18418_vm3, %v9462_v52  ;;  %18425 = vst [vmem:[#allocation157_spill] sm:$0xff] %v12475_v59 }
 0x209   : > { %476 = vst.msk [vmem:[#allocation4 + $0xf0] sm:$0xff] %vm18419_vm9, %v9462_v52  ;;  %vm18426_vm3 = vmmov %vm18366_vm1 }
 0x20a   : > { %477 = vst.msk [vmem:[#allocation4 + $0xf8] sm:$0xff] %vm18420_vm10, %v9462_v52  ;;  %v12428_v52 = vld [vmem:[#allocation4] sm:$0xff]  ;;  %vm18427_vm9 = vmmov %vm18366_vm1 }
 0x20b   : > { %v12433_v18 = vmax.f32 %v12428_v52, %v3695_v29  ;;  %5868 = vst.msk [vmem:[#allocation2] sm:$0xff] %vm18421_vm13, %v12436_v12  ;;  %v12464_v29 = vld [vmem:[#allocation4 + $0x10] sm:$0xff]  ;;  %18429 = vst [vmem:[#allocation159_spill] sm:$0xff] %v12489_v2 }
 0x20c   : > { %5901 = vst.msk [vmem:[#allocation4 + $0x8] sm:$0xff] %vm18422_vm11, %v12451_v35  ;;  %v12469_v31 = vmax.f32 %v12464_v29, %v3705_v33  ;;  %v3518_v33 = vpop.xlane.xlu0 %3517  ;;  %vm18430_vm10 = vmmov %vm18366_vm1 }
 0x20d   : > { %5900 = vst.msk [vmem:[#allocation4] sm:$0xff] %vm18366_vm1, %v12433_v18  ;;  %v12486_v0 = vmax.f32 %v12475_v59, %v3518_v33  ;;  %4045 = vperm.xlu1 %8674, %v12433_v18   ;;  %18431 = vst [vmem:[#allocation160_spill] sm:$0xff] %v12495_v10  ;;  %v3523_v33 = vpop.xlane.xlu1 %3522 }
 0x20e   : > { %5869 = vst.msk [vmem:[#allocation2 + $0x8] sm:$0xff] %vm18423_vm7, %v12454_v27  ;;  %v12506_v16 = vmax.f32 %v12495_v10, %v3523_v33  ;;  %18434 = vst [vmem:[#allocation163_spill] sm:$0xff] %v12509_v45  ;;  %v12588_v10 = vld [vmem:[#allocation2 + $0x48] sm:$0xff] }
 0x20f   : > { %5902 = vst.msk [vmem:[#allocation4 + $0x10] sm:$0xff] %vm18426_vm3, %v12469_v31  ;;  %18428 = vst [vmem:[#allocation158_spill] sm:$0xff] %v12486_v0  ;;  %3900 = vperm.xlu0 %8673, %v12486_v0  }
 0x210   : > { %5870 = vst.msk [vmem:[#allocation2 + $0x10] sm:$0xff] %vm18427_vm9, %v12472_v1  ;;  %v3710_v15 = vpop.xlane.xlu0 %3709  ;;  %18433 = vst [vmem:[#allocation162_spill] sm:$0xff] %v12506_v16 }
 0x211   : > { %5871 = vst.msk [vmem:[#allocation2 + $0x18] sm:$0xff] %vm18430_vm10, %v12486_v0  ;;  %v12498_v57 = vmax.f32 %v12489_v2, %v3710_v15  ;;  %4050 = vperm.xlu1 %8674, %v12451_v35   ;;  %vm18435_vm13 = vmmov %vm18366_vm1  ;;  %v3715_v19 = vpop.xlane.xlu1 %3714  ;;  %v18599_v0 = vld [vmem:[#allocation111_spill] sm:$0xff] }
 0x212   : > { %5872 = vst.msk [vmem:[#allocation2 + $0x20] sm:$0xff] %vm18435_vm13, %v12506_v16  ;;  %18436 = vst [vmem:[#allocation164_spill] sm:$0xff] %v12515_v9  ;;  %v12519_v36 = vmax.f32 %v12509_v45, %v3715_v19  ;;  %v12545_v45 = vld [vmem:[#allocation4 + $0x30] sm:$0xff] }
 0x213   : > { %18432 = vst [vmem:[#allocation161_spill] sm:$0xff] %v12498_v57  ;;  %5903 = vst.msk [vmem:[#allocation4 + $0x18] sm:$0xff] %vm18366_vm1, %v12498_v57  ;;  %3905 = vperm.xlu0 %8673, %v12506_v16  }
 0x214   : > { %18437 = vst [vmem:[#allocation165_spill] sm:$0xff] %v12519_v36  ;;  %v3528_v33 = vpop.xlane.xlu0 %3527  ;;  %18439 = vst [vmem:[#allocation167_spill] sm:$0xff] %v12525_v41 }
 0x215   : > { %4055 = vperm.xlu1 %8674, %v12469_v31   ;;  %v12523_v53 = vmax.f32 %v12515_v9, %v3528_v33  ;;  %vm18440_vm11 = vmmov %vm18366_vm1  ;;  %18441 = vst [vmem:[#allocation168_spill] sm:$0xff] %v12531_v56  ;;  %v3533_v33 = vpop.xlane.xlu1 %3532  ;;  %v12556_v9 = vld [vmem:[#allocation2 + $0x38] sm:$0xff] }
 0x216   : > { %5904 = vst.msk [vmem:[#allocation4 + $0x20] sm:$0xff] %vm18440_vm11, %v12519_v36  ;;  %vm18442_vm7 = vmmov %vm18366_vm1  ;;  %v12539_v11 = vmax.f32 %v12525_v41, %v3533_v33 }
 0x217   : > { %18438 = vst [vmem:[#allocation166_spill] sm:$0xff] %v12523_v53  ;;  %5873 = vst.msk [vmem:[#allocation2 + $0x28] sm:$0xff] %vm18442_vm7, %v12523_v53  ;;  %3910 = vperm.xlu0 %8673, %v12523_v53  }
 0x218   : > { %v3720_v30 = vpop.xlane.xlu0 %3719  ;;  %18443 = vst [vmem:[#allocation169_spill] sm:$0xff] %v12539_v11  ;;  %18445 = vst [vmem:[#allocation171_spill] sm:$0xff] %v12545_v45 }
 0x219   : > { %4060 = vperm.xlu1 %8674, %v12498_v57   ;;  %v12543_v15 = vmax.f32 %v12531_v56, %v3720_v30  ;;  %vm18446_vm3 = vmmov %vm18366_vm1  ;;  %v3725_v33 = vpop.xlane.xlu1 %3724  ;;  %18448 = vst [vmem:[#allocation172_spill] sm:$0xff] %v12556_v9  ;;  %v12570_v56 = vld [vmem:[#allocation4 + $0x38] sm:$0xff] }
 0x21a   : > { %5874 = vst.msk [vmem:[#allocation2 + $0x30] sm:$0xff] %vm18446_vm3, %v12539_v11  ;;  %vm18447_vm9 = vmmov %vm18366_vm1  ;;  %v12559_v30 = vmax.f32 %v12545_v45, %v3725_v33  ;;  %v12606_v33 = vld [vmem:[#allocation4 + $0x48] sm:$0xff] }
 0x21b   : > { %18444 = vst [vmem:[#allocation170_spill] sm:$0xff] %v12543_v15  ;;  %5905 = vst.msk [vmem:[#allocation4 + $0x28] sm:$0xff] %vm18447_vm9, %v12543_v15  ;;  %3915 = vperm.xlu0 %8673, %v12539_v11  }
 0x21c   : > { %18449 = vst [vmem:[#allocation173_spill] sm:$0xff] %v12559_v30  ;;  %v3538_v14 = vpop.xlane.xlu0 %3537  ;;  %vm18450_vm10 = vmmov %vm18366_vm1 }
 0x21d   : > { %4065 = vperm.xlu1 %8674, %v12519_v36   ;;  %5906 = vst.msk [vmem:[#allocation4 + $0x30] sm:$0xff] %vm18450_vm10, %v12559_v30  ;;  %v12567_v19 = vmax.f32 %v12556_v9, %v3538_v14  ;;  %18452 = vst [vmem:[#allocation175_spill] sm:$0xff] %v12570_v56  ;;  %v12572_v36 = vld [vmem:[#allocation2 + $0x40] sm:$0xff]  ;;  %v3543_v45 = vpop.xlane.xlu1 %3542  ;;  %v12626_v9 = vld [vmem:[#allocation4 + $0x50] sm:$0xff] }
 0x21e   : > { %18453 = vst [vmem:[#allocation176_spill] sm:$0xff] %v12572_v36  ;;  %v12583_v14 = vmax.f32 %v12572_v36, %v3543_v45  ;;  %18457 = vst [vmem:[#allocation180_spill] sm:$0xff] %v12588_v10 }
 0x21f   : > { %18451 = vst [vmem:[#allocation174_spill] sm:$0xff] %v12567_v19  ;;  %5875 = vst.msk [vmem:[#allocation2 + $0x38] sm:$0xff] %vm18366_vm1, %v12567_v19  ;;  %3920 = vperm.xlu0 %8673, %v12567_v19  }
 0x220   : > { %v3730_v41 = vpop.xlane.xlu0 %3729  ;;  %18455 = vst [vmem:[#allocation178_spill] sm:$0xff] %v12583_v14  ;;  %vm18458_vm13 = vmmov %vm18366_vm1 }
 0x221   : > { %4070 = vperm.xlu1 %8674, %v12543_v15   ;;  %v12580_v16 = vmax.f32 %v12570_v56, %v3730_v41  ;;  %v12586_v15 = vld [vmem:[#allocation4 + $0x40] sm:$0xff]  ;;  %vm18459_vm11 = vmmov %vm18366_vm1  ;;  %v3735_v45 = vpop.xlane.xlu1 %3734  ;;  %18462 = vst [vmem:[#allocation183_spill] sm:$0xff] %v12606_v33  ;;  %v12608_v56 = vld [vmem:[#allocation2 + $0x50] sm:$0xff] }
 0x222   : > { %18456 = vst [vmem:[#allocation179_spill] sm:$0xff] %v12586_v15  ;;  %5876 = vst.msk [vmem:[#allocation2 + $0x40] sm:$0xff] %vm18459_vm11, %v12583_v14 }
 0x223   : > { %18454 = vst [vmem:[#allocation177_spill] sm:$0xff] %v12580_v16  ;;  %5907 = vst.msk [vmem:[#allocation4 + $0x38] sm:$0xff] %vm18458_vm13, %v12580_v16  ;;  %3925 = vperm.xlu0 %8673, %v12583_v14   ;;  %v12666_v14 = vld [vmem:[#allocation4 + $0x60] sm:$0xff] }
 0x224   : > { %v3548_v41 = vpop.xlane.xlu0 %3547  ;;  %18463 = vst [vmem:[#allocation184_spill] sm:$0xff] %v12608_v56  ;;  %vm18464_vm7 = vmmov %vm18366_vm1 }
 0x225   : > { %4075 = vperm.xlu1 %8674, %v12559_v30   ;;  %v12600_v30 = vmax.f32 %v12586_v15, %v3735_v45  ;;  %v12603_v53 = vmax.f32 %v12588_v10, %v3548_v41  ;;  %vm18465_vm3 = vmmov %vm18366_vm1  ;;  %v3553_v41 = vpop.xlane.xlu1 %3552  ;;  %18468 = vst [vmem:[#allocation187_spill] sm:$0xff] %v12626_v9  ;;  %v12653_v15 = vld [vmem:[#allocation4 + $0x58] sm:$0xff] }
 0x226   : > { %v12623_v11 = vmax.f32 %v12608_v56, %v3553_v41  ;;  %vm18469_vm9 = vmmov %vm18366_vm1  ;;  %v12637_v41 = vld [vmem:[#allocation2 + $0x58] sm:$0xff]  ;;  %v12650_v56 = vld [vmem:[#allocation2 + $0x60] sm:$0xff]  ;;  %18475 = vst [vmem:[#allocation192_spill] sm:$0xff] %v12653_v15 }
 0x227   : > { %18460 = vst [vmem:[#allocation181_spill] sm:$0xff] %v12600_v30  ;;  %18461 = vst [vmem:[#allocation182_spill] sm:$0xff] %v12603_v53  ;;  %3930 = vperm.xlu0 %8673, %v12603_v53  }
 0x228   : > { %5908 = vst.msk [vmem:[#allocation4 + $0x40] sm:$0xff] %vm18464_vm7, %v12600_v30  ;;  %v3740_v45 = vpop.xlane.xlu0 %3739  ;;  %18467 = vst [vmem:[#allocation186_spill] sm:$0xff] %v12623_v11 }
 0x229   : > { %4080 = vperm.xlu1 %8674, %v12580_v16   ;;  %5877 = vst.msk [vmem:[#allocation2 + $0x48] sm:$0xff] %vm18465_vm3, %v12603_v53  ;;  %v12620_v16 = vmax.f32 %v12606_v33, %v3740_v45  ;;  %vm18470_vm10 = vmmov %vm18366_vm1  ;;  %v3745_v45 = vpop.xlane.xlu1 %3744 }
 0x22a   : > { %5878 = vst.msk [vmem:[#allocation2 + $0x50] sm:$0xff] %vm18470_vm10, %v12623_v11  ;;  %18471 = vst [vmem:[#allocation188_spill] sm:$0xff] %v12637_v41 }
 0x22b   : > { %18466 = vst [vmem:[#allocation185_spill] sm:$0xff] %v12620_v16  ;;  %5909 = vst.msk [vmem:[#allocation4 + $0x48] sm:$0xff] %vm18469_vm9, %v12620_v16  ;;  %3935 = vperm.xlu0 %8673, %v12623_v11  }
 0x22c   : > { %v3558_v36 = vpop.xlane.xlu0 %3557  ;;  %18474 = vst [vmem:[#allocation191_spill] sm:$0xff] %v12650_v56  ;;  %vm18476_vm13 = vmmov %vm18366_vm1 }
 0x22d   : > { %4085 = vperm.xlu1 %8674, %v12600_v30   ;;  %v12640_v30 = vmax.f32 %v12626_v9, %v3745_v45  ;;  %v12648_v10 = vmax.f32 %v12637_v41, %v3558_v36  ;;  %18479 = vst [vmem:[#allocation195_spill] sm:$0xff] %v12666_v14  ;;  %vm18480_vm11 = vmmov %vm18366_vm1 }
 0x22e   : > { %vm18481_vm7 = vmmov %vm18366_vm1 }
 0x22f   : > { %18472 = vst [vmem:[#allocation189_spill] sm:$0xff] %v12640_v30  ;;  %5910 = vst.msk [vmem:[#allocation4 + $0x50] sm:$0xff] %vm18366_vm1, %v12640_v30  ;;  %3940 = vperm.xlu0 %8673, %v12648_v10  }
 0x230   : > { %18473 = vst [vmem:[#allocation190_spill] sm:$0xff] %v12648_v10  ;;  %5879 = vst.msk [vmem:[#allocation2 + $0x58] sm:$0xff] %vm18476_vm13, %v12648_v10  ;;  %v3750_v33 = vpop.xlane.xlu0 %3749  ;;  %v12707_v10 = vld [vmem:[#allocation4 + $0x70] sm:$0xff] }
 0x231   : > { %4090 = vperm.xlu1 %8674, %v12620_v16   ;;  %v3563_v16 = vpop.xlane.xlu1 %3562  ;;  %v12664_v36 = vmax.f32 %v12653_v15, %v3750_v33  ;;  %vm18484_vm3 = vmmov %vm18366_vm1  ;;  %v12691_v15 = vld [vmem:[#allocation2 + $0x70] sm:$0xff]  ;;  %18491 = vst [vmem:[#allocation203_spill] sm:$0xff] %v12707_v10 }
 0x232   : > { %v12661_v9 = vmax.f32 %v12650_v56, %v3563_v16  ;;  %18486 = vst [vmem:[#allocation199_spill] sm:$0xff] %v12691_v15  ;;  %v12693_v56 = vld [vmem:[#allocation4 + $0x68] sm:$0xff]  ;;  %vm18488_vm9 = vmmov %vm18366_vm1 }
 0x233   : > { %18478 = vst [vmem:[#allocation194_spill] sm:$0xff] %v12664_v36  ;;  %5911 = vst.msk [vmem:[#allocation4 + $0x58] sm:$0xff] %vm18481_vm7, %v12664_v36 }
 0x234   : > { %18477 = vst [vmem:[#allocation193_spill] sm:$0xff] %v12661_v9  ;;  %5880 = vst.msk [vmem:[#allocation2 + $0x60] sm:$0xff] %vm18480_vm11, %v12661_v9  ;;  %v3568_v11 = vpop.xlane.xlu0 %3567  ;;  %3945 = vperm.xlu0 %8673, %v12661_v9  }
 0x235   : > { %4095 = vperm.xlu1 %8674, %v12640_v30   ;;  %v3755_v16 = vpop.xlane.xlu1 %3754  ;;  %v12677_v30 = vld [vmem:[#allocation2 + $0x68] sm:$0xff]  ;;  %18487 = vst [vmem:[#allocation200_spill] sm:$0xff] %v12693_v56  ;;  %vm18492_vm10 = vmmov %vm18366_vm1 }
 0x236   : > { %18482 = vst [vmem:[#allocation196_spill] sm:$0xff] %v12677_v30  ;;  %v12681_v33 = vmax.f32 %v12666_v14, %v3755_v16  ;;  %v12689_v41 = vmax.f32 %v12677_v30, %v3568_v11  ;;  %v12713_v30 = vld [vmem:[#allocation2 + $0x78] sm:$0xff]  ;;  %vm18496_vm13 = vmmov %vm18366_vm1 }
 0x237   : > { %18493 = vst [vmem:[#allocation204_spill] sm:$0xff] %v12713_v30  ;;  %vm18499_vm11 = vmmov %vm18366_vm1 }
 0x238   : > { %18483 = vst [vmem:[#allocation197_spill] sm:$0xff] %v12681_v33  ;;  %5912 = vst.msk [vmem:[#allocation4 + $0x60] sm:$0xff] %vm18484_vm3, %v12681_v33  ;;  %v3760_v45 = vpop.xlane.xlu0 %3759  ;;  %3950 = vperm.xlu0 %8673, %v12689_v41  }
 0x239   : > { %4100 = vperm.xlu1 %8674, %v12664_v36   ;;  %18485 = vst [vmem:[#allocation198_spill] sm:$0xff] %v12689_v41  ;;  %5881 = vst.msk [vmem:[#allocation2 + $0x68] sm:$0xff] %vm18488_vm9, %v12689_v41  ;;  %v3573_v36 = vpop.xlane.xlu1 %3572  ;;  %v12705_v11 = vmax.f32 %v12693_v56, %v3760_v45  ;;  %v12733_v56 = vld [vmem:[#allocation2 + $0x80] sm:$0xff] }
 0x23a   : > { %v12701_v14 = vmax.f32 %v12691_v15, %v3573_v36  ;;  %18498 = vst [vmem:[#allocation208_spill] sm:$0xff] %v12733_v56  ;;  %v12747_v41 = vld [vmem:[#allocation4 + $0x80] sm:$0xff]  ;;  %vm18503_vm7 = vmmov %vm18366_vm1 }
 0x23b   : > { %18490 = vst [vmem:[#allocation202_spill] sm:$0xff] %v12705_v11  ;;  %5913 = vst.msk [vmem:[#allocation4 + $0x68] sm:$0xff] %vm18366_vm1, %v12705_v11 }
 0x23c   : > { %18489 = vst [vmem:[#allocation201_spill] sm:$0xff] %v12701_v14  ;;  %5882 = vst.msk [vmem:[#allocation2 + $0x70] sm:$0xff] %vm18492_vm10, %v12701_v14  ;;  %v3578_v9 = vpop.xlane.xlu0 %3577  ;;  %3955 = vperm.xlu0 %8673, %v12701_v14   ;;  %v12767_v14 = vld [vmem:[#allocation2 + $0x90] sm:$0xff] }
 0x23d   : > { %4105 = vperm.xlu1 %8674, %v12681_v33   ;;  %v3765_v45 = vpop.xlane.xlu1 %3764  ;;  %v12725_v16 = vmax.f32 %v12713_v30, %v3578_v9  ;;  %v12731_v33 = vld [vmem:[#allocation4 + $0x78] sm:$0xff]  ;;  %18502 = vst [vmem:[#allocation211_spill] sm:$0xff] %v12747_v41  ;;  %vm18504_vm3 = vmmov %vm18366_vm1 }
 0x23e   : > { %v12721_v36 = vmax.f32 %v12707_v10, %v3765_v45  ;;  %18497 = vst [vmem:[#allocation207_spill] sm:$0xff] %v12731_v33  ;;  %18508 = vst [vmem:[#allocation215_spill] sm:$0xff] %v12767_v14 }
 0x23f   : > { %18495 = vst [vmem:[#allocation206_spill] sm:$0xff] %v12725_v16  ;;  %5883 = vst.msk [vmem:[#allocation2 + $0x78] sm:$0xff] %vm18499_vm11, %v12725_v16 }
 0x240   : > { %18494 = vst [vmem:[#allocation205_spill] sm:$0xff] %v12721_v36  ;;  %5914 = vst.msk [vmem:[#allocation4 + $0x70] sm:$0xff] %vm18496_vm13, %v12721_v36  ;;  %v3770_v9 = vpop.xlane.xlu0 %3769  ;;  %3960 = vperm.xlu0 %8673, %v12725_v16  }
 0x241   : > { %4110 = vperm.xlu1 %8674, %v12705_v11   ;;  %v3583_v11 = vpop.xlane.xlu1 %3582  ;;  %v12742_v15 = vmax.f32 %v12731_v33, %v3770_v9  ;;  %v12758_v9 = vld [vmem:[#allocation2 + $0x88] sm:$0xff]  ;;  %vm18509_vm9 = vmmov %vm18366_vm1 }
 0x242   : > { %v12745_v10 = vmax.f32 %v12733_v56, %v3583_v11  ;;  %18505 = vst [vmem:[#allocation212_spill] sm:$0xff] %v12758_v9  ;;  %v12774_v56 = vld [vmem:[#allocation4 + $0x88] sm:$0xff]  ;;  %vm18511_vm10 = vmmov %vm18366_vm1 }
 0x243   : > { %18500 = vst [vmem:[#allocation209_spill] sm:$0xff] %v12742_v15  ;;  %5915 = vst.msk [vmem:[#allocation4 + $0x78] sm:$0xff] %vm18503_vm7, %v12742_v15 }
 0x244   : > { %18501 = vst [vmem:[#allocation210_spill] sm:$0xff] %v12745_v10  ;;  %5884 = vst.msk [vmem:[#allocation2 + $0x80] sm:$0xff] %vm18504_vm3, %v12745_v10  ;;  %v3588_v45 = vpop.xlane.xlu0 %3587  ;;  %3965 = vperm.xlu0 %8673, %v12745_v10  }
 0x245   : > { %4115 = vperm.xlu1 %8674, %v12721_v36   ;;  %v3775_v11 = vpop.xlane.xlu1 %3774  ;;  %v12765_v33 = vmax.f32 %v12758_v9, %v3588_v45  ;;  %18510 = vst [vmem:[#allocation216_spill] sm:$0xff] %v12774_v56  ;;  %vm18516_vm13 = vmmov %vm18366_vm1  ;;  %v12811_v9 = vld [vmem:[#allocation4 + $0x98] sm:$0xff] }
 0x246   : > { %v12762_v36 = vmax.f32 %v12747_v41, %v3775_v11  ;;  %v12787_v41 = vld [vmem:[#allocation4 + $0x90] sm:$0xff]  ;;  %v12793_v11 = vld [vmem:[#allocation2 + $0x98] sm:$0xff]  ;;  %vm18519_vm11 = vmmov %vm18366_vm1  ;;  %18520 = vst [vmem:[#allocation223_spill] sm:$0xff] %v12811_v9 }
 0x247   : > { %18507 = vst [vmem:[#allocation214_spill] sm:$0xff] %v12765_v33  ;;  %5885 = vst.msk [vmem:[#allocation2 + $0x88] sm:$0xff] %vm18511_vm10, %v12765_v33 }
 0x248   : > { %18506 = vst [vmem:[#allocation213_spill] sm:$0xff] %v12762_v36  ;;  %5916 = vst.msk [vmem:[#allocation4 + $0x80] sm:$0xff] %vm18509_vm9, %v12762_v36  ;;  %3970 = vperm.xlu0 %8673, %v12765_v33   ;;  %v12827_v33 = vld [vmem:[#allocation2 + $0xa8] sm:$0xff] }
 0x249   : > { %4120 = vperm.xlu1 %8674, %v12742_v15   ;;  %v3593_v45 = vpop.xlane.xlu1 %3592  ;;  %v3780_v15 = vpop.xlane.xlu0 %3779  ;;  %18514 = vst [vmem:[#allocation219_spill] sm:$0xff] %v12787_v41  ;;  %18515 = vst [vmem:[#allocation220_spill] sm:$0xff] %v12793_v11 }
 0x24a   : > { %v12782_v16 = vmax.f32 %v12767_v14, %v3593_v45  ;;  %v12785_v30 = vmax.f32 %v12774_v56, %v3780_v15  ;;  %vm18521_vm7 = vmmov %vm18366_vm1  ;;  %18525 = vst [vmem:[#allocation227_spill] sm:$0xff] %v12827_v33 }
 0x24b   : > { %vm18526_vm3 = vmmov %vm18366_vm1 }
 0x24c   : > { %18512 = vst [vmem:[#allocation217_spill] sm:$0xff] %v12782_v16  ;;  %18513 = vst [vmem:[#allocation218_spill] sm:$0xff] %v12785_v30  ;;  %3975 = vperm.xlu0 %8673, %v12782_v16  }
 0x24d   : > { %4125 = vperm.xlu1 %8674, %v12762_v36   ;;  %5886 = vst.msk [vmem:[#allocation2 + $0x90] sm:$0xff] %vm18366_vm1, %v12782_v16  ;;  %v3785_v15 = vpop.xlane.xlu1 %3784  ;;  %v3598_v36 = vpop.xlane.xlu0 %3597  ;;  %vm18528_vm9 = vmmov %vm18366_vm1 }
 0x24e   : > { %5917 = vst.msk [vmem:[#allocation4 + $0x88] sm:$0xff] %vm18516_vm13, %v12785_v30  ;;  %v12802_v45 = vmax.f32 %v12787_v41, %v3785_v15  ;;  %v12805_v14 = vmax.f32 %v12793_v11, %v3598_v36  ;;  %v12818_v15 = vld [vmem:[#allocation2 + $0xa0] sm:$0xff]  ;;  %vm18532_vm10 = vmmov %vm18366_vm1 }
 0x24f   : > { %18522 = vst [vmem:[#allocation224_spill] sm:$0xff] %v12818_v15  ;;  %v12834_v11 = vld [vmem:[#allocation4 + $0xa0] sm:$0xff]  ;;  %vm18536_vm13 = vmmov %vm18366_vm1 }
 0x250   : > { %18517 = vst [vmem:[#allocation221_spill] sm:$0xff] %v12802_v45  ;;  %18518 = vst [vmem:[#allocation222_spill] sm:$0xff] %v12805_v14  ;;  %3980 = vperm.xlu0 %8673, %v12805_v14  }
 0x251   : > { %4130 = vperm.xlu1 %8674, %v12785_v30   ;;  %5918 = vst.msk [vmem:[#allocation4 + $0x90] sm:$0xff] %vm18519_vm11, %v12802_v45  ;;  %v3790_v36 = vpop.xlane.xlu0 %3789  ;;  %v3603_v41 = vpop.xlane.xlu1 %3602  ;;  %18527 = vst [vmem:[#allocation228_spill] sm:$0xff] %v12834_v11 }
 0x252   : > { %5887 = vst.msk [vmem:[#allocation2 + $0x98] sm:$0xff] %vm18521_vm7, %v12805_v14  ;;  %v12822_v10 = vmax.f32 %v12811_v9, %v3790_v36  ;;  %v12825_v56 = vmax.f32 %v12818_v15, %v3603_v41  ;;  %v12847_v9 = vld [vmem:[#allocation4 + $0xa8] sm:$0xff]  ;;  %v12853_v36 = vld [vmem:[#allocation2 + $0xb0] sm:$0xff]  ;;  %vm18539_vm11 = vmmov %vm18366_vm1 }
 0x253   : > { %18531 = vst [vmem:[#allocation231_spill] sm:$0xff] %v12847_v9  ;;  %18533 = vst [vmem:[#allocation232_spill] sm:$0xff] %v12853_v36  ;;  %v12871_v15 = vld [vmem:[#allocation4 + $0xb0] sm:$0xff] }
 0x254   : > { %18523 = vst [vmem:[#allocation225_spill] sm:$0xff] %v12822_v10  ;;  %18524 = vst [vmem:[#allocation226_spill] sm:$0xff] %v12825_v56  ;;  %3985 = vperm.xlu0 %8673, %v12825_v56  }
 0x255   : > { %4135 = vperm.xlu1 %8674, %v12802_v45   ;;  %5919 = vst.msk [vmem:[#allocation4 + $0x98] sm:$0xff] %vm18526_vm3, %v12822_v10  ;;  %v3608_v41 = vpop.xlane.xlu0 %3607  ;;  %v3795_v45 = vpop.xlane.xlu1 %3794  ;;  %18537 = vst [vmem:[#allocation235_spill] sm:$0xff] %v12871_v15 }
 0x256   : > { %5888 = vst.msk [vmem:[#allocation2 + $0xa0] sm:$0xff] %vm18528_vm9, %v12825_v56  ;;  %v12842_v16 = vmax.f32 %v12827_v33, %v3608_v41  ;;  %v12845_v30 = vmax.f32 %v12834_v11, %v3795_v45  ;;  %v12873_v11 = vld [vmem:[#allocation2 + $0xb8] sm:$0xff]  ;;  %vm18543_vm7 = vmmov %vm18366_vm1 }
 0x257   : > { %18538 = vst [vmem:[#allocation236_spill] sm:$0xff] %v12873_v11  ;;  %v12887_v56 = vld [vmem:[#allocation4 + $0xb8] sm:$0xff]  ;;  %vm18544_vm3 = vmmov %vm18366_vm1 }
 0x258   : > { %18529 = vst [vmem:[#allocation229_spill] sm:$0xff] %v12842_v16  ;;  %18530 = vst [vmem:[#allocation230_spill] sm:$0xff] %v12845_v30  ;;  %3990 = vperm.xlu0 %8673, %v12842_v16  }
 0x259   : > { %4140 = vperm.xlu1 %8674, %v12822_v10   ;;  %5889 = vst.msk [vmem:[#allocation2 + $0xa8] sm:$0xff] %vm18532_vm10, %v12842_v16  ;;  %v3800_v45 = vpop.xlane.xlu0 %3799  ;;  %v3613_v10 = vpop.xlane.xlu1 %3612  ;;  %18542 = vst [vmem:[#allocation239_spill] sm:$0xff] %v12887_v56  ;;  %v12907_v16 = vld [vmem:[#allocation2 + $0xc8] sm:$0xff] }
 0x25a   : > { %5920 = vst.msk [vmem:[#allocation4 + $0xa0] sm:$0xff] %vm18366_vm1, %v12845_v30  ;;  %v12862_v41 = vmax.f32 %v12847_v9, %v3800_v45  ;;  %v12865_v33 = vmax.f32 %v12853_v36, %v3613_v10  ;;  %18548 = vst [vmem:[#allocation243_spill] sm:$0xff] %v12907_v16 }
 0x25b   : > { %vm18549_vm9 = vmmov %vm18366_vm1 }
 0x25c   : > { %18534 = vst [vmem:[#allocation233_spill] sm:$0xff] %v12862_v41  ;;  %18535 = vst [vmem:[#allocation234_spill] sm:$0xff] %v12865_v33  ;;  %3995 = vperm.xlu0 %8673, %v12865_v33  }
 0x25d   : > { %4145 = vperm.xlu1 %8674, %v12845_v30   ;;  %5921 = vst.msk [vmem:[#allocation4 + $0xa8] sm:$0xff] %vm18536_vm13, %v12862_v41  ;;  %v3805_v10 = vpop.xlane.xlu1 %3804  ;;  %v3618_v45 = vpop.xlane.xlu0 %3617  ;;  %vm18551_vm10 = vmmov %vm18366_vm1 }
 0x25e   : > { %5890 = vst.msk [vmem:[#allocation2 + $0xb0] sm:$0xff] %vm18539_vm11, %v12865_v33  ;;  %v12882_v14 = vmax.f32 %v12871_v15, %v3805_v10  ;;  %v12885_v9 = vmax.f32 %v12873_v11, %v3618_v45  ;;  %v12899_v10 = vld [vmem:[#allocation2 + $0xc0] sm:$0xff]  ;;  %vm18556_vm13 = vmmov %vm18366_vm1 }
 0x25f   : > { %18545 = vst [vmem:[#allocation240_spill] sm:$0xff] %v12899_v10  ;;  %v12915_v11 = vld [vmem:[#allocation4 + $0xc0] sm:$0xff]  ;;  %vm18559_vm11 = vmmov %vm18366_vm1 }
 0x260   : > { %18540 = vst [vmem:[#allocation237_spill] sm:$0xff] %v12882_v14  ;;  %18541 = vst [vmem:[#allocation238_spill] sm:$0xff] %v12885_v9  ;;  %4000 = vperm.xlu0 %8673, %v12885_v9  }
 0x261   : > { %4150 = vperm.xlu1 %8674, %v12862_v41   ;;  %5922 = vst.msk [vmem:[#allocation4 + $0xb0] sm:$0xff] %vm18543_vm7, %v12882_v14  ;;  %v3810_v45 = vpop.xlane.xlu0 %3809  ;;  %v3623_v30 = vpop.xlane.xlu1 %3622  ;;  %18550 = vst [vmem:[#allocation244_spill] sm:$0xff] %v12915_v11 }
 0x262   : > { %5891 = vst.msk [vmem:[#allocation2 + $0xb8] sm:$0xff] %vm18544_vm3, %v12885_v9  ;;  %v12902_v41 = vmax.f32 %v12887_v56, %v3810_v45  ;;  %v12905_v15 = vmax.f32 %v12899_v10, %v3623_v30  ;;  %v12927_v56 = vld [vmem:[#allocation4 + $0xc8] sm:$0xff]  ;;  %v12934_v45 = vld [vmem:[#allocation2 + $0xd0] sm:$0xff]  ;;  %vm18561_vm7 = vmmov %vm18366_vm1 }
 0x263   : > { %18554 = vst [vmem:[#allocation247_spill] sm:$0xff] %v12927_v56  ;;  %18555 = vst [vmem:[#allocation248_spill] sm:$0xff] %v12934_v45  ;;  %v12952_v10 = vld [vmem:[#allocation4 + $0xd0] sm:$0xff] }
 0x264   : > { %18546 = vst [vmem:[#allocation241_spill] sm:$0xff] %v12902_v41  ;;  %18547 = vst [vmem:[#allocation242_spill] sm:$0xff] %v12905_v15  ;;  %4005 = vperm.xlu0 %8673, %v12905_v15   ;;  %v18595_v9 = vld [vmem:[#allocation110_spill] sm:$0xff] }
 0x265   : > { %4155 = vperm.xlu1 %8674, %v12882_v14   ;;  %5923 = vst.msk [vmem:[#allocation4 + $0xb8] sm:$0xff] %vm18549_vm9, %v12902_v41  ;;  %v3628_v30 = vpop.xlane.xlu0 %3627  ;;  %v3815_v14 = vpop.xlane.xlu1 %3814  ;;  %18560 = vst [vmem:[#allocation251_spill] sm:$0xff] %v12952_v10 }
 0x266   : > { %5892 = vst.msk [vmem:[#allocation2 + $0xc0] sm:$0xff] %vm18551_vm10, %v12905_v15  ;;  %v12922_v33 = vmax.f32 %v12907_v16, %v3628_v30  ;;  %v12925_v36 = vmax.f32 %v12915_v11, %v3815_v14  ;;  %vm18566_vm3 = vmmov %vm18366_vm1 }
 0x267   : > { %vm18568_vm9 = vmmov %vm18366_vm1 }
 0x268   : > { %18552 = vst [vmem:[#allocation245_spill] sm:$0xff] %v12922_v33  ;;  %18553 = vst [vmem:[#allocation246_spill] sm:$0xff] %v12925_v36  ;;  %4010 = vperm.xlu0 %8673, %v12922_v33  }
 0x269   : > { %4160 = vperm.xlu1 %8674, %v12902_v41   ;;  %5893 = vst.msk [vmem:[#allocation2 + $0xc8] sm:$0xff] %vm18366_vm1, %v12922_v33  ;;  %v3820_v14 = vpop.xlane.xlu0 %3819  ;;  %v3633_v41 = vpop.xlane.xlu1 %3632  ;;  %v12968_v33 = vld [vmem:[#allocation2 + $0xe0] sm:$0xff]  ;;  %vm18572_vm10 = vmmov %vm18366_vm1 }
 0x26a   : > { %5924 = vst.msk [vmem:[#allocation4 + $0xc0] sm:$0xff] %vm18556_vm13, %v12925_v36  ;;  %v12942_v30 = vmax.f32 %v12927_v56, %v3820_v14  ;;  %v12945_v16 = vmax.f32 %v12934_v45, %v3633_v41  ;;  %v12959_v41 = vld [vmem:[#allocation2 + $0xd8] sm:$0xff]  ;;  %18565 = vst [vmem:[#allocation255_spill] sm:$0xff] %v12968_v33 }
 0x26b   : > { %18562 = vst [vmem:[#allocation252_spill] sm:$0xff] %v12959_v41  ;;  %v12975_v45 = vld [vmem:[#allocation4 + $0xd8] sm:$0xff]  ;;  %vm18577_vm13 = vmmov %vm18366_vm1 }
 0x26c   : > { %18557 = vst [vmem:[#allocation249_spill] sm:$0xff] %v12942_v30  ;;  %18558 = vst [vmem:[#allocation250_spill] sm:$0xff] %v12945_v16  ;;  %4015 = vperm.xlu0 %8673, %v12945_v16  }
 0x26d   : > { %4165 = vperm.xlu1 %8674, %v12925_v36   ;;  %5925 = vst.msk [vmem:[#allocation4 + $0xc8] sm:$0xff] %vm18559_vm11, %v12942_v30  ;;  %v3825_v14 = vpop.xlane.xlu1 %3824  ;;  %v3638_v56 = vpop.xlane.xlu0 %3637  ;;  %18567 = vst [vmem:[#allocation256_spill] sm:$0xff] %v12975_v45 }
 0x26e   : > { %5894 = vst.msk [vmem:[#allocation2 + $0xd0] sm:$0xff] %vm18561_vm7, %v12945_v16  ;;  %v12962_v15 = vmax.f32 %v12952_v10, %v3825_v14  ;;  %v12965_v11 = vmax.f32 %v12959_v41, %v3638_v56  ;;  %v12988_v10 = vld [vmem:[#allocation2 + $0xe8] sm:$0xff]  ;;  %v12994_v14 = vld [vmem:[#allocation4 + $0xe0] sm:$0xff]  ;;  %vm18579_vm11 = vmmov %vm18366_vm1 }
 0x26f   : > { %18571 = vst [vmem:[#allocation259_spill] sm:$0xff] %v12988_v10  ;;  %18573 = vst [vmem:[#allocation260_spill] sm:$0xff] %v12994_v14 }
 0x270   : > { %18563 = vst [vmem:[#allocation253_spill] sm:$0xff] %v12962_v15  ;;  %18564 = vst [vmem:[#allocation254_spill] sm:$0xff] %v12965_v11  ;;  %4020 = vperm.xlu0 %8673, %v12965_v11  }
 0x271   : > { %4170 = vperm.xlu1 %8674, %v12942_v30   ;;  %5926 = vst.msk [vmem:[#allocation4 + $0xd0] sm:$0xff] %vm18566_vm3, %v12962_v15  ;;  %v3643_v56 = vpop.xlane.xlu1 %3642  ;;  %v3830_v16 = vpop.xlane.xlu0 %3829  ;;  %vm18583_vm7 = vmmov %vm18366_vm1 }
 0x272   : > { %5895 = vst.msk [vmem:[#allocation2 + $0xd8] sm:$0xff] %vm18568_vm9, %v12965_v11  ;;  %v12982_v30 = vmax.f32 %v12968_v33, %v3643_v56  ;;  %v12985_v36 = vmax.f32 %v12975_v45, %v3830_v16  ;;  %v13008_v33 = vld [vmem:[#allocation2 + $0xf0] sm:$0xff]  ;;  %v13014_v45 = vld [vmem:[#allocation4 + $0xe8] sm:$0xff]  ;;  %vm18585_vm3 = vmmov %vm18366_vm1 }
 0x273   : > { %18576 = vst [vmem:[#allocation263_spill] sm:$0xff] %v13008_v33  ;;  %18578 = vst [vmem:[#allocation264_spill] sm:$0xff] %v13014_v45 }
 0x274   : > { %18569 = vst [vmem:[#allocation257_spill] sm:$0xff] %v12982_v30  ;;  %18570 = vst [vmem:[#allocation258_spill] sm:$0xff] %v12985_v36  ;;  %4025 = vperm.xlu0 %8673, %v12982_v30  }
 0x275   : > { %4175 = vperm.xlu1 %8674, %v12962_v15   ;;  %5896 = vst.msk [vmem:[#allocation2 + $0xe0] sm:$0xff] %vm18572_vm10, %v12982_v30  ;;  %v3648_v16 = vpop.xlane.xlu1 %3647  ;;  %v3835_v56 = vpop.xlane.xlu0 %3834  ;;  %vm18588_vm9 = vmmov %vm18366_vm1 }
 0x276   : > { %5927 = vst.msk [vmem:[#allocation4 + $0xd8] sm:$0xff] %vm18366_vm1, %v12985_v36  ;;  %v13002_v11 = vmax.f32 %v12988_v10, %v3648_v16  ;;  %v13005_v15 = vmax.f32 %v12994_v14, %v3835_v56  ;;  %v13028_v10 = vld [vmem:[#allocation2 + $0xf8] sm:$0xff]  ;;  %v13034_v14 = vld [vmem:[#allocation4 + $0xf0] sm:$0xff]  ;;  %vm18590_vm10 = vmmov %vm18366_vm1 }
 0x277   : > { %18582 = vst [vmem:[#allocation267_spill] sm:$0xff] %v13028_v10  ;;  %18584 = vst [vmem:[#allocation268_spill] sm:$0xff] %v13034_v14 }
 0x278   : > { %18574 = vst [vmem:[#allocation261_spill] sm:$0xff] %v13002_v11  ;;  %18575 = vst [vmem:[#allocation262_spill] sm:$0xff] %v13005_v15  ;;  %4030 = vperm.xlu0 %8673, %v13002_v11  }
 0x279   : > { %4180 = vperm.xlu1 %8674, %v12985_v36   ;;  %5897 = vst.msk [vmem:[#allocation2 + $0xe8] sm:$0xff] %vm18577_vm13, %v13002_v11  ;;  %v3653_v16 = vpop.xlane.xlu1 %3652  ;;  %v3840_v56 = vpop.xlane.xlu0 %3839 }
 0x27a   : > { %5928 = vst.msk [vmem:[#allocation4 + $0xe0] sm:$0xff] %vm18579_vm11, %v13005_v15  ;;  %v13022_v30 = vmax.f32 %v13008_v33, %v3653_v16  ;;  %v13025_v41 = vmax.f32 %v13014_v45, %v3840_v56 }
 0x27c   : > { %18580 = vst [vmem:[#allocation265_spill] sm:$0xff] %v13022_v30  ;;  %18581 = vst [vmem:[#allocation266_spill] sm:$0xff] %v13025_v41  ;;  %4035 = vperm.xlu0 %8673, %v13022_v30  }
 0x27d   : > { %4185 = vperm.xlu1 %8674, %v13005_v15   ;;  %5898 = vst.msk [vmem:[#allocation2 + $0xf0] sm:$0xff] %vm18583_vm7, %v13022_v30  ;;  %v3658_v16 = vpop.xlane.xlu1 %3657  ;;  %v3845_v56 = vpop.xlane.xlu0 %3844  ;;  %v13052_v15 = vld [vmem:[#allocation4 + $0xf8] sm:$0xff]  ;;  %vm18602_vm7 = vnez %v17878_v3 }
 0x27e   : > { %5929 = vst.msk [vmem:[#allocation4 + $0xe8] sm:$0xff] %vm18585_vm3, %v13025_v41  ;;  %v13042_v11 = vmax.f32 %v13028_v10, %v3658_v16  ;;  %v13045_v36 = vmax.f32 %v13034_v14, %v3845_v56  ;;  %18589 = vst [vmem:[#allocation271_spill] sm:$0xff] %v13052_v15  ;;  %v18592_v14 = vld [vmem:[#allocation50_spill] sm:$0xff]  ;;  %vm18604_vm3 = vnez %v17892_v21 }
 0x27f   : > { %vm18593_vm13 = vnez %v18592_v14 }
 0x280   : > { %18586 = vst [vmem:[#allocation269_spill] sm:$0xff] %v13042_v11  ;;  %18587 = vst [vmem:[#allocation270_spill] sm:$0xff] %v13045_v36  ;;  %4040 = vperm.xlu0 %8673, %v13042_v11  }
 0x281   : > { %4190 = vperm.xlu1 %8674, %v13025_v41   ;;  %5899 = vst.msk [vmem:[#allocation2 + $0xf8] sm:$0xff] %vm18588_vm9, %v13042_v11  ;;  %v3886_v16 = vpop.permute.xlu1 %3885  ;;  %v3850_v56 = vpop.xlane.xlu0 %3849 }
 0x282   : > { %5930 = vst.msk [vmem:[#allocation4 + $0xf0] sm:$0xff] %vm18590_vm10, %v13045_v36  ;;  %v13060_v45 = vmax.f32 %v13052_v15, %v3850_v56  ;;  %v18594_v56 = vld [vmem:[#allocation106_spill] sm:$0xff]  ;;  %v18597_v15 = vld [vmem:[#allocation51_spill] sm:$0xff] }
 0x283   : > { %v18596_v53 = vsel %vm18593_vm13, %v18594_v56, %v18595_v9  ;;  %vm18598_vm11 = vnez %v18597_v15 }
 0x284   : > { %18591 = vst [vmem:[#allocation272_spill] sm:$0xff] %v13060_v45  ;;  %5931 = vst.msk [vmem:[#allocation4 + $0xf8] sm:$0xff] %vm18366_vm1, %v13060_v45  ;;  %vm18618_vm1 = vnez %v17895_v42 }
 0x285   : > { %4195 = vperm.xlu1 %8674, %v13045_v36   ;;  %v3891_v30 = vpop.permute.xlu0 %3890 }
 0x289   : > { %4200 = vperm.xlu1 %8674, %v13060_v45   ;;  %v3896_v57 = vpop.permute.xlu0 %3895 }
 0x28c   : > { %v4046_v41 = vpop.permute.xlu1 %4045 }
 0x28d   : > { %v4203_v10 = vsel %vm18593_vm13, %v3886_v16, %v4046_v41  ;;  %v18600_v41 = vld [vmem:[#allocation114_spill] sm:$0xff] }
 0x28e   : > { %v4459_v11 = vsub.f32 %v18596_v53, %v4203_v10  ;;  %v3901_v45 = vpop.permute.xlu0 %3900  ;;  %v18601_v16 = vsel %vm18598_vm11, %v18599_v0, %v18600_v41  ;;  %v18605_v0 = vld [vmem:[#allocation116_spill] sm:$0xff] }
 0x290   : > { %v4051_v36 = vpop.permute.xlu1 %4050  ;;  %v4587_v33 = vmul.f32 1.442695, %v4459_v11  ;;  %v18603_v11 = vsel %vm18602_vm7, %v11289_v50, %v11311_v28 }
 0x291   : > { %v4207_v2 = vsel %vm18598_vm11, %v3891_v30, %v4051_v36 }
 0x292   : > { %v4463_v59 = vsub.f32 %v18601_v16, %v4207_v2  ;;  %8675 = vpow2.f32 %v4587_v33  ;;  %v3906_v53 = vpop.permute.xlu0 %3905 }
 0x294   : > { %v4056_v19 = vpop.permute.xlu1 %4055  ;;  %v4595_v10 = vmul.f32 1.442695, %v4463_v59  ;;  %v18608_v59 = vld [vmem:[#allocation55_spill] sm:$0xff] }
 0x295   : > { %v4211_v22 = vsel %vm18602_vm7, %v3896_v57, %v4056_v19  ;;  %v18606_v57 = vld [vmem:[#allocation119_spill] sm:$0xff]  ;;  %vm18609_vm9 = vnez %v18608_v59 }
 0x296   : > { %v4467_v36 = vsub.f32 %v18603_v11, %v4211_v22  ;;  %v3911_v25 = vpop.permute.xlu0 %3910  ;;  %8677 = vpow2.f32 %v4595_v10  ;;  %v18607_v19 = vsel %vm18604_vm3, %v18605_v0, %v18606_v57  ;;  %v18611_v22 = vld [vmem:[#allocation125_spill] sm:$0xff] }
 0x297   : > { %v18613_v11 = vld [vmem:[#allocation57_spill] sm:$0xff] }
 0x298   : > { %v4061_v63 = vpop.permute.xlu1 %4060  ;;  %v4603_v2 = vmul.f32 1.442695, %v4467_v36  ;;  %vm18614_vm10 = vnez %v18613_v11 }
 0x299   : > { %v4215_v30 = vsel %vm18604_vm3, %v3901_v45, %v4061_v63  ;;  %v18610_v63 = vld [vmem:[#allocation120_spill] sm:$0xff] }
 0x29a   : > { %v4471_v33 = vsub.f32 %v18607_v19, %v4215_v30  ;;  %v3916_v50 = vpop.permute.xlu0 %3915  ;;  %8679 = vpow2.f32 %v4603_v2  ;;  %v18612_v45 = vsel %vm18609_vm9, %v18610_v63, %v18611_v22  ;;  %v18616_v2 = vld [vmem:[#allocation127_spill] sm:$0xff]  ;;  %v18619_v22 = vld [vmem:[#allocation104_spill] sm:$0xff] }
 0x29b   : > { %vm18620_vm0 = vnez %v18619_v22 }
 0x29c   : > { %v4066_v9 = vpop.permute.xlu1 %4065  ;;  %v8676_v1 = vpop.eup %8675  ;;  %v4611_v28 = vmul.f32 1.442695, %v4471_v33 }
 0x29d   : > { %v4219_v41 = vsel %vm18609_vm9, %v3906_v53, %v4066_v9  ;;  %v4843_v30 = vsel %vm18593_vm13, %v8676_v1, 0.0  ;;  %v18615_v53 = vld [vmem:[#allocation124_spill] sm:$0xff]  ;;  %vm18622_vm13 = vnez %v17913_v44 }
 0x29e   : > { %v4475_v10 = vsub.f32 %v18612_v45, %v4219_v41  ;;  %v3921_v57 = vpop.permute.xlu0 %3920  ;;  %8681 = vpow2.f32 %v4611_v28  ;;  %v18617_v19 = vsel %vm18614_vm10, %v18615_v53, %v18616_v2  ;;  %v18621_v28 = vsel %vm18618_vm1, %v11467_v48, %v11509_v43  ;;  %v18625_v48 = vld [vmem:[#allocation130_spill] sm:$0xff]  ;;  %v18626_v43 = vld [vmem:[#allocation133_spill] sm:$0xff] }
 0x29f   : > { %4974 = vadd.xlane.f32.xlu0 %v4843_v30 }
 0x2a0   : > { %v4071_v56 = vpop.permute.xlu1 %4070  ;;  %v4619_v9 = vmul.f32 1.442695, %v4475_v10  ;;  %v8678_v63 = vpop.eup %8677 }
 0x2a1   : > { %v4223_v36 = vsel %vm18614_vm10, %v3911_v25, %v4071_v56  ;;  %v5131_v25 = vsel %vm18620_vm0, %v8676_v1, 0.0  ;;  %v18623_v1 = vld [vmem:[#allocation113_spill] sm:$0xff] }
 0x2a2   : > { %v4479_v33 = vsub.f32 %v18617_v19, %v4223_v36  ;;  %v3926_v56 = vpop.permute.xlu0 %3925  ;;  %8683 = vpow2.f32 %v4619_v9  ;;  %vm18624_vm0 = vnez %v18623_v1  ;;  %v18627_v19 = vsel %vm18622_vm13, %v18625_v48, %v18626_v43 }
 0x2a3   : > { %5262 = vadd.xlane.f32.xlu0 %v5131_v25  ;;  %v5135_v30 = vsel %vm18624_vm0, %v8678_v63, 0.0 }
 0x2a4   : > { %v4076_v16 = vpop.permute.xlu1 %4075  ;;  %v4627_v45 = vmul.f32 1.442695, %v4479_v33 }
 0x2a5   : > { %v4227_v41 = vsel %vm18618_vm1, %v3916_v50, %v4076_v16  ;;  %v4847_v16 = vsel %vm18598_vm11, %v8678_v63, 0.0  ;;  %v8680_v50 = vpop.eup %8679  ;;  %v18630_v63 = vld [vmem:[#allocation115_spill] sm:$0xff] }
 0x2a6   : > { %v4483_v10 = vsub.f32 %v18621_v28, %v4227_v41  ;;  %v3931_v9 = vpop.permute.xlu0 %3930  ;;  %8685 = vpow2.f32 %v4627_v45  ;;  %vm18631_vm11 = vnez %v18630_v63 }
 0x2a7   : > { %5267 = vadd.xlane.f32.xlu0 %v5135_v30  ;;  %v5139_v22 = vsel %vm18631_vm11, %v8680_v50, 0.0 }
 0x2a8   : > { %v4081_v0 = vpop.permute.xlu1 %4080  ;;  %v4635_v2 = vmul.f32 1.442695, %v4483_v10  ;;  %v8682_v41 = vpop.eup %8681  ;;  %v18632_v10 = vld [vmem:[#allocation136_spill] sm:$0xff] }
 0x2a9   : > { %v4231_v36 = vsel %vm18622_vm13, %v3921_v57, %v4081_v0  ;;  %v18628_v0 = vld [vmem:[#allocation58_spill] sm:$0xff]  ;;  %v4851_v57 = vsel %vm18602_vm7, %v8680_v50, 0.0  ;;  %v18636_v50 = vld [vmem:[#allocation117_spill] sm:$0xff] }
 0x2aa   : > { %v4487_v33 = vsub.f32 %v18627_v19, %v4231_v36  ;;  %vm18629_vm5 = vnez %v18628_v0  ;;  %v3936_v45 = vpop.permute.xlu0 %3935  ;;  %8687 = vpow2.f32 %v4635_v2  ;;  %vm18637_vm7 = vnez %v18636_v50  ;;  %v18639_v19 = vld [vmem:[#allocation42_spill] sm:$0xff] }
 0x2ab   : > { %5272 = vadd.xlane.f32.xlu0 %v5139_v22  ;;  %v18633_v36 = vsel %vm18629_vm5, %v11559_v60, %v18632_v10  ;;  %v5143_v30 = vsel %vm18637_vm7, %v8682_v41, 0.0  ;;  %v18638_v60 = vld [vmem:[#allocation134_spill] sm:$0xff] }
 0x2ac   : > { %v4086_v14 = vpop.permute.xlu1 %4085  ;;  %v4643_v28 = vmul.f32 1.442695, %v4487_v33  ;;  %v8684_v1 = vpop.eup %8683 }
 0x2ad   : > { %4979 = vadd.xlane.f32.xlu1 %v4847_v16  ;;  %v4235_v15 = vsel %vm18629_vm5, %v3926_v56, %v4086_v14  ;;  %v18634_v14 = vld [vmem:[#allocation61_spill] sm:$0xff]  ;;  %v4855_v56 = vsel %vm18604_vm3, %v8682_v41, 0.0  ;;  %v18643_v41 = vld [vmem:[#allocation123_spill] sm:$0xff] }
 0x2ae   : > { %v4491_v16 = vsub.f32 %v18633_v36, %v4235_v15  ;;  %vm18635_vm0 = vnez %v18634_v14  ;;  %v3941_v2 = vpop.permute.xlu0 %3940  ;;  %8689 = vpow2.f32 %v4643_v28  ;;  %vm18644_vm3 = vnez %v18643_v41  ;;  %v18645_v36 = vld [vmem:[#allocation137_spill] sm:$0xff]  ;;  %v9251_v14 = vld [vmem:[%s9861_s8] sm:$0xff] }
 0x2af   : > { %5277 = vadd.xlane.f32.xlu0 %v5143_v30  ;;  %v18640_v33 = vsel %vm18635_vm0, %v18638_v60, %v18639_v19  ;;  %v5147_v63 = vsel %vm18644_vm3, %v8684_v1, 0.0 }
 0x2b0   : > { %v4091_v53 = vpop.permute.xlu1 %4090  ;;  %v4651_v43 = vmul.f32 1.442695, %v4491_v16  ;;  %v18646_v16 = vld [vmem:[#allocation138_spill] sm:$0xff] }
 0x2b1   : > { %4984 = vadd.xlane.f32.xlu1 %v4851_v57  ;;  %v4239_v3 = vsel %vm18635_vm0, %v3931_v9, %v4091_v53  ;;  %v18641_v53 = vld [vmem:[#allocation60_spill] sm:$0xff]  ;;  %v4859_v9 = vsel %vm18609_vm9, %v8684_v1, 0.0  ;;  %v8686_v57 = vpop.eup %8685  ;;  %v18650_v1 = vld [vmem:[#allocation126_spill] sm:$0xff] }
 0x2b2   : > { %v4495_v15 = vsub.f32 %v18640_v33, %v4239_v3  ;;  %vm18642_vm11 = vnez %v18641_v53  ;;  %8691 = vpow2.f32 %v4651_v43  ;;  %vm18651_vm9 = vnez %v18650_v1  ;;  %v18652_v33 = vld [vmem:[#allocation85_spill] sm:$0xff]  ;;  %v18678_v53 = vld [vmem:[#allocation52_spill] sm:$0xff] }
 0x2b3   : > { %v3946_v28 = vpop.permute.xlu0 %3945  ;;  %5282 = vadd.xlane.f32.xlu0 %v5147_v63  ;;  %v18647_v3 = vsel %vm18642_vm11, %v18645_v36, %v18646_v16  ;;  %v5151_v30 = vsel %vm18651_vm9, %v8686_v57, 0.0  ;;  %vm18662_vm9 = vnez %v17961_v49 }
 0x2b4   : > { %v4096_v25 = vpop.permute.xlu1 %4095  ;;  %v4659_v10 = vmul.f32 1.442695, %v4495_v15  ;;  %v8688_v50 = vpop.eup %8687  ;;  %v18653_v15 = vld [vmem:[#allocation45_spill] sm:$0xff] }
 0x2b5   : > { %4989 = vadd.xlane.f32.xlu1 %v4855_v56  ;;  %v4243_v21 = vsel %vm18642_vm11, %v3936_v45, %v4096_v25  ;;  %v18648_v25 = vld [vmem:[#allocation64_spill] sm:$0xff]  ;;  %v4863_v45 = vsel %vm18614_vm10, %v8686_v57, 0.0 }
 0x2b6   : > { %v4499_v56 = vsub.f32 %v18647_v3, %v4243_v21  ;;  %vm18649_vm7 = vnez %v18648_v25  ;;  %8693 = vpow2.f32 %v4659_v10  ;;  %v18657_v57 = vld [vmem:[#allocation128_spill] sm:$0xff]  ;;  %v18659_v3 = vld [vmem:[#allocation139_spill] sm:$0xff] }
 0x2b7   : > { %v3951_v43 = vpop.permute.xlu0 %3950  ;;  %5287 = vadd.xlane.f32.xlu0 %v5151_v30  ;;  %v18654_v21 = vsel %vm18649_vm7, %v18652_v33, %v18653_v15  ;;  %vm18658_vm10 = vnez %v18657_v57  ;;  %v18665_v15 = vld [vmem:[#allocation95_spill] sm:$0xff] }
 0x2b8   : > { %v4101_v48 = vpop.permute.xlu1 %4100  ;;  %v4667_v19 = vmul.f32 1.442695, %v4499_v56  ;;  %v8690_v41 = vpop.eup %8689  ;;  %v5155_v63 = vsel %vm18658_vm10, %v8688_v50, 0.0  ;;  %v18660_v56 = vld [vmem:[#allocation72_spill] sm:$0xff] }
 0x2b9   : > { %4994 = vadd.xlane.f32.xlu1 %v4859_v9  ;;  %v4247_v59 = vsel %vm18649_vm7, %v3941_v2, %v4101_v48  ;;  %v18655_v48 = vld [vmem:[#allocation62_spill] sm:$0xff]  ;;  %v4867_v2 = vsel %vm18618_vm1, %v8688_v50, 0.0  ;;  %v18663_v50 = vld [vmem:[#allocation132_spill] sm:$0xff] }
 0x2ba   : > { %v4503_v9 = vsub.f32 %v18654_v21, %v4247_v59  ;;  %vm18656_vm3 = vnez %v18655_v48  ;;  %8695 = vpow2.f32 %v4667_v19  ;;  %vm18664_vm1 = vnez %v18663_v50  ;;  %v576_v48 = vld [vmem:[%s17703_s1 + $0x10] sm:$0xff] }
 0x2bb   : > { %v3956_v10 = vpop.permute.xlu0 %3955  ;;  %5292 = vadd.xlane.f32.xlu0 %v5155_v63  ;;  %v18661_v59 = vsel %vm18656_vm3, %v18659_v3, %v18660_v56  ;;  %v5159_v1 = vsel %vm18664_vm1, %v8690_v41, 0.0  ;;  %v18666_v21 = vsel %vm18662_vm9, %v11721_v54, %v18665_v15  ;;  %v18669_v54 = vsel %vm18198_vm8, %v11743_v34, %v11809_v8  ;;  %v18670_v3 = vld [vmem:[#allocation89_spill] sm:$0xff]  ;;  %v18672_v34 = vld [vmem:[#allocation43_spill] sm:$0xff]  ;;  %v9252_v15 = vld [vmem:[%s9852_s22] sm:$0xff] }
 0x2bc   : > { %v4106_v22 = vpop.permute.xlu1 %4105  ;;  %v4675_v16 = vmul.f32 1.442695, %v4503_v9  ;;  %v18673_v8 = vld [vmem:[#allocation59_spill] sm:$0xff]  ;;  %v6191_v50 = vmax.f32 %v9251_v14, 1.0  ;;  %v9256_v14 = vld [vmem:[%s9852_s22 + $0x10] sm:$0xff] }
 0x2bd   : > { %4999 = vadd.xlane.f32.xlu1 %v4863_v45  ;;  %v4251_v11 = vsel %vm18656_vm3, %v3946_v28, %v4106_v22  ;;  %v4871_v22 = vsel %vm18622_vm13, %v8690_v41, 0.0  ;;  %v8692_v28 = vpop.eup %8691 }
 0x2be   : > { %v4507_v45 = vsub.f32 %v18661_v59, %v4251_v11  ;;  %8697 = vpow2.f32 %v4675_v16  ;;  %v18667_v11 = vld [vmem:[#allocation135_spill] sm:$0xff] }
 0x2bf   : > { %v3961_v19 = vpop.permute.xlu0 %3960  ;;  %5297 = vadd.xlane.f32.xlu0 %v5159_v1  ;;  %vm18668_vm13 = vnez %v18667_v11 }
 0x2c0   : > { %v4111_v60 = vpop.permute.xlu1 %4110  ;;  %v4683_v33 = vmul.f32 1.442695, %v4507_v45 }
 0x2c1   : > { %5004 = vadd.xlane.f32.xlu1 %v4867_v2  ;;  %v4255_v42 = vsel %vm18662_vm9, %v3951_v43, %v4111_v60  ;;  %v4875_v60 = vsel %vm18629_vm5, %v8692_v28, 0.0  ;;  %v8694_v43 = vpop.eup %8693  ;;  %v5163_v2 = vsel %vm18668_vm13, %v8692_v28, 0.0  ;;  %vm18671_vm5 = vnez %v18670_v3 }
 0x2c2   : > { %v4511_v9 = vsub.f32 %v18666_v21, %v4255_v42  ;;  %8699 = vpow2.f32 %v4683_v33  ;;  %v5167_v56 = vsel %vm18671_vm5, %v8694_v43, 0.0  ;;  %v6511_v21 = vmax.f32 %v9252_v15, 1.0 }
 0x2c3   : > { %v3966_v57 = vpop.permute.xlu0 %3965  ;;  %5302 = vadd.xlane.f32.xlu0 %v5163_v2 }
 0x2c4   : > { %v4116_v36 = vpop.permute.xlu1 %4115  ;;  %v4691_v63 = vmul.f32 1.442695, %v4511_v9  ;;  %v8696_v16 = vpop.eup %8695  ;;  %v18676_v9 = vld [vmem:[#allocation41_spill] sm:$0xff] }
 0x2c5   : > { %5009 = vadd.xlane.f32.xlu1 %v4871_v22  ;;  %v4259_v44 = vsel %vm18198_vm8, %v3956_v10, %v4116_v36  ;;  %v4879_v10 = vsel %vm18635_vm0, %v8694_v43, 0.0  ;;  %v18674_v22 = vsel %vm18207_vm2, %v18672_v34, %v18673_v8  ;;  %vm18677_vm0 = vnez %v18676_v9  ;;  %v9253_v43 = vld [vmem:[%s9861_s8 + $0x8] sm:$0xff]  ;;  %v608_v9 = vld [vmem:[%s17703_s1 + $0x110] sm:$0xff] }
 0x2c6   : > { %v4515_v36 = vsub.f32 %v18669_v54, %v4259_v44  ;;  %8701 = vpow2.f32 %v4691_v63  ;;  %v5171_v44 = vsel %vm18677_vm0, %v8696_v16, 0.0  ;;  %v6192_v11 = vmax.f32 %v9253_v43, 1.0  ;;  %v18683_v8 = vld [vmem:[#allocation65_spill] sm:$0xff] }
 0x2c7   : > { %v3971_v45 = vpop.permute.xlu0 %3970  ;;  %5307 = vadd.xlane.f32.xlu0 %v5167_v56  ;;  %vm18684_vm10 = vnez %v18683_v8  ;;  %v18691_v8 = vld [vmem:[#allocation140_spill] sm:$0xff] }
 0x2c8   : > { %v4121_v30 = vpop.permute.xlu1 %4120  ;;  %v4699_v42 = vmul.f32 1.442695, %v4515_v36  ;;  %v8698_v33 = vpop.eup %8697  ;;  %v9254_v36 = vld [vmem:[%s9852_s22 + $0x8] sm:$0xff] }
 0x2c9   : > { %5014 = vadd.xlane.f32.xlu1 %v4875_v60  ;;  %v4263_v0 = vsel %vm18207_vm2, %v3961_v19, %v4121_v30  ;;  %v4883_v19 = vsel %vm18642_vm11, %v8696_v16, 0.0  ;;  %v4887_v3 = vsel %vm18649_vm7, %v8698_v33, 0.0 }
 0x2ca   : > { %v4519_v28 = vsub.f32 %v18674_v22, %v4263_v0  ;;  %8703 = vpow2.f32 %v4699_v42  ;;  %v6512_v0 = vmax.f32 %v9254_v36, 1.0  ;;  %v9255_v42 = vld [vmem:[%s9861_s8 + $0x10] sm:$0xff]  ;;  %v5175_v22 = vsel %vm18684_vm10, %v8698_v33, 0.0 }
 0x2cb   : > { %v3976_v2 = vpop.permute.xlu0 %3975  ;;  %5312 = vadd.xlane.f32.xlu0 %v5171_v44  ;;  %8705 = vlog2.f32 %v6191_v50  ;;  %v6193_v34 = vmax.f32 %v9255_v42, 1.0  ;;  %v6513_v50 = vmax.f32 %v9256_v14, 1.0  ;;  %vm18747_vm10 = vnez %v18303_v23  ;;  %v9280_v23 = vld [vmem:[%s9687_s17 + $0x8] sm:$0xff] }
 0x2cc   : > { %v4126_v41 = vpop.permute.xlu1 %4125  ;;  %v8700_v56 = vpop.eup %8699  ;;  %8707 = vlog2.f32 %v6511_v21  ;;  %v9257_v21 = vld [vmem:[%s9861_s8 + $0x20] sm:$0xff] }
 0x2cd   : > { %5019 = vadd.xlane.f32.xlu1 %v4879_v10  ;;  %v4267_v30 = vsel %vm18209_vm4, %v3966_v57, %v4126_v41  ;;  %v4707_v41 = vmul.f32 1.442695, %v4519_v28  ;;  %v18679_v57 = vld [vmem:[#allocation100_spill] sm:$0xff]  ;;  %v18681_v10 = vld [vmem:[#allocation75_spill] sm:$0xff]  ;;  %8709 = vlog2.f32 %v6192_v11  ;;  %v6195_v33 = vmax.f32 %v9257_v21, 1.0 }
 0x2ce   : > { %v18680_v63 = vsel %vm18209_vm4, %v18678_v53, %v18679_v57  ;;  %vm18682_vm11 = vnez %v18681_v10  ;;  %v4891_v43 = vsel %vm18656_vm3, %v8700_v56, 0.0  ;;  %v577_v11 = vld [vmem:[%s17703_s1 + $0x18] sm:$0xff]  ;;  %v9258_v57 = vld [vmem:[%s9852_s22 + $0x20] sm:$0xff] }
 0x2cf   : > { %v4523_v54 = vsub.f32 %v18680_v63, %v4267_v30  ;;  %v3981_v30 = vpop.permute.xlu0 %3980  ;;  %5317 = vadd.xlane.f32.xlu0 %v5175_v22  ;;  %8711 = vpow2.f32 %v4707_v41  ;;  %v581_v41 = vld [vmem:[%s17703_s1 + $0x38] sm:$0xff]  ;;  %v6515_v63 = vmax.f32 %v9258_v57, 1.0  ;;  %v588_v57 = vld [vmem:[%s17703_s1 + $0x70] sm:$0xff] }
 0x2d0   : > { %v4131_v59 = vpop.permute.xlu1 %4130  ;;  %8713 = vlog2.f32 %v6512_v0  ;;  %v8702_v53 = vpop.eup %8701  ;;  %v9259_v0 = vld [vmem:[%s9861_s8 + $0x18] sm:$0xff] }
 0x2d1   : > { %5024 = vadd.xlane.f32.xlu1 %v4883_v19  ;;  %v4271_v16 = vsel %vm18682_vm11, %v3971_v45, %v4131_v59  ;;  %v4715_v25 = vmul.f32 1.442695, %v4523_v54  ;;  %v18685_v59 = vld [vmem:[#allocation46_spill] sm:$0xff]  ;;  %8715 = vlog2.f32 %v6193_v34  ;;  %v18692_v22 = vld [vmem:[#allocation143_spill] sm:$0xff] }
 0x2d2   : > { %v18686_v45 = vld [vmem:[#allocation142_spill] sm:$0xff]  ;;  %8717 = vlog2.f32 %v6513_v50  ;;  %v18693_v14 = vsel %vm18237_vm6, %v18691_v8, %v18692_v22  ;;  %v18699_v8 = vld [vmem:[#allocation103_spill] sm:$0xff] }
 0x2d3   : > { %v18687_v19 = vsel %vm18682_vm11, %v18685_v59, %v18686_v45  ;;  %v18689_v54 = vld [vmem:[#allocation90_spill] sm:$0xff]  ;;  %8719 = vpow2.f32 %v4715_v25  ;;  %v9260_v45 = vld [vmem:[%s9852_s22 + $0x18] sm:$0xff] }
 0x2d4   : > { %v4136_v60 = vpop.permute.xlu1 %4135  ;;  %v4527_v15 = vsub.f32 %v18687_v19, %v4271_v16  ;;  %vm18690_vm7 = vnez %v18689_v54  ;;  %v6194_v16 = vmax.f32 %v9259_v0, 1.0  ;;  %8721 = vlog2.f32 %v6195_v33  ;;  %v18694_v50 = vld [vmem:[#allocation82_spill] sm:$0xff]  ;;  %v585_v25 = vld [vmem:[%s17703_s1 + $0x58] sm:$0xff]  ;;  %v8704_v33 = vpop.eup %8703 }
 0x2d5   : > { %5029 = vadd.xlane.f32.xlu1 %v4887_v3  ;;  %v4275_v44 = vsel %vm18237_vm6, %v3976_v2, %v4136_v60  ;;  %v5179_v36 = vsel %vm18690_vm7, %v8700_v56, 0.0  ;;  %v8573_v60 = vpack.c.bf16 %v581_v41, %v577_v11  ;;  %v580_v2 = vld [vmem:[%s17703_s1 + $0x30] sm:$0xff]  ;;  %v3986_v3 = vpop.permute.xlu0 %3985  ;;  %v6514_v19 = vmax.f32 %v9260_v45, 1.0  ;;  %v13297_v54 = vpop.eup %8705  ;;  %v9263_v45 = vld [vmem:[%s9861_s8 + $0x28] sm:$0xff] }
 0x2d6   : > { %5322 = vadd.xlane.f32.xlu0 %v5179_v36  ;;  %v8575_v34 = vpack.c.bf16 %v580_v2, %v576_v48  ;;  %v4723_v56 = vmul.f32 1.442695, %v4527_v15  ;;  %v4531_v59 = vsub.f32 %v18693_v14, %v4275_v44  ;;  %vm18695_vm3 = vnez %v18694_v50  ;;  %v589_v15 = vld [vmem:[%s17703_s1 + $0x78] sm:$0xff]  ;;  %v9261_v44 = vld [vmem:[%s9861_s8 + $0x30] sm:$0xff]  ;;  %v13300_v2 = vpop.eup %8707 }
 0x2d7   : > { %8574 = vmatprep.subr.bf16.mxu1 %v8573_v60  ;;  %8723 = vlog2.f32 %v6515_v63  ;;  %v6197_v11 = vmax.f32 %v9261_v44, 1.0  ;;  %v18696_v41 = vld [vmem:[#allocation94_spill] sm:$0xff]  ;;  %v8577_v49 = vpack.c.bf16 %v589_v15, %v585_v25  ;;  %v18702_v25 = vld [vmem:[#allocation76_spill] sm:$0xff]  ;;  %v9264_v44 = vld [vmem:[%s9852_s22 + $0x28] sm:$0xff] }
 0x2d8   : > { %v13242_v28 = vpop.permute.xlu1 %4140  ;;  %8576 = vmatpush1.bf16.msra.mxu1 %v8575_v34  ;;  %vm18697_vm1 = vnez %v18696_v41  ;;  %8725 = vlog2.f32 %v6194_v16  ;;  %v9262_v63 = vld [vmem:[%s9852_s22 + $0x30] sm:$0xff]  ;;  %v4731_v0 = vmul.f32 1.442695, %v4531_v59  ;;  %v18698_v34 = vld [vmem:[#allocation141_spill] sm:$0xff]  ;;  %v13307_v16 = vpop.eup %8709  ;;  %v6516_v41 = vmax.f32 %v9264_v44, 1.0  ;;  %v621_v50 = vld [vmem:[%s17703_s1 + $0x178] sm:$0xff] }
 0x2d9   : > { %5034 = vadd.xlane.f32.xlu1 %v4891_v43  ;;  %v4279_v21 = vsel %vm18695_vm3, %v3981_v30, %v13242_v28  ;;  %v4895_v43 = vsel %vm18662_vm9, %v8702_v53, 0.0  ;;  %v5183_v28 = vsel %vm18697_vm1, %v8702_v53, 0.0  ;;  %v584_v30 = vld [vmem:[%s17703_s1 + $0x50] sm:$0xff]  ;;  %v6517_v36 = vmax.f32 %v9262_v63, 1.0  ;;  %v3991_v60 = vpop.permute.xlu0 %3990  ;;  %8578 = vmatprep.subr.bf16.mxu1 %v8577_v49  ;;  %18701 = vst [vmem:[#allocation50_spill] sm:$0xff] %v13307_v16  ;;  %v8712_v59 = vpop.eup %8711  ;;  %v18709_v63 = vld [vmem:[#allocation107_spill] sm:$0xff] }
 0x2da   : > { %5327 = vadd.xlane.f32.xlu0 %v5183_v28  ;;  %v8579_v53 = vpack.c.bf16 %v588_v57, %v584_v30  ;;  %8727 = vpow2.f32 %v4723_v56  ;;  %v18700_v22 = vsel %vm18695_vm3, %v18698_v34, %v18699_v8  ;;  %vm18703_vm9 = vnez %v18702_v25  ;;  %v13317_v49 = vpop.eup %8713  ;;  %v18708_v57 = vld [vmem:[#allocation63_spill] sm:$0xff]  ;;  %v18712_v44 = vld [vmem:[#allocation97_spill] sm:$0xff] }
 0x2db   : > { %v4535_v14 = vsub.f32 %v18700_v22, %v4279_v21  ;;  %8729 = vlog2.f32 %v6514_v19  ;;  %v4899_v56 = vsel %vm18198_vm8, %v8704_v33, 0.0  ;;  %v18704_v21 = vld [vmem:[#allocation99_spill] sm:$0xff]  ;;  %18706 = vst [vmem:[#allocation106_spill] sm:$0xff] %v13317_v49  ;;  %v9265_v19 = vld [vmem:[%s9861_s8 + $0x40] sm:$0xff]  ;;  %vm18713_vm8 = vnez %v18712_v44 }
 0x2dc   : > { %v4146_v42 = vpop.permute.xlu1 %4145  ;;  %8580 = vmatpush1.bf16.msra.mxu1 %v8579_v53  ;;  %8731 = vlog2.f32 %v6197_v11  ;;  %vm18705_vm13 = vnez %v18704_v21  ;;  %v6199_v30 = vmax.f32 %v9265_v19, 1.0  ;;  %v18710_v53 = vsel %vm18703_vm9, %v18708_v57, %v18709_v63  ;;  %v597_v21 = vld [vmem:[%s17703_s1 + $0xb8] sm:$0xff]  ;;  %v596_v57 = vld [vmem:[%s17703_s1 + $0xb0] sm:$0xff] }
 0x2dd   : > { %5039 = vadd.xlane.f32.xlu1 %v4895_v43  ;;  %v6196_v43 = vmax.f32 %v9263_v45, 1.0  ;;  %v4283_v15 = vsel %vm18703_vm9, %v3986_v3, %v4146_v42  ;;  %v5187_v28 = vsel %vm18705_vm13, %v8704_v33, 0.0  ;;  %8733 = vlog2.f32 %v6517_v36  ;;  %v3996_v3 = vpop.permute.xlu0 %3995  ;;  %v13320_v42 = vpop.eup %8715  ;;  %v9266_v36 = vld [vmem:[%s9852_s22 + $0x40] sm:$0xff] }
 0x2de   : > { %5332 = vadd.xlane.f32.xlu0 %v5187_v28  ;;  %18707 = vst [vmem:[#allocation110_spill] sm:$0xff] %v13320_v42  ;;  %8735 = vpow2.f32 %v4731_v0  ;;  %v4739_v11 = vmul.f32 1.442695, %v4535_v14  ;;  %v4539_v34 = vsub.f32 %v18710_v53, %v4283_v15  ;;  %v13327_v33 = vpop.eup %8717  ;;  %v6519_v8 = vmax.f32 %v9266_v36, 1.0  ;;  %v9267_v14 = vld [vmem:[%s9861_s8 + $0x38] sm:$0xff] }
 0x2df   : > { %18711 = vst [vmem:[#allocation51_spill] sm:$0xff] %v13327_v33  ;;  %8737 = vlog2.f32 %v6196_v43  ;;  %v4903_v45 = vsel %vm18207_vm2, %v8712_v59, 0.0  ;;  %v8720_v0 = vpop.eup %8719  ;;  %v5191_v15 = vsel %vm18713_vm8, %v8712_v59, 0.0  ;;  %v593_v43 = vld [vmem:[%s17703_s1 + $0x98] sm:$0xff]  ;;  %v592_v59 = vld [vmem:[%s17703_s1 + $0x90] sm:$0xff]  ;;  %v18716_v53 = vsel %vm11010_vm12, %v11960_v47, %v12016_v51 }
 0x2e0   : > { %v4151_v48 = vpop.permute.xlu1 %4150  ;;  %8739 = vlog2.f32 %v6516_v41  ;;  %v8581_v19 = vpack.c.bf16 %v597_v21, %v593_v43  ;;  %vm18718_vm2 = vnez %v18264_v20  ;;  %v18719_v21 = vld [vmem:[#allocation56_spill] sm:$0xff]  ;;  %v601_v51 = vld [vmem:[%s17703_s1 + $0xd8] sm:$0xff]  ;;  %v18962_v33 = vld [vmem:[#allocation230_spill] sm:$0xff] }
 0x2e1   : > { %5044 = vadd.xlane.f32.xlu1 %v4899_v56  ;;  %v4287_v22 = vsel %vm11010_vm12, %v3991_v60, %v4151_v48  ;;  %v6198_v56 = vmax.f32 %v9267_v14, 1.0  ;;  %v13343_v60 = vpop.eup %8721  ;;  %8741 = vlog2.f32 %v6199_v30  ;;  %v6518_v48 = vmax.f32 %v9268_v46, 1.0  ;;  %v13346_v41 = vpop.permute.xlu0 %4000 }
 0x2e2   : > { %18714 = vst [vmem:[#allocation111_spill] sm:$0xff] %v13343_v60  ;;  %5337 = vadd.xlane.f32.xlu0 %v5191_v15  ;;  %v13354_v63 = vpop.eup %8723  ;;  %8743 = vpow2.f32 %v4739_v11  ;;  %v4747_v30 = vmul.f32 1.442695, %v4539_v34  ;;  %v4543_v36 = vsub.f32 %v18716_v53, %v4287_v22  ;;  %v4907_v15 = vsel %vm18209_vm4, %v8720_v0, 0.0  ;;  %8582 = vmatprep.subr.bf16.mxu1 %v8581_v19  ;;  %v9269_v34 = vld [vmem:[%s9861_s8 + $0x50] sm:$0xff]  ;;  %v18951_v60 = vld [vmem:[#allocation224_spill] sm:$0xff] }
 0x2e3   : > { %18715 = vst [vmem:[#allocation114_spill] sm:$0xff] %v13354_v63  ;;  %v13361_v14 = vpop.eup %8725  ;;  %8745 = vlog2.f32 %v6519_v8  ;;  %v6201_v43 = vmax.f32 %v9269_v34, 1.0  ;;  %vm18720_vm5 = vnez %v18719_v21  ;;  %v18723_v19 = vsel %vm18718_vm2, %v11973_v7, %v12045_v4  ;;  %v604_v53 = vld [vmem:[%s17703_s1 + $0xf0] sm:$0xff]  ;;  %v9272_v34 = vld [vmem:[%s9852_s22 + $0x48] sm:$0xff] }
 0x2e4   : > { %v4156_v5 = vpop.permute.xlu1 %4155  ;;  %18717 = vst [vmem:[#allocation116_spill] sm:$0xff] %v13361_v14  ;;  %v8728_v11 = vpop.eup %8727  ;;  %8747 = vlog2.f32 %v6198_v56  ;;  %v5195_v47 = vsel %vm18720_vm5, %v8720_v0, 0.0  ;;  %v4755_v46 = vmul.f32 1.442695, %v4543_v36  ;;  %v6520_v21 = vmax.f32 %v9272_v34, 1.0 }
 0x2e5   : > { %5049 = vadd.xlane.f32.xlu1 %v4903_v45  ;;  %v8583_v45 = vpack.c.bf16 %v596_v57, %v592_v59  ;;  %v4291_v44 = vsel %vm18718_vm2, %v3996_v3, %v4156_v5  ;;  %v605_v3 = vld [vmem:[%s17703_s1 + $0xf8] sm:$0xff]  ;;  %v13376_v1 = vpop.eup %8729  ;;  %8749 = vlog2.f32 %v6518_v48  ;;  %v9270_v5 = vld [vmem:[%s9852_s22 + $0x50] sm:$0xff]  ;;  %v13379_v22 = vpop.permute.xlu0 %4005  ;;  %v4911_v7 = vsel %vm18682_vm11, %v8728_v11, 0.0 }
 0x2e6   : > { %18721 = vst [vmem:[#allocation119_spill] sm:$0xff] %v13376_v1  ;;  %v6521_v8 = vmax.f32 %v9270_v5, 1.0  ;;  %5342 = vadd.xlane.f32.xlu0 %v5195_v47  ;;  %v8585_v56 = vpack.c.bf16 %v605_v3, %v601_v51  ;;  %v13381_v0 = vpop.eup %8731  ;;  %8751 = vpow2.f32 %v4747_v30  ;;  %v4547_v59 = vsub.f32 %v18723_v19, %v4291_v44  ;;  %v600_v48 = vld [vmem:[%s17703_s1 + $0xd0] sm:$0xff]  ;;  %v9271_v30 = vld [vmem:[%s9861_s8 + $0x48] sm:$0xff]  ;;  %v9273_v5 = vld [vmem:[%s9861_s8 + $0x60] sm:$0xff] }
 0x2e7   : > { %8584 = vmatpush1.bf16.msra.mxu1 %v8583_v45  ;;  %18722 = vst [vmem:[#allocation55_spill] sm:$0xff] %v13381_v0  ;;  %v13394_v45 = vpop.eup %8733  ;;  %v6200_v36 = vmax.f32 %v9271_v30, 1.0  ;;  %v8587_v4 = vpack.c.bf16 %v604_v53, %v600_v48  ;;  %8753 = vlog2.f32 %v6201_v43  ;;  %v18725_v47 = vld [vmem:[#allocation66_spill] sm:$0xff]  ;;  %v6203_v19 = vmax.f32 %v9273_v5, 1.0  ;;  %v18731_v30 = vld [vmem:[#allocation93_spill] sm:$0xff] }
 0x2e8   : > { %v4161_v28 = vpop.permute.xlu1 %4160  ;;  %18724 = vst [vmem:[#allocation120_spill] sm:$0xff] %v13394_v45  ;;  %8586 = vmatprep.subr.bf16.mxu1 %v8585_v56  ;;  %v8736_v44 = vpop.eup %8735  ;;  %vm18726_vm4 = vnez %v18725_v47  ;;  %8755 = vlog2.f32 %v6521_v8  ;;  %v18729_v43 = vsel %vm11120_vm15, %v11995_v26, %v12073_v6  ;;  %v9274_v8 = vld [vmem:[%s9852_s22 + $0x60] sm:$0xff]  ;;  %vm18732_vm0 = vnez %v18731_v30  ;;  %v613_v26 = vld [vmem:[%s17703_s1 + $0x138] sm:$0xff]  ;;  %v18952_v1 = vld [vmem:[#allocation226_spill] sm:$0xff] }
 0x2e9   : > { %5054 = vadd.xlane.f32.xlu1 %v4907_v15  ;;  %v4295_v15 = vsel %vm11120_vm15, %v13346_v41, %v4161_v28  ;;  %v5199_v51 = vsel %vm18726_vm4, %v8728_v11, 0.0  ;;  %v13405_v3 = vpop.eup %8737  ;;  %v4011_v41 = vpop.permute.xlu0 %4010  ;;  %8757 = vpow2.f32 %v4755_v46  ;;  %v4763_v28 = vmul.f32 1.442695, %v4547_v59  ;;  %v609_v59 = vld [vmem:[%s17703_s1 + $0x118] sm:$0xff] }
 0x2ea   : > { %18727 = vst [vmem:[#allocation125_spill] sm:$0xff] %v13405_v3  ;;  %5347 = vadd.xlane.f32.xlu0 %v5199_v51  ;;  %v13408_v10 = vpop.eup %8739  ;;  %v4551_v56 = vsub.f32 %v18729_v43, %v4295_v15  ;;  %8759 = vlog2.f32 %v6200_v36  ;;  %v6523_v53 = vmax.f32 %v9274_v8, 1.0  ;;  %v4915_v46 = vsel %vm18237_vm6, %v8736_v44, 0.0  ;;  %v9275_v36 = vld [vmem:[%s9861_s8 + $0x58] sm:$0xff] }
 0x2eb   : > { %8588 = vmatpush1.bf16.msra.mxu1 %v8587_v4  ;;  %18728 = vst [vmem:[#allocation57_spill] sm:$0xff] %v13408_v10  ;;  %v13415_v48 = vpop.eup %8741  ;;  %8761 = vlog2.f32 %v6520_v21  ;;  %v6202_v15 = vmax.f32 %v9275_v36, 1.0  ;;  %v18733_v4 = vld [vmem:[#allocation83_spill] sm:$0xff]  ;;  %v9284_v10 = vld [vmem:[%s9687_s17 + $0x28] sm:$0xff] }
 0x2ec   : > { %v4166_v57 = vpop.permute.xlu1 %4165  ;;  %18730 = vst [vmem:[#allocation124_spill] sm:$0xff] %v13415_v48  ;;  %v8744_v6 = vpop.eup %8743  ;;  %vm18734_vm11 = vnez %v18733_v4  ;;  %8763 = vlog2.f32 %v6203_v19  ;;  %v9276_v51 = vld [vmem:[%s9852_s22 + $0x58] sm:$0xff] }
 0x2ed   : > { %5059 = vadd.xlane.f32.xlu1 %v4911_v7  ;;  %v4299_v7 = vsel %vm18732_vm0, %v13379_v22, %v4166_v57  ;;  %v5203_v34 = vsel %vm18734_vm11, %v8736_v44, 0.0  ;;  %v8589_v22 = vpack.c.bf16 %v613_v26, %v609_v59  ;;  %v612_v57 = vld [vmem:[%s17703_s1 + $0x130] sm:$0xff]  ;;  %v13438_v47 = vpop.eup %8745  ;;  %v6522_v21 = vmax.f32 %v9276_v51, 1.0  ;;  %v4016_v5 = vpop.permute.xlu0 %4015  ;;  %v18741_v51 = vld [vmem:[#allocation77_spill] sm:$0xff] }
 0x2ee   : > { %18735 = vst [vmem:[#allocation127_spill] sm:$0xff] %v13438_v47  ;;  %5352 = vadd.xlane.f32.xlu0 %v5203_v34  ;;  %v8591_v43 = vpack.c.bf16 %v612_v57, %v608_v9  ;;  %v13441_v8 = vpop.eup %8747  ;;  %8765 = vpow2.f32 %v4763_v28  ;;  %v4771_v44 = vmul.f32 1.442695, %v4551_v56  ;;  %v18738_v59 = vld [vmem:[#allocation86_spill] sm:$0xff]  ;;  %v4919_v9 = vsel %vm18695_vm3, %v8744_v6, 0.0  ;;  %v9277_v56 = vld [vmem:[%s9861_s8 + $0x68] sm:$0xff] }
 0x2ef   : > { %18736 = vst [vmem:[#allocation104_spill] sm:$0xff] %v13441_v8  ;;  %8590 = vmatprep.subr.bf16.mxu1 %v8589_v22  ;;  %v13448_v19 = vpop.eup %8749  ;;  %8767 = vlog2.f32 %v6523_v53  ;;  %v6204_v57 = vmax.f32 %v9277_v56, 1.0  ;;  %vm18742_vm6 = vnez %v18741_v51  ;;  %v9278_v22 = vld [vmem:[%s9852_s22 + $0x68] sm:$0xff]  ;;  %vm18757_vm3 = vnez %v18119_v24  ;;  %v18862_v24 = vld [vmem:[#allocation47_spill] sm:$0xff]  ;;  %v18903_v47 = vld [vmem:[#allocation206_spill] sm:$0xff] }
 0x2f0   : > { %v4171_v11 = vpop.permute.xlu1 %4170  ;;  %18740 = vst [vmem:[#allocation113_spill] sm:$0xff] %v13448_v19  ;;  %8592 = vmatpush1.bf16.msra.mxu1 %v8591_v43  ;;  %v8752_v28 = vpop.eup %8751  ;;  %8769 = vlog2.f32 %v6202_v15  ;;  %v616_v43 = vld [vmem:[%s17703_s1 + $0x150] sm:$0xff]  ;;  %v18905_v19 = vld [vmem:[#allocation149_spill] sm:$0xff] }
 0x2f1   : > { %5064 = vadd.xlane.f32.xlu1 %v4915_v46  ;;  %v18737_v46 = vld [vmem:[#allocation80_spill] sm:$0xff]  ;;  %v4303_v34 = vsel %vm18289_vm14, %v4011_v41, %v4171_v11  ;;  %8771 = vlog2.f32 %v6522_v21  ;;  %v617_v41 = vld [vmem:[%s17703_s1 + $0x158] sm:$0xff]  ;;  %v13464_v11 = vpop.eup %8753 }
 0x2f2   : > { %v18739_v26 = vsel %vm18732_vm0, %v18737_v46, %v18738_v59  ;;  %v6524_v46 = vmax.f32 %v9278_v22, 1.0  ;;  %v4021_v59 = vpop.permute.xlu0 %4020  ;;  %18743 = vst [vmem:[#allocation130_spill] sm:$0xff] %v13464_v11  ;;  %8773 = vpow2.f32 %v4771_v44  ;;  %v8593_v21 = vpack.c.bf16 %v621_v50, %v617_v41  ;;  %v18749_v41 = vld [vmem:[#allocation96_spill] sm:$0xff]  ;;  %v9281_v11 = vld [vmem:[%s9687_s17 + $0x10] sm:$0xff] }
 0x2f3   : > { %v4555_v36 = vsub.f32 %v18739_v26, %v4299_v7  ;;  %v5207_v7 = vsel %vm18742_vm6, %v8744_v6, 0.0  ;;  %v18744_v6 = vsel %vm18289_vm14, %v12040_v40, %v12135_v58  ;;  %v620_v26 = vld [vmem:[%s17703_s1 + $0x170] sm:$0xff]  ;;  %v18746_v44 = vsub.f32 %v12428_v52, %v12433_v18 }
 0x2f4   : > { %v4176_v4 = vpop.permute.xlu1 %4175  ;;  %5357 = vadd.xlane.f32.xlu0 %v5207_v7  ;;  %v4559_v15 = vsub.f32 %v18744_v6, %v4303_v34  ;;  %v4923_v58 = vsel %vm18703_vm9, %v8752_v28, 0.0  ;;  %v8595_v34 = vpack.c.bf16 %v620_v26, %v616_v43  ;;  %8775 = vlog2.f32 %v6204_v57  ;;  %8594 = vmatprep.subr.bf16.mxu1 %v8593_v21 }
 0x2f5   : > { %5069 = vadd.xlane.f32.xlu1 %v4919_v9  ;;  %v4779_v53 = vmul.f32 1.442695, %v4555_v36  ;;  %v13477_v9 = vpop.eup %8755  ;;  %v5708_v36 = vmul.f32 1.442695, %v18746_v44  ;;  %v4307_v56 = vsel %vm18747_vm10, %v4016_v5, %v4176_v4  ;;  %v18748_v7 = vsub.f32 %v12430_v17, %v12436_v12  ;;  %v625_v17 = vld [vmem:[%s17703_s1 + $0x198] sm:$0xff]  ;;  %v18759_v44 = vld [vmem:[#allocation68_spill] sm:$0xff] }
 0x2f6   : > { %18745 = vst [vmem:[#allocation133_spill] sm:$0xff] %v13477_v9  ;;  %v8758_v51 = vpop.eup %8757  ;;  %vm18750_vm7 = vnez %v18749_v41  ;;  %8777 = vlog2.f32 %v6524_v46  ;;  %v18752_v18 = vsub.f32 %v12446_v39, %v12451_v35  ;;  %v4026_v5 = vpop.permute.xlu0 %4025  ;;  %8596 = vmatpush1.bf16.msra.mxu1 %v8595_v34  ;;  %v629_v12 = vld [vmem:[%s17703_s1 + $0x1b8] sm:$0xff]  ;;  %v18754_v39 = vsel %vm18747_vm10, %v12079_v38, %v12156_v32 }
 0x2f7   : > { %v5483_v22 = vmul.f32 1.442695, %v18748_v7  ;;  %v5211_v50 = vsel %vm18750_vm7, %v8752_v28, 0.0  ;;  %v13491_v52 = vpop.eup %8759  ;;  %8779 = vpow2.f32 %v4779_v53  ;;  %v4787_v28 = vmul.f32 1.442695, %v4559_v15  ;;  %v18766_v34 = vld [vmem:[#allocation147_spill] sm:$0xff] }
 0x2f8   : > { %v4181_v40 = vpop.permute.xlu1 %4180  ;;  %18751 = vst [vmem:[#allocation58_spill] sm:$0xff] %v13491_v52  ;;  %v5710_v25 = vmul.f32 1.442695, %v18752_v18  ;;  %5362 = vadd.xlane.f32.xlu0 %v5211_v50  ;;  %v13502_v4 = vpop.eup %8761  ;;  %v4563_v35 = vsub.f32 %v18754_v39, %v4307_v56  ;;  %v8597_v57 = vpack.c.bf16 %v629_v12, %v625_v17  ;;  %8781 = vpow2.f32 %v5708_v36  ;;  %v18769_v50 = vld [vmem:[#allocation157_spill] sm:$0xff]  ;;  %v18770_v18 = vld [vmem:[#allocation158_spill] sm:$0xff] }
 0x2f9   : > { %5074 = vadd.xlane.f32.xlu1 %v4923_v58  ;;  %18753 = vst [vmem:[#allocation115_spill] sm:$0xff] %v13502_v4  ;;  %v13509_v46 = vpop.eup %8763  ;;  %v18756_v6 = vsub.f32 %v12448_v55, %v12454_v27  ;;  %v4311_v43 = vsel %vm18757_vm3, %v4021_v59, %v4181_v40  ;;  %v4927_v53 = vsel %vm11010_vm12, %v8758_v51, 0.0  ;;  %8783 = vpow2.f32 %v5483_v22  ;;  %v18762_v27 = vld [vmem:[#allocation156_spill] sm:$0xff]  ;;  %v18765_v58 = vld [vmem:[#allocation98_spill] sm:$0xff]  ;;  %v18772_v12 = vld [vmem:[#allocation109_spill] sm:$0xff] }
 0x2fa   : > { %18755 = vst [vmem:[#allocation136_spill] sm:$0xff] %v13509_v46  ;;  %v8766_v15 = vpop.eup %8765  ;;  %v18758_v38 = vsub.f32 %v12464_v29, %v12469_v31  ;;  %vm18760_vm1 = vnez %v18759_v44  ;;  %8598 = vmatprep.subr.bf16.mxu1 %v8597_v57  ;;  %8785 = vpow2.f32 %v5710_v25  ;;  %v18763_v59 = vsub.f32 %v12466_v13, %v18762_v27  ;;  %v628_v29 = vld [vmem:[%s17703_s1 + $0x1b0] sm:$0xff]  ;;  %v4031_v7 = vpop.permute.xlu0 %4030  ;;  %v18777_v44 = vld [vmem:[#allocation105_spill] sm:$0xff] }
 0x2fb   : > { %v5485_v21 = vmul.f32 1.442695, %v18756_v6  ;;  %v5215_v36 = vsel %vm18760_vm1, %v8758_v51, 0.0  ;;  %v13523_v55 = vpop.eup %8767  ;;  %8787 = vpow2.f32 %v4787_v28  ;;  %v4795_v40 = vmul.f32 1.442695, %v4563_v35  ;;  %v18774_v6 = vld [vmem:[#allocation159_spill] sm:$0xff] }
 0x2fc   : > { %v4186_v26 = vpop.permute.xlu1 %4185  ;;  %v5712_v32 = vmul.f32 1.442695, %v18758_v38  ;;  %18761 = vst [vmem:[#allocation61_spill] sm:$0xff] %v13523_v55  ;;  %v5487_v56 = vmul.f32 1.442695, %v18763_v59  ;;  %5367 = vadd.xlane.f32.xlu0 %v5215_v36  ;;  %v13534_v31 = vpop.eup %8769  ;;  %v18767_v51 = vsel %vm18757_vm3, %v18765_v58, %v18766_v34  ;;  %v8599_v22 = vpack.c.bf16 %v628_v29, %v624_v62  ;;  %v18779_v36 = vld [vmem:[#allocation160_spill] sm:$0xff] }
 0x2fd   : > { %5079 = vadd.xlane.f32.xlu1 %v4927_v53  ;;  %18764 = vst [vmem:[#allocation117_spill] sm:$0xff] %v13534_v31  ;;  %v4567_v13 = vsub.f32 %v18767_v51, %v4311_v43  ;;  %v13541_v41 = vpop.eup %8771  ;;  %8789 = vpow2.f32 %v5485_v21  ;;  %v18771_v25 = vsub.f32 %v18769_v50, %v18770_v18  ;;  %vm18773_vm12 = vnez %v18772_v12  ;;  %v18775_v43 = vld [vmem:[#allocation161_spill] sm:$0xff]  ;;  %v18780_v27 = vld [vmem:[#allocation162_spill] sm:$0xff]  ;;  %v18784_v62 = vld [vmem:[#allocation148_spill] sm:$0xff] }
 0x2fe   : > { %18768 = vst [vmem:[#allocation134_spill] sm:$0xff] %v13541_v41  ;;  %v4315_v39 = vsel %vm18773_vm12, %v4026_v5, %v4186_v26  ;;  %v4931_v35 = vsel %vm18718_vm2, %v8766_v15, 0.0  ;;  %v8774_v57 = vpop.eup %8773  ;;  %8791 = vpow2.f32 %v5712_v32  ;;  %v18776_v53 = vsub.f32 %v18774_v6, %v18775_v43  ;;  %8600 = vmatpush1.bf16.msra.mxu1 %v8599_v22  ;;  %v18783_v32 = vld [vmem:[#allocation91_spill] sm:$0xff]  ;;  %v18790_v50 = vld [vmem:[#allocation129_spill] sm:$0xff]  ;;  %v18793_v6 = vld [vmem:[#allocation166_spill] sm:$0xff] }
 0x2ff   : > { %v5489_v17 = vmul.f32 1.442695, %v18771_v25  ;;  %vm18778_vm9 = vnez %v18777_v44  ;;  %8793 = vpow2.f32 %v5487_v56  ;;  %v18781_v59 = vsub.f32 %v18779_v36, %v18780_v27  ;;  %v13558_v26 = vpop.eup %8775  ;;  %v18788_v56 = vld [vmem:[#allocation165_spill] sm:$0xff]  ;;  %v4036_v44 = vpop.permute.xlu0 %4035  ;;  %v18797_v36 = vld [vmem:[#allocation44_spill] sm:$0xff]  ;;  %v18847_v46 = vld [vmem:[#allocation186_spill] sm:$0xff] }
 0x300   : > { %v4191_v28 = vpop.permute.xlu1 %4190  ;;  %v5714_v38 = vmul.f32 1.442695, %v18776_v53  ;;  %v5219_v21 = vsel %vm18778_vm9, %v8766_v15, 0.0  ;;  %18782 = vst [vmem:[#allocation42_spill] sm:$0xff] %v13558_v26  ;;  %8795 = vpow2.f32 %v4795_v40  ;;  %v4803_v20 = vmul.f32 1.442695, %v4567_v13  ;;  %v13565_v34 = vpop.eup %8777 }
 0x301   : > { %5084 = vadd.xlane.f32.xlu1 %v4931_v35  ;;  %v5491_v5 = vmul.f32 1.442695, %v18781_v59  ;;  %5372 = vadd.xlane.f32.xlu0 %v5219_v21  ;;  %v18785_v29 = vsel %vm18773_vm12, %v18783_v32, %v18784_v62  ;;  %18786 = vst [vmem:[#allocation60_spill] sm:$0xff] %v13565_v34  ;;  %8797 = vpow2.f32 %v5489_v17  ;;  %v18787_v15 = vld [vmem:[#allocation163_spill] sm:$0xff]  ;;  %vm18791_vm13 = vnez %v18790_v50  ;;  %v8780_v17 = vpop.eup %8779  ;;  %v18792_v35 = vld [vmem:[#allocation164_spill] sm:$0xff]  ;;  %v18799_v32 = vld [vmem:[#allocation169_spill] sm:$0xff] }
 0x302   : > { %v4571_v58 = vsub.f32 %v18785_v29, %v4315_v39  ;;  %v18789_v51 = vsub.f32 %v18787_v15, %v18788_v56  ;;  %v4319_v18 = vsel %vm18791_vm13, %v4031_v7, %v4191_v28  ;;  %v4935_v40 = vsel %vm11120_vm15, %v8774_v57, 0.0  ;;  %v633_v13 = vld [vmem:[%s17703_s1 + $0x1d8] sm:$0xff]  ;;  %v18795_v7 = vld [vmem:[#allocation108_spill] sm:$0xff]  ;;  %v13585_v21 = vpop.eup %8781  ;;  %v18842_v26 = vld [vmem:[#allocation185_spill] sm:$0xff] }
 0x303   : > { %v637_v39 = vld [vmem:[%s17703_s1 + $0x1f8] sm:$0xff]  ;;  %8799 = vpow2.f32 %v5714_v38  ;;  %v18794_v43 = vsub.f32 %v18792_v35, %v18793_v6  ;;  %vm18796_vm8 = vnez %v18795_v7  ;;  %v7058_v27 = vsub.s32 0, %v18797_v36  ;;  %v13591_v38 = vpop.eup %8783  ;;  %v18801_v56 = vld [vmem:[#allocation144_spill] sm:$0xff]  ;;  %v18860_v41 = vld [vmem:[#allocation145_spill] sm:$0xff] }
 0x304   : > { %v5716_v22 = vmul.f32 1.442695, %v18789_v51  ;;  %v4196_v25 = vpop.permute.xlu1 %4195  ;;  %v5223_v37 = vsel %vm18796_vm8, %v8774_v57, 0.0  ;;  %v8601_v28 = vpack.c.bf16 %v637_v39, %v633_v13  ;;  %8801 = vpow2.f32 %v5491_v5  ;;  %v18798_v59 = vld [vmem:[#allocation167_spill] sm:$0xff]  ;;  %v18802_v51 = vld [vmem:[#allocation150_spill] sm:$0xff]  ;;  %v13598_v13 = vpop.eup %8785  ;;  %v18804_v5 = vld [vmem:[#allocation168_spill] sm:$0xff] }
 0x305   : > { %v5493_v53 = vmul.f32 1.442695, %v18794_v43  ;;  %5089 = vadd.xlane.f32.xlu1 %v4935_v40  ;;  %v18800_v62 = vsub.f32 %v18798_v59, %v18799_v32  ;;  %5377 = vadd.xlane.f32.xlu0 %v5223_v37  ;;  %8803 = vpow2.f32 %v4803_v20  ;;  %v4811_v15 = vmul.f32 1.442695, %v4571_v58  ;;  %v18805_v39 = vld [vmem:[#allocation170_spill] sm:$0xff]  ;;  %v18807_v43 = vld [vmem:[#allocation121_spill] sm:$0xff]  ;;  %v8788_v37 = vpop.eup %8787 }
 0x306   : > { %v18803_v57 = vsel %vm18791_vm13, %v18801_v56, %v18802_v51  ;;  %8602 = vmatprep.subr.bf16.mxu1 %v8601_v28  ;;  %8805 = vpow2.f32 %v5716_v22  ;;  %v18806_v35 = vsub.f32 %v18804_v5, %v18805_v39  ;;  %vm18808_vm15 = vnez %v18807_v43  ;;  %v632_v58 = vld [vmem:[%s17703_s1 + $0x1d0] sm:$0xff]  ;;  %v18809_v22 = vld [vmem:[#allocation171_spill] sm:$0xff]  ;;  %v18810_v28 = vld [vmem:[#allocation173_spill] sm:$0xff] }
 0x307   : > { %v5495_v29 = vmul.f32 1.442695, %v18800_v62  ;;  %v4575_v40 = vsub.f32 %v18803_v57, %v4319_v18  ;;  %v4323_v7 = vsel %vm18808_vm15, %v4036_v44, %v4196_v25  ;;  %v4939_v20 = vsel %vm18732_vm0, %v8780_v17, 0.0  ;;  %v636_v18 = vld [vmem:[%s17703_s1 + $0x1f0] sm:$0xff]  ;;  %v13618_v56 = vpop.eup %8789  ;;  %v18814_v57 = vld [vmem:[#allocation172_spill] sm:$0xff]  ;;  %v18841_v34 = vld [vmem:[#allocation183_spill] sm:$0xff] }
 0x308   : > { %v5718_v6 = vmul.f32 1.442695, %v18806_v35  ;;  %8807 = vpow2.f32 %v5493_v53  ;;  %v18811_v59 = vsub.f32 %v18809_v22, %v18810_v28  ;;  %v4201_v62 = vpop.permute.xlu1 %4200  ;;  %v18812_v25 = vld [vmem:[#allocation78_spill] sm:$0xff]  ;;  %v8603_v44 = vpack.c.bf16 %v636_v18, %v632_v58  ;;  %v13626_v35 = vpop.eup %8791  ;;  %v18863_v31 = vld [vmem:[#allocation191_spill] sm:$0xff]  ;;  %s9351_s1 = sshll.u32 %s9463_s20, 4  ;;  %s9352_s1 = int_to_ptr.vmem [resolvable:$false] %s9351_s1 }
 0x309   : > { %5094 = vadd.xlane.f32.xlu1 %v4939_v20  ;;  %vm18813_vm2 = vnez %v18812_v25  ;;  %v13621_v51 = vmin.u32 %v7058_v27, %v18797_v36  ;;  %8809 = vpow2.f32 %v5495_v29  ;;  %v18815_v5 = vld [vmem:[#allocation174_spill] sm:$0xff]  ;;  %v4819_v22 = vmul.f32 1.442695, %v4575_v40  ;;  %v4041_v28 = vpop.permute.xlu0 %4040  ;;  %v13633_v27 = vpop.eup %8793  ;;  %v18820_v29 = vld [vmem:[#allocation175_spill] sm:$0xff]  ;;  %s9353_s2 = scalar_lea.vmem %s9352_s1, 256 }
 0x30a   : > { %v5720_v32 = vmul.f32 1.442695, %v18811_v59  ;;  %v5227_v30 = vsel %vm18813_vm2, %v8780_v17, 0.0  ;;  %v18816_v39 = vsub.f32 %v18814_v57, %v18815_v5  ;;  %8811 = vpow2.f32 %v4811_v15  ;;  %v18817_v20 = vld [vmem:[#allocation146_spill] sm:$0xff]  ;;  %v18818_v17 = vld [vmem:[#allocation153_spill] sm:$0xff]  ;;  %8604 = vmatpush1.bf16.msra.mxu1 %v8603_v44  ;;  %v18823_v57 = vld [vmem:[#allocation131_spill] sm:$0xff]  ;;  %v8796_v5 = vpop.eup %8795 }
 0x30b   : > { %5382 = vadd.xlane.f32.xlu0 %v5227_v30  ;;  %v18819_v58 = vsel %vm18808_vm15, %v18817_v20, %v18818_v17  ;;  %8813 = vpow2.f32 %v5718_v6  ;;  %v18821_v59 = vld [vmem:[#allocation177_spill] sm:$0xff]  ;;  %vm18824_vm5 = vnez %v18823_v57  ;;  %v4943_v40 = vsel %vm18289_vm14, %v8788_v37, 0.0  ;;  %v18828_v17 = vld [vmem:[#allocation84_spill] sm:$0xff]  ;;  %v18897_v52 = vld [vmem:[#allocation38_spill] sm:$0xff] }
 0x30c   : > { %v5497_v53 = vmul.f32 1.442695, %v18816_v39  ;;  %v4579_v18 = vsub.f32 %v18819_v58, %v4323_v7  ;;  %v18822_v25 = vsub.f32 %v18820_v29, %v18821_v59  ;;  %v4327_v15 = vsel %vm18824_vm5, %v4041_v28, %v4201_v62  ;;  %v18825_v39 = vld [vmem:[#allocation176_spill] sm:$0xff]  ;;  %v18826_v7 = vld [vmem:[#allocation178_spill] sm:$0xff]  ;;  %v13647_v58 = vpop.eup %8797  ;;  %v18830_v59 = vld [vmem:[#allocation179_spill] sm:$0xff] }
 0x30d   : > { %8815 = vpow2.f32 %v5720_v32  ;;  %v18827_v20 = vsub.f32 %v18825_v39, %v18826_v7  ;;  %5099 = vadd.xlane.f32.xlu1 %v4943_v40  ;;  %vm18829_vm4 = vnez %v18828_v17  ;;  %v7061_v29 = vand.u32 3, %v13621_v51  ;;  %v18831_v62 = vld [vmem:[#allocation181_spill] sm:$0xff]  ;;  %v13654_v32 = vpop.eup %8799  ;;  %v18833_v39 = vld [vmem:[#allocation48_spill] sm:$0xff]  ;;  %v18927_v43 = vld [vmem:[#allocation215_spill] sm:$0xff] }
 0x30e   : > { %v5722_v30 = vmul.f32 1.442695, %v18822_v25  ;;  %v5231_v6 = vsel %vm18829_vm4, %v8788_v37, 0.0  ;;  %8817 = vpow2.f32 %v5497_v53  ;;  %v18832_v28 = vsub.f32 %v18830_v59, %v18831_v62  ;;  %v9279_v25 = vld [vmem:[%s9687_s17] sm:$0xff]  ;;  %v18834_v37 = vld [vmem:[#allocation151_spill] sm:$0xff]  ;;  %v13663_v59 = vpop.eup %8801  ;;  %v18839_v62 = vld [vmem:[#allocation182_spill] sm:$0xff] }
 0x30f   : > { %v5499_v44 = vmul.f32 1.442695, %v18827_v20  ;;  %5387 = vadd.xlane.f32.xlu0 %v5231_v6  ;;  %960 = vmatmul.mubr.f32.vlgmr.msra.gmra.mrb[0].mxu1 %v9279_v25  ;;  %v7065_v7 = vsub.s32 0, %v18833_v39  ;;  %8819 = vpow2.f32 %v4819_v22  ;;  %v4827_v40 = vmul.f32 1.442695, %v4579_v18  ;;  %v18835_v20 = vld [vmem:[#allocation155_spill] sm:$0xff]  ;;  %v8804_v18 = vpop.eup %8803 }
 0x310   : > { %v5724_v61 = vmul.f32 1.442695, %v18832_v28  ;;  %v18836_v17 = vsel %vm18824_vm5, %v18834_v37, %v18835_v20  ;;  %v18837_v53 = vmov 0.0   ;;  %8821 = vpow2.f32 %v5722_v30  ;;  %v18838_v6 = vld [vmem:[#allocation180_spill] sm:$0xff] }
 0x311   : > { %v4583_v51 = vsub.f32 %v18836_v17, %v4327_v15  ;;  %965 = vmatprep.mubr.f32.mxu1 %v18837_v53  ;;  %v18840_v28 = vsub.f32 %v18838_v6, %v18839_v62  ;;  %v4947_v22 = vsel %vm18747_vm10, %v8796_v5, 0.0  ;;  %8823 = vpow2.f32 %v5499_v44  ;;  %v18844_v15 = vld [vmem:[#allocation101_spill] sm:$0xff]  ;;  %v13675_v17 = vpop.eup %8805  ;;  %v18846_v30 = vld [vmem:[#allocation184_spill] sm:$0xff] }
 0x312   : > { %v18843_v55 = vsub.f32 %v18841_v34, %v18842_v26  ;;  %5104 = vadd.xlane.f32.xlu1 %v4947_v22  ;;  %vm18845_vm14 = vnez %v18844_v15  ;;  %8825 = vpow2.f32 %v5724_v61  ;;  %v18848_v6 = vsub.f32 %v18846_v30, %v18847_v46  ;;  %v18849_v46 = vld [vmem:[#allocation187_spill] sm:$0xff]  ;;  %v18857_v30 = vld [vmem:[#allocation188_spill] sm:$0xff] }
 0x313   : > { %v5501_v25 = vmul.f32 1.442695, %v18840_v28  ;;  %v5235_v20 = vsel %vm18845_vm14, %v8796_v5, 0.0  ;;  %966 = vmatmul.mubr.f32.gmra.mrb[2].mxu1 %v9280_v23  ;;  %v13681_v28 = vpop.eup %8807  ;;  %v7062_v44 = vsub.s32 0, %v7061_v29  ;;  %v13684_v26 = vmin.u32 %v7065_v7, %v18833_v39  ;;  %v18850_v5 = vld [vmem:[#allocation189_spill] sm:$0xff]  ;;  %v18852_v7 = vld [vmem:[#allocation32_spill] sm:$0xff] }
 0x314   : > { %v5726_v37 = vmul.f32 1.442695, %v18843_v55  ;;  %v5503_v62 = vmul.f32 1.442695, %v18848_v6  ;;  %5392 = vadd.xlane.f32.xlu0 %v5235_v20  ;;  %8827 = vpow2.f32 %v4827_v40  ;;  %v4835_v55 = vmul.f32 1.442695, %v4583_v51  ;;  %971 = vmatprep.mubr.f32.mxu1 %v18837_v53  ;;  %v13687_v34 = vpop.eup %8809 }
 0x315   : > { %vm7057_vm0 = vcmp.lt.s32.totalorder %v18797_v36, 0  ;;  %8829 = vpow2.f32 %v5501_v25  ;;  %v18851_v61 = vsub.f32 %v18849_v46, %v18850_v5  ;;  %v4951_v15 = vsel %vm18757_vm3, %v8804_v18, 0.0  ;;  %v8812_v20 = vpop.eup %8811  ;;  %v18854_v40 = vld [vmem:[#allocation29_spill] sm:$0xff]  ;;  %v18858_v6 = vld [vmem:[#allocation190_spill] sm:$0xff] }
 0x316   : > { %vm18853_vm11 = vnez %v18852_v7  ;;  %vm18855_vm6 = vnez %v18854_v40  ;;  %8831 = vpow2.f32 %v5726_v37  ;;  %v18859_v23 = vsub.f32 %v18857_v30, %v18858_v6  ;;  %5109 = vadd.xlane.f32.xlu1 %v4951_v15  ;;  %v13706_v5 = vpop.eup %8813  ;;  %v18864_v7 = vld [vmem:[#allocation193_spill] sm:$0xff]  ;;  %v18868_v30 = vld [vmem:[#allocation194_spill] sm:$0xff] }
 0x317   : > { %v5728_v22 = vmul.f32 1.442695, %v18851_v61  ;;  %vm18856_vm10 = vmand %vm18853_vm11, %vm18855_vm6  ;;  %vm18861_vm7 = vnez %v18860_v41  ;;  %v7072_v61 = vsub.s32 0, %v18862_v24  ;;  %8833 = vpow2.f32 %v5503_v62  ;;  %972 = vmatmul.mubr.f32.gmra.mrb[4].mxu1 %v9281_v11  ;;  %v13713_v37 = vpop.eup %8815  ;;  %v18872_v11 = vld [vmem:[#allocation195_spill] sm:$0xff]  ;;  %v18873_v62 = vld [vmem:[#allocation197_spill] sm:$0xff] }
 0x318   : > { %v8513_v51 = vsel %vm18856_vm10, 1.0, %v18837_v53  ;;  %v5505_v25 = vmul.f32 1.442695, %v18859_v23  ;;  %v5239_v46 = vsel %vm18861_vm7, %v8804_v18, 0.0  ;;  %v18865_v9 = vsub.f32 %v18863_v31, %v18864_v7  ;;  %v18867_v18 = vld [vmem:[#allocation192_spill] sm:$0xff]  ;;  %977 = vmatprep.mubr.f32.mxu1 %v18837_v53  ;;  %v13724_v31 = vpop.eup %8817  ;;  %v18888_v36 = vld [vmem:[#allocation201_spill] sm:$0xff] }
 0x319   : > { %5397 = vadd.xlane.f32.xlu0 %v5239_v46  ;;  %v13717_v15 = vsel %vm7057_vm0, %v7062_v44, %v7061_v29  ;;  %v7068_v41 = vand.u32 3, %v13684_v26  ;;  %v18869_v6 = vsub.f32 %v18867_v18, %v18868_v30  ;;  %8835 = vpow2.f32 %v4835_v55  ;;  %v8820_v7 = vpop.eup %8819  ;;  %v18875_v46 = vld [vmem:[#allocation36_spill] sm:$0xff]  ;;  %v18877_v55 = vld [vmem:[#allocation35_spill] sm:$0xff]  ;;  %v18882_v30 = vld [vmem:[#allocation198_spill] sm:$0xff] }
 0x31a   : > { %v5507_v40 = vmul.f32 1.442695, %v18865_v9  ;;  %18866 = vst [vmem:[#allocation123_spill] sm:$0xff] %v13717_v15  ;;  %vm18870_vm3 = vcmask 7168   ;;  %8837 = vpow2.f32 %v5728_v22  ;;  %v18874_v29 = vsub.f32 %v18872_v11, %v18873_v62  ;;  %v18884_v11 = vld [vmem:[#allocation102_spill] sm:$0xff]  ;;  %v13747_v12 = vpop.eup %8821 }
 0x31b   : > { %v5730_v23 = vmul.f32 1.442695, %v18869_v6  ;;  %v13727_v9 = vsel %vm18870_vm3, %v8513_v51, 0.0  ;;  %v4955_v26 = vsel %vm18773_vm12, %v8812_v20, 0.0  ;;  %vm18876_vm1 = vnez %v18875_v46  ;;  %v18881_v51 = vld [vmem:[#allocation196_spill] sm:$0xff] }
 0x31c   : > { %18871 = vst [vmem:[#allocation137_spill] sm:$0xff] %v13727_v9  ;;  %v5732_v44 = vmul.f32 1.442695, %v18874_v29  ;;  %vm18878_vm9 = vnez %v18877_v55  ;;  %8839 = vpow2.f32 %v5505_v25  ;;  %v18883_v22 = vsub.f32 %v18881_v51, %v18882_v30  ;;  %5114 = vadd.xlane.f32.xlu1 %v4955_v26  ;;  %v18887_v55 = vld [vmem:[#allocation199_spill] sm:$0xff]  ;;  %v13759_v26 = vpop.eup %8823  ;;  %v18890_v30 = vld [vmem:[#allocation53_spill] sm:$0xff] }
 0x31d   : > { %vm18879_vm8 = vmand %vm18876_vm1, %vm18878_vm9  ;;  %vm18885_vm2 = vnez %v18884_v11  ;;  %v13750_v29 = vadd.s32 4, %v13717_v15  ;;  %v13753_v46 = vmin.u32 %v7072_v61, %v18862_v24  ;;  %8841 = vpow2.f32 %v5507_v40  ;;  %v9282_v51 = vld [vmem:[%s9687_s17 + $0x18] sm:$0xff]  ;;  %v18891_v61 = vld [vmem:[#allocation200_spill] sm:$0xff] }
 0x31e   : > { %v13740_v18 = vsel %vm18879_vm8, 1.0, %v18837_v53  ;;  %v5509_v6 = vmul.f32 1.442695, %v18883_v22  ;;  %v5243_v62 = vsel %vm18885_vm2, %v8812_v20, 0.0  ;;  %v18889_v25 = vsub.f32 %v18887_v55, %v18888_v36  ;;  %978 = vmatmul.mubr.f32.gmra.mrb[6].mxu1 %v9282_v51  ;;  %v18892_v11 = vld [vmem:[#allocation202_spill] sm:$0xff]  ;;  %v13768_v36 = vpop.eup %8825  ;;  %v18894_v55 = vld [vmem:[#allocation203_spill] sm:$0xff] }
 0x31f   : > { %18880 = vst [vmem:[#allocation138_spill] sm:$0xff] %v13740_v18  ;;  %18886 = vst [vmem:[#allocation64_spill] sm:$0xff] %v13750_v29  ;;  %5402 = vadd.xlane.f32.xlu0 %v5243_v62  ;;  %vm7197_vm12 = vcmp.ne.s32.totalorder %v13717_v15, 0  ;;  %vm7229_vm4 = vcmp.lt.s32.totalorder %v13717_v15, 0  ;;  %v7069_v20 = vsub.s32 0, %v7068_v41  ;;  %v7079_v22 = vsub.s32 0, %v18890_v30  ;;  %983 = vmatprep.mubr.f32.mxu1 %v18837_v53 }
 0x320   : > { %v5511_v18 = vmul.f32 1.442695, %v18889_v25  ;;  %8843 = vpow2.f32 %v5730_v23  ;;  %v18893_v40 = vsub.f32 %v18891_v61, %v18892_v11  ;;  %vm7064_vm14 = vcmp.lt.s32.totalorder %v18833_v39, 0  ;;  %v18895_v62 = vld [vmem:[#allocation205_spill] sm:$0xff]  ;;  %v8828_v23 = vpop.eup %8827  ;;  %v5644_v29 = vld [vmem:[#allocation5] sm:$0xff] }
 0x321   : > { %8845 = vpow2.f32 %v5732_v44  ;;  %v18896_v25 = vsub.f32 %v18894_v55, %v18895_v62  ;;  %v4959_v4 = vsel %vm18791_vm13, %v8820_v7, 0.0  ;;  %vm18898_vm0 = vnez %v18897_v52  ;;  %v18899_v61 = vld [vmem:[#allocation37_spill] sm:$0xff]  ;;  %v13787_v62 = vpop.eup %8829  ;;  %v18908_v52 = vld [vmem:[#allocation207_spill] sm:$0xff] }
 0x322   : > { %v5734_v9 = vmul.f32 1.442695, %v18893_v40  ;;  %vm18900_vm10 = vnez %v18899_v61  ;;  %8847 = vpow2.f32 %v5509_v6  ;;  %v18902_v40 = vld [vmem:[#allocation204_spill] sm:$0xff]  ;;  %5119 = vadd.xlane.f32.xlu1 %v4959_v4  ;;  %vm18906_vm3 = vnez %v18905_v19  ;;  %v18909_v61 = vld [vmem:[#allocation209_spill] sm:$0xff] }
 0x323   : > { %v5736_v51 = vmul.f32 1.442695, %v18896_v25  ;;  %vm18901_vm7 = vmand %vm18898_vm0, %vm18900_vm10  ;;  %v18904_v48 = vsub.f32 %v18902_v40, %v18903_v47  ;;  %v5247_v55 = vsel %vm18906_vm3, %v8820_v7, 0.0  ;;  %v18907_v25 = vld [vmem:[#allocation49_spill] sm:$0xff]  ;;  %8849 = vpow2.f32 %v5511_v18  ;;  %v9283_v6 = vld [vmem:[%s9687_s17 + $0x20] sm:$0xff]  ;;  %v13795_v47 = vpop.eup %8831 }
 0x324   : > { %v8514_v11 = vsel %vm18901_vm7, 1.0, %v18837_v53  ;;  %v7086_v8 = vsub.s32 0, %v18907_v25  ;;  %v18910_v45 = vsub.f32 %v18908_v52, %v18909_v61  ;;  %5407 = vadd.xlane.f32.xlu0 %v5247_v55  ;;  %984 = vmatmul.mubr.f32.gmra.mrb[8].mxu1 %v9283_v6  ;;  %vm7071_vm13 = vcmp.lt.s32.totalorder %v18862_v24, 0  ;;  %v18912_v4 = vld [vmem:[#allocation208_spill] sm:$0xff]  ;;  %v18913_v7 = vld [vmem:[#allocation210_spill] sm:$0xff]  ;;  %v18917_v40 = vld [vmem:[#allocation211_spill] sm:$0xff] }
 0x325   : > { %v5513_v44 = vmul.f32 1.442695, %v18904_v48  ;;  %v13800_v48 = vsel %vm7064_vm14, %v7069_v20, %v7068_v41  ;;  %v13803_v19 = vmin.u32 %v7079_v22, %v18890_v30  ;;  %8851 = vpow2.f32 %v5734_v9  ;;  %989 = vmatprep.mubr.f32.mxu1 %v18837_v53  ;;  %v18918_v41 = vld [vmem:[#allocation213_spill] sm:$0xff]  ;;  %v18920_v6 = vld [vmem:[#allocation67_spill] sm:$0xff] }
 0x326   : > { %v5738_v0 = vmul.f32 1.442695, %v18910_v45  ;;  %18911 = vst [vmem:[#allocation126_spill] sm:$0xff] %v13800_v48  ;;  %v18914_v18 = vsub.f32 %v18912_v4, %v18913_v7  ;;  %v13809_v45 = vpop.eup %8833  ;;  %vm18915_vm8 = vcmask 7168   ;;  %8853 = vpow2.f32 %v5736_v51  ;;  %v18921_v7 = vld [vmem:[#allocation212_spill] sm:$0xff] }
 0x327   : > { %v13812_v61 = vsel %vm18915_vm8, %v8514_v11, 0.0  ;;  %v18919_v20 = vsub.f32 %v18917_v40, %v18918_v41  ;;  %v4963_v9 = vsel %vm18808_vm15, %v8828_v23, 0.0  ;;  %v8836_v22 = vpop.eup %8835  ;;  %v7093_v4 = vsub.s32 0, %v18920_v6  ;;  %v18924_v11 = vld [vmem:[#allocation152_spill] sm:$0xff]  ;;  %v18928_v41 = vld [vmem:[#allocation217_spill] sm:$0xff]  ;;  %vm19013_vm3 = vmmov %vm18915_vm8 }
 0x328   : > { %v5515_v52 = vmul.f32 1.442695, %v18914_v18  ;;  %18916 = vst [vmem:[#allocation85_spill] sm:$0xff] %v13812_v61  ;;  %8855 = vpow2.f32 %v5513_v44  ;;  %v18922_v18 = vld [vmem:[#allocation214_spill] sm:$0xff]  ;;  %5124 = vadd.xlane.f32.xlu1 %v4963_v9  ;;  %vm18925_vm2 = vnez %v18924_v11  ;;  %v13825_v51 = vpop.eup %8837  ;;  %vm7198_vm14 = vcmp.ne.s32.totalorder %v13800_v48, 0  ;;  %990 = vmatmul.mubr.f32.gmra.mrb[10].mxu1 %v9284_v10  ;;  %v18930_v9 = vld [vmem:[#allocation216_spill] sm:$0xff]  ;;  %vm19034_vm8 = vmmov %vm19013_vm3 }
 0x329   : > { %v5740_v55 = vmul.f32 1.442695, %v18919_v20  ;;  %v18923_v50 = vsub.f32 %v18921_v7, %v18922_v18  ;;  %v5251_v61 = vsel %vm18925_vm2, %v8828_v23, 0.0  ;;  %v13829_v40 = vmin.u32 %v7086_v8, %v18907_v25  ;;  %v18931_v7 = vld [vmem:[#allocation218_spill] sm:$0xff]  ;;  %995 = vmatprep.mubr.f32.mxu1 %v18837_v53  ;;  %v18935_v10 = vld [vmem:[#allocation221_spill] sm:$0xff]  ;;  %vm19036_vm2 = vmmov %vm19013_vm3 }
 0x32a   : > { %8857 = vpow2.f32 %v5738_v0  ;;  %v18929_v20 = vsub.f32 %v18927_v43, %v18928_v41  ;;  %5412 = vadd.xlane.f32.xlu0 %v5251_v61  ;;  %vm7230_vm15 = vcmp.lt.s32.totalorder %v13800_v48, 0  ;;  %v7082_v23 = vand.u32 3, %v13803_v19  ;;  %v18933_v11 = vld [vmem:[#allocation54_spill] sm:$0xff]  ;;  %v18934_v61 = vld [vmem:[#allocation219_spill] sm:$0xff] }
 0x32b   : > { %v5517_v39 = vmul.f32 1.442695, %v18923_v50  ;;  %18926 = vst [vmem:[#allocation45_spill] sm:$0xff] %v13829_v40  ;;  %v13835_v50 = vpop.eup %8839  ;;  %8859 = vpow2.f32 %v5515_v52  ;;  %v18932_v18 = vsub.f32 %v18930_v9, %v18931_v7  ;;  %v7100_v43 = vsub.s32 0, %v18933_v11  ;;  %v18938_v7 = vld [vmem:[#allocation220_spill] sm:$0xff] }
 0x32c   : > { %v5519_v44 = vmul.f32 1.442695, %v18929_v20  ;;  %v13843_v0 = vpop.eup %8841  ;;  %8861 = vpow2.f32 %v5740_v55  ;;  %v18936_v41 = vsub.f32 %v18934_v61, %v18935_v10  ;;  %v4967_v19 = vsel %vm18824_vm5, %v8836_v22, 0.0  ;;  %v18941_v55 = vld [vmem:[#allocation154_spill] sm:$0xff]  ;;  %vm13867_vm5 = vmand %vm7229_vm4, %vm7197_vm12  ;;  %v18961_v10 = vld [vmem:[#allocation228_spill] sm:$0xff]  ;;  %v4975_v16 = vpop.xlane.xlu0 %4974 }
 0x32d   : > { %v5742_v8 = vmul.f32 1.442695, %v18932_v18  ;;  %v13851_v52 = vpop.eup %8843  ;;  %v13854_v9 = vmin.u32 %v7093_v4, %v18920_v6  ;;  %8863 = vpow2.f32 %v5517_v39  ;;  %v18939_v18 = vld [vmem:[#allocation222_spill] sm:$0xff]  ;;  %5129 = vadd.xlane.f32.xlu1 %v4967_v19  ;;  %vm18942_vm7 = vnez %v18941_v55  ;;  %vm13893_vm12 = vmand %vm7230_vm15, %vm7198_vm14 }
 0x32e   : > { %v5744_v20 = vmul.f32 1.442695, %v18936_v41  ;;  %v18940_v25 = vsub.f32 %v18938_v7, %v18939_v18  ;;  %v5255_v63 = vsel %vm18942_vm7, %v8836_v22, 0.0  ;;  %v13861_v61 = vpop.eup %8845  ;;  %v18943_v57 = vmov 0  ;;  %v18948_v41 = vld [vmem:[#allocation225_spill] sm:$0xff]  ;;  %v9285_v7 = vld [vmem:[%s9687_s17 + $0x30] sm:$0xff]  ;;  %vm19041_vm14 = vmmov %vm19036_vm2 }
 0x32f   : > { %18937 = vst [vmem:[#allocation62_spill] sm:$0xff] %v13854_v9  ;;  %v18944_v57 = vsel %vm13867_vm5, 4294967295, %v18943_v57  ;;  %v18946_v39 = vand.u32 3, %v13753_v46  ;;  %8865 = vpow2.f32 %v5519_v44  ;;  %5417 = vadd.xlane.f32.xlu0 %v5255_v63  ;;  %996 = vmatmul.mubr.f32.gmra.mrb[12].mxu1 %v9285_v7  ;;  %v13878_v18 = vpop.eup %8847  ;;  %v13881_v55 = vadd.s32 4, %v13800_v48  ;;  %v18968_v7 = vld [vmem:[#allocation231_spill] sm:$0xff]  ;;  %v5646_v48 = vld [vmem:[#allocation5 + $0x10] sm:$0xff]  ;;  %vm19042_vm15 = vmmov %vm19036_vm2 }
 0x330   : > { %v5521_v3 = vmul.f32 1.442695, %v18940_v25  ;;  %18945 = vst [vmem:[#allocation128_spill] sm:$0xff] %v18944_v57  ;;  %v18947_v25 = vld [vmem:[#allocation223_spill] sm:$0xff]  ;;  %v7083_v6 = vsub.s32 0, %v7082_v23  ;;  %8867 = vpow2.f32 %v5742_v8  ;;  %1001 = vmatprep.mubr.f32.mxu1 %v18837_v53  ;;  %v13887_v44 = vpop.eup %8849  ;;  %v18954_v63 = vmov 0  ;;  %vm19051_vm7 = vmmov %vm19036_vm2 }
 0x331   : > { %v7076_v4 = vsub.s32 0, %v18946_v39  ;;  %v18949_v19 = vsub.f32 %v18947_v25, %v18948_v41  ;;  %18950 = vst [vmem:[#allocation139_spill] sm:$0xff] %v13881_v55  ;;  %v18953_v39 = vsub.f32 %v18951_v60, %v18952_v1  ;;  %v18955_v63 = vsel %vm13893_vm12, 4294967295, %v18954_v63  ;;  %v18958_v60 = vld [vmem:[#allocation227_spill] sm:$0xff]  ;;  %v18959_v1 = vld [vmem:[#allocation229_spill] sm:$0xff]  ;;  %v18981_v55 = vld [vmem:[#allocation236_spill] sm:$0xff] }
 0x332   : > { %18956 = vst [vmem:[#allocation72_spill] sm:$0xff] %v18955_v63  ;;  %vm7078_vm4 = vcmp.lt.s32.totalorder %v18890_v30, 0  ;;  %v13899_v8 = vmin.u32 %v7100_v43, %v18933_v11  ;;  %8869 = vpow2.f32 %v5744_v20  ;;  %v18960_v25 = vsub.f32 %v18958_v60, %v18959_v1  ;;  %v18977_v30 = vld [vmem:[#allocation237_spill] sm:$0xff]  ;;  %v18982_v57 = vld [vmem:[#allocation238_spill] sm:$0xff] }
 0x333   : > { %v5746_v22 = vmul.f32 1.442695, %v18949_v19  ;;  %v5523_v14 = vmul.f32 1.442695, %v18953_v39  ;;  %v13904_v19 = vpop.eup %8851  ;;  %8871 = vpow2.f32 %v5521_v3  ;;  %v18963_v42 = vsub.f32 %v18961_v10, %v18962_v33  ;;  %v18969_v39 = vld [vmem:[#allocation233_spill] sm:$0xff]  ;;  %v9286_v33 = vld [vmem:[%s9687_s17 + $0x38] sm:$0xff] }
 0x334   : > { %18957 = vst [vmem:[#allocation132_spill] sm:$0xff] %v13899_v8  ;;  %v5525_v41 = vmul.f32 1.442695, %v18960_v25  ;;  %v13914_v11 = vpop.eup %8853  ;;  %v18964_v20 = vand.u32 3, %v13753_v46  ;;  %v18966_v1 = vand.u32 3, %v13829_v40  ;;  %v18970_v3 = vsub.f32 %v18968_v7, %v18969_v39  ;;  %1002 = vmatmul.mubr.f32.gmra.mrb[14].mxu1 %v9286_v33  ;;  %v18972_v10 = vld [vmem:[#allocation232_spill] sm:$0xff] }
 0x335   : > { %v5748_v43 = vmul.f32 1.442695, %v18963_v42  ;;  %8873 = vpow2.f32 %v5746_v22  ;;  %v13930_v42 = vpop.eup %8855  ;;  %v18973_v22 = vld [vmem:[#allocation234_spill] sm:$0xff]  ;;  %v5419_v39 = vld [vmem:[#allocation3] sm:$0xff]  ;;  %1007 = vmatprep.mubr.f32.mxu1 %v18837_v53  ;;  %v18976_v46 = vld [vmem:[#allocation235_spill] sm:$0xff]  ;;  %v18983_v33 = vsub.f32 %v18981_v55, %v18982_v57 }
 0x336   : > { %v13920_v60 = vsel %vm7071_vm13, %v7076_v4, %v18964_v20  ;;  %v13924_v25 = vsub.s32 0, %v18966_v1  ;;  %v5750_v15 = vmul.f32 1.442695, %v18970_v3  ;;  %v13938_v4 = vsel %vm7078_vm4, %v7083_v6, %v7082_v23  ;;  %v5645_v1 = vld [vmem:[#allocation5 + $0x8] sm:$0xff]  ;;  %v13944_v3 = vpop.eup %8857  ;;  %v5421_v63 = vld [vmem:[#allocation3 + $0x10] sm:$0xff]  ;;  %v5423_v57 = vld [vmem:[#allocation3 + $0x20] sm:$0xff] }
 0x337   : > { %18965 = vst [vmem:[#allocation95_spill] sm:$0xff] %v13920_v60  ;;  %18971 = vst [vmem:[#allocation89_spill] sm:$0xff] %v13938_v4  ;;  %8875 = vpow2.f32 %v5523_v14  ;;  %v18974_v20 = vsub.f32 %v18972_v10, %v18973_v22  ;;  %v18978_v6 = vsub.f32 %v18976_v46, %v18977_v30  ;;  %v5420_v14 = vld [vmem:[#allocation3 + $0x8] sm:$0xff]  ;;  %v13951_v10 = vpop.eup %8859  ;;  %v18979_v22 = vand.u32 3, %v13854_v9  ;;  %v5422_v30 = vld [vmem:[#allocation3 + $0x18] sm:$0xff] }
 0x338   : > { %18967 = vst [vmem:[#allocation135_spill] sm:$0xff] %v13924_v25  ;;  %8877 = vpow2.f32 %v5525_v41  ;;  %v5529_v4 = vmul.f32 1.442695, %v18983_v33  ;;  %v13961_v41 = vmul.f32 %v13585_v21, %v5644_v29  ;;  %v13963_v46 = vpop.eup %8861  ;;  %v18985_v60 = vld [vmem:[#allocation241_spill] sm:$0xff]  ;;  %v9287_v55 = vld [vmem:[%s9687_s17 + $0x40] sm:$0xff]  ;;  %v18988_v33 = vld [vmem:[#allocation242_spill] sm:$0xff]  ;;  %v13979_v25 = vmul.f32 %v13618_v56, %v5420_v14 }
 0x339   : > { %v5527_v7 = vmul.f32 1.442695, %v18974_v20  ;;  %v5752_v23 = vmul.f32 1.442695, %v18978_v6  ;;  %v13955_v20 = vsub.s32 0, %v18979_v22  ;;  %8879 = vpow2.f32 %v5748_v43  ;;  %v18984_v6 = vld [vmem:[#allocation239_spill] sm:$0xff]  ;;  %1008 = vmatmul.mubr.f32.gmra.mrb[16].mxu1 %v9287_v55  ;;  %v13973_v21 = vpop.eup %8863  ;;  %vm19030_vm13 = vmmov %vm19013_vm3 }
 0x33a   : > { %8881 = vpow2.f32 %v5750_v15  ;;  %v18986_v24 = vsub.f32 %v18984_v6, %v18985_v60  ;;  %v5547_v22 = vmul.f32 %v13591_v38, %v5419_v39  ;;  %v13970_v43 = vmul.f32 %v13598_v13, %v5645_v1  ;;  %v18987_v29 = vld [vmem:[#allocation240_spill] sm:$0xff]  ;;  %v5424_v13 = vld [vmem:[#allocation3 + $0x28] sm:$0xff]  ;;  %1013 = vmatprep.mubr.f32.mxu1 %v18837_v53  ;;  %v13985_v60 = vpop.eup %8865  ;;  %v18990_v39 = vld [vmem:[#allocation243_spill] sm:$0xff] }
 0x33b   : > { %18980 = vst [vmem:[#allocation43_spill] sm:$0xff] %v13955_v20  ;;  %v5647_v20 = vld [vmem:[#allocation5 + $0x18] sm:$0xff]  ;;  %8883 = vpow2.f32 %v5527_v7  ;;  %v18989_v9 = vsub.f32 %v18987_v29, %v18988_v33  ;;  %v5648_v38 = vld [vmem:[#allocation5 + $0x20] sm:$0xff]  ;;  %v18991_v1 = vld [vmem:[#allocation245_spill] sm:$0xff]  ;;  %v13991_v55 = vmul.f32 %v13633_v27, %v5421_v63  ;;  %v13994_v56 = vmul.f32 %v13647_v58, %v5422_v30 }
 0x33c   : > { %v5754_v8 = vmul.f32 1.442695, %v18986_v24  ;;  %v13982_v24 = vmul.f32 %v13626_v35, %v5646_v48  ;;  %8885 = vpow2.f32 %v5752_v23  ;;  %v18992_v7 = vsub.f32 %v18990_v39, %v18991_v1  ;;  %v5649_v35 = vld [vmem:[#allocation5 + $0x28] sm:$0xff]  ;;  %v5425_v48 = vld [vmem:[#allocation3 + $0x30] sm:$0xff]  ;;  %v18993_v14 = vld [vmem:[#allocation244_spill] sm:$0xff] }
 0x33d   : > { %v5531_v15 = vmul.f32 1.442695, %v18989_v9  ;;  %v13996_v9 = vpop.eup %8867  ;;  %8887 = vpow2.f32 %v5529_v4  ;;  %v18994_v29 = vld [vmem:[#allocation246_spill] sm:$0xff]  ;;  %v14002_v40 = vmul.f32 %v13654_v32, %v5647_v20  ;;  %v14005_v39 = vmul.f32 %v13663_v59, %v5423_v57  ;;  %v18996_v58 = vld [vmem:[#allocation247_spill] sm:$0xff]  ;;  %v18997_v30 = vld [vmem:[#allocation249_spill] sm:$0xff] }
 0x33e   : > { %v5533_v6 = vmul.f32 1.442695, %v18992_v7  ;;  %v18995_v33 = vsub.f32 %v18993_v14, %v18994_v29  ;;  %v5650_v27 = vld [vmem:[#allocation5 + $0x30] sm:$0xff]  ;;  %v14007_v63 = vpop.eup %8869  ;;  %8889 = vpow2.f32 %v5754_v8  ;;  %v18998_v1 = vsub.f32 %v18996_v58, %v18997_v30  ;;  %v5426_v29 = vld [vmem:[#allocation3 + $0x38] sm:$0xff]  ;;  %v9288_v20 = vld [vmem:[%s9687_s17 + $0x48] sm:$0xff] }
 0x33f   : > { %v14013_v4 = vmul.f32 %v13675_v17, %v5648_v38  ;;  %v14016_v14 = vmul.f32 %v13681_v28, %v5424_v13  ;;  %v5651_v32 = vld [vmem:[#allocation5 + $0x38] sm:$0xff]  ;;  %1014 = vmatmul.mubr.f32.gmra.mrb[18].mxu1 %v9288_v20  ;;  %v14019_v59 = vpop.eup %8871  ;;  %8891 = vpow2.f32 %v5531_v15  ;;  %v18999_v57 = vld [vmem:[#allocation248_spill] sm:$0xff]  ;;  %v14025_v58 = vmul.f32 %v13706_v5, %v5649_v35  ;;  %v19005_v15 = vld [vmem:[#allocation253_spill] sm:$0xff] }
 0x340   : > { %v5756_v23 = vmul.f32 1.442695, %v18995_v33  ;;  %v5758_v7 = vmul.f32 1.442695, %v18998_v1  ;;  %v19000_v33 = vld [vmem:[#allocation250_spill] sm:$0xff]  ;;  %v14028_v17 = vmul.f32 %v13687_v34, %v5425_v48  ;;  %v5427_v28 = vld [vmem:[#allocation3 + $0x40] sm:$0xff]  ;;  %1019 = vmatprep.mubr.f32.mxu1 %v18837_v53  ;;  %v14031_v13 = vpop.eup %8873  ;;  %8893 = vpow2.f32 %v5533_v6  ;;  %vm19055_vm4 = vmmov %vm19036_vm2 }
 0x341   : > { %v19001_v8 = vsub.f32 %v18999_v57, %v19000_v33  ;;  %19002 = vst [vmem:[#allocation59_spill] sm:$0xff] %v14025_v58  ;;  %v5652_v38 = vld [vmem:[#allocation5 + $0x40] sm:$0xff]  ;;  %v19004_v30 = vld [vmem:[#allocation251_spill] sm:$0xff]  ;;  %v5579_v57 = vadd.f32 %v5547_v22, %v4975_v16  ;;  %v14037_v33 = vmul.f32 %v13713_v37, %v5650_v27  ;;  %v5428_v5 = vld [vmem:[#allocation3 + $0x48] sm:$0xff]  ;;  %v14039_v34 = vpop.eup %8875  ;;  %v14045_v6 = vmul.f32 %v13724_v31, %v5426_v29 }
 0x342   : > { %19003 = vst [vmem:[#allocation71_spill] sm:$0xff] %v14028_v17  ;;  %v19006_v1 = vsub.f32 %v19004_v30, %v19005_v15  ;;  %v5653_v35 = vld [vmem:[#allocation5 + $0x48] sm:$0xff]  ;;  %8895 = vpow2.f32 %v5756_v23  ;;  %v19007_v48 = vld [vmem:[#allocation252_spill] sm:$0xff]  ;;  %v14048_v30 = vmul.f32 %v13747_v12, %v5651_v32  ;;  %v5429_v16 = vld [vmem:[#allocation3 + $0x50] sm:$0xff]  ;;  %v14050_v22 = vpop.eup %8877  ;;  %v14057_v23 = vmul.f32 %v13759_v26, %v5427_v28 }
 0x343   : > { %v5535_v49 = vmul.f32 1.442695, %v19001_v8  ;;  %v19008_v8 = vld [vmem:[#allocation254_spill] sm:$0xff]  ;;  %8897 = vpow2.f32 %v5758_v7  ;;  %v19010_v37 = vld [vmem:[#allocation255_spill] sm:$0xff]  ;;  %v19011_v27 = vld [vmem:[#allocation257_spill] sm:$0xff]  ;;  %5612 = vst.msk [vmem:[#allocation3] sm:$0xff] %vm19013_vm3, %v5579_v57  ;;  %v14063_v32 = vpop.eup %8879  ;;  %v14069_v57 = vmul.f32 %v13787_v62, %v5428_v5  ;;  %v14072_v26 = vmul.f32 %v13795_v47, %v5653_v35 }
 0x344   : > { %v5760_v20 = vmul.f32 1.442695, %v19006_v1  ;;  %v19009_v17 = vsub.f32 %v19007_v48, %v19008_v8  ;;  %v19012_v15 = vsub.f32 %v19010_v37, %v19011_v27  ;;  %v5654_v31 = vld [vmem:[#allocation5 + $0x50] sm:$0xff]  ;;  %v5430_v29 = vld [vmem:[#allocation3 + $0x58] sm:$0xff]  ;;  %v19015_v7 = vld [vmem:[#allocation256_spill] sm:$0xff]  ;;  %v5263_v27 = vpop.xlane.xlu0 %5262 }
 0x345   : > { %v9289_v12 = vld [vmem:[%s9687_s17 + $0x50] sm:$0xff]  ;;  %8899 = vpow2.f32 %v5535_v49  ;;  %19018 = vst [vmem:[#allocation52_spill] sm:$0xff] %v14072_v26  ;;  %v5431_v28 = vld [vmem:[#allocation3 + $0x60] sm:$0xff]  ;;  %v19020_v49 = vld [vmem:[#allocation261_spill] sm:$0xff] }
 0x346   : > { %v5537_v58 = vmul.f32 1.442695, %v19009_v17  ;;  %v5539_v1 = vmul.f32 1.442695, %v19012_v15  ;;  %v14060_v17 = vmul.f32 %v13768_v36, %v5652_v38  ;;  %1020 = vmatmul.mubr.f32.gmra.mrb[20].mxu1 %v9289_v12  ;;  %v19016_v48 = vld [vmem:[#allocation258_spill] sm:$0xff]  ;;  %v5655_v36 = vld [vmem:[#allocation5 + $0x58] sm:$0xff]  ;;  %v14075_v38 = vpop.eup %8881  ;;  %8901 = vpow2.f32 %v5760_v20  ;;  %vm19060_vm3 = vmmov %vm19036_vm2 }
 0x347   : > { %v19017_v8 = vsub.f32 %v19015_v7, %v19016_v48  ;;  %1025 = vmatprep.mubr.f32.mxu1 %v18837_v53  ;;  %v19019_v15 = vld [vmem:[#allocation259_spill] sm:$0xff]  ;;  %v5804_v7 = vadd.f32 %v13961_v41, %v5263_v27  ;;  %v14082_v48 = vmul.f32 %v13809_v45, %v5429_v16  ;;  %v5656_v62 = vld [vmem:[#allocation5 + $0x60] sm:$0xff]  ;;  %v14084_v5 = vpop.eup %8883  ;;  %v19023_v35 = vld [vmem:[#allocation262_spill] sm:$0xff]  ;;  %v14090_v20 = vmul.f32 %v13825_v51, %v5654_v31 }
 0x348   : > { %19014 = vst [vmem:[#allocation41_spill] sm:$0xff] %v14060_v17  ;;  %v19021_v12 = vsub.f32 %v19019_v15, %v19020_v49  ;;  %8903 = vpow2.f32 %v5537_v58  ;;  %v19022_v47 = vld [vmem:[#allocation260_spill] sm:$0xff]  ;;  %v14093_v15 = vmul.f32 %v13835_v50, %v5430_v29  ;;  %v5432_v49 = vld [vmem:[#allocation3 + $0x68] sm:$0xff]  ;;  %v5433_v41 = vld [vmem:[#allocation3 + $0x70] sm:$0xff]  ;;  %v14095_v27 = vpop.eup %8885  ;;  %v14105_v51 = vmul.f32 %v13843_v0, %v5431_v28 }
 0x349   : > { %v5762_v37 = vmul.f32 1.442695, %v19017_v8  ;;  %v19024_v8 = vsub.f32 %v19022_v47, %v19023_v35  ;;  %19025 = vst [vmem:[#allocation100_spill] sm:$0xff] %v14090_v20  ;;  %8905 = vpow2.f32 %v5539_v1  ;;  %v19027_v45 = vld [vmem:[#allocation263_spill] sm:$0xff]  ;;  %v19028_v16 = vld [vmem:[#allocation265_spill] sm:$0xff]  ;;  %5836 = vst.msk [vmem:[#allocation5] sm:$0xff] %vm19030_vm13, %v5804_v7  ;;  %v4980_v47 = vpop.xlane.xlu1 %4979  ;;  %v14102_v35 = vmul.f32 %v13851_v52, %v5655_v36  ;;  %v5268_v20 = vpop.xlane.xlu0 %5267 }
 0x34a   : > { %v5541_v17 = vmul.f32 1.442695, %v19021_v12  ;;  %19026 = vst [vmem:[#allocation75_spill] sm:$0xff] %v14093_v15  ;;  %v19029_v12 = vsub.f32 %v19027_v45, %v19028_v16  ;;  %v5657_v50 = vld [vmem:[#allocation5 + $0x68] sm:$0xff]  ;;  %v5658_v31 = vld [vmem:[#allocation5 + $0x70] sm:$0xff]  ;;  %v5434_v29 = vld [vmem:[#allocation3 + $0x78] sm:$0xff]  ;;  %v14108_v15 = vpop.eup %8887  ;;  %v5580_v7 = vadd.f32 %v13979_v25, %v4980_v47  ;;  %v14115_v52 = vmul.f32 %v13861_v61, %v5656_v62 }
 0x34b   : > { %v5764_v26 = vmul.f32 1.442695, %v19024_v8  ;;  %v9290_v8 = vld [vmem:[%s9687_s17 + $0x58] sm:$0xff]  ;;  %8907 = vpow2.f32 %v5762_v37  ;;  %v19031_v1 = vld [vmem:[#allocation264_spill] sm:$0xff]  ;;  %v19032_v45 = vld [vmem:[#allocation266_spill] sm:$0xff]  ;;  %v14118_v28 = vpop.eup %8889  ;;  %v14122_v37 = vmul.f32 %v13878_v18, %v5432_v49  ;;  %v14131_v62 = vmul.f32 %v13904_v19, %v5657_v50 }
 0x34c   : > { %v5543_v58 = vmul.f32 1.442695, %v19029_v12  ;;  %1026 = vmatmul.mubr.f32.gmra.mrb[22].mxu1 %v9290_v8  ;;  %v19033_v16 = vsub.f32 %v19031_v1, %v19032_v45  ;;  %v5659_v0 = vld [vmem:[#allocation5 + $0x78] sm:$0xff]  ;;  %v5435_v36 = vld [vmem:[#allocation3 + $0x80] sm:$0xff]  ;;  %8909 = vpow2.f32 %v5541_v17  ;;  %v5805_v8 = vadd.f32 %v13970_v43, %v5268_v20  ;;  %v5436_v47 = vld [vmem:[#allocation3 + $0x88] sm:$0xff]  ;;  %v14127_v45 = vpop.eup %8891  ;;  %5613 = vst.msk [vmem:[#allocation3 + $0x8] sm:$0xff] %vm19034_vm8, %v5580_v7 }
 0x34d   : > { %1031 = vmatprep.mubr.f32.mxu1 %v18837_v53  ;;  %v14125_v1 = vmul.f32 %v13887_v44, %v5433_v41  ;;  %v5660_v25 = vld [vmem:[#allocation5 + $0x80] sm:$0xff]  ;;  %8911 = vpow2.f32 %v5764_v26  ;;  %v14134_v43 = vmul.f32 %v13914_v11, %v5658_v31  ;;  %v14137_v18 = vmul.f32 %v13930_v42, %v5434_v29  ;;  %v5661_v44 = vld [vmem:[#allocation5 + $0x88] sm:$0xff]  ;;  %v5437_v17 = vld [vmem:[#allocation3 + $0x90] sm:$0xff]  ;;  %v14139_v20 = vpop.eup %8893  ;;  %v4985_v26 = vpop.xlane.xlu1 %4984 }
 0x34e   : > { %v5766_v12 = vmul.f32 1.442695, %v19033_v16  ;;  %v6031_v61 = vld [vmem:[#allocation3] sm:$0xff]  ;;  %8913 = vpow2.f32 %v5543_v58  ;;  %5837 = vst.msk [vmem:[#allocation5 + $0x8] sm:$0xff] %vm19036_vm2, %v5805_v8  ;;  %v14143_v41 = vmul.f32 %v13944_v3, %v5659_v0  ;;  %v14146_v19 = vmul.f32 %v13951_v10, %v5435_v36  ;;  %v5662_v11 = vld [vmem:[#allocation5 + $0x90] sm:$0xff]  ;;  %v5438_v50 = vld [vmem:[#allocation3 + $0x98] sm:$0xff]  ;;  %v14149_v29 = vpop.eup %8895 }
 0x34f   : > { %19035 = vst [vmem:[#allocation65_spill] sm:$0xff] %v14137_v18  ;;  %v6063_v49 = vmax.f32 %v6031_v61, 1e-30  ;;  %v5663_v31 = vld [vmem:[#allocation5 + $0x98] sm:$0xff]  ;;  %v9291_v42 = vld [vmem:[%s9687_s17 + $0x60] sm:$0xff]  ;;  %v19039_v58 = vld [vmem:[#allocation269_spill] sm:$0xff]  ;;  %v5581_v8 = vadd.f32 %v13991_v55, %v4985_v26  ;;  %v5273_v18 = vpop.xlane.xlu0 %5272  ;;  %v14156_v3 = vmul.f32 %v13963_v46, %v5660_v25 }
 0x350   : > { %19037 = vst [vmem:[#allocation46_spill] sm:$0xff] %v14146_v19  ;;  %1032 = vmatmul.mubr.f32.gmra.mrb[24].mxu1 %v9291_v42  ;;  %8915 = vpow2.f32 %v5766_v12  ;;  %v19038_v16 = vld [vmem:[#allocation267_spill] sm:$0xff]  ;;  %v5439_v10 = vld [vmem:[#allocation3 + $0xa0] sm:$0xff]  ;;  %v5440_v36 = vld [vmem:[#allocation3 + $0xa8] sm:$0xff]  ;;  %v14159_v19 = vpop.eup %8897  ;;  %v5806_v12 = vadd.f32 %v13982_v24, %v5273_v18  ;;  %v14163_v42 = vmul.f32 %v13973_v21, %v5436_v47  ;;  %v14176_v24 = vmul.f32 %v14019_v59, %v5438_v50 }
 0x351   : > { %v19040_v7 = vsub.f32 %v19038_v16, %v19039_v58  ;;  %v5664_v0 = vld [vmem:[#allocation5 + $0xa0] sm:$0xff]  ;;  %1037 = vmatprep.mubr.f32.mxu1 %v18837_v53  ;;  %8917 = vlog2.f32 %v6063_v49  ;;  %v14166_v16 = vmul.f32 %v13985_v60, %v5437_v17  ;;  %v5665_v55 = vld [vmem:[#allocation5 + $0xa8] sm:$0xff]  ;;  %v5441_v26 = vld [vmem:[#allocation3 + $0xb0] sm:$0xff]  ;;  %v8900_v46 = vpop.eup %8899  ;;  %5614 = vst.msk [vmem:[#allocation3 + $0x10] sm:$0xff] %vm19041_vm14, %v5581_v8  ;;  %v14170_v58 = vmul.f32 %v13996_v9, %v5661_v44 }
 0x352   : > { %v6351_v25 = vld [vmem:[#allocation5] sm:$0xff]  ;;  %v14173_v49 = vmul.f32 %v14007_v63, %v5662_v11  ;;  %v14179_v21 = vmul.f32 %v14031_v13, %v5663_v31  ;;  %v5666_v60 = vld [vmem:[#allocation5 + $0xb0] sm:$0xff]  ;;  %v5442_v47 = vld [vmem:[#allocation3 + $0xb8] sm:$0xff]  ;;  %v8902_v18 = vpop.eup %8901  ;;  %5838 = vst.msk [vmem:[#allocation5 + $0x10] sm:$0xff] %vm19042_vm15, %v5806_v12  ;;  %v14183_v8 = vmul.f32 %v14039_v34, %v5439_v10  ;;  %v14186_v9 = vmul.f32 %v14063_v32, %v5664_v0 }
 0x353   : > { %v5545_v61 = vmul.f32 1.442695, %v19040_v7  ;;  %v6383_v17 = vmax.f32 %v6351_v25, 1e-30  ;;  %v4990_v7 = vpop.xlane.xlu1 %4989  ;;  %v14189_v63 = vmul.f32 %v14050_v22, %v5440_v36  ;;  %v5667_v59 = vld [vmem:[#allocation5 + $0xb8] sm:$0xff]  ;;  %v5443_v44 = vld [vmem:[#allocation3 + $0xc0] sm:$0xff]  ;;  %v8904_v11 = vpop.eup %8903  ;;  %v14194_v12 = vmul.f32 %v14075_v38, %v5665_v55  ;;  %vm19063_vm13 = vmmov %vm19036_vm2 }
 0x354   : > { %v9292_v13 = vld [vmem:[%s9687_s17 + $0x68] sm:$0xff]  ;;  %v5582_v50 = vadd.f32 %v13994_v56, %v4990_v7  ;;  %v5278_v31 = vpop.xlane.xlu0 %5277  ;;  %v14197_v34 = vmul.f32 %v14084_v5, %v5441_v26  ;;  %v5668_v32 = vld [vmem:[#allocation5 + $0xc0] sm:$0xff]  ;;  %v8906_v22 = vpop.eup %8905  ;;  %v14205_v56 = vmul.f32 %v14108_v15, %v5442_v47  ;;  %v5445_v38 = vld [vmem:[#allocation3 + $0xd0] sm:$0xff] }
 0x355   : > { %19043 = vst [vmem:[#allocation142_spill] sm:$0xff] %v14189_v63  ;;  %1038 = vmatmul.mubr.f32.gmra.mrb[26].mxu1 %v9292_v13  ;;  %8919 = vpow2.f32 %v5545_v61  ;;  %19044 = vst [vmem:[#allocation74_spill] sm:$0xff] %v14194_v12  ;;  %v5444_v10 = vld [vmem:[#allocation3 + $0xc8] sm:$0xff]  ;;  %v5807_v25 = vadd.f32 %v14002_v40, %v5278_v31  ;;  %v14202_v61 = vmul.f32 %v14095_v27, %v5666_v60  ;;  %v5670_v55 = vld [vmem:[#allocation5 + $0xd0] sm:$0xff]  ;;  %v8908_v5 = vpop.eup %8907 }
 0x356   : > { %19045 = vst [vmem:[#allocation90_spill] sm:$0xff] %v14197_v34  ;;  %v5669_v0 = vld [vmem:[#allocation5 + $0xc8] sm:$0xff]  ;;  %1043 = vmatprep.mubr.f32.mxu1 %v18837_v53  ;;  %8921 = vlog2.f32 %v6383_v17  ;;  %19047 = vst [vmem:[#allocation143_spill] sm:$0xff] %v14205_v56  ;;  %v19048_v26 = vld [vmem:[#allocation268_spill] sm:$0xff]  ;;  %v14212_v40 = vmul.f32 %v14118_v28, %v5667_v59  ;;  %v14215_v27 = vmul.f32 %v14127_v45, %v5443_v44  ;;  %v8910_v60 = vpop.eup %8909 }
 0x357   : > { %v6032_v36 = vld [vmem:[#allocation3 + $0x8] sm:$0xff]  ;;  %19046 = vst [vmem:[#allocation140_spill] sm:$0xff] %v14202_v61  ;;  %v19049_v7 = vld [vmem:[#allocation270_spill] sm:$0xff]  ;;  %5615 = vst.msk [vmem:[#allocation3 + $0x18] sm:$0xff] %vm19051_vm7, %v5582_v50  ;;  %v14225_v50 = vmul.f32 %v14139_v20, %v5444_v10  ;;  %v8912_v44 = vpop.eup %8911 }
 0x358   : > { %v19050_v13 = vsub.f32 %v19048_v26, %v19049_v7  ;;  %v6064_v12 = vmax.f32 %v6032_v36, 1e-30  ;;  %v6352_v63 = vld [vmem:[#allocation5 + $0x8] sm:$0xff]  ;;  %v5446_v15 = vld [vmem:[#allocation3 + $0xd8] sm:$0xff]  ;;  %v19053_v17 = vld [vmem:[#allocation272_spill] sm:$0xff]  ;;  %5839 = vst.msk [vmem:[#allocation5 + $0x18] sm:$0xff] %vm19055_vm4, %v5807_v25  ;;  %v4995_v26 = vpop.xlane.xlu1 %4994  ;;  %v14222_v36 = vmul.f32 %v14149_v29, %v5668_v32  ;;  %v14232_v25 = vmul.f32 %v8900_v46, %v5445_v38  ;;  %v8914_v20 = vpop.eup %8913 }
 0x359   : > { %v19052_v47 = vld [vmem:[#allocation271_spill] sm:$0xff]  ;;  %v6384_v61 = vmax.f32 %v6352_v63, 1e-30  ;;  %v5447_v59 = vld [vmem:[#allocation3 + $0xe0] sm:$0xff]  ;;  %v9293_v45 = vld [vmem:[%s9687_s17 + $0x70] sm:$0xff]  ;;  %v5583_v7 = vadd.f32 %v14005_v39, %v4995_v26  ;;  %v14230_v63 = vmul.f32 %v14159_v19, %v5669_v0 }
 0x35a   : > { %v5768_v34 = vmul.f32 1.442695, %v19050_v13  ;;  %v19054_v31 = vsub.f32 %v19052_v47, %v19053_v17  ;;  %v5671_v28 = vld [vmem:[#allocation5 + $0xd8] sm:$0xff]  ;;  %1044 = vmatmul.mubr.f32.gmra.mrb[28].mxu1 %v9293_v45  ;;  %8923 = vlog2.f32 %v6064_v12  ;;  %v5283_v13 = vpop.xlane.xlu0 %5282  ;;  %19057 = vst [vmem:[#allocation94_spill] sm:$0xff] %v14232_v25  ;;  %v5672_v47 = vld [vmem:[#allocation5 + $0xe0] sm:$0xff]  ;;  %v5448_v29 = vld [vmem:[#allocation3 + $0xe8] sm:$0xff]  ;;  %v14236_v17 = vmul.f32 %v8902_v18, %v5670_v55  ;;  %v8916_v39 = vpop.eup %8915 }
 0x35b   : > { %19056 = vst [vmem:[#allocation82_spill] sm:$0xff] %v14230_v63  ;;  %1049 = vmatprep.mubr.f32.mxu1 %v18837_v53  ;;  %8925 = vlog2.f32 %v6384_v61  ;;  %v6033_v32 = vld [vmem:[#allocation3 + $0x10] sm:$0xff]  ;;  %v5808_v10 = vadd.f32 %v14013_v4, %v5283_v13  ;;  %v14238_v12 = vmul.f32 %v8904_v11, %v5446_v15  ;;  %5616 = vst.msk [vmem:[#allocation3 + $0x20] sm:$0xff] %vm19060_vm3, %v5583_v7  ;;  %v5673_v55 = vld [vmem:[#allocation5 + $0xe8] sm:$0xff]  ;;  %v6224_v26 = vmul.f32 0.6931472, %v13297_v54 }
 0x35c   : > { %v5770_v56 = vmul.f32 1.442695, %v19054_v31  ;;  %19058 = vst [vmem:[#allocation141_spill] sm:$0xff] %v14236_v17  ;;  %8927 = vpow2.f32 %v5768_v34  ;;  %v6065_v19 = vmax.f32 %v6033_v32, 1e-30  ;;  %v6353_v0 = vld [vmem:[#allocation5 + $0x10] sm:$0xff]  ;;  %v14241_v46 = vmul.f32 %v8908_v5, %v5671_v28  ;;  %v8918_v31 = vpop.eup %8917  ;;  %v5000_v4 = vpop.xlane.xlu1 %4999  ;;  %vm19069_vm8 = vmmov %vm19036_vm2 }
 0x35d   : > { %19059 = vst [vmem:[#allocation103_spill] sm:$0xff] %v14238_v12  ;;  %v14243_v38 = vmul.f32 %v8906_v22, %v5447_v59  ;;  %v6385_v61 = vmax.f32 %v6353_v0, 1e-30  ;;  %5840 = vst.msk [vmem:[#allocation5 + $0x20] sm:$0xff] %vm19063_vm13, %v5808_v10  ;;  %v14246_v18 = vmul.f32 %v8912_v44, %v5672_v47  ;;  %v14248_v11 = vmul.f32 %v8910_v60, %v5448_v29  ;;  %v5449_v34 = vld [vmem:[#allocation3 + $0xf0] sm:$0xff]  ;;  %v9294_v15 = vld [vmem:[%s9687_s17 + $0x78] sm:$0xff] }
 0x35e   : > { %19061 = vst [vmem:[#allocation76_spill] sm:$0xff] %v14241_v46  ;;  %8929 = vpow2.f32 %v5770_v56  ;;  %1050 = vmatmul.mubr.f32.gmra.mrb[30].mxu1 %v9294_v15  ;;  %v6096_v5 = vmul.f32 0.6931472, %v8918_v31  ;;  %v5584_v22 = vadd.f32 %v14016_v14, %v5000_v4  ;;  %v5288_v28 = vpop.xlane.xlu0 %5287  ;;  %v5999_v56 = vld [vmem:[#allocation2] sm:$0xff]  ;;  %v6544_v59 = vmul.f32 0.6931472, %v13300_v2  ;;  %vm19079_vm14 = vmmov %vm19036_vm2 }
 0x35f   : > { %19062 = vst [vmem:[#allocation99_spill] sm:$0xff] %v14243_v38  ;;  %19064 = vst [vmem:[#allocation63_spill] sm:$0xff] %v14246_v18  ;;  %8931 = vlog2.f32 %v6065_v19  ;;  %1055 = vmatprep.mubr.f32.mxu1 %v18837_v53  ;;  %v19066_v45 = vld [vmem:[#allocation50_spill] sm:$0xff]  ;;  %v6034_v60 = vld [vmem:[#allocation3 + $0x18] sm:$0xff]  ;;  %v8920_v47 = vpop.eup %8919  ;;  %v14263_v10 = vmul.f32 %v8916_v39, %v5673_v55  ;;  %v14265_v19 = vmul.f32 %v8914_v20, %v5449_v34 }
 0x360   : > { %19065 = vst [vmem:[#allocation107_spill] sm:$0xff] %v14248_v11  ;;  %v14256_v44 = vmul.f32 0.6931472, %v19066_v45  ;;  %8933 = vlog2.f32 %v6385_v61  ;;  %v19067_v7 = vld [vmem:[#allocation59_spill] sm:$0xff]  ;;  %v19068_v54 = vld [vmem:[#allocation106_spill] sm:$0xff]  ;;  %5617 = vst.msk [vmem:[#allocation3 + $0x28] sm:$0xff] %vm19069_vm8, %v5584_v22  ;;  %v8922_v0 = vpop.eup %8921  ;;  %v6159_v31 = vadd.f32 %v6096_v5, %v5999_v56 }
 0x361   : > { %v5809_v13 = vadd.f32 %v19067_v7, %v5288_v28  ;;  %v14260_v29 = vmul.f32 0.6931472, %v19068_v54  ;;  %v6066_v32 = vmax.f32 %v6034_v60, 1e-30  ;;  %v6354_v14 = vld [vmem:[#allocation5 + $0x18] sm:$0xff]  ;;  %19070 = vst [vmem:[#allocation97_spill] sm:$0xff] %v14263_v10  ;;  %v5005_v60 = vpop.xlane.xlu1 %5004  ;;  %vm19081_vm15 = vmmov %vm19036_vm2 }
 0x362   : > { %19071 = vst [vmem:[#allocation56_spill] sm:$0xff] %v14265_v19  ;;  %v5450_v2 = vld [vmem:[#allocation3 + $0xf8] sm:$0xff]  ;;  %v19072_v61 = vld [vmem:[#allocation110_spill] sm:$0xff]  ;;  %v6386_v45 = vmax.f32 %v6354_v14, 1e-30  ;;  %v9295_v7 = vld [vmem:[%s9687_s17 + $0x80] sm:$0xff]  ;;  %v5293_v5 = vpop.xlane.xlu0 %5292 }
 0x363   : > { %v14268_v4 = vmul.f32 0.6931472, %v19072_v61  ;;  %v19073_v15 = vld [vmem:[#allocation51_spill] sm:$0xff]  ;;  %5841 = vst.msk [vmem:[#allocation5 + $0x28] sm:$0xff] %vm19036_vm2, %v5809_v13  ;;  %1056 = vmatmul.mubr.f32.gmra.mrb[32].mxu1 %v9295_v7  ;;  %v6416_v39 = vmul.f32 0.6931472, %v8922_v0  ;;  %8935 = vlog2.f32 %v6066_v32  ;;  %v5810_v7 = vadd.f32 %v14037_v33, %v5293_v5  ;;  %vm19084_vm7 = vmmov %vm19036_vm2 }
 0x364   : > { %v14271_v28 = vmul.f32 0.6931472, %v19073_v15  ;;  %v19074_v55 = vld [vmem:[#allocation116_spill] sm:$0xff]  ;;  %v19075_v34 = vld [vmem:[#allocation71_spill] sm:$0xff]  ;;  %1061 = vmatprep.mubr.f32.mxu1 %v18837_v53  ;;  %v5981_v56 = vld [vmem:[%s9861_s8 + $0x70] sm:$0xff]  ;;  %8937 = vlog2.f32 %v6386_v45  ;;  %v14292_v11 = vmul.f32 %v8920_v47, %v5450_v2  ;;  %v6287_v45 = vadd.f32 %v6224_v26, %v6159_v31 }
 0x365   : > { %v14276_v20 = vmul.f32 0.6931472, %v19074_v55  ;;  %v5585_v22 = vadd.f32 %v19075_v34, %v5005_v60  ;;  %v6319_v54 = vld [vmem:[#allocation4] sm:$0xff]  ;;  %v19076_v61 = vld [vmem:[#allocation119_spill] sm:$0xff]  ;;  %v8924_v55 = vpop.eup %8923  ;;  %v19078_v60 = vld [vmem:[#allocation114_spill] sm:$0xff]  ;;  %5842 = vst.msk [vmem:[#allocation5 + $0x30] sm:$0xff] %vm19081_vm15, %v5810_v7  ;;  %v5010_v38 = vpop.xlane.xlu1 %5009 }
 0x366   : > { %v14282_v15 = vmul.f32 0.6931472, %v19076_v61  ;;  %v19077_v13 = vld [vmem:[#allocation111_spill] sm:$0xff]  ;;  %v6035_v0 = vld [vmem:[#allocation3 + $0x20] sm:$0xff]  ;;  %v6479_v32 = vadd.f32 %v6416_v39, %v6319_v54  ;;  %v14289_v34 = vmul.f32 0.6931472, %v19078_v60  ;;  %v8926_v61 = vpop.eup %8925  ;;  %v5586_v47 = vadd.f32 %v14045_v6, %v5010_v38  ;;  %v5298_v2 = vpop.xlane.xlu0 %5297  ;;  %vm19085_vm4 = vmmov %vm19036_vm2 }
 0x367   : > { %v14285_v14 = vmul.f32 0.6931472, %v19077_v13  ;;  %v6067_v19 = vmax.f32 %v6035_v0, 1e-30  ;;  %v6355_v10 = vld [vmem:[#allocation5 + $0x20] sm:$0xff]  ;;  %5618 = vst.msk [vmem:[#allocation3 + $0x30] sm:$0xff] %vm19079_vm14, %v5585_v22  ;;  %v14296_v5 = vpop.eup %8927  ;;  %vm19087_vm3 = vmmov %vm19036_vm2 }
 0x368   : > { %19080 = vst [vmem:[#allocation66_spill] sm:$0xff] %v14292_v11  ;;  %v6098_v13 = vmul.f32 0.6931472, %v8924_v55  ;;  %v6387_v18 = vmax.f32 %v6355_v10, 1e-30  ;;  %v9296_v33 = vld [vmem:[%s9687_s17 + $0x88] sm:$0xff]  ;;  %v6607_v0 = vadd.f32 %v6544_v59, %v6479_v32  ;;  %v14303_v10 = vpop.eup %8929  ;;  %v5811_v59 = vadd.f32 %v14048_v30, %v5298_v2  ;;  %vm19088_vm13 = vmmov %vm19036_vm2 }
 0x369   : > { %1062 = vmatmul.mubr.f32.gmra.mrb[34].mxu1 %v9296_v33  ;;  %v6205_v39 = vmax.f32 %v5981_v56, 1.0  ;;  %v6000_v54 = vld [vmem:[#allocation2 + $0x8] sm:$0xff]  ;;  %v6418_v60 = vmul.f32 0.6931472, %v8926_v61  ;;  %8939 = vlog2.f32 %v6067_v19  ;;  %v14301_v26 = vld [vmem:[%s9852_s22 + $0x70] sm:$0xff]  ;;  %v8932_v19 = vpop.eup %8931  ;;  %5619 = vst.msk [vmem:[#allocation3 + $0x38] sm:$0xff] %vm19084_vm7, %v5586_v47  ;;  %v5015_v46 = vpop.xlane.xlu1 %5014  ;;  %vm19090_vm8 = vmmov %vm19036_vm2 }
 0x36a   : > { %1067 = vmatprep.mubr.f32.mxu1 %v18837_v53  ;;  %v6320_v31 = vld [vmem:[#allocation4 + $0x8] sm:$0xff]  ;;  %v6160_v22 = vadd.f32 %v6098_v13, %v6000_v54  ;;  %8941 = vlog2.f32 %v6387_v18  ;;  %v14309_v32 = vadd.f32 %v6607_v0, %v6287_v45  ;;  %v8934_v13 = vpop.eup %8933  ;;  %v6100_v54 = vmul.f32 0.6931472, %v8932_v19  ;;  %5843 = vst.msk [vmem:[#allocation5 + $0x38] sm:$0xff] %vm19085_vm4, %v5811_v59  ;;  %v9297_v30 = vld [vmem:[%s9687_s17 + $0x90] sm:$0xff]  ;;  %v5303_v47 = vpop.xlane.xlu0 %5302  ;;  %vm19093_vm14 = vmmov %vm19036_vm2 }
 0x36b   : > { %v19082_v7 = vld [vmem:[#allocation125_spill] sm:$0xff]  ;;  %v6480_v6 = vadd.f32 %v6418_v60, %v6320_v31  ;;  %v6001_v0 = vld [vmem:[#allocation2 + $0x10] sm:$0xff]  ;;  %v6420_v31 = vmul.f32 0.6931472, %v8934_v13  ;;  %8943 = vlog2.f32 %v6205_v39  ;;  %vm19096_vm15 = vmmov %vm19036_vm2 }
 0x36c   : > { %v14306_v56 = vmul.f32 0.6931472, %v19082_v7  ;;  %v6036_v55 = vld [vmem:[#allocation3 + $0x28] sm:$0xff]  ;;  %v6288_v18 = vadd.f32 %v14256_v44, %v6160_v22  ;;  %v6703_v60 = vand.u32 2147483647, %v14309_v32  ;;  %v6321_v44 = vld [vmem:[#allocation4 + $0x10] sm:$0xff]  ;;  %vm19099_vm7 = vmmov %vm19036_vm2 }
 0x36d   : > { %v6068_v38 = vmax.f32 %v6036_v55, 1e-30  ;;  %v19083_v61 = vld [vmem:[#allocation57_spill] sm:$0xff]  ;;  %1068 = vmatmul.mubr.f32.gmra.mrb[36].mxu1 %v9297_v30  ;;  %v6608_v2 = vadd.f32 %v14260_v29, %v6480_v6  ;;  %v5587_v55 = vadd.f32 %v14057_v23, %v5015_v46  ;;  %v8936_v30 = vpop.eup %8935  ;;  %v6481_v29 = vadd.f32 %v6420_v31, %v6321_v44  ;;  %v6357_v6 = vld [vmem:[#allocation5 + $0x30] sm:$0xff]  ;;  %v5020_v23 = vpop.xlane.xlu1 %5019  ;;  %v9298_v46 = vld [vmem:[%s9687_s17 + $0x98] sm:$0xff] }
 0x36e   : > { %v14312_v33 = vmul.f32 0.6931472, %v19083_v61  ;;  %v6356_v11 = vld [vmem:[#allocation5 + $0x28] sm:$0xff]  ;;  %1073 = vmatprep.mubr.f32.mxu1 %v18837_v53  ;;  %v6037_v22 = vld [vmem:[#allocation3 + $0x30] sm:$0xff]  ;;  %v5982_v61 = vld [vmem:[%s9861_s8 + $0x78] sm:$0xff]  ;;  %v6735_v45 = vsub.f32 0.0, %v6703_v60  ;;  %v8938_v13 = vpop.eup %8937  ;;  %v5588_v44 = vadd.f32 %v14069_v57, %v5020_v23 }
 0x36f   : > { %v6388_v7 = vmax.f32 %v6356_v11, 1e-30  ;;  %v6161_v11 = vadd.f32 %v6100_v54, %v6001_v0  ;;  %8945 = vlog2.f32 %v6068_v38  ;;  %v19086_v59 = vld [vmem:[#allocation41_spill] sm:$0xff]  ;;  %v14325_v12 = vadd.f32 %v6608_v2, %v6288_v18  ;;  %5620 = vst.msk [vmem:[#allocation3 + $0x40] sm:$0xff] %vm19087_vm3, %v5587_v55  ;;  %v6002_v0 = vld [vmem:[#allocation2 + $0x18] sm:$0xff]  ;;  %v5308_v2 = vpop.xlane.xlu0 %5307  ;;  %vm19101_vm4 = vmmov %vm19036_vm2 }
 0x370   : > { %v5812_v19 = vadd.f32 %v19086_v59, %v5303_v47  ;;  %v6102_v17 = vmul.f32 0.6931472, %v8936_v30  ;;  %v6069_v54 = vmax.f32 %v6037_v22, 1e-30  ;;  %v6389_v38 = vmax.f32 %v6357_v6, 1e-30  ;;  %vm19107_vm3 = vmmov %vm19036_vm2 }
 0x371   : > { %8947 = vlog2.f32 %v6388_v7  ;;  %v6289_v39 = vadd.f32 %v14268_v4, %v6161_v11  ;;  %1074 = vmatmul.mubr.f32.gmra.mrb[38].mxu1 %v9298_v46  ;;  %v6767_v18 = vmul.f32 1.442695, %v6735_v45  ;;  %v6704_v60 = vand.u32 2147483647, %v14325_v12  ;;  %v5950_v11 = vld [vmem:[%s9852_s22 + $0x78] sm:$0xff]  ;;  %5621 = vst.msk [vmem:[#allocation3 + $0x48] sm:$0xff] %vm19090_vm8, %v5588_v44  ;;  %v5025_v57 = vpop.xlane.xlu1 %5024  ;;  %vm19114_vm8 = vmmov %vm19036_vm2 }
 0x372   : > { %5844 = vst.msk [vmem:[#allocation5 + $0x40] sm:$0xff] %vm19088_vm13, %v5812_v19  ;;  %v6609_v7 = vadd.f32 %v14271_v28, %v6481_v29  ;;  %1079 = vmatprep.mubr.f32.mxu1 %v18837_v53  ;;  %v6206_v4 = vmax.f32 %v5982_v61, 1.0  ;;  %v6162_v31 = vadd.f32 %v6102_v17, %v6002_v0  ;;  %v6422_v47 = vmul.f32 0.6931472, %v8938_v13  ;;  %v6322_v55 = vld [vmem:[#allocation4 + $0x18] sm:$0xff]  ;;  %v6003_v29 = vld [vmem:[#allocation2 + $0x20] sm:$0xff]  ;;  %vm19112_vm13 = vmmov %vm19036_vm2 }
 0x373   : > { %8949 = vlog2.f32 %v6069_v54  ;;  %v8940_v22 = vpop.eup %8939  ;;  %v6736_v59 = vsub.f32 0.0, %v6704_v60  ;;  %v19089_v19 = vld [vmem:[#allocation55_spill] sm:$0xff]  ;;  %v9299_v13 = vld [vmem:[%s9687_s17 + $0xa0] sm:$0xff]  ;;  %v5313_v23 = vpop.xlane.xlu0 %5312  ;;  %v6526_v0 = vmax.f32 %v5950_v11, 1.0 }
 0x374   : > { %8951 = vpow2.f32 %v6767_v18  ;;  %v14336_v45 = vadd.f32 %v6609_v7, %v6289_v39  ;;  %v14339_v28 = vmul.f32 0.6931472, %v19089_v19  ;;  %v8942_v30 = vpop.eup %8941  ;;  %v6290_v17 = vadd.f32 %v14276_v20, %v6162_v31  ;;  %v5983_v46 = vld [vmem:[%s9861_s8 + $0x80] sm:$0xff] }
 0x375   : > { %v6482_v61 = vadd.f32 %v6422_v47, %v6322_v55  ;;  %v6104_v6 = vmul.f32 0.6931472, %v8940_v22  ;;  %8953 = vlog2.f32 %v6389_v38  ;;  %1080 = vmatmul.mubr.f32.gmra.mrb[40].mxu1 %v9299_v13  ;;  %v6769_v54 = vmul.f32 1.442695, %v6736_v59  ;;  %v5951_v7 = vld [vmem:[%s9852_s22 + $0x80] sm:$0xff]  ;;  %v14351_v31 = vpop.eup %8943 }
 0x376   : > { %v6705_v39 = vand.u32 2147483647, %v14336_v45  ;;  %1085 = vmatprep.mubr.f32.mxu1 %v18837_v53  ;;  %v19091_v18 = vmax.f32 %v14301_v26, 1.0  ;;  %v6424_v60 = vmul.f32 0.6931472, %v8942_v30  ;;  %v6323_v47 = vld [vmem:[#allocation4 + $0x20] sm:$0xff]  ;;  %v5589_v59 = vadd.f32 %v14082_v48, %v5025_v57 }
 0x377   : > { %v6610_v20 = vadd.f32 %v14282_v15, %v6482_v61  ;;  %v6163_v38 = vadd.f32 %v6104_v6, %v6003_v29  ;;  %v19092_v22 = vld [vmem:[#allocation52_spill] sm:$0xff]  ;;  %v5030_v61 = vpop.xlane.xlu1 %5029  ;;  %v9300_v29 = vld [vmem:[%s9687_s17 + $0xa8] sm:$0xff]  ;;  %v6207_v30 = vmax.f32 %v5983_v46, 1.0  ;;  %v5318_v57 = vpop.xlane.xlu0 %5317 }
 0x378   : > { %8955 = vlog2.f32 %v19091_v18  ;;  %v6737_v44 = vsub.f32 0.0, %v6705_v39  ;;  %v5813_v55 = vadd.f32 %v19092_v22, %v5308_v2  ;;  %v6483_v15 = vadd.f32 %v6424_v60, %v6323_v47  ;;  %5622 = vst.msk [vmem:[#allocation3 + $0x50] sm:$0xff] %vm19093_vm14, %v5589_v59  ;;  %v19094_v2 = vld [vmem:[#allocation100_spill] sm:$0xff]  ;;  %v6324_v18 = vld [vmem:[#allocation4 + $0x28] sm:$0xff] }
 0x379   : > { %8957 = vlog2.f32 %v6206_v4  ;;  %v8946_v11 = vpop.eup %8945  ;;  %v14355_v19 = vadd.f32 %v6610_v20, %v6290_v17  ;;  %v6291_v26 = vadd.f32 %v14285_v14, %v6163_v38  ;;  %1086 = vmatmul.mubr.f32.gmra.mrb[42].mxu1 %v9300_v29  ;;  %v5814_v48 = vadd.f32 %v19094_v2, %v5313_v23  ;;  %v6004_v14 = vld [vmem:[#allocation2 + $0x28] sm:$0xff]  ;;  %v19095_v38 = vld [vmem:[#allocation120_spill] sm:$0xff]  ;;  %v19097_v23 = vld [vmem:[#allocation75_spill] sm:$0xff] }
 0x37a   : > { %8959 = vpow2.f32 %v6769_v54  ;;  %v6771_v6 = vmul.f32 1.442695, %v6737_v44  ;;  %v6106_v13 = vmul.f32 0.6931472, %v8946_v11  ;;  %5845 = vst.msk [vmem:[#allocation5 + $0x48] sm:$0xff] %vm19036_vm2, %v5813_v55  ;;  %1091 = vmatprep.mubr.f32.mxu1 %v18837_v53  ;;  %v6527_v17 = vmax.f32 %v5951_v7, 1.0 }
 0x37b   : > { %v8948_v4 = vpop.eup %8947  ;;  %v6706_v54 = vand.u32 2147483647, %v14355_v19  ;;  %v6611_v39 = vadd.f32 %v14289_v34, %v6483_v15  ;;  %8961 = vlog2.f32 %v6526_v0  ;;  %v6556_v60 = vmul.f32 0.6931472, %v19095_v38  ;;  %5846 = vst.msk [vmem:[#allocation5 + $0x50] sm:$0xff] %vm19096_vm15, %v5814_v48  ;;  %v5984_v44 = vld [vmem:[%s9861_s8 + $0x88] sm:$0xff]  ;;  %v14371_v11 = vpop.xlane.xlu1 %5034 }
 0x37c   : > { %v6426_v46 = vmul.f32 0.6931472, %v8948_v4  ;;  %8963 = vpow2.f32 %v6771_v6  ;;  %v6164_v20 = vadd.f32 %v6106_v13, %v6004_v14  ;;  %v5590_v47 = vadd.f32 %v19097_v23, %v5030_v61  ;;  %v9301_v34 = vld [vmem:[%s9687_s17 + $0xb0] sm:$0xff]  ;;  %v5952_v0 = vld [vmem:[%s9852_s22 + $0x88] sm:$0xff]  ;;  %v19098_v13 = vld [vmem:[#allocation104_spill] sm:$0xff] }
 0x37d   : > { %v8950_v7 = vpop.eup %8949  ;;  %v6738_v22 = vsub.f32 0.0, %v6706_v54  ;;  %v14369_v55 = vadd.f32 %v6611_v39, %v6291_v26  ;;  %1092 = vmatmul.mubr.f32.gmra.mrb[44].mxu1 %v9301_v34  ;;  %8965 = vlog2.f32 %v6207_v30  ;;  %v6005_v29 = vld [vmem:[#allocation2 + $0x30] sm:$0xff]  ;;  %v14377_v61 = vmul.f32 0.6931472, %v19098_v13  ;;  %v14380_v26 = vpop.xlane.xlu0 %5322 }
 0x37e   : > { %v6484_v59 = vadd.f32 %v6426_v46, %v6324_v18  ;;  %v8952_v15 = vpop.eup %8951  ;;  %v6292_v4 = vadd.f32 %v14306_v56, %v6164_v20  ;;  %v6108_v6 = vmul.f32 0.6931472, %v8950_v7  ;;  %5623 = vst.msk [vmem:[#allocation3 + $0x58] sm:$0xff] %vm19099_vm7, %v5590_v47  ;;  %1097 = vmatprep.mubr.f32.mxu1 %v18837_v53  ;;  %8967 = vlog2.f32 %v6527_v17  ;;  %v5985_v20 = vld [vmem:[%s9861_s8 + $0x90] sm:$0xff]  ;;  %v19100_v7 = vld [vmem:[#allocation113_spill] sm:$0xff]  ;;  %vm19130_vm7 = vmmov %vm19107_vm3 }
 0x37f   : > { %v8954_v2 = vpop.eup %8953  ;;  %v6831_v48 = vadd.f32 1.0, %v8952_v15  ;;  %v6773_v14 = vmul.f32 1.442695, %v6738_v22  ;;  %v6707_v30 = vand.u32 2147483647, %v14369_v55  ;;  %v6208_v54 = vmax.f32 %v5984_v44, 1.0  ;;  %v5040_v44 = vpop.xlane.xlu1 %5039 }
 0x380   : > { %v6612_v39 = vadd.f32 %v14312_v33, %v6484_v59  ;;  %v6165_v46 = vadd.f32 %v6108_v6, %v6005_v29  ;;  %v6428_v18 = vmul.f32 0.6931472, %v8954_v2  ;;  %v6528_v38 = vmax.f32 %v5952_v0, 1.0  ;;  %v6325_v47 = vld [vmem:[#allocation4 + $0x30] sm:$0xff]  ;;  %v9302_v15 = vld [vmem:[%s9687_s17 + $0xb8] sm:$0xff] }
 0x381   : > { %8969 = vlog2.f32 %v6831_v48  ;;  %v6739_v17 = vsub.f32 0.0, %v6707_v30  ;;  %v14391_v22 = vmul.f32 0.6931472, %v19100_v7  ;;  %v5815_v34 = vadd.f32 %v14102_v35, %v5318_v57  ;;  %1098 = vmatmul.mubr.f32.gmra.mrb[46].mxu1 %v9302_v15  ;;  %v5953_v13 = vld [vmem:[%s9852_s22 + $0x90] sm:$0xff]  ;;  %v14399_v29 = vpop.xlane.xlu0 %5327 }
 0x382   : > { %v14384_v56 = vpop.eup %8955  ;;  %8971 = vpow2.f32 %v6773_v14  ;;  %v14396_v33 = vadd.f32 %v6612_v39, %v6292_v4  ;;  %v6293_v59 = vadd.f32 %v14339_v28, %v6165_v46  ;;  %v6485_v0 = vadd.f32 %v6428_v18, %v6325_v47  ;;  %v5674_v6 = vld [vmem:[#allocation5 + $0xf0] sm:$0xff]  ;;  %1103 = vmatprep.mubr.f32.mxu1 %v18837_v53  ;;  %v6038_v4 = vld [vmem:[#allocation3 + $0x38] sm:$0xff]  ;;  %v19102_v46 = vld [vmem:[#allocation124_spill] sm:$0xff] }
 0x383   : > { %v14388_v23 = vpop.eup %8957  ;;  %v6775_v48 = vmul.f32 1.442695, %v6739_v17  ;;  %5847 = vst.msk [vmem:[#allocation5 + $0x58] sm:$0xff] %vm19101_vm4, %v5815_v34  ;;  %v6209_v35 = vmax.f32 %v5985_v20, 1.0  ;;  %8973 = vlog2.f32 %v6208_v54  ;;  %v6529_v30 = vmax.f32 %v5953_v13, 1.0  ;;  %v6358_v39 = vld [vmem:[#allocation5 + $0x38] sm:$0xff]  ;;  %v14412_v17 = vpop.xlane.xlu1 %5044 }
 0x384   : > { %v8960_v25 = vpop.eup %8959  ;;  %v6708_v57 = vand.u32 2147483647, %v14396_v33  ;;  %v6613_v14 = vadd.f32 %v6556_v60, %v6485_v0  ;;  %8975 = vlog2.f32 %v6528_v38  ;;  %v14407_v18 = vmul.f32 0.6931472, %v19102_v46  ;;  %v9303_v20 = vld [vmem:[%s9687_s17 + $0xc0] sm:$0xff]  ;;  %v19105_v15 = vld [vmem:[#allocation58_spill] sm:$0xff] }
 0x385   : > { %v6832_v2 = vadd.f32 1.0, %v8960_v25  ;;  %v14404_v28 = vpop.eup %8961  ;;  %v19103_v25 = vld [vmem:[#allocation127_spill] sm:$0xff]  ;;  %v14415_v54 = vmul.f32 %v14296_v5, %v5674_v6  ;;  %1104 = vmatmul.mubr.f32.gmra.mrb[48].mxu1 %v9303_v20  ;;  %v6039_v34 = vld [vmem:[#allocation3 + $0x40] sm:$0xff]  ;;  %v14421_v13 = vmul.f32 0.6931472, %v19105_v15  ;;  %v14423_v0 = vpop.xlane.xlu0 %5332  ;;  %v5591_v6 = vadd.f32 %v14105_v51, %v14371_v11 }
 0x386   : > { %v14410_v47 = vmul.f32 0.6931472, %v19103_v25  ;;  %v8964_v60 = vpop.eup %8963  ;;  %v6740_v38 = vsub.f32 0.0, %v6708_v57  ;;  %v14418_v7 = vadd.f32 %v6613_v14, %v6293_v59  ;;  %1109 = vmatprep.mubr.f32.mxu1 %v18837_v53  ;;  %v6070_v5 = vmax.f32 %v6038_v4, 1e-30  ;;  %v6359_v15 = vld [vmem:[#allocation5 + $0x40] sm:$0xff] }
 0x387   : > { %8977 = vlog2.f32 %v6832_v2  ;;  %19104 = vst [vmem:[#allocation93_spill] sm:$0xff] %v14415_v54  ;;  %v14426_v2 = vpop.eup %8965  ;;  %v6833_v46 = vadd.f32 1.0, %v8964_v60  ;;  %v6390_v25 = vmax.f32 %v6358_v39, 1e-30  ;;  %v6071_v20 = vmax.f32 %v6039_v34, 1e-30  ;;  %v14439_v11 = vpop.xlane.xlu1 %5049 }
 0x388   : > { %8979 = vpow2.f32 %v6775_v48  ;;  %v5675_v48 = vld [vmem:[#allocation5 + $0xf8] sm:$0xff]  ;;  %v14430_v59 = vpop.eup %8967  ;;  %v6777_v57 = vmul.f32 1.442695, %v6740_v38  ;;  %v6709_v14 = vand.u32 2147483647, %v14418_v7  ;;  %5624 = vst.msk [vmem:[#allocation3 + $0x60] sm:$0xff] %vm19107_vm3, %v5591_v6  ;;  %v5816_v51 = vadd.f32 %v14115_v52, %v14380_v26 }
 0x389   : > { %8981 = vlog2.f32 %v6209_v35  ;;  %v19106_v54 = vld [vmem:[#allocation115_spill] sm:$0xff]  ;;  %v9304_v35 = vld [vmem:[%s9687_s17 + $0xc8] sm:$0xff]  ;;  %v5592_v38 = vadd.f32 %v14122_v37, %v5040_v44  ;;  %v6671_v52 = vmax.f32 %v14309_v32, 0.0  ;;  %v5987_v37 = vld [vmem:[%s9861_s8 + $0xa0] sm:$0xff] }
 0x38a   : > { %8983 = vlog2.f32 %v6529_v30  ;;  %v14434_v60 = vmul.f32 0.6931472, %v19106_v54  ;;  %1110 = vmatmul.mubr.f32.gmra.mrb[50].mxu1 %v9304_v35  ;;  %v6741_v4 = vsub.f32 0.0, %v6709_v14  ;;  %v19108_v30 = vld [vmem:[#allocation130_spill] sm:$0xff]  ;;  %v14446_v54 = vpop.xlane.xlu0 %5337  ;;  %v5986_v34 = vld [vmem:[%s9861_s8 + $0x98] sm:$0xff]  ;;  %v19110_v26 = vld [vmem:[#allocation133_spill] sm:$0xff] }
 0x38b   : > { %8985 = vlog2.f32 %v6833_v46  ;;  %v14443_v39 = vmul.f32 0.6931472, %v19108_v30  ;;  %1115 = vmatprep.mubr.f32.mxu1 %v18837_v53  ;;  %v8970_v46 = vpop.eup %8969  ;;  %v14452_v6 = vmul.f32 0.6931472, %v19110_v26  ;;  %5848 = vst.msk [vmem:[#allocation5 + $0x60] sm:$0xff] %vm19112_vm13, %v5816_v51  ;;  %v5954_v14 = vld [vmem:[%s9852_s22 + $0x98] sm:$0xff]  ;;  %v14466_v51 = vpop.xlane.xlu1 %5054 }
 0x38c   : > { %8987 = vpow2.f32 %v6777_v57  ;;  %v14456_v57 = vmul.f32 %v14303_v10, %v5675_v48  ;;  %v8972_v44 = vpop.eup %8971  ;;  %v6864_v35 = vmul.f32 0.6931472, %v8970_v46  ;;  %v6779_v30 = vmul.f32 1.442695, %v6741_v4  ;;  %5625 = vst.msk [vmem:[#allocation3 + $0x68] sm:$0xff] %vm19114_vm8, %v5592_v38  ;;  %v19115_v26 = vld [vmem:[#allocation117_spill] sm:$0xff]  ;;  %vm19140_vm8 = vmmov %vm19130_vm7 }
 0x38d   : > { %19109 = vst [vmem:[#allocation83_spill] sm:$0xff] %v14443_v39  ;;  %8989 = vlog2.f32 %v6070_v5  ;;  %19111 = vst [vmem:[#allocation80_spill] sm:$0xff] %v14452_v6  ;;  %v6391_v39 = vmax.f32 %v6359_v15, 1e-30  ;;  %v14461_v32 = vpop.eup %8973  ;;  %v6834_v5 = vadd.f32 1.0, %v8972_v44  ;;  %v9305_v10 = vld [vmem:[%s9687_s17 + $0xd0] sm:$0xff] }
 0x38e   : > { %19113 = vst [vmem:[#allocation86_spill] sm:$0xff] %v14456_v57  ;;  %8991 = vlog2.f32 %v6390_v25  ;;  %v14464_v6 = vmul.f32 0.6931472, %v19115_v26  ;;  %1116 = vmatmul.mubr.f32.gmra.mrb[52].mxu1 %v9305_v10  ;;  %v6210_v48 = vmax.f32 %v5986_v34, 1.0  ;;  %v14469_v57 = vpop.eup %8975  ;;  %v6927_v4 = vadd.f32 %v6864_v35, %v6671_v52  ;;  %v19117_v25 = vld [vmem:[#allocation134_spill] sm:$0xff]  ;;  %v14474_v38 = vpop.xlane.xlu0 %5342  ;;  %v19119_v44 = vld [vmem:[#allocation136_spill] sm:$0xff] }
 0x38f   : > { %8993 = vlog2.f32 %v6071_v20  ;;  %v14472_v15 = vmul.f32 0.6931472, %v19117_v25  ;;  %1121 = vmatprep.mubr.f32.mxu1 %v18837_v53  ;;  %v6530_v20 = vmax.f32 %v5954_v14, 1.0  ;;  %v14478_v26 = vmul.f32 0.6931472, %v19119_v44  ;;  %v5955_v10 = vld [vmem:[%s9852_s22 + $0xa0] sm:$0xff] }
 0x390   : > { %19116 = vst [vmem:[#allocation77_spill] sm:$0xff] %v14464_v6  ;;  %8995 = vpow2.f32 %v6779_v30  ;;  %v5817_v34 = vadd.f32 %v14131_v62, %v14399_v29  ;;  %v6211_v52 = vmax.f32 %v5987_v37, 1.0  ;;  %v19121_v30 = vld [vmem:[#allocation14_spill] sm:$0xff]  ;;  %v19123_v25 = vld [vmem:[#allocation12_spill] sm:$0xff]  ;;  %v6672_v14 = vmax.f32 %v14325_v12, 0.0  ;;  %v14498_v37 = vpop.xlane.xlu1 %5059 }
 0x391   : > { %19118 = vst [vmem:[#allocation96_spill] sm:$0xff] %v14472_v15  ;;  %v8978_v46 = vpop.eup %8977  ;;  %8997 = vlog2.f32 %v6834_v5  ;;  %19120 = vst [vmem:[#allocation68_spill] sm:$0xff] %v14478_v26  ;;  %vm19122_vm2 = vnez %v19121_v30  ;;  %vm19124_vm14 = vnez %v19123_v25  ;;  %v19126_v26 = vld [vmem:[#allocation61_spill] sm:$0xff]  ;;  %v19128_v62 = vld [vmem:[#allocation42_spill] sm:$0xff] }
 0x392   : > { %v8980_v35 = vpop.eup %8979  ;;  %vm19125_vm15 = vmand %vm19122_vm2, %vm19124_vm14  ;;  %v6866_v6 = vmul.f32 0.6931472, %v8978_v46  ;;  %8999 = vlog2.f32 %v6391_v39  ;;  %v14492_v63 = vmul.f32 0.6931472, %v19126_v26  ;;  %v14495_v29 = vmul.f32 0.6931472, %v19128_v62 }
 0x393   : > { %v7663_v15 = vsel %vm19125_vm15, %v6927_v4, 0.0  ;;  %v14489_v5 = vpop.eup %8981  ;;  %v6835_v44 = vadd.f32 1.0, %v8980_v35  ;;  %5849 = vst.msk [vmem:[#allocation5 + $0x68] sm:$0xff] %vm19130_vm7, %v5817_v34  ;;  %v9306_v30 = vld [vmem:[%s9687_s17 + $0xd8] sm:$0xff]  ;;  %9001 = vlog2.f32 %v6210_v48  ;;  %v6040_v39 = vld [vmem:[#allocation3 + $0x48] sm:$0xff]  ;;  %v19131_v46 = vld [vmem:[#allocation60_spill] sm:$0xff]  ;;  %v14506_v35 = vpop.xlane.xlu0 %5347  ;;  %v5593_v48 = vadd.f32 %v14125_v1, %v14412_v17 }
 0x394   : > { %19127 = vst [vmem:[#allocation156_spill] sm:$0xff] %v14492_v63  ;;  %19129 = vst [vmem:[#allocation98_spill] sm:$0xff] %v14495_v29  ;;  %1122 = vmatmul.mubr.f32.gmra.mrb[54].mxu1 %v9306_v30  ;;  %v14501_v4 = vpop.eup %8983  ;;  %v6928_v12 = vadd.f32 %v6866_v6, %v6672_v14  ;;  %v14504_v25 = vmul.f32 0.6931472, %v19131_v46  ;;  %v6531_v26 = vmax.f32 %v5955_v10, 1.0  ;;  %9003 = vlog2.f32 %v6530_v20  ;;  %v6360_v34 = vld [vmem:[#allocation5 + $0x48] sm:$0xff] }
 0x395   : > { %1127 = vmatprep.mubr.f32.mxu1 %v18837_v53  ;;  %v8986_v62 = vpop.eup %8985  ;;  %9005 = vlog2.f32 %v6835_v44  ;;  %v14512_v30 = vmul.f32 0.6931472, %v14351_v31  ;;  %v14515_v6 = vmul.f32 0.6931472, %v14384_v56  ;;  %v19135_v46 = vld [vmem:[#allocation16_spill] sm:$0xff]  ;;  %v6673_v10 = vmax.f32 %v14336_v45, 0.0  ;;  %vm19141_vm2 = vmmov %vm19130_vm7  ;;  %v14526_v56 = vpop.xlane.xlu1 %5064 }
 0x396   : > { %19132 = vst [vmem:[#allocation147_spill] sm:$0xff] %v14504_v25  ;;  %v8988_v14 = vpop.eup %8987  ;;  %vm19136_vm4 = vnez %v19135_v46  ;;  %v19137_v25 = vld [vmem:[#allocation13_spill] sm:$0xff]  ;;  %v6868_v44 = vmul.f32 0.6931472, %v8986_v62  ;;  %9007 = vlog2.f32 %v6211_v52  ;;  %v7695_v1 = vsel %vm19140_vm8, %v7663_v15, 0.0  ;;  %vm19142_vm14 = vmmov %vm19141_vm2  ;;  %v9307_v46 = vld [vmem:[%s9687_s17 + $0xe0] sm:$0xff] }
 0x397   : > { %19133 = vst [vmem:[#allocation157_spill] sm:$0xff] %v14512_v30  ;;  %19134 = vst [vmem:[#allocation158_spill] sm:$0xff] %v14515_v6  ;;  %vm19138_vm3 = vnez %v19137_v25  ;;  %v8990_v29 = vpop.eup %8989  ;;  %v6836_v17 = vadd.f32 1.0, %v8988_v14  ;;  %v6072_v30 = vmax.f32 %v6040_v39, 1e-30  ;;  %v5988_v25 = vld [vmem:[%s9861_s8 + $0xa8] sm:$0xff]  ;;  %v14530_v62 = vpop.xlane.xlu0 %5352  ;;  %9009 = vlog2.f32 %v6531_v26 }
 0x398   : > { %vm19139_vm13 = vmand %vm19136_vm4, %vm19138_vm3  ;;  %5626 = vst.msk [vmem:[#allocation3 + $0x70] sm:$0xff] %vm19142_vm14, %v5593_v48  ;;  %1128 = vmatmul.mubr.f32.gmra.mrb[56].mxu1 %v9307_v46  ;;  %v8992_v6 = vpop.eup %8991  ;;  %v6929_v63 = vadd.f32 %v6868_v44, %v6673_v10  ;;  %v6392_v45 = vmax.f32 %v6360_v34, 1e-30  ;;  %v14534_v52 = vmul.f32 0.6931472, %v14388_v23  ;;  %v19146_v34 = vld [vmem:[#allocation18_spill] sm:$0xff]  ;;  %v5818_v23 = vadd.f32 %v14134_v43, %v14423_v0 }
 0x399   : > { %v7664_v20 = vsel %vm19139_vm13, %v6928_v12, 0.0  ;;  %1133 = vmatprep.mubr.f32.mxu1 %v18837_v53  ;;  %v8994_v15 = vpop.eup %8993  ;;  %9011 = vlog2.f32 %v6836_v17  ;;  %v14537_v39 = vmul.f32 0.6931472, %v14426_v2  ;;  %v14540_v48 = vmul.f32 0.6931472, %v14404_v28  ;;  %vm19151_vm3 = vmmov %vm19141_vm2  ;;  %v14551_v28 = vpop.xlane.xlu1 %5069  ;;  %v9308_v46 = vld [vmem:[%s9687_s17 + $0xe8] sm:$0xff] }
 0x39a   : > { %v7696_v31 = vsel %vm19141_vm2, %v7664_v20, 0.0  ;;  %19143 = vst [vmem:[#allocation109_spill] sm:$0xff] %v14534_v52  ;;  %v8996_v14 = vpop.eup %8995  ;;  %vm19147_vm15 = vnez %v19146_v34  ;;  %v19148_v20 = vld [vmem:[#allocation15_spill] sm:$0xff]  ;;  %v6674_v10 = vmax.f32 %v14355_v19, 0.0  ;;  %v6212_v44 = vmax.f32 %v5988_v25, 1.0  ;;  %v5956_v34 = vld [vmem:[%s9852_s22 + $0xa8] sm:$0xff]  ;;  %vm19152_vm13 = vmmov %vm19141_vm2 }
 0x39b   : > { %v7697_v12 = vadd.f32 %v7696_v31, %v7695_v1  ;;  %19144 = vst [vmem:[#allocation159_spill] sm:$0xff] %v14537_v39  ;;  %19145 = vst [vmem:[#allocation161_spill] sm:$0xff] %v14540_v48  ;;  %vm19149_vm7 = vnez %v19148_v20  ;;  %v8998_v1 = vpop.eup %8997  ;;  %v6837_v31 = vadd.f32 1.0, %v8996_v14  ;;  %v6110_v17 = vmul.f32 0.6931472, %v8990_v29  ;;  %v6006_v48 = vld [vmem:[#allocation2 + $0x38] sm:$0xff]  ;;  %v14556_v0 = vpop.xlane.xlu0 %5357 }
 0x39c   : > { %vm19150_vm4 = vmand %vm19147_vm15, %vm19149_vm7  ;;  %9013 = vlog2.f32 %v6072_v30  ;;  %1134 = vmatmul.mubr.f32.gmra.mrb[58].mxu1 %v9308_v46  ;;  %v9000_v20 = vpop.eup %8999  ;;  %v6870_v19 = vmul.f32 0.6931472, %v8998_v1  ;;  %v6430_v43 = vmul.f32 0.6931472, %v8992_v6  ;;  %5850 = vst.msk [vmem:[#allocation5 + $0x70] sm:$0xff] %vm19152_vm13, %v5818_v23  ;;  %v6326_v30 = vld [vmem:[#allocation4 + $0x38] sm:$0xff] }
 0x39d   : > { %v7665_v26 = vsel %vm19150_vm4, %v6929_v63, 0.0  ;;  %9015 = vlog2.f32 %v6392_v45  ;;  %1139 = vmatprep.mubr.f32.mxu1 %v18837_v53  ;;  %v14559_v29 = vpop.eup %9001  ;;  %v14562_v25 = vmul.f32 0.6931472, %v14461_v32  ;;  %v14568_v6 = vmul.f32 0.6931472, %v14469_v57  ;;  %v14576_v23 = vld [vmem:[%s9852_s22 + $0xb8] sm:$0xff]  ;;  %v14584_v57 = vpop.xlane.xlu1 %5074  ;;  %vm19166_vm15 = vmmov %vm19151_vm3 }
 0x39e   : > { %v7698_v2 = vsel %vm19151_vm3, %v7665_v26, 0.0  ;;  %9017 = vlog2.f32 %v6837_v31  ;;  %v14570_v45 = vpop.eup %9003  ;;  %v6930_v14 = vadd.f32 %v6870_v19, %v6674_v10  ;;  %v14573_v26 = vld [vmem:[%s9852_s22 + $0xb0] sm:$0xff]  ;;  %v14579_v1 = vld [vmem:[%s9852_s22 + $0xc0] sm:$0xff]  ;;  %v6532_v32 = vmax.f32 %v5956_v34, 1.0  ;;  %v19161_v39 = vld [vmem:[#allocation21_spill] sm:$0xff] }
 0x39f   : > { %v7699_v63 = vadd.f32 %v7698_v2, %v7697_v12  ;;  %19153 = vst [vmem:[#allocation105_spill] sm:$0xff] %v14562_v25  ;;  %v14565_v12 = vmul.f32 0.6931472, %v14430_v59  ;;  %19155 = vst [vmem:[#allocation162_spill] sm:$0xff] %v14568_v6  ;;  %v14582_v2 = vmul.f32 0.6931472, %v14489_v5  ;;  %9019 = vlog2.f32 %v6212_v44  ;;  %v9006_v31 = vpop.eup %9005  ;;  %v14598_v34 = vpop.xlane.xlu0 %5362 }
 0x3a0   : > { %19156 = vst [vmem:[#allocation91_spill] sm:$0xff] %v14570_v45  ;;  %19157 = vst [vmem:[#allocation148_spill] sm:$0xff] %v14579_v1  ;;  %v6166_v59 = vadd.f32 %v6110_v17, %v6006_v48  ;;  %v6112_v46 = vmul.f32 0.6931472, %v8994_v15  ;;  %v9309_v6 = vld [vmem:[%s9687_s17 + $0xf0] sm:$0xff]  ;;  %v14590_v19 = vpop.eup %9007  ;;  %v6007_v25 = vld [vmem:[#allocation2 + $0x40] sm:$0xff]  ;;  %vm19162_vm8 = vnez %v19161_v39  ;;  %v6486_v17 = vadd.f32 %v6430_v43, %v6326_v30 }
 0x3a1   : > { %19154 = vst [vmem:[#allocation160_spill] sm:$0xff] %v14565_v12  ;;  %19158 = vst [vmem:[#allocation163_spill] sm:$0xff] %v14582_v2  ;;  %v6432_v12 = vmul.f32 0.6931472, %v9000_v20  ;;  %1140 = vmatmul.mubr.f32.gmra.mrb[60].mxu1 %v9309_v6  ;;  %v14588_v10 = vmul.f32 0.6931472, %v14501_v4  ;;  %9021 = vlog2.f32 %v6532_v32 }
 0x3a2   : > { %19160 = vst [vmem:[#allocation129_spill] sm:$0xff] %v14590_v19  ;;  %v19163_v5 = vld [vmem:[#allocation19_spill] sm:$0xff]  ;;  %v6675_v48 = vmax.f32 %v14369_v55, 0.0  ;;  %v6872_v15 = vmul.f32 0.6931472, %v9006_v31  ;;  %1145 = vmatprep.mubr.f32.mxu1 %v18837_v53  ;;  %v6327_v4 = vld [vmem:[#allocation4 + $0x40] sm:$0xff]  ;;  %v14605_v55 = vpop.eup %9009 }
 0x3a3   : > { %19159 = vst [vmem:[#allocation165_spill] sm:$0xff] %v14588_v10  ;;  %vm19164_vm2 = vnez %v19163_v5  ;;  %v6041_v6 = vld [vmem:[#allocation3 + $0x50] sm:$0xff]  ;;  %v6533_v39 = vmax.f32 %v14573_v26, 1.0  ;;  %19167 = vst [vmem:[#allocation164_spill] sm:$0xff] %v14605_v55  ;;  %v6676_v30 = vmax.f32 %v14396_v33, 0.0  ;;  %v14609_v2 = vld [vmem:[%s9852_s22 + $0xc8] sm:$0xff]  ;;  %v6294_v26 = vadd.f32 %v14377_v61, %v6166_v59  ;;  %v14617_v55 = vpop.xlane.xlu1 %5079 }
 0x3a4   : > { %vm19165_vm14 = vmand %vm19162_vm8, %vm19164_vm2  ;;  %v6931_v43 = vadd.f32 %v6872_v15, %v6675_v48  ;;  %v6361_v10 = vld [vmem:[#allocation5 + $0x50] sm:$0xff]  ;;  %v6167_v5 = vadd.f32 %v6112_v46, %v6007_v25  ;;  %v6487_v53 = vadd.f32 %v6432_v12, %v6327_v4  ;;  %v14621_v48 = vld [vmem:[%s9852_s22 + $0xd8] sm:$0xff]  ;;  %v6614_v25 = vadd.f32 %v14391_v22, %v6486_v17 }
 0x3a5   : > { %v7666_v44 = vsel %vm19165_vm14, %v6930_v14, 0.0  ;;  %v14612_v52 = vld [vmem:[%s9852_s22 + $0xd0] sm:$0xff]  ;;  %v19168_v14 = vld [vmem:[#allocation65_spill] sm:$0xff]  ;;  %v19170_v15 = vld [vmem:[#allocation20_spill] sm:$0xff]  ;;  %v6073_v12 = vmax.f32 %v6041_v6, 1e-30  ;;  %9023 = vlog2.f32 %v6533_v39 }
 0x3a6   : > { %v7700_v20 = vsel %vm19166_vm15, %v7666_v44, 0.0  ;;  %v9012_v44 = vpop.eup %9011  ;;  %v5594_v1 = vadd.f32 %v19168_v14, %v14439_v11  ;;  %v19169_v33 = vld [vmem:[#allocation49_spill] sm:$0xff]  ;;  %vm19171_vm4 = vnez %v19170_v15  ;;  %v6042_v59 = vld [vmem:[#allocation3 + $0x58] sm:$0xff]  ;;  %v14630_v11 = vpop.xlane.xlu0 %5367  ;;  %vm19175_vm8 = vmmov %vm19166_vm15  ;;  %v6393_v14 = vmax.f32 %v6361_v10, 1e-30 }
 0x3a7   : > { %v7701_v31 = vadd.f32 %v7700_v20, %v7699_v63  ;;  %v9310_v63 = vld [vmem:[%s9687_s17 + $0xf8] sm:$0xff]  ;;  %vm7085_vm7 = vcmp.lt.s32.totalorder %v19169_v33, 0  ;;  %v19172_v20 = vld [vmem:[#allocation17_spill] sm:$0xff]  ;;  %v6874_v61 = vmul.f32 0.6931472, %v9012_v44  ;;  %v9014_v46 = vpop.eup %9013  ;;  %vm19176_vm2 = vmmov %vm19175_vm8  ;;  %v6677_v6 = vmax.f32 %v14418_v7, 0.0 }
 0x3a8   : > { %1146 = vmatmul.mubr.f32.gmra.mrb[62].mxu1 %v9310_v63  ;;  %vm19173_vm3 = vnez %v19172_v20  ;;  %5627 = vst.msk [vmem:[#allocation3 + $0x78] sm:$0xff] %vm19176_vm2, %v5594_v1  ;;  %v9016_v20 = vpop.eup %9015  ;;  %v6362_v44 = vld [vmem:[#allocation5 + $0x58] sm:$0xff]  ;;  %v6615_v10 = vadd.f32 %v14410_v47, %v6487_v53  ;;  %v6074_v1 = vmax.f32 %v6042_v59, 1e-30  ;;  %v6043_v19 = vld [vmem:[#allocation3 + $0x60] sm:$0xff]  ;;  %v14642_v63 = vpop.xlane.xlu1 %5084  ;;  %v14653_v7 = vadd.f32 %v6614_v25, %v6294_v26  ;;  %s16929_s17 = sand.u32 1, %s9441_s25  }
 0x3a9   : > { %vm19174_vm13 = vmand %vm19171_vm4, %vm19173_vm3  ;;  %v9018_v17 = vpop.eup %9017  ;;  %9025 = vlog2.f32 %v6073_v12  ;;  %v6114_v47 = vmul.f32 0.6931472, %v9014_v46  ;;  %v6394_v59 = vmax.f32 %v6362_v44, 1e-30  ;;  %v6075_v22 = vmax.f32 %v6043_v19, 1e-30 }
 0x3aa   : > { %v7667_v32 = vsel %vm19174_vm13, %v6931_v43, 0.0  ;;  %v6932_v43 = vadd.f32 %v6874_v61, %v6676_v30  ;;  %v14644_v15 = vpop.eup %9019  ;;  %v19180_v30 = vld [vmem:[#allocation23_spill] sm:$0xff]  ;;  %v6876_v61 = vmul.f32 0.6931472, %v9018_v17  ;;  %v14655_v53 = vpop.xlane.xlu0 %5372  ;;  %9027 = vlog2.f32 %v6393_v14  ;;  %v14662_v17 = vld [vmem:[%s9852_s22 + $0xe0] sm:$0xff]  ;;  %s7908_s27 = scalar_lea.sflag [#allocation7], %s16929_s17 }
 0x3ab   : > { %v7702_v4 = vsel %vm19175_vm8, %v7667_v32, 0.0  ;;  %v6295_v32 = vadd.f32 %v14407_v18, %v6167_v5  ;;  %vm19181_vm15 = vnez %v19180_v30  ;;  %v6363_v18 = vld [vmem:[#allocation5 + $0x60] sm:$0xff]  ;;  %v6434_v5 = vmul.f32 0.6931472, %v9016_v20  ;;  %v19183_v30 = vld [vmem:[#allocation46_spill] sm:$0xff]  ;;  %v14671_v19 = vpop.eup %9021 }
 0x3ac   : > { %v14636_v45 = vadd.f32 %v7702_v4, %v7701_v31  ;;  %v19178_v31 = vld [vmem:[#allocation26_spill] sm:$0xff]  ;;  %v6933_v4 = vadd.f32 %v6876_v61, %v6677_v6  ;;  %9029 = vlog2.f32 %v6074_v1  ;;  %v6395_v25 = vmax.f32 %v6363_v18, 1e-30  ;;  %v14666_v12 = vpop.xlane.xlu1 %5089  ;;  %v6328_v1 = vld [vmem:[#allocation4 + $0x48] sm:$0xff] }
 0x3ad   : > { %vm19179_vm14 = vnez %v19178_v31  ;;  %v5819_v31 = vadd.f32 %v14143_v41, %v14446_v54  ;;  %v14664_v26 = vadd.f32 %v6615_v10, %v6295_v32  ;;  %v14669_v46 = vmul.f32 0.6931472, %v14559_v29  ;;  %v6008_v41 = vld [vmem:[#allocation2 + $0x48] sm:$0xff]  ;;  %v19185_v54 = vld [vmem:[#allocation24_spill] sm:$0xff]  ;;  %v14691_v32 = vld [vmem:[%s9861_s8 + $0xb0] sm:$0xff] }
 0x3ae   : > { %19177 = vst [vmem:[#allocation166_spill] sm:$0xff] %v14636_v45  ;;  %vm19182_vm4 = vmand %vm19179_vm14, %vm19181_vm15  ;;  %vm19186_vm3 = vnez %v19185_v54  ;;  %v5820_v20 = vadd.f32 %v14156_v3, %v14474_v38  ;;  %v5596_v29 = vadd.f32 %v14163_v42, %v14498_v37  ;;  %v5821_v44 = vadd.f32 %v14170_v58, %v14506_v35  ;;  %v14688_v6 = vpop.xlane.xlu0 %5377  ;;  %v14694_v10 = vld [vmem:[%s9861_s8 + $0xb8] sm:$0xff] }
 0x3af   : > { %v14651_v39 = vsel %vm19182_vm4, %v6932_v43, 0.0  ;;  %v5595_v43 = vadd.f32 %v19183_v30, %v14466_v51  ;;  %19184 = vst [vmem:[#allocation108_spill] sm:$0xff] %v14669_v46  ;;  %v19187_v51 = vld [vmem:[#allocation22_spill] sm:$0xff]  ;;  %5851 = vst.msk [vmem:[#allocation5 + $0x78] sm:$0xff] %vm19176_vm2, %v5819_v31  ;;  %v6710_v61 = vand.u32 2147483647, %v14653_v7  ;;  %v6168_v18 = vadd.f32 %v6114_v47, %v6008_v41  ;;  %v14717_v30 = vpop.eup %9023 }
 0x3b0   : > { %vm19188_vm13 = vnez %v19187_v51  ;;  %vm19191_vm14 = vmmov %vm19176_vm2  ;;  %9031 = vlog2.f32 %v6394_v59  ;;  %v6488_v38 = vadd.f32 %v6434_v5, %v6328_v1  ;;  %v5597_v42 = vadd.f32 %v14166_v16, %v14526_v56  ;;  %v5095_v37 = vpop.xlane.xlu1 %5094  ;;  %v19195_v47 = vld [vmem:[#allocation45_spill] sm:$0xff]  ;;  %v19197_v59 = vld [vmem:[#allocation135_spill] sm:$0xff] }
 0x3b1   : > { %vm19189_vm8 = vmand %vm19186_vm3, %vm19188_vm13  ;;  %5628 = vst.msk [vmem:[#allocation3 + $0x80] sm:$0xff] %vm19191_vm14, %v5595_v43  ;;  %9033 = vlog2.f32 %v6075_v22  ;;  %v5822_v58 = vadd.f32 %v14173_v49, %v14530_v62  ;;  %v6213_v35 = vmax.f32 %v14691_v32, 1.0  ;;  %v6214_v22 = vmax.f32 %v14694_v10, 1.0  ;;  %v14727_v43 = vld [vmem:[%s9861_s8 + $0xc0] sm:$0xff]  ;;  %v19222_v32 = vld [vmem:[#allocation94_spill] sm:$0xff] }
 0x3b2   : > { %v14678_v14 = vsel %vm19189_vm8, %v6933_v4, 0.0  ;;  %v14698_v4 = vld [vmem:[%s9852_s22 + $0xe8] sm:$0xff]  ;;  %vm19192_vm15 = vmmov %vm19176_vm2  ;;  %9035 = vlog2.f32 %v6395_v25  ;;  %v19196_v5 = vand.u32 3, %v19195_v47  ;;  %v6711_v16 = vand.u32 2147483647, %v14664_v26  ;;  %v5383_v62 = vpop.xlane.xlu0 %5382  ;;  %v14769_v47 = vld [vmem:[%s9861_s8 + $0xf8] sm:$0xff] }
 0x3b3   : > { %19190 = vst [vmem:[#allocation167_spill] sm:$0xff] %v14678_v14  ;;  %5852 = vst.msk [vmem:[#allocation5 + $0x80] sm:$0xff] %vm19192_vm15, %v5820_v20  ;;  %v5598_v49 = vadd.f32 %v14176_v24, %v14551_v28  ;;  %v5823_v56 = vadd.f32 %v14179_v21, %v14556_v0  ;;  %v14730_v25 = vld [vmem:[%s9861_s8 + $0xc8] sm:$0xff]  ;;  %v6742_v54 = vsub.f32 0.0, %v6710_v61  ;;  %v6296_v51 = vadd.f32 %v14421_v13, %v6168_v18  ;;  %v14740_v24 = vld [vmem:[%s9861_s8 + $0xd8] sm:$0xff]  ;;  %v9026_v28 = vpop.eup %9025 }
 0x3b4   : > { %vm19193_vm4 = vmmov %vm19176_vm2  ;;  %v14715_v31 = vsel %vm7085_vm7, %v19197_v59, %v19196_v5  ;;  %v5599_v20 = vadd.f32 %v14183_v8, %v14584_v57  ;;  %v19200_v21 = vmax.f32 %v14576_v23, 1.0  ;;  %v6616_v0 = vadd.f32 %v14434_v60, %v6488_v38  ;;  %v19202_v8 = vld [vmem:[#allocation142_spill] sm:$0xff]  ;;  %v14754_v23 = vld [vmem:[%s9861_s8 + $0xe0] sm:$0xff]  ;;  %v9028_v18 = vpop.eup %9027 }
 0x3b5   : > { %5629 = vst.msk [vmem:[#allocation3 + $0x88] sm:$0xff] %vm19193_vm4, %v5596_v29  ;;  %vm19194_vm3 = vmmov %vm19176_vm2  ;;  %v14737_v29 = vld [vmem:[%s9861_s8 + $0xd0] sm:$0xff]  ;;  %v5824_v13 = vadd.f32 %v14186_v9, %v14598_v34  ;;  %v5600_v57 = vadd.f32 %v19202_v8, %v14617_v55  ;;  %v14757_v61 = vld [vmem:[%s9861_s8 + $0xe8] sm:$0xff]  ;;  %v6216_v5 = vmax.f32 %v14730_v25, 1.0  ;;  %v6743_v59 = vsub.f32 0.0, %v6711_v16 }
 0x3b6   : > { %5853 = vst.msk [vmem:[#allocation5 + $0x88] sm:$0xff] %vm19194_vm3, %v5821_v44  ;;  %vm19198_vm13 = vmmov %vm19176_vm2  ;;  %9037 = vlog2.f32 %v19200_v21  ;;  %v19203_v44 = vld [vmem:[#allocation74_spill] sm:$0xff]  ;;  %v19207_v9 = vld [vmem:[#allocation140_spill] sm:$0xff]  ;;  %v9030_v21 = vpop.eup %9029  ;;  %v5827_v16 = vadd.f32 %v14212_v40, %v14688_v6  ;;  %v5828_v40 = vadd.f32 %v14222_v36, %v5383_v62  ;;  %v6116_v62 = vmul.f32 0.6931472, %v9026_v28 }
 0x3b7   : > { %5630 = vst.msk [vmem:[#allocation3 + $0x90] sm:$0xff] %vm19198_vm13, %v5597_v42  ;;  %vm19199_vm8 = vmmov %vm19176_vm2  ;;  %v5825_v1 = vadd.f32 %v19203_v44, %v14630_v11  ;;  %v19204_v42 = vld [vmem:[#allocation67_spill] sm:$0xff]  ;;  %v19206_v60 = vld [vmem:[#allocation90_spill] sm:$0xff]  ;;  %v5826_v34 = vadd.f32 %v19207_v9, %v14655_v53  ;;  %v6215_v11 = vmax.f32 %v14727_v43, 1.0  ;;  %v5603_v43 = vadd.f32 %v14215_v27, %v5095_v37 }
 0x3b8   : > { %5854 = vst.msk [vmem:[#allocation5 + $0x90] sm:$0xff] %vm19199_vm8, %v5822_v58  ;;  %vm19201_vm7 = vmmov %vm19176_vm2  ;;  %vm7092_vm14 = vcmp.lt.s32.totalorder %v19204_v42, 0  ;;  %v5601_v38 = vadd.f32 %v19206_v60, %v14642_v63  ;;  %v5100_v58 = vpop.xlane.xlu1 %5099  ;;  %v14766_v55 = vld [vmem:[%s9861_s8 + $0xf0] sm:$0xff]  ;;  %v19211_v63 = vld [vmem:[#allocation143_spill] sm:$0xff]  ;;  %v14790_v44 = vadd.f32 %v6616_v0, %v6296_v51  ;;  %9039 = vlog2.f32 %v6213_v35 }
 0x3b9   : > { %5631 = vst.msk [vmem:[#allocation3 + $0x98] sm:$0xff] %vm19201_vm7, %v5598_v49  ;;  %vm19205_vm15 = vmmov %vm19176_vm2  ;;  %v5602_v53 = vadd.f32 %v19211_v63, %v14666_v12  ;;  %v5388_v49 = vpop.xlane.xlu0 %5387  ;;  %v5604_v27 = vadd.f32 %v14225_v50, %v5100_v58  ;;  %v19217_v37 = vld [vmem:[#allocation129_spill] sm:$0xff]  ;;  %v6783_v0 = vmul.f32 1.442695, %v6743_v59  ;;  %v19219_v9 = vld [vmem:[#allocation82_spill] sm:$0xff]  ;;  %9041 = vlog2.f32 %v6214_v22 }
 0x3ba   : > { %5855 = vst.msk [vmem:[#allocation5 + $0x98] sm:$0xff] %vm19176_vm2, %v5823_v56  ;;  %vm19208_vm4 = vmmov %vm19176_vm2  ;;  %v6217_v56 = vmax.f32 %v14737_v29, 1.0  ;;  %v6436_v58 = vmul.f32 0.6931472, %v9028_v18  ;;  %v19223_v59 = vld [vmem:[#allocation141_spill] sm:$0xff]  ;;  %v19226_v18 = vld [vmem:[#allocation91_spill] sm:$0xff] }
 0x3bb   : > { %5632 = vst.msk [vmem:[#allocation3 + $0xa0] sm:$0xff] %vm19205_vm15, %v5599_v20  ;;  %vm19209_vm3 = vmmov %vm19176_vm2  ;;  %v6218_v20 = vmax.f32 %v14740_v24, 1.0  ;;  %v19231_v28 = vld [vmem:[#allocation76_spill] sm:$0xff]  ;;  %v6679_v45 = vmax.f32 %v14664_v26, 0.0 }
 0x3bc   : > { %5856 = vst.msk [vmem:[#allocation5 + $0xa0] sm:$0xff] %vm19208_vm4, %v5824_v13  ;;  %vm19210_vm13 = vmmov %vm19176_vm2  ;;  %v14786_v13 = vld [vmem:[%s9852_s22 + $0xf0] sm:$0xff]  ;;  %v5105_v6 = vpop.xlane.xlu1 %5104  ;;  %v19245_v25 = vld [vmem:[#allocation80_spill] sm:$0xff] }
 0x3bd   : > { %5633 = vst.msk [vmem:[#allocation3 + $0xa8] sm:$0xff] %vm19209_vm3, %v5600_v57  ;;  %vm19212_vm8 = vmmov %vm19176_vm2  ;;  %v6781_v57 = vmul.f32 1.442695, %v6742_v54  ;;  %v14800_v54 = vmul.f32 0.6931472, %v19217_v37  ;;  %v5393_v63 = vpop.xlane.xlu0 %5392  ;;  %v5605_v35 = vadd.f32 %v19222_v32, %v5105_v6 }
 0x3be   : > { %5857 = vst.msk [vmem:[#allocation5 + $0xa8] sm:$0xff] %vm19210_vm13, %v5825_v1  ;;  %vm19213_vm7 = vmmov %vm19176_vm2  ;;  %v6044_v1 = vld [vmem:[#allocation3 + $0x68] sm:$0xff] }
 0x3bf   : > { %5634 = vst.msk [vmem:[#allocation3 + $0xb0] sm:$0xff] %vm19212_vm8, %v5601_v38  ;;  %19214 = vst [vmem:[#allocation169_spill] sm:$0xff] %v14790_v44  ;;  %v9032_v38 = vpop.eup %9031  ;;  %9043 = vpow2.f32 %v6781_v57  ;;  %v19228_v57 = vld [vmem:[#allocation34_spill] sm:$0xff] }
 0x3c0   : > { %5858 = vst.msk [vmem:[#allocation5 + $0xb0] sm:$0xff] %vm19213_vm7, %v5826_v34  ;;  %vm19215_vm15 = vmmov %vm19176_vm2  ;;  %v9034_v51 = vpop.eup %9033  ;;  %v5829_v34 = vadd.f32 %v19219_v9, %v5388_v49  ;;  %v6712_v49 = vand.u32 2147483647, %v14790_v44  ;;  %v6438_v37 = vmul.f32 0.6931472, %v9032_v38  ;;  %v5110_v22 = vpop.xlane.xlu1 %5109  ;;  %9045 = vlog2.f32 %v6215_v11  ;;  %v6329_v38 = vld [vmem:[#allocation4 + $0x50] sm:$0xff] }
 0x3c1   : > { %5635 = vst.msk [vmem:[#allocation3 + $0xb8] sm:$0xff] %vm19176_vm2, %v5602_v53  ;;  %vm19216_vm4 = vmmov %vm19176_vm2  ;;  %v14806_v53 = vld [vmem:[%s9852_s22 + $0xf8] sm:$0xff]  ;;  %v9036_v50 = vpop.eup %9035  ;;  %9047 = vpow2.f32 %v6783_v0  ;;  %v6120_v9 = vmul.f32 0.6931472, %v9034_v51  ;;  %v6489_v36 = vadd.f32 %v6436_v58, %v6329_v38  ;;  %v19235_v51 = vld [vmem:[#allocation62_spill] sm:$0xff] }
 0x3c2   : > { %5859 = vst.msk [vmem:[#allocation5 + $0xb8] sm:$0xff] %vm19215_vm15, %v5827_v16  ;;  %19218 = vst [vmem:[#allocation144_spill] sm:$0xff] %v14800_v54  ;;  %v5830_v16 = vadd.f32 %v19223_v59, %v5393_v63  ;;  %v14817_v10 = vpop.eup %9037  ;;  %v19230_v63 = vld [vmem:[#allocation103_spill] sm:$0xff]  ;;  %v6744_v60 = vsub.f32 0.0, %v6712_v49  ;;  %v19236_v0 = vand.u32 3, %v19235_v51  ;;  %v6331_v58 = vld [vmem:[#allocation4 + $0x60] sm:$0xff]  ;;  %9049 = vlog2.f32 %v6216_v5 }
 0x3c3   : > { %5636 = vst.msk [vmem:[#allocation3 + $0xc0] sm:$0xff] %vm19216_vm4, %v5603_v43  ;;  %vm19220_vm3 = vmmov %vm19176_vm2  ;;  %v6118_v43 = vmul.f32 0.6931472, %v9030_v21  ;;  %v6009_v21 = vld [vmem:[#allocation2 + $0x50] sm:$0xff]  ;;  %v5606_v32 = vadd.f32 %v19230_v63, %v5110_v22  ;;  %v6010_v59 = vld [vmem:[#allocation2 + $0x58] sm:$0xff]  ;;  %9051 = vlog2.f32 %v6217_v56  ;;  %v6617_v5 = vadd.f32 %v19245_v25, %v6489_v36 }
 0x3c4   : > { %5860 = vst.msk [vmem:[#allocation5 + $0xc0] sm:$0xff] %vm19220_vm3, %v5828_v40  ;;  %vm19221_vm13 = vmmov %vm19176_vm2  ;;  %v14823_v40 = vmul.f32 0.6931472, %v19226_v18  ;;  %v6169_v11 = vadd.f32 %v6116_v62, %v6009_v21  ;;  %v19232_v18 = vld [vmem:[#allocation164_spill] sm:$0xff]  ;;  %v14844_v21 = vmul.f32 0.6931472, %v14644_v15  ;;  %9053 = vlog2.f32 %v6218_v20 }
 0x3c5   : > { %5637 = vst.msk [vmem:[#allocation3 + $0xc8] sm:$0xff] %vm19221_vm13, %v5604_v27  ;;  %vm19224_vm8 = vmmov %vm19176_vm2  ;;  %v19229_v27 = vld [vmem:[#allocation137_spill] sm:$0xff]  ;;  %v14832_v3 = vmul.f32 0.6931472, %v19232_v18  ;;  %v6011_v62 = vld [vmem:[#allocation2 + $0x60] sm:$0xff] }
 0x3c6   : > { %5861 = vst.msk [vmem:[#allocation5 + $0xc8] sm:$0xff] %vm19224_vm8, %v5829_v34  ;;  %vm19225_vm7 = vmmov %vm19176_vm2  ;;  %v14827_v6 = vadd.f32 %v19229_v27, %v19228_v57  ;;  %v6440_v34 = vmul.f32 0.6931472, %v9036_v50  ;;  %v6170_v57 = vadd.f32 %v6118_v43, %v6010_v59  ;;  %v19237_v50 = vld [vmem:[#allocation43_spill] sm:$0xff]  ;;  %v19240_v49 = vld [vmem:[#allocation54_spill] sm:$0xff]  ;;  %v6171_v63 = vadd.f32 %v6120_v9, %v6011_v62 }
 0x3c7   : > { %5638 = vst.msk [vmem:[#allocation3 + $0xd0] sm:$0xff] %vm19225_vm7, %v5605_v35  ;;  %19227 = vst [vmem:[#allocation150_spill] sm:$0xff] %v14823_v40  ;;  %v5398_v35 = vpop.xlane.xlu0 %5397  ;;  %v14840_v22 = vsel %vm7092_vm14, %v19237_v50, %v19236_v0  ;;  %vm7099_vm3 = vcmp.lt.s32.totalorder %v19240_v49, 0  ;;  %v19241_v43 = vld [vmem:[#allocation132_spill] sm:$0xff]  ;;  %v19243_v59 = vld [vmem:[#allocation99_spill] sm:$0xff] }
 0x3c8   : > { %5862 = vst.msk [vmem:[#allocation5 + $0xd0] sm:$0xff] %vm19176_vm2, %v5830_v16  ;;  %v6330_v16 = vld [vmem:[#allocation4 + $0x58] sm:$0xff]  ;;  %v5831_v41 = vadd.f32 %v19231_v28, %v5398_v35  ;;  %19233 = vst [vmem:[#allocation168_spill] sm:$0xff] %v14832_v3  ;;  %v5115_v28 = vpop.xlane.xlu1 %5114  ;;  %v6364_v35 = vld [vmem:[#allocation5 + $0x68] sm:$0xff]  ;;  %v6076_v0 = vmax.f32 %v6044_v1, 1e-30 }
 0x3c9   : > { %v6490_v27 = vadd.f32 %v6438_v37, %v6330_v16  ;;  %vm19234_vm15 = vmmov %vm19176_vm2  ;;  %19239 = vst [vmem:[#allocation170_spill] sm:$0xff] %v14844_v21  ;;  %v19242_v37 = vand.u32 3, %v19241_v43  ;;  %v5607_v16 = vadd.f32 %v19243_v59, %v5115_v28  ;;  %v19244_v15 = vld [vmem:[#allocation83_spill] sm:$0xff]  ;;  %v6785_v9 = vmul.f32 1.442695, %v6744_v60  ;;  %v19252_v36 = vld [vmem:[#allocation70_spill] sm:$0xff] }
 0x3ca   : > { %5639 = vst.msk [vmem:[#allocation3 + $0xd8] sm:$0xff] %vm19234_vm15, %v5606_v32  ;;  %vm19238_vm4 = vmmov %vm19176_vm2  ;;  %v6491_v32 = vadd.f32 %v6440_v34, %v6331_v58  ;;  %v6297_v51 = vadd.f32 %v19244_v15, %v6169_v11  ;;  %v19246_v50 = vld [vmem:[#allocation63_spill] sm:$0xff]  ;;  %v19247_v34 = vld [vmem:[#allocation77_spill] sm:$0xff]  ;;  %v6396_v29 = vmax.f32 %v6364_v35, 1e-30  ;;  %v19251_v1 = vmax.f32 %v14754_v23, 1.0 }
 0x3cb   : > { %5863 = vst.msk [vmem:[#allocation5 + $0xd8] sm:$0xff] %vm19238_vm4, %v5831_v41  ;;  %v7104_v38 = vsub.s32 0, %v19242_v37  ;;  %v5403_v18 = vpop.xlane.xlu0 %5402  ;;  %v14854_v41 = vpop.eup %9039  ;;  %v6298_v62 = vadd.f32 %v19247_v34, %v6170_v57  ;;  %v19248_v58 = vld [vmem:[#allocation96_spill] sm:$0xff]  ;;  %vm19249_vm14 = vmmov %vm19176_vm2  ;;  %v19253_v11 = vsub.s32 0, %v19252_v36  ;;  %v19254_v57 = vld [vmem:[#allocation69_spill] sm:$0xff] }
 0x3cc   : > { %v5832_v12 = vadd.f32 %v19246_v50, %v5403_v18  ;;  %v14859_v8 = vpop.eup %9041  ;;  %v6618_v28 = vadd.f32 %v19248_v58, %v6490_v27  ;;  %5640 = vst.msk [vmem:[#allocation3 + $0xe0] sm:$0xff] %vm19249_vm14, %v5607_v16  ;;  %vm19250_vm13 = vmmov %vm19176_vm2  ;;  %v5120_v56 = vpop.xlane.xlu1 %5119  ;;  %9055 = vlog2.f32 %v19251_v1  ;;  %v7114_v37 = vsub.s32 0, %v19254_v57  ;;  %v19255_v59 = vld [vmem:[#allocation68_spill] sm:$0xff]  ;;  %v19257_v20 = vld [vmem:[#allocation107_spill] sm:$0xff] }
 0x3cd   : > { %v14872_v60 = vmin.u32 %v19253_v11, %v19252_v36  ;;  %v9044_v27 = vpop.eup %9043  ;;  %v6299_v16 = vadd.f32 %v19255_v59, %v6171_v63  ;;  %v19256_v18 = vld [vmem:[#allocation156_spill] sm:$0xff]  ;;  %v5608_v35 = vadd.f32 %v19257_v20, %v5120_v56  ;;  %v14882_v25 = vadd.f32 %v6617_v5, %v6297_v51  ;;  %v6045_v50 = vld [vmem:[#allocation3 + $0x70] sm:$0xff]  ;;  %v19260_v34 = vld [vmem:[#allocation97_spill] sm:$0xff] }
 0x3ce   : > { %5864 = vst.msk [vmem:[#allocation5 + $0xe0] sm:$0xff] %vm19250_vm13, %v5832_v12  ;;  %v6619_v24 = vadd.f32 %v19256_v18, %v6491_v32  ;;  %v19258_v12 = vmax.f32 %v14757_v61, 1.0  ;;  %v14880_v23 = vpop.eup %9045  ;;  %v14886_v1 = vmul.f32 0.6931472, %v14671_v19  ;;  %v14888_v32 = vadd.f32 %v6618_v28, %v6298_v62  ;;  %vm19263_vm8 = vmmov %vm19176_vm2  ;;  %v19265_v51 = vld [vmem:[#allocation79_spill] sm:$0xff]  ;;  %v6365_v11 = vld [vmem:[#allocation5 + $0x70] sm:$0xff] }
 0x3cf   : > { %v5408_v15 = vpop.xlane.xlu0 %5407  ;;  %19259 = vst [vmem:[#allocation121_spill] sm:$0xff] %v14882_v25  ;;  %v9048_v63 = vpop.eup %9047  ;;  %5641 = vst.msk [vmem:[#allocation3 + $0xe8] sm:$0xff] %vm19263_vm8, %v5608_v35  ;;  %v19264_v61 = vand.u32 3, %v19241_v43  ;;  %v7121_v5 = vsub.s32 0, %v19265_v51  ;;  %v14901_v62 = vmin.u32 %v7114_v37, %v19254_v57  ;;  %v6077_v43 = vmax.f32 %v6045_v50, 1e-30 }
 0x3d0   : > { %9057 = vlog2.f32 %v19258_v12  ;;  %v5833_v58 = vadd.f32 %v19260_v34, %v5408_v15  ;;  %19261 = vst [vmem:[#allocation171_spill] sm:$0xff] %v14886_v1  ;;  %19262 = vst [vmem:[#allocation173_spill] sm:$0xff] %v14888_v32  ;;  %v5125_v19 = vpop.xlane.xlu1 %5124  ;;  %v14903_v28 = vadd.f32 %v6619_v24, %v6299_v16  ;;  %v19268_v59 = vld [vmem:[#allocation56_spill] sm:$0xff]  ;;  %v19269_v20 = vmax.f32 %v14766_v55, 1.0  ;;  %v6046_v15 = vld [vmem:[#allocation3 + $0x78] sm:$0xff] }
 0x3d1   : > { %9059 = vlog2.f32 %v6076_v0  ;;  %v14895_v56 = vsel %vm7099_vm3, %v7104_v38, %v19264_v61  ;;  %v6838_v0 = vadd.f32 1.0, %v9044_v27  ;;  %vm19266_vm7 = vmmov %vm19176_vm2  ;;  %v5609_v18 = vadd.f32 %v19268_v59, %v5125_v19  ;;  %v9050_v27 = vpop.eup %9049  ;;  %v19270_v12 = vld [vmem:[#allocation93_spill] sm:$0xff]  ;;  %v6051_v26 = vld [vmem:[#allocation3 + $0xa0] sm:$0xff] }
 0x3d2   : > { %9061 = vpow2.f32 %v6785_v9  ;;  %5865 = vst.msk [vmem:[#allocation5 + $0xe8] sm:$0xff] %vm19266_vm7, %v5833_v58  ;;  %v17561_v9 = vand.u32 3, %v14872_v60  ;;  %19267 = vst [vmem:[#allocation78_spill] sm:$0xff] %v14903_v28  ;;  %v6713_v35 = vand.u32 2147483647, %v14882_v25  ;;  %v19271_v58 = vmax.f32 %v14769_v47, 1.0  ;;  %v9052_v37 = vpop.eup %9051 }
 0x3d3   : > { %9063 = vlog2.f32 %v6396_v29  ;;  %v5413_v38 = vpop.xlane.xlu0 %5412  ;;  %v6839_v29 = vadd.f32 1.0, %v9048_v63  ;;  %vm7106_vm2 = vcmp.lt.s32.totalorder %v19252_v36, 0  ;;  %v6714_v16 = vand.u32 2147483647, %v14888_v32  ;;  %vm19272_vm15 = vmmov %vm19238_vm4  ;;  %v6367_v25 = vld [vmem:[#allocation5 + $0x80] sm:$0xff] }
 0x3d4   : > { %9065 = vlog2.f32 %v19269_v20  ;;  %v5834_v34 = vadd.f32 %v19270_v12, %v5413_v38  ;;  %v6397_v24 = vmax.f32 %v6365_v11, 1e-30  ;;  %5642 = vst.msk [vmem:[#allocation3 + $0xf0] sm:$0xff] %vm19272_vm15, %v5609_v18  ;;  %vm7113_vm4 = vcmp.lt.s32.totalorder %v19254_v57, 0  ;;  %vm19273_vm3 = vmmov %vm19266_vm7  ;;  %v5130_v50 = vpop.xlane.xlu1 %5129  ;;  %v9054_v11 = vpop.eup %9053  ;;  %v19276_v18 = vld [vmem:[#allocation66_spill] sm:$0xff] }
 0x3d5   : > { %9067 = vlog2.f32 %v19271_v58  ;;  %v14917_v55 = vmin.u32 %v7121_v5, %v19265_v51  ;;  %v14921_v47 = vmul.f32 0.6931472, %v14717_v30  ;;  %v14924_v63 = vmul.f32 0.6931472, %v14817_v10  ;;  %v19277_v12 = vld [vmem:[#allocation86_spill] sm:$0xff]  ;;  %vm19278_vm14 = vmmov %vm19273_vm3 }
 0x3d6   : > { %9069 = vlog2.f32 %v6838_v0  ;;  %5866 = vst.msk [vmem:[#allocation5 + $0xf0] sm:$0xff] %vm19273_vm3, %v5834_v34  ;;  %v7117_v61 = vand.u32 3, %v14901_v62  ;;  %v6715_v19 = vand.u32 2147483647, %v14903_v28  ;;  %v6078_v59 = vmax.f32 %v6046_v15, 1e-30  ;;  %v9056_v0 = vpop.eup %9055  ;;  %vm19279_vm8 = vmmov %vm19273_vm3 }
 0x3d7   : > { %19274 = vst [vmem:[#allocation172_spill] sm:$0xff] %v14921_v47  ;;  %19275 = vst [vmem:[#allocation174_spill] sm:$0xff] %v14924_v63  ;;  %9071 = vlog2.f32 %v6077_v43  ;;  %v5610_v5 = vadd.f32 %v19276_v18, %v5130_v50  ;;  %v5418_v38 = vpop.xlane.xlu0 %5417  ;;  %v6745_v20 = vsub.f32 0.0, %v6713_v35  ;;  %v7111_v30 = vsub.s32 0, %v17561_v9  ;;  %v6366_v28 = vld [vmem:[#allocation5 + $0x78] sm:$0xff]  ;;  %v6369_v63 = vld [vmem:[#allocation5 + $0x90] sm:$0xff] }
 0x3d8   : > { %9073 = vlog2.f32 %v6839_v29  ;;  %v5835_v34 = vadd.f32 %v19277_v12, %v5418_v38  ;;  %v6746_v58 = vsub.f32 0.0, %v6714_v16  ;;  %vm7120_vm13 = vcmp.lt.s32.totalorder %v19265_v51, 0  ;;  %v19283_v16 = vld [vmem:[#allocation148_spill] sm:$0xff]  ;;  %vm19297_vm7 = vmmov %vm19273_vm3 }
 0x3d9   : > { %9075 = vlog2.f32 %v6397_v24  ;;  %5643 = vst.msk [vmem:[#allocation3 + $0xf8] sm:$0xff] %vm19278_vm14, %v5610_v5  ;;  %v7124_v62 = vand.u32 3, %v14917_v55  ;;  %v14937_v29 = vmul.f32 0.6931472, %v14854_v41  ;;  %v14940_v35 = vmul.f32 0.6931472, %v14859_v8 }
 0x3da   : > { %v9058_v10 = vpop.eup %9057  ;;  %5867 = vst.msk [vmem:[#allocation5 + $0xf8] sm:$0xff] %vm19279_vm8, %v5835_v34  ;;  %v14943_v15 = vmul.f32 0.6931472, %v14880_v23  ;;  %v19284_v24 = vmax.f32 %v19283_v16, 1.0  ;;  %v6747_v18 = vsub.f32 0.0, %v6715_v19  ;;  %v7118_v55 = vsub.s32 0, %v7117_v61 }
 0x3db   : > { %v9060_v43 = vpop.eup %9059  ;;  %19280 = vst [vmem:[#allocation146_spill] sm:$0xff] %v14937_v29  ;;  %19281 = vst [vmem:[#allocation153_spill] sm:$0xff] %v14940_v35  ;;  %v14947_v5 = vmul.f32 0.6931472, %v9050_v27  ;;  %v6787_v12 = vmul.f32 1.442695, %v6745_v20 }
 0x3dc   : > { %19282 = vst [vmem:[#allocation175_spill] sm:$0xff] %v14943_v15  ;;  %9077 = vlog2.f32 %v19284_v24  ;;  %v9062_v50 = vpop.eup %9061  ;;  %v14949_v34 = vmul.f32 0.6931472, %v9052_v37  ;;  %v14951_v41 = vmul.f32 0.6931472, %v9054_v11  ;;  %v19288_v8 = vmax.f32 %v14609_v2, 1.0 }
 0x3dd   : > { %9079 = vlog2.f32 %v6078_v59  ;;  %19285 = vst [vmem:[#allocation177_spill] sm:$0xff] %v14947_v5  ;;  %v9064_v38 = vpop.eup %9063  ;;  %v6789_v9 = vmul.f32 1.442695, %v6746_v58  ;;  %v14955_v16 = vmul.f32 0.6931472, %v9056_v0  ;;  %v19290_v19 = vmax.f32 %v14612_v52, 1.0 }
 0x3de   : > { %19286 = vst [vmem:[#allocation131_spill] sm:$0xff] %v14949_v34  ;;  %19287 = vst [vmem:[#allocation176_spill] sm:$0xff] %v14951_v41  ;;  %9081 = vlog2.f32 %v19288_v8  ;;  %v9066_v23 = vpop.eup %9065  ;;  %v7125_v27 = vsub.s32 0, %v7124_v62  ;;  %v6840_v24 = vadd.f32 1.0, %v9062_v50  ;;  %v6122_v32 = vmul.f32 0.6931472, %v9060_v43 }
 0x3df   : > { %19289 = vst [vmem:[#allocation178_spill] sm:$0xff] %v14955_v16  ;;  %9083 = vlog2.f32 %v19290_v19  ;;  %v9068_v59 = vpop.eup %9067  ;;  %v6047_v20 = vld [vmem:[#allocation3 + $0x80] sm:$0xff]  ;;  %v14959_v37 = vmul.f32 0.6931472, %v9058_v10  ;;  %v19292_v11 = vmax.f32 %v14621_v48, 1.0  ;;  %v19293_v58 = vmax.f32 %v14662_v17, 1.0 }
 0x3e0   : > { %v6791_v2 = vmul.f32 1.442695, %v6747_v18  ;;  %v6442_v8 = vmul.f32 0.6931472, %v9064_v38  ;;  %v19294_v0 = vand.u32 3, %v14872_v60  ;;  %v9070_v50 = vpop.eup %9069  ;;  %v6048_v10 = vld [vmem:[#allocation3 + $0x88] sm:$0xff]  ;;  %v14975_v48 = vsel %vm7113_vm4, %v7118_v55, %v7117_v61 }
 0x3e1   : > { %19291 = vst [vmem:[#allocation84_spill] sm:$0xff] %v14959_v37  ;;  %9085 = vlog2.f32 %v19292_v11  ;;  %v6398_v43 = vmax.f32 %v6366_v28, 1e-30  ;;  %v14971_v19 = vmul.f32 0.6931472, %v9066_v23  ;;  %v9072_v18 = vpop.eup %9071  ;;  %v6012_v38 = vld [vmem:[#allocation2 + $0x68] sm:$0xff] }
 0x3e2   : > { %9087 = vlog2.f32 %v19293_v58  ;;  %v14969_v52 = vsel %vm7106_vm2, %v7111_v30, %v19294_v0  ;;  %v6079_v17 = vmax.f32 %v6047_v20, 1e-30  ;;  %v6368_v11 = vld [vmem:[#allocation5 + $0x88] sm:$0xff]  ;;  %v14977_v60 = vmul.f32 0.6931472, %v9068_v59  ;;  %v6049_v61 = vld [vmem:[#allocation3 + $0x90] sm:$0xff] }
 0x3e3   : > { %9089 = vpow2.f32 %v6787_v12  ;;  %19295 = vst [vmem:[#allocation179_spill] sm:$0xff] %v14971_v19  ;;  %v14981_v30 = vsel %vm7120_vm13, %v7125_v27, %v7124_v62  ;;  %v9074_v12 = vpop.eup %9073  ;;  %v6332_v28 = vld [vmem:[#allocation4 + $0x68] sm:$0xff]  ;;  %v6678_v23 = vmax.f32 %v14653_v7, 0.0  ;;  %v6172_v58 = vadd.f32 %v6122_v32, %v6012_v38  ;;  %v6050_v27 = vld [vmem:[#allocation3 + $0x98] sm:$0xff] }
 0x3e4   : > { %9091 = vpow2.f32 %v6789_v9  ;;  %19296 = vst [vmem:[#allocation181_spill] sm:$0xff] %v14977_v60  ;;  %v6399_v0 = vmax.f32 %v6367_v25, 1e-30  ;;  %v9076_v55 = vpop.eup %9075  ;;  %v6878_v14 = vmul.f32 0.6931472, %v9070_v50  ;;  %v6492_v9 = vadd.f32 %v6442_v8, %v6332_v28  ;;  %v6370_v32 = vld [vmem:[#allocation5 + $0x98] sm:$0xff] }
 0x3e5   : > { %9093 = vlog2.f32 %v6840_v24  ;;  %v6080_v20 = vmax.f32 %v6048_v10, 1e-30  ;;  %v6124_v47 = vmul.f32 0.6931472, %v9072_v18  ;;  %v6400_v62 = vmax.f32 %v6368_v11, 1e-30 }
 0x3e6   : > { %9095 = vpow2.f32 %v6791_v2  ;;  %v9078_v59 = vpop.eup %9077  ;;  %v6880_v19 = vmul.f32 0.6931472, %v9074_v12  ;;  %v6081_v25 = vmax.f32 %v6049_v61, 1e-30  ;;  %v14988_v2 = vsel %vm19297_vm7, %v14651_v39, 0.0  ;;  %v19301_v38 = vld [vmem:[#allocation147_spill] sm:$0xff] }
 0x3e7   : > { %9097 = vlog2.f32 %v6398_v43  ;;  %v9080_v60 = vpop.eup %9079  ;;  %19298 = vst [vmem:[#allocation151_spill] sm:$0xff] %v14988_v2  ;;  %v6444_v8 = vmul.f32 0.6931472, %v9076_v55  ;;  %v6401_v50 = vmax.f32 %v6369_v63, 1e-30  ;;  %v19299_v43 = vld [vmem:[#allocation98_spill] sm:$0xff]  ;;  %v14994_v11 = vadd.f32 %v19301_v38, %v6492_v9 }
 0x3e8   : > { %9099 = vlog2.f32 %v6079_v17  ;;  %v9082_v24 = vpop.eup %9081  ;;  %v14991_v18 = vadd.f32 %v19299_v43, %v6172_v58  ;;  %v6082_v17 = vmax.f32 %v6050_v27, 1e-30  ;;  %v6013_v28 = vld [vmem:[#allocation2 + $0x70] sm:$0xff]  ;;  %v14996_v61 = vadd.f32 %v6878_v14, %v6678_v23  ;;  %v6371_v55 = vld [vmem:[#allocation5 + $0xa0] sm:$0xff]  ;;  %v6052_v43 = vld [vmem:[#allocation3 + $0xa8] sm:$0xff] }
 0x3e9   : > { %9101 = vlog2.f32 %v6399_v0  ;;  %v9084_v10 = vpop.eup %9083  ;;  %19302 = vst [vmem:[#allocation180_spill] sm:$0xff] %v14994_v11  ;;  %v6126_v7 = vmul.f32 0.6931472, %v9080_v60  ;;  %v6402_v39 = vmax.f32 %v6370_v32, 1e-30  ;;  %v6333_v63 = vld [vmem:[#allocation4 + $0x70] sm:$0xff]  ;;  %v14998_v44 = vadd.f32 %v6124_v47, %v6013_v28 }
 0x3ea   : > { %19300 = vst [vmem:[#allocation155_spill] sm:$0xff] %v14991_v18  ;;  %9103 = vlog2.f32 %v6080_v20  ;;  %19303 = vst [vmem:[#allocation182_spill] sm:$0xff] %v14996_v61  ;;  %v6083_v58 = vmax.f32 %v6051_v26, 1e-30  ;;  %v19305_v2 = vld [vmem:[#allocation73_spill] sm:$0xff]  ;;  %v15003_v20 = vadd.f32 %v6880_v19, %v6679_v45  ;;  %v15005_v27 = vadd.f32 %v6444_v8, %v6333_v63  ;;  %v19309_v60 = vld [vmem:[#allocation87_spill] sm:$0xff] }
 0x3eb   : > { %v9086_v12 = vpop.eup %9085  ;;  %9105 = vlog2.f32 %v6400_v62  ;;  %19304 = vst [vmem:[#allocation183_spill] sm:$0xff] %v14998_v44  ;;  %v7128_v9 = vsub.s32 0, %v19305_v2  ;;  %v6372_v14 = vld [vmem:[#allocation5 + $0xa8] sm:$0xff]  ;;  %v7135_v23 = vsub.s32 0, %v19309_v60  ;;  %v6014_v32 = vld [vmem:[#allocation2 + $0x78] sm:$0xff]  ;;  %v19315_v19 = vld [vmem:[#allocation92_spill] sm:$0xff] }
 0x3ec   : > { %v9088_v0 = vpop.eup %9087  ;;  %9107 = vlog2.f32 %v6081_v25  ;;  %19307 = vst [vmem:[#allocation101_spill] sm:$0xff] %v15003_v20  ;;  %19308 = vst [vmem:[#allocation184_spill] sm:$0xff] %v15005_v27  ;;  %v6403_v47 = vmax.f32 %v6371_v55, 1e-30  ;;  %v15010_v25 = vmul.f32 0.6931472, %v9078_v59 }
 0x3ed   : > { %v15001_v38 = vpop.eup %9089  ;;  %9109 = vlog2.f32 %v6401_v50  ;;  %v19312_v26 = vld [vmem:[#allocation81_spill] sm:$0xff]  ;;  %v6084_v45 = vmax.f32 %v6052_v43, 1e-30  ;;  %v7149_v8 = vsub.s32 0, %v19315_v19  ;;  %v6404_v63 = vmax.f32 %v6372_v14, 1e-30 }
 0x3ee   : > { %19306 = vst [vmem:[#allocation185_spill] sm:$0xff] %v15001_v38  ;;  %v15008_v62 = vpop.eup %9091  ;;  %9111 = vlog2.f32 %v6082_v17  ;;  %19311 = vst [vmem:[#allocation187_spill] sm:$0xff] %v15010_v25  ;;  %v7142_v28 = vsub.s32 0, %v19312_v26  ;;  %v15015_v38 = vadd.f32 %v6126_v7, %v6014_v32  ;;  %v19317_v17 = vld [vmem:[#allocation88_spill] sm:$0xff]  ;;  %v15024_v20 = vmul.f32 0.6931472, %v9082_v24 }
 0x3ef   : > { %19310 = vst [vmem:[#allocation186_spill] sm:$0xff] %v15008_v62  ;;  %v15013_v61 = vpop.eup %9093  ;;  %9113 = vlog2.f32 %v6402_v39  ;;  %v15021_v62 = vmin.u32 %v7128_v9, %v19305_v2  ;;  %v7156_v59 = vsub.s32 0, %v19317_v17  ;;  %vm7127_vm2 = vcmp.lt.s32.totalorder %v19305_v2, 0  ;;  %v19320_v39 = vld [vmem:[#allocation118_spill] sm:$0xff]  ;;  %v19323_v24 = vld [vmem:[#allocation112_spill] sm:$0xff] }
 0x3f0   : > { %19313 = vst [vmem:[#allocation189_spill] sm:$0xff] %v15013_v61  ;;  %19314 = vst [vmem:[#allocation188_spill] sm:$0xff] %v15015_v38  ;;  %v15018_v50 = vpop.eup %9095  ;;  %9115 = vlog2.f32 %v6083_v58  ;;  %v19319_v61 = vmax.f32 %v14698_v4, 1.0  ;;  %v15030_v7 = vmin.u32 %v7135_v23, %v19309_v60  ;;  %v7163_v43 = vsub.s32 0, %v19320_v39  ;;  %v19326_v25 = vld [vmem:[#allocation122_spill] sm:$0xff] }
 0x3f1   : > { %19316 = vst [vmem:[#allocation190_spill] sm:$0xff] %v15018_v50  ;;  %v9098_v55 = vpop.eup %9097  ;;  %19318 = vst [vmem:[#allocation145_spill] sm:$0xff] %v15024_v20  ;;  %v15033_v14 = vmul.f32 0.6931472, %v9084_v10  ;;  %v19322_v9 = vmax.f32 %v14786_v13, 1.0  ;;  %v15038_v32 = vmin.u32 %v7142_v28, %v19312_v26  ;;  %v7170_v50 = vsub.s32 0, %v19323_v24 }
 0x3f2   : > { %9117 = vlog2.f32 %v19319_v61  ;;  %v9100_v58 = vpop.eup %9099  ;;  %v15041_v61 = vmul.f32 0.6931472, %v9086_v12  ;;  %v19325_v20 = vmax.f32 %v14806_v53, 1.0  ;;  %v8498_v23 = vmin.u32 %v7149_v8, %v19315_v19 }
 0x3f3   : > { %19321 = vst [vmem:[#allocation191_spill] sm:$0xff] %v15033_v14  ;;  %9119 = vlog2.f32 %v19322_v9  ;;  %v9102_v4 = vpop.eup %9101  ;;  %v7177_v11 = vsub.s32 0, %v19326_v25  ;;  %v6446_v14 = vmul.f32 0.6931472, %v9098_v55  ;;  %v15047_v18 = vmul.f32 0.6931472, %v9088_v0 }
 0x3f4   : > { %19324 = vst [vmem:[#allocation193_spill] sm:$0xff] %v15041_v61  ;;  %9121 = vlog2.f32 %v19325_v20  ;;  %v9104_v10 = vpop.eup %9103  ;;  %v7131_v13 = vand.u32 3, %v15021_v62  ;;  %v8499_v28 = vmin.u32 %v7156_v59, %v19317_v17  ;;  %v6128_v1 = vmul.f32 0.6931472, %v9100_v58 }
 0x3f5   : > { %19327 = vst [vmem:[#allocation192_spill] sm:$0xff] %v15047_v18  ;;  %v9106_v9 = vpop.eup %9105  ;;  %vm7134_vm15 = vcmp.lt.s32.totalorder %v19309_v60, 0  ;;  %v7138_v12 = vand.u32 3, %v15030_v7  ;;  %v8500_v53 = vmin.u32 %v7163_v43, %v19320_v39  ;;  %v6448_v8 = vmul.f32 0.6931472, %v9102_v4  ;;  %v6334_v18 = vld [vmem:[#allocation4 + $0x78] sm:$0xff] }
 0x3f6   : > { %v9108_v20 = vpop.eup %9107  ;;  %9123 = vlog2.f32 %v6403_v47  ;;  %v7145_v61 = vand.u32 3, %v15038_v32  ;;  %v8501_v0 = vmin.u32 %v7170_v50, %v19323_v24  ;;  %vm7141_vm4 = vcmp.lt.s32.totalorder %v19312_v26, 0  ;;  %v6015_v7 = vld [vmem:[#allocation2 + $0x80] sm:$0xff]  ;;  %v19401_v60 = vld [vmem:[#allocation123_spill] sm:$0xff] }
 0x3f7   : > { %v9110_v55 = vpop.eup %9109  ;;  %9125 = vlog2.f32 %v6084_v45  ;;  %v7152_v62 = vand.u32 3, %v8498_v23  ;;  %v8502_v59 = vmin.u32 %v7177_v11, %v19326_v25  ;;  %v15060_v3 = vadd.f32 %v6446_v14, %v6334_v18  ;;  %v6335_v32 = vld [vmem:[#allocation4 + $0x80] sm:$0xff]  ;;  %v6058_v26 = vld [vmem:[#allocation3 + $0xd8] sm:$0xff] }
 0x3f8   : > { %v15058_v58 = vpop.eup %9111  ;;  %9127 = vlog2.f32 %v6404_v63  ;;  %v7132_v43 = vsub.s32 0, %v7131_v13  ;;  %v7159_v47 = vand.u32 3, %v8499_v28  ;;  %v15064_v50 = vadd.f32 %v6128_v1, %v6015_v7 }
 0x3f9   : > { %19328 = vst [vmem:[#allocation194_spill] sm:$0xff] %v15060_v3  ;;  %v15062_v4 = vpop.eup %9113  ;;  %v15066_v37 = vmul.f32 0.6931472, %v9104_v10  ;;  %v7139_v45 = vsub.s32 0, %v7138_v12  ;;  %v7166_v40 = vand.u32 3, %v8500_v53  ;;  %v15070_v11 = vadd.f32 %v6448_v8, %v6335_v32  ;;  %v19339_v32 = vld [vmem:[#allocation95_spill] sm:$0xff] }
 0x3fa   : > { %19329 = vst [vmem:[#allocation195_spill] sm:$0xff] %v15062_v4  ;;  %19330 = vst [vmem:[#allocation197_spill] sm:$0xff] %v15064_v50  ;;  %v15068_v23 = vpop.eup %9115  ;;  %v15072_v16 = vmul.f32 0.6931472, %v9106_v9  ;;  %v7146_v18 = vsub.s32 0, %v7145_v61  ;;  %v7173_v14 = vand.u32 3, %v8501_v0  ;;  %v15080_v10 = vsel %vm7127_vm2, %v7132_v43, %v7131_v13 }
 0x3fb   : > { %19331 = vst [vmem:[#allocation196_spill] sm:$0xff] %v15066_v37  ;;  %19332 = vst [vmem:[#allocation198_spill] sm:$0xff] %v15068_v23  ;;  %v15074_v41 = vmul.f32 0.6931472, %v9108_v20  ;;  %v15076_v28 = vmul.f32 0.6931472, %v9110_v55  ;;  %v15086_v8 = vsel %vm7134_vm15, %v7139_v45, %v7138_v12 }
 0x3fc   : > { %19333 = vst [vmem:[#allocation102_spill] sm:$0xff] %v15070_v11  ;;  %19334 = vst [vmem:[#allocation199_spill] sm:$0xff] %v15072_v16  ;;  %v9118_v63 = vpop.eup %9117  ;;  %v7153_v34 = vsub.s32 0, %v7152_v62  ;;  %v7180_v1 = vand.u32 3, %v8502_v59  ;;  %vm7148_vm3 = vcmp.lt.s32.totalorder %v19315_v19, 0  ;;  %vm7155_vm14 = vcmp.lt.s32.totalorder %v19317_v17, 0 }
 0x3fd   : > { %19335 = vst [vmem:[#allocation201_spill] sm:$0xff] %v15074_v41  ;;  %19336 = vst [vmem:[#allocation200_spill] sm:$0xff] %v15076_v28  ;;  %v9120_v7 = vpop.eup %9119  ;;  %v7160_v9 = vsub.s32 0, %v7159_v47  ;;  %vm7162_vm13 = vcmp.lt.s32.totalorder %v19320_v39, 0  ;;  %v7167_v20 = vsub.s32 0, %v7166_v40  ;;  %vm7169_vm8 = vcmp.lt.s32.totalorder %v19323_v24, 0 }
 0x3fe   : > { %v9122_v53 = vpop.eup %9121  ;;  %v15090_v0 = vmul.f32 0.6931472, %v9118_v63  ;;  %v15094_v13 = vsel %vm7141_vm4, %v7146_v18, %v7145_v61  ;;  %v7174_v55 = vsub.s32 0, %v7173_v14  ;;  %v15097_v59 = vmul.f32 0.6931472, %v9120_v7  ;;  %v19342_v61 = vld [vmem:[#allocation89_spill] sm:$0xff] }
 0x3ff   : > { %v15099_v43 = vsel %vm7148_vm3, %v7153_v34, %v7152_v62  ;;  %v7181_v12 = vsub.s32 0, %v7180_v1  ;;  %v15104_v5 = vmul.f32 0.6931472, %v9122_v53  ;;  %v15108_v63 = vsel %vm7155_vm14, %v7160_v9, %v7159_v47  ;;  %v19353_v9 = vld [vmem:[#allocation40_spill] sm:$0xff]  ;;  %v19355_v53 = vld [vmem:[#allocation39_spill] sm:$0xff]  ;;  %v6060_v11 = vld [vmem:[#allocation3 + $0xe8] sm:$0xff] }
 0x400   : > { %19337 = vst [vmem:[#allocation202_spill] sm:$0xff] %v15090_v0  ;;  %19338 = vst [vmem:[#allocation203_spill] sm:$0xff] %v15097_v59  ;;  %v15102_v45 = vpop.eup %9123  ;;  %v15116_v34 = vsel %vm7162_vm13, %v7167_v20, %v7166_v40  ;;  %vm7231_vm7 = vcmp.lt.s32.totalorder %v19339_v32, 0  ;;  %v15125_v47 = vsel %vm7169_vm8, %v7174_v55, %v7173_v14  ;;  %vm7232_vm15 = vcmp.lt.s32.totalorder %v19342_v61, 0  ;;  %v19358_v55 = vld [vmem:[#allocation85_spill] sm:$0xff]  ;;  %v19412_v14 = vld [vmem:[#allocation126_spill] sm:$0xff] }
 0x401   : > { %19340 = vst [vmem:[#allocation205_spill] sm:$0xff] %v15102_v45  ;;  %19341 = vst [vmem:[#allocation204_spill] sm:$0xff] %v15104_v5  ;;  %v15112_v18 = vpop.eup %9125  ;;  %vm19345_vm13 = vcmp.lt.s32.totalorder %v19326_v25, 0  ;;  %vm19346_vm10 = vcmp.ne.s32.totalorder %v19339_v32, 0  ;;  %vm19349_vm2 = vcmp.ne.s32.totalorder %v19342_v61, 0  ;;  %v19352_v7 = vmov 0.0  }
 0x402   : > { %19343 = vst [vmem:[#allocation206_spill] sm:$0xff] %v15112_v18  ;;  %v15121_v62 = vpop.eup %9127  ;;  %v15132_v40 = vsel %vm19345_vm13, %v7181_v12, %v7180_v1  ;;  %vm15143_vm0 = vmand %vm7231_vm7, %vm19346_vm10  ;;  %vm19354_vm14 = vnez %v19353_v9  ;;  %vm19356_vm8 = vnez %v19355_v53  ;;  %v7853_v12 = vadd.f32 %v19358_v55, %v14827_v6  ;;  %v19359_v5 = vld [vmem:[#allocation138_spill] sm:$0xff]  ;;  %v19400_v18 = vld [vmem:[#allocation64_spill] sm:$0xff] }
 0x403   : > { %19344 = vst [vmem:[#allocation149_spill] sm:$0xff] %v15121_v62  ;;  %vm15151_vm9 = vmand %vm7232_vm15, %vm19349_vm2  ;;  %vm19360_vm10 = vcmask 7168   ;;  %vm19361_vm13 = vcmp.ne.s32.totalorder %v14715_v31, 0  ;;  %vm19362_vm3 = vcmp.lt.s32.totalorder %v14715_v31, 0  ;;  %vm19366_vm2 = vcmp.ne.s32.totalorder %v14840_v22, 0  ;;  %v6059_v6 = vld [vmem:[#allocation3 + $0xe0] sm:$0xff] }
 0x404   : > { %vm19357_vm1 = vmand %vm19354_vm14, %vm19356_vm8  ;;  %v7854_v59 = vsel %vm19360_vm10, %v19359_v5, 0.0  ;;  %vm19367_vm15 = vcmp.lt.s32.totalorder %v14840_v22, 0  ;;  %vm19370_vm7 = vcmp.ne.s32.totalorder %v14895_v56, 0  ;;  %vm19371_vm6 = vcmp.lt.s32.totalorder %v14895_v56, 0  ;;  %v6018_v24 = vld [vmem:[#allocation2 + $0x98] sm:$0xff] }
 0x405   : > { %v8516_v20 = vsel %vm19357_vm1, 1.0, %v19352_v7  ;;  %vm15172_vm4 = vmand %vm19362_vm3, %vm19361_vm13  ;;  %v7855_v5 = vadd.f32 %v7854_v59, %v7853_v12  ;;  %vm19375_vm8 = vcmp.lt.s32.totalorder %v14969_v52, 0  ;;  %v7295_v55 = vadd.s32 4, %v19339_v32  ;;  %v6053_v7 = vld [vmem:[#allocation3 + $0xb0] sm:$0xff]  ;;  %v6020_v59 = vld [vmem:[#allocation2 + $0xa8] sm:$0xff] }
 0x406   : > { %vm19365_vm1 = vmmov %vm19360_vm10  ;;  %v7296_v15 = vadd.s32 4, %v19342_v61  ;;  %v15225_v35 = vadd.s32 4, %v14715_v31  ;;  %v15228_v29 = vadd.s32 4, %v14840_v22  ;;  %v15242_v3 = vadd.s32 4, %v14969_v52 }
 0x407   : > { %v7856_v9 = vsel %vm19365_vm1, %v8516_v20, 0.0  ;;  %vm15184_vm14 = vmand %vm19367_vm15, %vm19366_vm2  ;;  %vm19374_vm1 = vcmp.ne.s32.totalorder %v14969_v52, 0  ;;  %v15245_v27 = vadd.s32 4, %v14975_v48  ;;  %v15248_v28 = vadd.s32 4, %v14981_v30 }
 0x408   : > { %vm15197_vm11 = vmand %vm19371_vm6, %vm19370_vm7  ;;  %v15213_v12 = vadd.f32 %v7856_v9, %v7855_v5  ;;  %vm19379_vm6 = vcmp.ne.s32.totalorder %v14975_v48, 0  ;;  %vm19380_vm7 = vcmp.lt.s32.totalorder %v14975_v48, 0  ;;  %v15231_v9 = vadd.s32 4, %v14895_v56  ;;  %v6054_v5 = vld [vmem:[#allocation3 + $0xb8] sm:$0xff] }
 0x409   : > { %vm15208_vm13 = vmand %vm19375_vm8, %vm19374_vm1  ;;  %vm19383_vm8 = vcmp.ne.s32.totalorder %v14981_v30, 0  ;;  %vm19384_vm1 = vcmp.lt.s32.totalorder %v14981_v30, 0  ;;  %v15251_v16 = vadd.s32 4, %v15080_v10  ;;  %v19389_v62 = vmov 0 }
 0x40a   : > { %19378 = vst [vmem:[#allocation207_spill] sm:$0xff] %v15213_v12  ;;  %vm15219_vm2 = vmand %vm19380_vm7, %vm19379_vm6  ;;  %v961_v12 = vpop.f32.mrb[0].mxu1  ;;  %vm19387_vm7 = vcmp.ne.s32.totalorder %v15080_v10, 0  ;;  %v15262_v54 = vadd.s32 4, %v15086_v8  ;;  %v15265_v25 = vadd.s32 4, %v15094_v13  ;;  %v15268_v45 = vadd.s32 4, %v15099_v43 }
 0x40b   : > { %vm15237_vm6 = vmand %vm19384_vm1, %vm19383_vm8  ;;  %v6055_v12 = vld [vmem:[#allocation3 + $0xc0] sm:$0xff]  ;;  %v963_v21 = vpop.f32.mrb[1].mxu1  ;;  %vm19388_vm8 = vcmp.lt.s32.totalorder %v15080_v10, 0  ;;  %v15271_v4 = vadd.s32 4, %v15108_v63  ;;  %vm19391_vm3 = vcmp.ne.s32.totalorder %v15086_v8, 0  ;;  %v15282_v50 = vadd.s32 4, %v15116_v34 }
 0x40c   : > { %vm15257_vm1 = vmand %vm19388_vm8, %vm19387_vm7  ;;  %v6056_v21 = vld [vmem:[#allocation3 + $0xc8] sm:$0xff]  ;;  %v967_v46 = vpop.f32.mrb[2].mxu1  ;;  %vm19392_vm7 = vcmp.lt.s32.totalorder %v15086_v8, 0  ;;  %v15285_v19 = vadd.s32 4, %v15125_v47  ;;  %v15288_v38 = vadd.s32 4, %v15132_v40  ;;  %vm19395_vm15 = vcmp.ne.s32.totalorder %v15094_v13, 0 }
 0x40d   : > { %v19390_v62 = vsel %vm15257_vm1, 4294967295, %v19389_v62  ;;  %vm15277_vm8 = vmand %vm19392_vm7, %vm19391_vm3  ;;  %v6085_v39 = vmax.f32 %v6053_v7, 1e-30  ;;  %v969_v44 = vpop.f32.mrb[3].mxu1  ;;  %vm19396_vm10 = vcmp.lt.s32.totalorder %v15094_v13, 0  ;;  %v7327_v17 = vsel %vm15143_vm0, %v7295_v55, %v19339_v32  ;;  %v6057_v7 = vld [vmem:[#allocation3 + $0xd0] sm:$0xff] }
 0x40e   : > { %vm15294_vm1 = vmand %vm19396_vm10, %vm19395_vm15  ;;  %v7328_v41 = vsel %vm15151_vm9, %v7296_v15, %v19342_v61  ;;  %v7329_v44 = vsel %vm15172_vm4, %v15225_v35, %v14715_v31  ;;  %v6086_v37 = vmax.f32 %v6054_v5, 1e-30  ;;  %v19402_v23 = vsel %vm13867_vm5, %v19400_v18, %v19401_v60  ;;  %v19405_v32 = vld [vmem:[#allocation44_spill] sm:$0xff]  ;;  %v19411_v18 = vld [vmem:[#allocation139_spill] sm:$0xff] }
 0x40f   : > { %vm15313_vm10 = vcmp.eq.s32.totalorder %v19402_v23, 0  ;;  %vm19406_vm9 = vcmp.ne.s32.totalorder %v15099_v43, 0  ;;  %vm19407_vm3 = vcmp.lt.s32.totalorder %v15099_v43, 0  ;;  %v19408_v15 = vmov 0  ;;  %v6061_v5 = vld [vmem:[#allocation3 + $0xf0] sm:$0xff]  ;;  %v19477_v46 = vld [vmem:[#allocation88_spill] sm:$0xff] }
 0x410   : > { %vm15322_vm15 = vmand %vm19407_vm3, %vm19406_vm9  ;;  %v7330_v31 = vsel %vm15184_vm14, %v15228_v29, %v14840_v22  ;;  %v7331_v35 = vsel %vm15197_vm11, %v15231_v9, %v14895_v56  ;;  %v7332_v60 = vsel %vm15208_vm13, %v15242_v3, %v14969_v52  ;;  %v6087_v23 = vmax.f32 %v6055_v12, 1e-30  ;;  %v19416_v22 = vld [vmem:[#allocation48_spill] sm:$0xff]  ;;  %v19430_v9 = vld [vmem:[#allocation47_spill] sm:$0xff] }
 0x411   : > { %v19409_v15 = vsel %vm15322_vm15, 4294967295, %v19408_v15  ;;  %v19413_v1 = vsel %vm13893_vm12, %v19411_v18, %v19412_v14  ;;  %vm19417_vm11 = vcmp.ne.s32.totalorder %v15108_v63, 0  ;;  %vm19418_vm14 = vcmp.lt.s32.totalorder %v15108_v63, 0  ;;  %v6019_v56 = vld [vmem:[#allocation2 + $0xa0] sm:$0xff] }
 0x412   : > { %vm15343_vm5 = vcmp.eq.s32.totalorder %v19413_v1, 0  ;;  %vm15352_vm7 = vmand %vm19418_vm14, %vm19417_vm11  ;;  %v7333_v3 = vsel %vm15219_vm2, %v15245_v27, %v14975_v48  ;;  %v7334_v29 = vsel %vm15237_vm6, %v15248_v28, %v14981_v30  ;;  %vm19421_vm12 = vnez %v19390_v62  ;;  %v6373_v1 = vld [vmem:[#allocation5 + $0xb0] sm:$0xff]  ;;  %v19463_v62 = vld [vmem:[#allocation87_spill] sm:$0xff] }
 0x413   : > { %v7335_v52 = vsel %vm19421_vm12, %v15251_v16, %v15080_v10  ;;  %v6088_v20 = vmax.f32 %v6056_v21, 1e-30  ;;  %vm19422_vm13 = vcmp.ne.s32.totalorder %v15116_v34, 0  ;;  %vm19423_vm9 = vcmp.lt.s32.totalorder %v15116_v34, 0  ;;  %v19456_v30 = vld [vmem:[#allocation198_spill] sm:$0xff] }
 0x414   : > { %vm15372_vm3 = vmand %vm19423_vm9, %vm19422_vm13  ;;  %vm15384_vm2 = vcmp.eq.s32.totalorder %v7327_v17, 0  ;;  %v6089_v28 = vmax.f32 %v6057_v7, 1e-30  ;;  %9129 = vlog2.f32 %v6085_v39  ;;  %vm15392_vm6 = vcmp.eq.s32.totalorder %v7328_v41, 0  ;;  %v973_v17 = vpop.f32.mrb[4].mxu1  ;;  %v19437_v7 = vld [vmem:[#allocation53_spill] sm:$0xff] }
 0x415   : > { %v6090_v12 = vmax.f32 %v6058_v26, 1e-30  ;;  %9131 = vlog2.f32 %v6086_v37  ;;  %vm19431_vm14 = vcmp.ne.s32.totalorder %v15125_v47, 0  ;;  %vm19432_vm13 = vcmp.lt.s32.totalorder %v15125_v47, 0  ;;  %v6062_v37 = vld [vmem:[#allocation3 + $0xf8] sm:$0xff]  ;;  %v975_v61 = vpop.f32.mrb[5].mxu1 }
 0x416   : > { %vm15401_vm9 = vmand %vm19432_vm13, %vm19431_vm14  ;;  %vm15409_vm4 = vcmp.eq.s32.totalorder %v7329_v44, 0  ;;  %v19435_v21 = vmov 0  ;;  %v6091_v26 = vmax.f32 %v6059_v6, 1e-30  ;;  %9133 = vlog2.f32 %v6087_v23  ;;  %v979_v6 = vpop.f32.mrb[6].mxu1  ;;  %v6017_v44 = vld [vmem:[#allocation2 + $0x90] sm:$0xff] }
 0x417   : > { %v19436_v21 = vsel %vm15409_vm4, 4294967295, %v19435_v21  ;;  %vm19438_vm14 = vcmp.ne.s32.totalorder %v15132_v40, 0  ;;  %vm19439_vm13 = vcmp.lt.s32.totalorder %v15132_v40, 0  ;;  %vm15426_vm4 = vcmp.eq.s32.totalorder %v7330_v31, 0  ;;  %v6374_v31 = vld [vmem:[#allocation5 + $0xb8] sm:$0xff]  ;;  %v981_v0 = vpop.f32.mrb[7].mxu1 }
 0x418   : > { %vm15418_vm0 = vmand %vm19439_vm13, %vm19438_vm14  ;;  %v19442_v14 = vmov 0  ;;  %v6092_v23 = vmax.f32 %v6060_v11, 1e-30  ;;  %9135 = vlog2.f32 %v6088_v20  ;;  %vm15431_vm15 = vcmp.eq.s32.totalorder %v7331_v35, 0  ;;  %v6375_v6 = vld [vmem:[#allocation5 + $0xc0] sm:$0xff]  ;;  %v6016_v20 = vld [vmem:[#allocation2 + $0x88] sm:$0xff] }
 0x419   : > { %v19443_v14 = vsel %vm15426_vm4, 4294967295, %v19442_v14  ;;  %v19444_v17 = vmov 0  ;;  %v6093_v61 = vmax.f32 %v6061_v5, 1e-30  ;;  %9137 = vlog2.f32 %v6089_v28  ;;  %v15459_v5 = vld [vmem:[#allocation5 + $0xd0] sm:$0xff]  ;;  %v19514_v39 = vld [vmem:[#allocation105_spill] sm:$0xff] }
 0x41a   : > { %v19445_v17 = vsel %vm15431_vm15, 4294967295, %v19444_v17  ;;  %vm15442_vm11 = vcmp.eq.s32.totalorder %v7332_v60, 0  ;;  %v6094_v11 = vmax.f32 %v6062_v37, 1e-30  ;;  %9139 = vlog2.f32 %v6090_v12  ;;  %v15457_v60 = vld [vmem:[#allocation5 + $0xc8] sm:$0xff]  ;;  %v15461_v12 = vld [vmem:[#allocation5 + $0xd8] sm:$0xff] }
 0x41b   : > { %vm15452_vm4 = vcmp.eq.s32.totalorder %v7333_v3, 0  ;;  %v19448_v0 = vmov 0  ;;  %9141 = vlog2.f32 %v6091_v26  ;;  %v6405_v37 = vmax.f32 %v6373_v1, 1e-30  ;;  %v985_v26 = vpop.f32.mrb[8].mxu1  ;;  %v19559_v1 = vld [vmem:[#allocation199_spill] sm:$0xff] }
 0x41c   : > { %v19449_v0 = vsel %vm15452_vm4, 4294967295, %v19448_v0  ;;  %vm15463_vm13 = vcmp.eq.s32.totalorder %v7334_v29, 0  ;;  %v19450_v41 = vmov 0  ;;  %v6134_v3 = vmul.f32 0.6931472, %v15058_v58  ;;  %v19455_v29 = vld [vmem:[#allocation73_spill] sm:$0xff] }
 0x41d   : > { %v19451_v41 = vsel %vm15463_vm13, 4294967295, %v19450_v41  ;;  %9143 = vlog2.f32 %v6092_v23  ;;  %v6406_v28 = vmax.f32 %v6374_v31, 1e-30  ;;  %vm15474_vm14 = vcmp.eq.s32.totalorder %v7335_v52, 0  ;;  %v987_v51 = vpop.f32.mrb[9].mxu1  ;;  %v19471_v31 = vld [vmem:[#allocation81_spill] sm:$0xff] }
 0x41e   : > { %19452 = vst [vmem:[#allocation209_spill] sm:$0xff] %v19451_v41  ;;  %v6136_v48 = vmul.f32 0.6931472, %v19456_v30  ;;  %9145 = vlog2.f32 %v6093_v61  ;;  %v6407_v41 = vmax.f32 %v6375_v6, 1e-30  ;;  %vm19457_vm15 = vcmp.lt.s32.totalorder %v19405_v32, 16  ;;  %v15502_v23 = vpop.eup %9129 }
 0x41f   : > { %vm15484_vm13 = vmand %vm15313_vm10, %vm19457_vm15  ;;  %v19460_v16 = vsel %vm15277_vm8, %v15262_v54, %v15086_v8  ;;  %v19464_v51 = vld [vmem:[#allocation206_spill] sm:$0xff]  ;;  %9147 = vlog2.f32 %v6094_v11  ;;  %v15499_v30 = vld [vmem:[#allocation5 + $0xe0] sm:$0xff]  ;;  %v6408_v2 = vmax.f32 %v15457_v60, 1e-30  ;;  %vm19465_vm10 = vcmp.lt.s32.totalorder %v19416_v22, 16 }
 0x420   : > { %vm15493_vm12 = vcmp.eq.s32.totalorder %v19460_v16, 0  ;;  %v6138_v52 = vmul.f32 0.6931472, %v19464_v51  ;;  %vm15508_vm8 = vmand %vm15343_vm5, %vm19465_vm10  ;;  %v19468_v8 = vsel %vm15294_vm1, %v15265_v25, %v15094_v13  ;;  %v19469_v61 = vmov 0  ;;  %v19472_v11 = vld [vmem:[#allocation196_spill] sm:$0xff]  ;;  %v19473_v60 = vld [vmem:[#allocation201_spill] sm:$0xff]  ;;  %v15527_v51 = vpop.eup %9131 }
 0x421   : > { %vm15517_vm15 = vcmp.eq.s32.totalorder %v19468_v8, 0  ;;  %v6176_v6 = vadd.f32 %v19472_v11, %v6016_v20  ;;  %v6177_v53 = vadd.f32 %v19473_v60, %v6017_v44  ;;  %v15524_v26 = vld [vmem:[#allocation5 + $0xe8] sm:$0xff]  ;;  %v6409_v16 = vmax.f32 %v15459_v5, 1e-30  ;;  %v19481_v5 = vld [vmem:[#allocation183_spill] sm:$0xff]  ;;  %v991_v11 = vpop.f32.mrb[10].mxu1  ;;  %v9134_v60 = vpop.eup %9133 }
 0x422   : > { %v19470_v61 = vsel %vm15517_vm15, 4294967295, %v19469_v61  ;;  %9149 = vlog2.f32 %v6405_v37  ;;  %v19474_v25 = vsel %vm15352_vm7, %v15271_v4, %v15108_v63  ;;  %vm19478_vm10 = vcmp.lt.s32.totalorder %v19430_v9, 16  ;;  %v19482_v4 = vld [vmem:[#allocation157_spill] sm:$0xff]  ;;  %v15552_v37 = vld [vmem:[#allocation5 + $0xf0] sm:$0xff]  ;;  %v9136_v11 = vpop.eup %9135  ;;  %v19662_v54 = vld [vmem:[#allocation84_spill] sm:$0xff] }
 0x423   : > { %vm15534_vm1 = vcmp.eq.s32.totalorder %v19474_v25, 0  ;;  %vm15543_vm4 = vmand %vm15384_vm2, %vm19478_vm10  ;;  %v6178_v20 = vadd.f32 %v6134_v3, %v6018_v24  ;;  %v15550_v63 = vadd.f32 %v19482_v4, %v19481_v5  ;;  %v6410_v8 = vmax.f32 %v15461_v12, 1e-30  ;;  %v19487_v3 = vld [vmem:[#allocation118_spill] sm:$0xff]  ;;  %v19491_v24 = vld [vmem:[#allocation188_spill] sm:$0xff]  ;;  %v993_v4 = vpop.f32.mrb[11].mxu1 }
 0x424   : > { %9151 = vlog2.f32 %v6406_v28  ;;  %v19484_v27 = vsel %vm15372_vm3, %v15282_v50, %v15116_v34  ;;  %v19485_v25 = vmov 0  ;;  %vm19488_vm10 = vcmp.lt.s32.totalorder %v19437_v7, 16  ;;  %v19492_v50 = vld [vmem:[#allocation109_spill] sm:$0xff]  ;;  %v19583_v44 = vld [vmem:[#allocation194_spill] sm:$0xff] }
 0x425   : > { %19483 = vst [vmem:[#allocation208_spill] sm:$0xff] %v15550_v63  ;;  %vm15560_vm7 = vcmp.eq.s32.totalorder %v19484_v27, 0  ;;  %vm15569_vm15 = vmand %vm15392_vm6, %vm19488_vm10  ;;  %v19489_v12 = vmov 0  ;;  %v6179_v28 = vadd.f32 %v6136_v48, %v6019_v56  ;;  %v15576_v34 = vadd.f32 %v19492_v50, %v19491_v24  ;;  %v19498_v63 = vld [vmem:[#allocation92_spill] sm:$0xff]  ;;  %v9138_v56 = vpop.eup %9137  ;;  %v15799_v13 = vld [vmem:[%s9861_s8 + $0x88] sm:$0xff] }
 0x426   : > { %v19486_v25 = vsel %vm15560_vm7, 4294967295, %v19485_v25  ;;  %v19490_v12 = vsel %vm15569_vm15, 4294967295, %v19489_v12  ;;  %v6411_v5 = vmax.f32 %v15499_v30, 1e-30  ;;  %9153 = vlog2.f32 %v6407_v41  ;;  %v19503_v41 = vld [vmem:[#allocation197_spill] sm:$0xff]  ;;  %v19504_v30 = vld [vmem:[#allocation159_spill] sm:$0xff]  ;;  %v9140_v4 = vpop.eup %9139 }
 0x427   : > { %19493 = vst [vmem:[#allocation210_spill] sm:$0xff] %v15576_v34  ;;  %vm19494_vm3 = vnez %v19409_v15  ;;  %vm19499_vm5 = vcmp.lt.s32.totalorder %v19169_v33, 16  ;;  %vm19500_vm2 = vnez %v19436_v21  ;;  %v19501_v48 = vmov 0  ;;  %v19509_v50 = vld [vmem:[#allocation112_spill] sm:$0xff]  ;;  %v15865_v27 = vld [vmem:[%s9861_s8 + $0x98] sm:$0xff] }
 0x428   : > { %v19495_v55 = vsel %vm19494_vm3, %v15268_v45, %v15099_v43  ;;  %vm15593_vm15 = vmand %vm19500_vm2, %vm19499_vm5  ;;  %v6180_v15 = vadd.f32 %v6138_v52, %v6020_v59  ;;  %v15600_v43 = vadd.f32 %v19504_v30, %v19503_v41  ;;  %v6412_v45 = vmax.f32 %v15524_v26, 1e-30  ;;  %v15628_v26 = vld [vmem:[#allocation5 + $0xf8] sm:$0xff]  ;;  %v19525_v30 = vld [vmem:[#allocation205_spill] sm:$0xff] }
 0x429   : > { %vm15584_vm6 = vcmp.eq.s32.totalorder %v19495_v55, 0  ;;  %v19502_v48 = vsel %vm15593_vm15, 4294967295, %v19501_v48  ;;  %9155 = vlog2.f32 %v6408_v2  ;;  %v19506_v21 = vsel %vm15401_vm9, %v15285_v19, %v15125_v47  ;;  %v19516_v19 = vld [vmem:[#allocation163_spill] sm:$0xff]  ;;  %v15898_v24 = vld [vmem:[%s9861_s8 + $0xa0] sm:$0xff] }
 0x42a   : > { %19505 = vst [vmem:[#allocation211_spill] sm:$0xff] %v15600_v43  ;;  %vm15608_vm5 = vcmp.eq.s32.totalorder %v19506_v21, 0  ;;  %vm19510_vm3 = vcmp.lt.s32.totalorder %v19204_v42, 16  ;;  %vm19511_vm7 = vnez %v19443_v14  ;;  %v15623_v2 = vadd.f32 %v19514_v39, %v6176_v6  ;;  %v19522_v6 = vld [vmem:[#allocation108_spill] sm:$0xff]  ;;  %v6336_v39 = vld [vmem:[#allocation4 + $0x88] sm:$0xff] }
 0x42b   : > { %vm15617_vm10 = vmand %vm19511_vm7, %vm19510_vm3  ;;  %v15626_v47 = vadd.f32 %v19516_v19, %v6177_v53  ;;  %v6413_v59 = vmax.f32 %v15552_v37, 1e-30  ;;  %9157 = vlog2.f32 %v6409_v16  ;;  %vm19518_vm9 = vcmp.lt.s32.totalorder %v19240_v49, 16  ;;  %v19524_v53 = vld [vmem:[#allocation195_spill] sm:$0xff]  ;;  %v997_v16 = vpop.f32.mrb[12].mxu1  ;;  %v9142_v37 = vpop.eup %9141  ;;  %v6337_v19 = vld [vmem:[#allocation4 + $0x90] sm:$0xff] }
 0x42c   : > { %19515 = vst [vmem:[#allocation213_spill] sm:$0xff] %v15623_v2  ;;  %vm19519_vm7 = vnez %v19445_v17  ;;  %v19520_v14 = vmov 0  ;;  %v15641_v55 = vadd.f32 %v19522_v6, %v6178_v20  ;;  %v6454_v41 = vmul.f32 0.6931472, %v19524_v53  ;;  %v19536_v53 = vld [vmem:[#allocation144_spill] sm:$0xff]  ;;  %v999_v16 = vpop.f32.mrb[13].mxu1 }
 0x42d   : > { %19517 = vst [vmem:[#allocation212_spill] sm:$0xff] %v15626_v47  ;;  %vm15635_vm3 = vmand %vm19519_vm7, %vm19518_vm9  ;;  %v6456_v21 = vmul.f32 0.6931472, %v19525_v30  ;;  %9159 = vlog2.f32 %v6410_v8  ;;  %vm19526_vm2 = vcmp.gt.s32.totalorder %v19405_v32, 16  ;;  %v19529_v20 = vsel %vm15418_vm0, %v15288_v38, %v15132_v40  ;;  %v19532_v8 = vld [vmem:[#allocation122_spill] sm:$0xff]  ;;  %v19538_v40 = vld [vmem:[#allocation149_spill] sm:$0xff] }
 0x42e   : > { %v19521_v14 = vsel %vm15635_vm3, 4294967295, %v19520_v14  ;;  %19523 = vst [vmem:[#allocation214_spill] sm:$0xff] %v15641_v55  ;;  %vm15649_vm9 = vmor %vm15484_vm13, %vm19526_vm2  ;;  %vm15658_vm7 = vcmp.eq.s32.totalorder %v19529_v20, 0  ;;  %vm19533_vm3 = vcmp.lt.s32.totalorder %v19252_v36, 16  ;;  %v19534_v58 = vmov 0  ;;  %v9144_v20 = vpop.eup %9143  ;;  %v19546_v16 = vld [vmem:[#allocation79_spill] sm:$0xff] }
 0x42f   : > { %vm15667_vm13 = vmand %vm15442_vm11, %vm19533_vm3  ;;  %v6140_v18 = vmul.f32 0.6931472, %v15502_v23  ;;  %v15674_v38 = vadd.f32 %v19536_v53, %v6179_v28  ;;  %v6458_v30 = vmul.f32 0.6931472, %v19538_v40  ;;  %9161 = vlog2.f32 %v6411_v5  ;;  %v15696_v53 = vpop.eup %9145  ;;  %v6338_v40 = vld [vmem:[#allocation4 + $0x98] sm:$0xff]  ;;  %v19560_v2 = vld [vmem:[#allocation200_spill] sm:$0xff] }
 0x430   : > { %v19535_v58 = vsel %vm15667_vm13, 4294967295, %v19534_v58  ;;  %vm19539_vm0 = vcmp.lt.s32.totalorder %v19254_v57, 16  ;;  %vm19540_vm15 = vnez %v19449_v0  ;;  %vm19543_vm2 = vcmp.gt.s32.totalorder %v19416_v22, 16  ;;  %v6030_v17 = vld [vmem:[#allocation2 + $0xf8] sm:$0xff] }
 0x431   : > { %19537 = vst [vmem:[#allocation152_spill] sm:$0xff] %v15674_v38  ;;  %vm15681_vm11 = vmand %vm19540_vm15, %vm19539_vm0  ;;  %v19544_v23 = vmov 0  ;;  %v6142_v28 = vmul.f32 0.6931472, %v15527_v51  ;;  %v6144_v5 = vmul.f32 0.6931472, %v9134_v60  ;;  %9163 = vlog2.f32 %v6412_v45  ;;  %v15710_v45 = vpop.eup %9147 }
 0x432   : > { %vm15690_vm13 = vmor %vm15508_vm8, %vm19543_vm2  ;;  %v6414_v0 = vmax.f32 %v15628_v26, 1e-30  ;;  %vm19547_vm15 = vcmp.lt.s32.totalorder %v19546_v16, 16  ;;  %v19548_v38 = vld [vmem:[#allocation209_spill] sm:$0xff]  ;;  %v6146_v51 = vmul.f32 0.6931472, %v9136_v11  ;;  %9165 = vlog2.f32 %v6413_v59 }
 0x433   : > { %v19545_v23 = vsel %vm15690_vm13, 4294967295, %v19544_v23  ;;  %vm19549_vm0 = vnez %v19548_v38  ;;  %v6148_v55 = vmul.f32 0.6931472, %v9138_v56  ;;  %v19552_v60 = vld [vmem:[#allocation170_spill] sm:$0xff]  ;;  %v6339_v26 = vld [vmem:[#allocation4 + $0xa0] sm:$0xff]  ;;  %vm19554_vm2 = vcmp.lt.s32.totalorder %v19455_v29, 16  ;;  %v15735_v29 = vpop.eup %9149 }
 0x434   : > { %vm15702_vm3 = vmand %vm19549_vm0, %vm19547_vm15  ;;  %v15708_v47 = vadd.f32 %v19552_v60, %v6180_v15  ;;  %v19555_v38 = vmov 0  ;;  %v15722_v11 = vld [vmem:[%s9852_s22 + $0x70] sm:$0xff]  ;;  %v6150_v59 = vmul.f32 0.6931472, %v9140_v4  ;;  %v6340_v60 = vld [vmem:[#allocation4 + $0xa8] sm:$0xff]  ;;  %v15731_v43 = vadd.f32 %v19560_v2, %v6337_v19 }
 0x435   : > { %vm15716_vm13 = vmand %vm15474_vm14, %vm19554_vm2  ;;  %19558 = vst [vmem:[#allocation216_spill] sm:$0xff] %v15722_v11  ;;  %v15726_v15 = vld [vmem:[%s9861_s8 + $0x70] sm:$0xff]  ;;  %v15733_v34 = vadd.f32 %v6454_v41, %v6338_v40  ;;  %vm19561_vm14 = vcmp.lt.s32.totalorder %v19463_v62, 16  ;;  %v19562_v11 = vmov 0  ;;  %v15747_v4 = vld [vmem:[%s9852_s22 + $0x78] sm:$0xff]  ;;  %v15754_v40 = vadd.f32 %v6456_v21, %v6339_v26 }
 0x436   : > { %19553 = vst [vmem:[#allocation215_spill] sm:$0xff] %v15708_v47  ;;  %v19556_v38 = vsel %vm15716_vm13, 4294967295, %v19555_v38  ;;  %v6021_v56 = vld [vmem:[#allocation2 + $0xb0] sm:$0xff]  ;;  %v6496_v47 = vadd.f32 %v19559_v1, %v6336_v39  ;;  %vm15741_vm2 = vmand %vm15493_vm12, %vm19561_vm14  ;;  %v15751_v2 = vld [vmem:[%s9861_s8 + $0x78] sm:$0xff]  ;;  %v6152_v19 = vmul.f32 0.6931472, %v9142_v37  ;;  %vm19567_vm14 = vnez %v19470_v61 }
 0x437   : > { %19557 = vst [vmem:[#allocation217_spill] sm:$0xff] %v19556_v38  ;;  %v1003_v38 = vpop.f32.mrb[14].mxu1  ;;  %v19563_v11 = vsel %vm15741_vm2, 4294967295, %v19562_v11  ;;  %19565 = vst [vmem:[#allocation219_spill] sm:$0xff] %v15747_v4  ;;  %v6022_v41 = vld [vmem:[#allocation2 + $0xb8] sm:$0xff]  ;;  %v6023_v39 = vld [vmem:[#allocation2 + $0xc0] sm:$0xff]  ;;  %v6181_v10 = vadd.f32 %v6140_v18, %v6021_v56  ;;  %9167 = vlog2.f32 %v6414_v0  ;;  %vm19592_vm0 = vnez %v19490_v12 }
 0x438   : > { %19564 = vst [vmem:[#allocation218_spill] sm:$0xff] %v19563_v11  ;;  %v15756_v38 = vadd.f32 %v6458_v30, %v6340_v60  ;;  %v1005_v1 = vpop.f32.mrb[15].mxu1  ;;  %v15758_v11 = vpop.eup %9151  ;;  %vm19566_vm12 = vcmp.lt.s32.totalorder %v19471_v31, 16  ;;  %v19568_v4 = vmov 0  ;;  %v15770_v37 = vld [vmem:[%s9852_s22 + $0x80] sm:$0xff]  ;;  %v6024_v18 = vld [vmem:[#allocation2 + $0xc8] sm:$0xff]  ;;  %v6182_v61 = vadd.f32 %v6142_v28, %v6022_v41 }
 0x439   : > { %vm15764_vm8 = vmand %vm19567_vm14, %vm19566_vm12  ;;  %19571 = vst [vmem:[#allocation220_spill] sm:$0xff] %v15770_v37  ;;  %v15774_v21 = vld [vmem:[%s9861_s8 + $0x80] sm:$0xff]  ;;  %v6025_v30 = vld [vmem:[#allocation2 + $0xd0] sm:$0xff]  ;;  %v6154_v26 = vmul.f32 0.6931472, %v9144_v20  ;;  %v6183_v56 = vadd.f32 %v6144_v5, %v6023_v39  ;;  %v9154_v60 = vpop.eup %9153  ;;  %vm19573_vm12 = vcmp.lt.s32.totalorder %v19477_v46, 16  ;;  %v6184_v0 = vadd.f32 %v6146_v51, %v6024_v18 }
 0x43a   : > { %v19569_v4 = vsel %vm15764_vm8, 4294967295, %v19568_v4  ;;  %19572 = vst [vmem:[#allocation222_spill] sm:$0xff] %v15774_v21  ;;  %vm15781_vm14 = vmand %vm15534_vm1, %vm19573_vm12  ;;  %v19574_v1 = vmov 0  ;;  %vm19577_vm2 = vcmp.gt.s32.totalorder %v19430_v9, 16  ;;  %v15795_v28 = vld [vmem:[%s9852_s22 + $0x88] sm:$0xff]  ;;  %v6026_v5 = vld [vmem:[#allocation2 + $0xd8] sm:$0xff]  ;;  %v6185_v41 = vadd.f32 %v6148_v55, %v6025_v30 }
 0x43b   : > { %19570 = vst [vmem:[#allocation221_spill] sm:$0xff] %v19569_v4  ;;  %v19575_v1 = vsel %vm15781_vm14, 4294967295, %v19574_v1  ;;  %vm15790_vm15 = vmor %vm15543_vm4, %vm19577_vm2  ;;  %v19581_v39 = vld [vmem:[#allocation184_spill] sm:$0xff]  ;;  %v19584_v37 = vld [vmem:[#allocation161_spill] sm:$0xff]  ;;  %v9156_v4 = vpop.eup %9155  ;;  %vm19586_vm4 = vcmp.lt.s32.totalorder %v19487_v3, 16  ;;  %vm19587_vm2 = vnez %v19486_v25  ;;  %vm19591_vm1 = vcmp.gt.s32.totalorder %v19437_v7, 16 }
 0x43c   : > { %19576 = vst [vmem:[#allocation154_spill] sm:$0xff] %v19575_v1  ;;  %19580 = vst [vmem:[#allocation223_spill] sm:$0xff] %v15795_v28  ;;  %v19582_v1 = vld [vmem:[#allocation158_spill] sm:$0xff]  ;;  %v15808_v21 = vadd.f32 %v19584_v37, %v19583_v44  ;;  %v19588_v28 = vmov 0  ;;  %v6027_v37 = vld [vmem:[#allocation2 + $0xe0] sm:$0xff]  ;;  %v6186_v30 = vadd.f32 %v6150_v59, %v6026_v5  ;;  %v1009_v3 = vpop.f32.mrb[16].mxu1 }
 0x43d   : > { %v15804_v46 = vadd.f32 %v19582_v1, %v19581_v39  ;;  %vm15814_vm12 = vmand %vm19587_vm2, %vm19586_vm4  ;;  %v15828_v51 = vld [vmem:[%s9852_s22 + $0x90] sm:$0xff]  ;;  %v6156_v18 = vmul.f32 0.6931472, %v15696_v53  ;;  %v19597_v12 = vld [vmem:[#allocation160_spill] sm:$0xff]  ;;  %vm19604_vm13 = vcmp.gt.s32.totalorder %v19169_v33, 16  ;;  %vm19605_vm4 = vnez %v19502_v48 }
 0x43e   : > { %19585 = vst [vmem:[#allocation225_spill] sm:$0xff] %v15808_v21  ;;  %v19589_v28 = vsel %vm15814_vm12, 4294967295, %v19588_v28  ;;  %vm15823_vm14 = vmor %vm19592_vm0, %vm19591_vm1  ;;  %v15832_v25 = vld [vmem:[%s9861_s8 + $0x90] sm:$0xff]  ;;  %v9158_v21 = vpop.eup %9157  ;;  %vm19601_vm0 = vcmp.lt.s32.totalorder %v19498_v63, 16  ;;  %v15861_v3 = vld [vmem:[%s9852_s22 + $0x98] sm:$0xff]  ;;  %v6187_v5 = vadd.f32 %v6152_v19, %v6027_v37  ;;  %vm19616_vm12 = vcmp.gt.s32.totalorder %v19204_v42, 16 }
 0x43f   : > { %19590 = vst [vmem:[#allocation224_spill] sm:$0xff] %v19589_v28  ;;  %19595 = vst [vmem:[#allocation226_spill] sm:$0xff] %v15828_v51  ;;  %v19596_v1 = vld [vmem:[#allocation102_spill] sm:$0xff]  ;;  %v19602_v51 = vmov 0  ;;  %v6028_v53 = vld [vmem:[#allocation2 + $0xe8] sm:$0xff]  ;;  %vm19634_vm2 = vcmp.lt.s32.totalorder %v19532_v8, 16 }
 0x440   : > { %v15838_v39 = vadd.f32 %v19597_v12, %v19596_v1  ;;  %v19599_v44 = vld [vmem:[#allocation162_spill] sm:$0xff]  ;;  %vm15847_vm1 = vmand %vm15584_vm6, %vm19601_vm0  ;;  %19608 = vst [vmem:[#allocation228_spill] sm:$0xff] %v15861_v3  ;;  %v6158_v59 = vmul.f32 0.6931472, %v15710_v45  ;;  %v19611_v12 = vld [vmem:[#allocation165_spill] sm:$0xff]  ;;  %v19614_v3 = vmov 0  ;;  %v6188_v19 = vadd.f32 %v6154_v26, %v6028_v53 }
 0x441   : > { %v15841_v28 = vadd.f32 %v19599_v44, %v6496_v47  ;;  %v19603_v51 = vsel %vm15847_vm1, 4294967295, %v19602_v51  ;;  %vm15856_vm8 = vmor %vm19605_vm4, %vm19604_vm13  ;;  %v19609_v1 = vld [vmem:[#allocation146_spill] sm:$0xff]  ;;  %v15874_v44 = vadd.f32 %v19611_v12, %v15731_v43  ;;  %vm19613_vm13 = vcmp.lt.s32.totalorder %v19509_v50, 16  ;;  %v15894_v45 = vld [vmem:[%s9852_s22 + $0xa0] sm:$0xff] }
 0x442   : > { %19598 = vst [vmem:[#allocation227_spill] sm:$0xff] %v15838_v39  ;;  %v15870_v48 = vadd.f32 %v19609_v1, %v6181_v10  ;;  %v9160_v39 = vpop.eup %9159  ;;  %vm15880_vm4 = vmand %vm15608_vm5, %vm19613_vm13  ;;  %v19619_v10 = vld [vmem:[#allocation153_spill] sm:$0xff]  ;;  %v19621_v37 = vld [vmem:[#allocation175_spill] sm:$0xff]  ;;  %v6460_v52 = vmul.f32 0.6931472, %v15735_v29  ;;  %v6190_v35 = vadd.f32 %v6158_v59, %v6030_v17 }
 0x443   : > { %19600 = vst [vmem:[#allocation229_spill] sm:$0xff] %v15841_v28  ;;  %19612 = vst [vmem:[#allocation231_spill] sm:$0xff] %v15874_v44  ;;  %v1011_v28 = vpop.f32.mrb[17].mxu1  ;;  %v19615_v3 = vsel %vm15880_vm4, 4294967295, %v19614_v3  ;;  %v15905_v1 = vadd.f32 %v19621_v37, %v6183_v56  ;;  %v9162_v12 = vpop.eup %9161  ;;  %v15917_v44 = vld [vmem:[%s9852_s22 + $0xa8] sm:$0xff]  ;;  %v19629_v53 = vld [vmem:[#allocation131_spill] sm:$0xff] }
 0x444   : > { %19610 = vst [vmem:[#allocation230_spill] sm:$0xff] %v15870_v48  ;;  %vm15889_vm6 = vmor %vm15617_vm10, %vm19616_vm12  ;;  %v15902_v28 = vadd.f32 %v19619_v10, %v6182_v61  ;;  %vm19623_vm10 = vcmp.gt.s32.totalorder %v19240_v49, 16  ;;  %vm19624_vm12 = vnez %v19521_v14  ;;  %v19625_v48 = vmov 0  ;;  %v15921_v26 = vld [vmem:[%s9861_s8 + $0xa8] sm:$0xff]  ;;  %v6029_v61 = vld [vmem:[#allocation2 + $0xf0] sm:$0xff] }
 0x445   : > { %19622 = vst [vmem:[#allocation232_spill] sm:$0xff] %v15905_v1  ;;  %vm15912_vm13 = vmor %vm19624_vm12, %vm19623_vm10  ;;  %v19627_v56 = vld [vmem:[#allocation177_spill] sm:$0xff]  ;;  %v15928_v10 = vadd.f32 %v19629_v53, %v6185_v41  ;;  %v6462_v14 = vmul.f32 0.6931472, %v15758_v11  ;;  %v6464_v37 = vmul.f32 0.6931472, %v9154_v60  ;;  %v9164_v1 = vpop.eup %9163  ;;  %v6189_v11 = vadd.f32 %v6156_v18, %v6029_v61 }
 0x446   : > { %19620 = vst [vmem:[#allocation233_spill] sm:$0xff] %v15902_v28  ;;  %v19626_v48 = vsel %vm15912_vm13, 4294967295, %v19625_v48  ;;  %v15925_v29 = vadd.f32 %v19627_v56, %v6184_v0  ;;  %vm19631_vm10 = vcmp.lt.s32.totalorder %v19405_v32, 16  ;;  %v19632_v28 = vmov 0  ;;  %vm15943_vm5 = vmand %vm15658_vm7, %vm19634_vm2  ;;  %v19641_v60 = vld [vmem:[#allocation176_spill] sm:$0xff]  ;;  %v1015_v53 = vpop.f32.mrb[18].mxu1 }
 0x447   : > { %19630 = vst [vmem:[#allocation235_spill] sm:$0xff] %v15928_v10  ;;  %vm15935_vm12 = vmand %vm15649_vm9, %vm19631_vm10  ;;  %vm19637_vm4 = vcmp.gt.s32.totalorder %v19252_v36, 16  ;;  %vm19638_vm13 = vnez %v19535_v58  ;;  %v15957_v41 = vadd.f32 %v19641_v60, %v6186_v30  ;;  %v6466_v6 = vmul.f32 0.6931472, %v9156_v4  ;;  %v9166_v10 = vpop.eup %9165  ;;  %v15976_v4 = vld [vmem:[%s9852_s22 + $0xb0] sm:$0xff]  ;;  %v16011_v59 = vld [vmem:[%s9861_s8 + $0xb8] sm:$0xff] }
 0x448   : > { %19628 = vst [vmem:[#allocation234_spill] sm:$0xff] %v15925_v29  ;;  %v19633_v28 = vsel %vm15935_vm12, 4294967295, %v19632_v28  ;;  %vm15952_vm1 = vmor %vm19638_vm13, %vm19637_vm4  ;;  %v6468_v56 = vmul.f32 0.6931472, %v9158_v21  ;;  %vm19643_vm9 = vcmp.gt.s32.totalorder %v19254_v57, 16  ;;  %vm19646_vm2 = vcmp.lt.s32.totalorder %v19416_v22, 16 }
 0x449   : > { %19642 = vst [vmem:[#allocation237_spill] sm:$0xff] %v15957_v41  ;;  %vm15963_vm7 = vmor %vm15681_vm11, %vm19643_vm9  ;;  %vm19647_vm4 = vnez %v19545_v23  ;;  %v19648_v18 = vmov 0  ;;  %v15980_v21 = vld [vmem:[%s9861_s8 + $0xb0] sm:$0xff]  ;;  %v6470_v60 = vmul.f32 0.6931472, %v9160_v39  ;;  %v1017_v41 = vpop.f32.mrb[19].mxu1 }
 0x44a   : > { %vm15971_vm13 = vmand %vm19647_vm4, %vm19646_vm2  ;;  %v19651_v30 = vld [vmem:[#allocation178_spill] sm:$0xff]  ;;  %vm19654_vm9 = vcmp.gt.s32.totalorder %v19546_v16, 16  ;;  %v19655_v29 = vmov 0  ;;  %vm19657_vm4 = vcmp.lt.s32.totalorder %v19430_v9, 16  ;;  %v19658_v39 = vmov 0  ;;  %v6342_v17 = vld [vmem:[#allocation4 + $0xb8] sm:$0xff] }
 0x44b   : > { %v19649_v18 = vsel %vm15971_vm13, 4294967295, %v19648_v18  ;;  %v15984_v61 = vadd.f32 %v19651_v30, %v6187_v5  ;;  %v6341_v22 = vld [vmem:[#allocation4 + $0xb0] sm:$0xff]  ;;  %vm15994_vm2 = vmor %vm15702_vm3, %vm19654_vm9  ;;  %v16015_v5 = vadd.f32 %v19662_v54, %v6188_v19  ;;  %v6343_v9 = vld [vmem:[#allocation4 + $0xc0] sm:$0xff]  ;;  %v6472_v41 = vmul.f32 0.6931472, %v9162_v12 }
 0x44c   : > { %19650 = vst [vmem:[#allocation236_spill] sm:$0xff] %v19649_v18  ;;  %v19653_v23 = vld [vmem:[#allocation150_spill] sm:$0xff]  ;;  %v19656_v29 = vsel %vm15994_vm2, 4294967295, %v19655_v29  ;;  %vm16002_vm10 = vmand %vm15790_vm15, %vm19657_vm4  ;;  %v6501_v20 = vadd.f32 %v6460_v52, %v6341_v22  ;;  %v19664_v30 = vld [vmem:[#allocation168_spill] sm:$0xff]  ;;  %vm19671_vm11 = vcmp.lt.s32.totalorder %v19437_v7, 16  ;;  %v19672_v19 = vmov 0 }
 0x44d   : > { %19652 = vst [vmem:[#allocation238_spill] sm:$0xff] %v15984_v61  ;;  %v15988_v53 = vadd.f32 %v19653_v23, %v15733_v34  ;;  %v19659_v39 = vsel %vm16002_vm10, 4294967295, %v19658_v39  ;;  %v16007_v34 = vld [vmem:[%s9852_s22 + $0xb8] sm:$0xff]  ;;  %19663 = vst [vmem:[#allocation240_spill] sm:$0xff] %v16015_v5  ;;  %v16019_v23 = vadd.f32 %v19664_v30, %v15754_v40  ;;  %v19665_v61 = vld [vmem:[#allocation73_spill] sm:$0xff]  ;;  %v19679_v7 = vmov 0 }
 0x44e   : > { %19660 = vst [vmem:[#allocation239_spill] sm:$0xff] %v19659_v39  ;;  %19661 = vst [vmem:[#allocation241_spill] sm:$0xff] %v16007_v34  ;;  %vm19666_vm15 = vcmp.gt.s32.totalorder %v19665_v61, 16  ;;  %v19667_v39 = vld [vmem:[#allocation217_spill] sm:$0xff]  ;;  %v19669_v34 = vmov 0  ;;  %v16038_v52 = vld [vmem:[%s9852_s22 + $0xc0] sm:$0xff]  ;;  %v6502_v54 = vadd.f32 %v6462_v14, %v6342_v17  ;;  %v6503_v30 = vadd.f32 %v6464_v37, %v6343_v9 }
 0x44f   : > { %vm19668_vm9 = vnez %v19667_v39  ;;  %vm16033_vm3 = vmand %vm15823_vm14, %vm19671_vm11  ;;  %19675 = vst [vmem:[#allocation243_spill] sm:$0xff] %v16038_v52  ;;  %v16042_v40 = vld [vmem:[%s9861_s8 + $0xc0] sm:$0xff]  ;;  %v6344_v55 = vld [vmem:[#allocation4 + $0xc8] sm:$0xff]  ;;  %v6474_v39 = vmul.f32 0.6931472, %v9164_v1  ;;  %v9168_v52 = vpop.eup %9167  ;;  %vm19683_vm14 = vcmp.gt.s32.totalorder %v19463_v62, 16 }
 0x450   : > { %vm16025_vm4 = vmor %vm19668_vm9, %vm19666_vm15  ;;  %v19673_v19 = vsel %vm16033_vm3, 4294967295, %v19672_v19  ;;  %vm19676_vm9 = vcmp.gt.f32.partialorder %v15726_v15, 0.5  ;;  %v19677_v12 = vld [vmem:[#allocation216_spill] sm:$0xff]  ;;  %v6345_v22 = vld [vmem:[#allocation4 + $0xd0] sm:$0xff]  ;;  %v19689_v1 = vmov 0  ;;  %v19885_v18 = vmov 0 }
 0x451   : > { %v19670_v34 = vsel %vm16025_vm4, 4294967295, %v19669_v34  ;;  %19674 = vst [vmem:[#allocation242_spill] sm:$0xff] %v19673_v19  ;;  %vm19678_vm4 = vcmp.gt.f32.partialorder %v19677_v12, 0.5  ;;  %v19682_v5 = vld [vmem:[#allocation171_spill] sm:$0xff]  ;;  %v19684_v15 = vld [vmem:[#allocation218_spill] sm:$0xff]  ;;  %v19686_v12 = vmov 0 }
 0x452   : > { %vm16049_vm10 = vmand %vm19678_vm4, %vm19676_vm9  ;;  %v16055_v19 = vadd.f32 %v19682_v5, %v15756_v38  ;;  %vm19685_vm11 = vnez %v19684_v15  ;;  %vm19688_vm4 = vcmp.lt.s32.totalorder %v19169_v33, 16  ;;  %v16074_v38 = vld [vmem:[%s9852_s22 + $0xc8] sm:$0xff]  ;;  %v19695_v37 = vld [vmem:[#allocation219_spill] sm:$0xff]  ;;  %v19697_v33 = vmov 0 }
 0x453   : > { %v19680_v7 = vsel %vm16049_vm10, 4294967295, %v19679_v7  ;;  %vm16061_vm0 = vmor %vm19685_vm11, %vm19683_vm14  ;;  %19692 = vst [vmem:[#allocation246_spill] sm:$0xff] %v16074_v38  ;;  %v16078_v14 = vld [vmem:[%s9861_s8 + $0xc8] sm:$0xff]  ;;  %vm19694_vm11 = vcmp.gt.f32.partialorder %v15751_v2, 0.5  ;;  %v19700_v47 = vld [vmem:[#allocation179_spill] sm:$0xff]  ;;  %v6504_v15 = vadd.f32 %v6466_v6, %v6344_v55  ;;  %v1021_v38 = vpop.f32.mrb[20].mxu1 }
 0x454   : > { %19681 = vst [vmem:[#allocation245_spill] sm:$0xff] %v19680_v7  ;;  %v19687_v12 = vsel %vm16061_vm0, 4294967295, %v19686_v12  ;;  %vm16069_vm9 = vmand %vm15856_vm8, %vm19688_vm4  ;;  %vm19696_vm0 = vcmp.gt.f32.partialorder %v19695_v37, 0.5  ;;  %v16090_v5 = vadd.f32 %v19700_v47, %v6189_v11  ;;  %v6346_v17 = vld [vmem:[#allocation4 + $0xd8] sm:$0xff]  ;;  %v6476_v9 = vmul.f32 0.6931472, %v9166_v10 }
 0x455   : > { %v19690_v1 = vsel %vm16069_vm9, 4294967295, %v19689_v1  ;;  %19693 = vst [vmem:[#allocation247_spill] sm:$0xff] %v16078_v14  ;;  %vm16085_vm3 = vmand %vm19696_vm0, %vm19694_vm11  ;;  %vm19702_vm8 = vcmp.gt.s32.totalorder %v19471_v31, 16  ;;  %v19703_v14 = vld [vmem:[#allocation221_spill] sm:$0xff]  ;;  %v19705_v2 = vmov 0  ;;  %v16101_v37 = vld [vmem:[%s9852_s22 + $0xd0] sm:$0xff] }
 0x456   : > { %19691 = vst [vmem:[#allocation244_spill] sm:$0xff] %v19690_v1  ;;  %v19698_v33 = vsel %vm16085_vm3, 4294967295, %v19697_v33  ;;  %19701 = vst [vmem:[#allocation248_spill] sm:$0xff] %v16090_v5  ;;  %v6505_v1 = vadd.f32 %v6468_v56, %v6345_v22  ;;  %vm19704_vm4 = vnez %v19703_v14  ;;  %v16105_v11 = vld [vmem:[%s9861_s8 + $0xd0] sm:$0xff]  ;;  %v19712_v6 = vld [vmem:[#allocation220_spill] sm:$0xff]  ;;  %v19714_v56 = vmov 0 }
 0x457   : > { %19699 = vst [vmem:[#allocation249_spill] sm:$0xff] %v19698_v33  ;;  %vm16096_vm15 = vmor %vm19704_vm4, %vm19702_vm8  ;;  %v19710_v10 = vld [vmem:[#allocation222_spill] sm:$0xff]  ;;  %vm19713_vm9 = vcmp.gt.f32.partialorder %v19712_v6, 0.5  ;;  %v19717_v55 = vld [vmem:[#allocation181_spill] sm:$0xff]  ;;  %v6506_v14 = vadd.f32 %v6470_v60, %v6346_v17  ;;  %v19726_v31 = vmov 0  ;;  %vm19729_vm4 = vcmp.lt.s32.totalorder %v19204_v42, 16 }
 0x458   : > { %v19706_v2 = vsel %vm16096_vm15, 4294967295, %v19705_v2  ;;  %19708 = vst [vmem:[#allocation251_spill] sm:$0xff] %v16101_v37  ;;  %19709 = vst [vmem:[#allocation253_spill] sm:$0xff] %v16105_v11  ;;  %vm19711_vm14 = vcmp.gt.f32.partialorder %v19710_v10, 0.5  ;;  %v16117_v22 = vadd.f32 %v19717_v55, %v6190_v35  ;;  %v6347_v38 = vld [vmem:[#allocation4 + $0xe0] sm:$0xff]  ;;  %v19719_v47 = vld [vmem:[#allocation155_spill] sm:$0xff] }
 0x459   : > { %19707 = vst [vmem:[#allocation250_spill] sm:$0xff] %v19706_v2  ;;  %vm16112_vm2 = vmand %vm19713_vm9, %vm19711_vm14  ;;  %v19720_v5 = vld [vmem:[#allocation180_spill] sm:$0xff]  ;;  %v19724_v6 = vld [vmem:[#allocation154_spill] sm:$0xff]  ;;  %v19730_v35 = vmov 0  ;;  %v19738_v42 = vmov 0  ;;  %v6507_v17 = vadd.f32 %v6472_v41, %v6347_v38  ;;  %vm19754_vm15 = vcmp.gt.f32.partialorder %v15832_v25, 0.5 }
 0x45a   : > { %v19715_v56 = vsel %vm16112_vm2, 4294967295, %v19714_v56  ;;  %19718 = vst [vmem:[#allocation254_spill] sm:$0xff] %v16117_v22  ;;  %v16121_v37 = vadd.f32 %v19720_v5, %v19719_v47  ;;  %v19721_v2 = vld [vmem:[#allocation208_spill] sm:$0xff]  ;;  %vm19725_vm9 = vnez %v19724_v6  ;;  %vm16139_vm0 = vmand %vm15889_vm6, %vm19729_vm4  ;;  %v19736_v5 = vld [vmem:[#allocation223_spill] sm:$0xff]  ;;  %v19764_v25 = vmov 0 }
 0x45b   : > { %19716 = vst [vmem:[#allocation252_spill] sm:$0xff] %v19715_v56  ;;  %v16125_v11 = vadd.f32 %v15804_v46, %v19721_v2  ;;  %v19722_v10 = vld [vmem:[#allocation88_spill] sm:$0xff]  ;;  %v19731_v35 = vsel %vm16139_vm0, 4294967295, %v19730_v35  ;;  %v6348_v43 = vld [vmem:[#allocation4 + $0xe8] sm:$0xff]  ;;  %v19742_v47 = vld [vmem:[#allocation210_spill] sm:$0xff] }
 0x45c   : > { %vm19723_vm8 = vcmp.gt.s32.totalorder %v19722_v10, 16  ;;  %19732 = vst [vmem:[#allocation257_spill] sm:$0xff] %v19731_v35  ;;  %v16144_v60 = vld [vmem:[%s9852_s22 + $0xe0] sm:$0xff]  ;;  %v19743_v6 = vld [vmem:[#allocation225_spill] sm:$0xff]  ;;  %v19744_v35 = vld [vmem:[#allocation166_spill] sm:$0xff] }
 0x45d   : > { %vm16131_vm14 = vmor %vm19725_vm9, %vm19723_vm8  ;;  %19733 = vst [vmem:[#allocation256_spill] sm:$0xff] %v16144_v60  ;;  %v16148_v46 = vld [vmem:[%s9861_s8 + $0xe0] sm:$0xff]  ;;  %vm19735_vm8 = vcmp.gt.f32.partialorder %v15799_v13, 0.5  ;;  %vm19737_vm9 = vcmp.gt.f32.partialorder %v19736_v5, 0.5  ;;  %v16162_v22 = vadd.f32 %v19743_v6, %v19742_v47  ;;  %v19745_v60 = vld [vmem:[#allocation151_spill] sm:$0xff]  ;;  %v6508_v47 = vadd.f32 %v6474_v39, %v6348_v43 }
 0x45e   : > { %v19727_v31 = vsel %vm16131_vm14, 4294967295, %v19726_v31  ;;  %19734 = vst [vmem:[#allocation258_spill] sm:$0xff] %v16148_v46  ;;  %vm16155_vm14 = vmand %vm19737_vm9, %vm19735_vm8  ;;  %v19741_v2 = vld [vmem:[#allocation172_spill] sm:$0xff]  ;;  %v16166_v46 = vadd.f32 %v19745_v60, %v19744_v35  ;;  %v19747_v13 = vld [vmem:[#allocation118_spill] sm:$0xff]  ;;  %v19757_v35 = vmov 0 }
 0x45f   : > { %19728 = vst [vmem:[#allocation255_spill] sm:$0xff] %v19727_v31  ;;  %v19739_v42 = vsel %vm16155_vm14, 4294967295, %v19738_v42  ;;  %v6629_v55 = vadd.f32 %v19741_v2, %v6501_v20  ;;  %vm19748_vm6 = vcmp.gt.s32.totalorder %v19747_v13, 16  ;;  %v19749_v5 = vld [vmem:[#allocation224_spill] sm:$0xff]  ;;  %v19751_v31 = vmov 0  ;;  %v16177_v41 = vld [vmem:[%s9852_s22 + $0xe8] sm:$0xff] }
 0x460   : > { %19740 = vst [vmem:[#allocation259_spill] sm:$0xff] %v19739_v42  ;;  %19746 = vst [vmem:[#allocation261_spill] sm:$0xff] %v16166_v46  ;;  %vm19750_vm4 = vnez %v19749_v5  ;;  %v16181_v20 = vld [vmem:[%s9861_s8 + $0xe8] sm:$0xff]  ;;  %v19755_v38 = vld [vmem:[#allocation226_spill] sm:$0xff]  ;;  %v6478_v2 = vmul.f32 0.6931472, %v9168_v52 }
 0x461   : > { %vm16172_vm8 = vmor %vm19750_vm4, %vm19748_vm6  ;;  %19753 = vst [vmem:[#allocation260_spill] sm:$0xff] %v16177_v41  ;;  %vm19756_vm0 = vcmp.gt.f32.partialorder %v19755_v38, 0.5  ;;  %v6349_v60 = vld [vmem:[#allocation4 + $0xf0] sm:$0xff]  ;;  %v19761_v46 = vld [vmem:[#allocation187_spill] sm:$0xff]  ;;  %vm19762_vm6 = vcmp.gt.s32.totalorder %v19498_v63, 16  ;;  %vm19763_vm4 = vnez %v19603_v51  ;;  %v19768_v52 = vmov 0 }
 0x462   : > { %v19752_v31 = vsel %vm16172_vm8, 4294967295, %v19751_v31  ;;  %vm16188_vm14 = vmand %vm19756_vm0, %vm19754_vm15  ;;  %v19760_v6 = vld [vmem:[#allocation174_spill] sm:$0xff]  ;;  %v6631_v41 = vadd.f32 %v19761_v46, %v6503_v30  ;;  %vm19766_vm15 = vcmp.lt.s32.totalorder %v19240_v49, 16  ;;  %vm19767_vm0 = vnez %v19626_v48  ;;  %v16211_v39 = vld [vmem:[%s9852_s22 + $0xd8] sm:$0xff] }
 0x463   : > { %v19758_v35 = vsel %vm16188_vm14, 4294967295, %v19757_v35  ;;  %v6630_v5 = vadd.f32 %v19760_v6, %v6502_v54  ;;  %vm16198_vm9 = vmor %vm19763_vm4, %vm19762_vm6  ;;  %19771 = vst [vmem:[#allocation265_spill] sm:$0xff] %v16211_v39  ;;  %v16215_v54 = vld [vmem:[%s9861_s8 + $0xd8] sm:$0xff]  ;;  %vm19772_vm6 = vcmp.gt.f32.partialorder %v15865_v27, 0.5  ;;  %v19773_v51 = vld [vmem:[#allocation228_spill] sm:$0xff]  ;;  %v19775_v49 = vmov 0 }
 0x464   : > { %19759 = vst [vmem:[#allocation262_spill] sm:$0xff] %v19758_v35  ;;  %v19765_v25 = vsel %vm16198_vm9, 4294967295, %v19764_v25  ;;  %vm16206_vm11 = vmand %vm19767_vm0, %vm19766_vm15  ;;  %vm19774_vm4 = vcmp.gt.f32.partialorder %v19773_v51, 0.5  ;;  %v6509_v48 = vadd.f32 %v6476_v9, %v6349_v60  ;;  %v19778_v30 = vld [vmem:[#allocation145_spill] sm:$0xff]  ;;  %v19779_v43 = vld [vmem:[#allocation191_spill] sm:$0xff]  ;;  %vm19783_vm15 = vcmp.gt.s32.totalorder %v19509_v50, 16 }
 0x465   : > { %v19769_v52 = vsel %vm16206_vm11, 4294967295, %v19768_v52  ;;  %vm16222_vm9 = vmand %vm19774_vm4, %vm19772_vm6  ;;  %v6632_v46 = vadd.f32 %v19778_v30, %v6504_v15  ;;  %v6633_v38 = vadd.f32 %v19779_v43, %v6505_v1  ;;  %v19780_v6 = vld [vmem:[#allocation211_spill] sm:$0xff]  ;;  %vm19784_vm0 = vnez %v19615_v3  ;;  %v16241_v51 = vld [vmem:[%s9852_s22 + $0xf0] sm:$0xff] }
 0x466   : > { %19770 = vst [vmem:[#allocation263_spill] sm:$0xff] %v19769_v52  ;;  %v19776_v49 = vsel %vm16222_vm9, 4294967295, %v19775_v49  ;;  %v19781_v52 = vld [vmem:[#allocation227_spill] sm:$0xff]  ;;  %vm16236_vm8 = vmor %vm19784_vm0, %vm19783_vm15  ;;  %v16245_v9 = vld [vmem:[%s9861_s8 + $0xf0] sm:$0xff]  ;;  %vm19789_vm14 = vcmp.gt.f32.partialorder %v15898_v24, 0.5  ;;  %vm19790_vm11 = vcmp.gt.f32.partialorder %v15894_v45, 0.5 }
 0x467   : > { %19777 = vst [vmem:[#allocation264_spill] sm:$0xff] %v19776_v49  ;;  %v16230_v39 = vadd.f32 %v19781_v52, %v19780_v6  ;;  %19787 = vst [vmem:[#allocation267_spill] sm:$0xff] %v16241_v51  ;;  %v19791_v3 = vmov 0  ;;  %v19794_v1 = vld [vmem:[#allocation193_spill] sm:$0xff]  ;;  %v19798_v43 = vld [vmem:[#allocation212_spill] sm:$0xff]  ;;  %vm19801_vm15 = vcmp.lt.s32.totalorder %v19252_v36, 16 }
 0x468   : > { %19788 = vst [vmem:[#allocation269_spill] sm:$0xff] %v16245_v9  ;;  %vm16252_vm9 = vmand %vm19790_vm11, %vm19789_vm14  ;;  %v6634_v15 = vadd.f32 %v19794_v1, %v6506_v14  ;;  %v19795_v60 = vld [vmem:[#allocation213_spill] sm:$0xff]  ;;  %v19799_v6 = vld [vmem:[#allocation231_spill] sm:$0xff]  ;;  %v19802_v45 = vmov 0  ;;  %vm19804_vm14 = vcmp.gt.f32.partialorder %v15921_v26, 0.5  ;;  %vm19805_vm0 = vcmp.gt.f32.partialorder %v15917_v44, 0.5 }
 0x469   : > { %19782 = vst [vmem:[#allocation266_spill] sm:$0xff] %v16230_v39  ;;  %v19792_v3 = vsel %vm16252_vm9, 4294967295, %v19791_v3  ;;  %v19796_v52 = vld [vmem:[#allocation229_spill] sm:$0xff]  ;;  %v16263_v51 = vadd.f32 %v19799_v6, %v19798_v43  ;;  %v19800_v9 = vld [vmem:[#allocation214_spill] sm:$0xff]  ;;  %vm16273_vm11 = vmand %vm15952_vm1, %vm19801_vm15  ;;  %v19806_v14 = vmov 0  ;;  %vm19814_vm1 = vcmp.gt.s32.totalorder %v19532_v8, 16 }
 0x46a   : > { %19793 = vst [vmem:[#allocation268_spill] sm:$0xff] %v19792_v3  ;;  %v16259_v30 = vadd.f32 %v19796_v52, %v19795_v60  ;;  %v16267_v24 = vadd.f32 %v15988_v53, %v19800_v9  ;;  %v19803_v45 = vsel %vm16273_vm11, 4294967295, %v19802_v45  ;;  %vm16281_vm6 = vmand %vm19805_vm0, %vm19804_vm14  ;;  %v6350_v1 = vld [vmem:[#allocation4 + $0xf8] sm:$0xff]  ;;  %v19809_v60 = vld [vmem:[#allocation192_spill] sm:$0xff]  ;;  %v19815_v44 = vmov 0 }
 0x46b   : > { %v19807_v14 = vsel %vm16281_vm6, 4294967295, %v19806_v14  ;;  %v6635_v53 = vadd.f32 %v19809_v60, %v6507_v17  ;;  %v19810_v9 = vld [vmem:[#allocation152_spill] sm:$0xff]  ;;  %v19811_v32 = vld [vmem:[#allocation215_spill] sm:$0xff]  ;;  %v19813_v43 = vld [vmem:[#allocation230_spill] sm:$0xff]  ;;  %vm19824_vm14 = vcmp.gt.f32.partialorder %v15980_v21, 0.5  ;;  %vm19825_vm0 = vcmp.gt.f32.partialorder %v15976_v4, 0.5 }
 0x46c   : > { %19797 = vst [vmem:[#allocation270_spill] sm:$0xff] %v16259_v30  ;;  %19808 = vst [vmem:[#allocation271_spill] sm:$0xff] %v19807_v14  ;;  %v16288_v36 = vadd.f32 %v16019_v23, %v19810_v9  ;;  %v16292_v52 = vadd.f32 %v16055_v19, %v19811_v32  ;;  %v16295_v6 = vadd.f32 %v6629_v55, %v19813_v43  ;;  %v16306_v26 = vld [vmem:[%s9852_s22 + $0xf8] sm:$0xff]  ;;  %v19817_v17 = vld [vmem:[#allocation202_spill] sm:$0xff]  ;;  %v19822_v43 = vmov 0  ;;  %s8108_s22 = sshll.u32 %s16929_s17, 3 }
 0x46d   : > { %vm16301_vm15 = vmor %vm15943_vm5, %vm19814_vm1  ;;  %v16310_v23 = vld [vmem:[%s9861_s8 + $0xf8] sm:$0xff]  ;;  %v6510_v19 = vadd.f32 %v6478_v2, %v6350_v1  ;;  %v6636_v0 = vadd.f32 %v19817_v17, %v6508_v47  ;;  %v19818_v55 = vld [vmem:[#allocation233_spill] sm:$0xff]  ;;  %vm19821_vm5 = vcmp.lt.s32.totalorder %v19254_v57, 16  ;;  %v19826_v2 = vmov 0  ;;  %v1023_v17 = vpop.f32.mrb[21].mxu1  ;;  %s373_s8 = scalar_lea.vmem [#allocation8], %s8108_s22 }
 0x46e   : > { %19812 = vst [vmem:[#allocation272_spill] sm:$0xff] %v16292_v52  ;;  %v19816_v44 = vsel %vm16301_vm15, 4294967295, %v19815_v44  ;;  %v16319_v60 = vadd.f32 %v6630_v5, %v19818_v55  ;;  %v19820_v9 = vld [vmem:[#allocation232_spill] sm:$0xff]  ;;  %vm16328_vm1 = vmand %vm15963_vm7, %vm19821_vm5  ;;  %v19828_v57 = vmov 0.0   ;;  %v19831_v4 = vld [vmem:[#allocation234_spill] sm:$0xff]  ;;  %v19837_v55 = vmov 0 }
 0x46f   : > { %v16322_v32 = vadd.f32 %v6631_v41, %v19820_v9  ;;  %v19823_v43 = vsel %vm16328_vm1, 4294967295, %v19822_v43  ;;  %vm16336_vm4 = vmand %vm19825_vm0, %vm19824_vm14  ;;  %v19830_v41 = vld [vmem:[#allocation203_spill] sm:$0xff]  ;;  %v16354_v47 = vadd.f32 %v6632_v46, %v19831_v4  ;;  %vm19835_vm14 = vcmp.lt.s32.totalorder %v19546_v16, 16  ;;  %v19840_v9 = vld [vmem:[#allocation241_spill] sm:$0xff]  ;;  %v1027_v4 = vpop.f32.mrb[22].mxu1  ;;  %s7939_s19 = sshll.u32 %s373_s8, 4  ;;  %s16933_s19 = int_to_ptr.vmem [resolvable:$true] %s7939_s19 }
 0x470   : > { %19819 = vst [vmem:[#allocation50_spill] sm:$0xff] %v16319_v60  ;;  %v19827_v2 = vsel %vm16336_vm4, 4294967295, %v19826_v2  ;;  %vm19829_vm7 = vmand %vm15935_vm12, %vm16049_vm10  ;;  %v16351_v21 = vadd.f32 %v19830_v41, %v6509_v48  ;;  %v19833_v5 = vld [vmem:[#allocation235_spill] sm:$0xff]  ;;  %vm19836_vm0 = vnez %v19656_v29  ;;  %vm19841_vm15 = vcmp.gt.f32.partialorder %v19840_v9, 0.5  ;;  %v1029_v4 = vpop.f32.mrb[23].mxu1  ;;  %v19871_v56 = vld [vmem:[#allocation246_spill] sm:$0xff] }
 0x471   : > { %v8517_v58 = vsel %vm19829_vm7, 1.0, %v19828_v57  ;;  %19832 = vst [vmem:[#allocation59_spill] sm:$0xff] %v16354_v47  ;;  %v16357_v1 = vadd.f32 %v6633_v38, %v19833_v5  ;;  %vm16363_vm5 = vmand %vm19836_vm0, %vm19835_vm14  ;;  %vm19839_vm7 = vcmp.gt.f32.partialorder %v16011_v59, 0.5  ;;  %v19842_v48 = vmov 0  ;;  %v19844_v46 = vld [vmem:[#allocation239_spill] sm:$0xff]  ;;  %v19848_v59 = vld [vmem:[#allocation237_spill] sm:$0xff] }
 0x472   : > { %v19838_v55 = vsel %vm16363_vm5, 4294967295, %v19837_v55  ;;  %vm16371_vm10 = vmand %vm19841_vm15, %vm19839_vm7  ;;  %vm19845_vm12 = vnez %v19844_v46  ;;  %vm19847_vm0 = vcmask 7168   ;;  %v16387_v38 = vadd.f32 %v6634_v15, %v19848_v59  ;;  %v19854_v17 = vld [vmem:[#allocation243_spill] sm:$0xff]  ;;  %v19860_v15 = vld [vmem:[#allocation242_spill] sm:$0xff]  ;;  %s366_s21 = scalar_lea.vmem [#allocation6], %s8108_s22 }
 0x473   : > { %19834 = vst [vmem:[#allocation106_spill] sm:$0xff] %v16357_v1  ;;  %v19843_v48 = vsel %vm16371_vm10, 4294967295, %v19842_v48  ;;  %vm19846_vm14 = vmand %vm15971_vm13, %vm16085_vm3  ;;  %v7858_v29 = vsel %vm19847_vm0, %v8517_v58, 0.0  ;;  %vm19849_vm15 = vcmp.lt.s32.totalorder %v19665_v61, 16  ;;  %vm19850_vm7 = vnez %v19670_v34  ;;  %v19863_v34 = vld [vmem:[#allocation207_spill] sm:$0xff]  ;;  %v19881_v4 = vld [vmem:[#allocation81_spill] sm:$0xff] }
 0x474   : > { %v8518_v16 = vsel %vm19846_vm14, 1.0, %v19828_v57  ;;  %vm16394_vm1 = vmand %vm19850_vm7, %vm19849_vm15  ;;  %v19851_v5 = vmov 0  ;;  %vm19853_vm5 = vcmp.gt.f32.partialorder %v16042_v40, 0.5  ;;  %vm19855_vm14 = vcmp.gt.f32.partialorder %v19854_v17, 0.5  ;;  %v19869_v41 = vld [vmem:[#allocation247_spill] sm:$0xff]  ;;  %v19883_v33 = vld [vmem:[#allocation250_spill] sm:$0xff] }
 0x475   : > { %v19852_v5 = vsel %vm16394_vm1, 4294967295, %v19851_v5  ;;  %vm16402_vm3 = vmand %vm19855_vm14, %vm19853_vm5  ;;  %v19856_v58 = vmov 0  ;;  %vm19859_vm0 = vnez %v19739_v42  ;;  %vm19861_vm13 = vnez %v19860_v15  ;;  %v19887_v15 = vld [vmem:[#allocation253_spill] sm:$0xff]  ;;  %v19889_v42 = vld [vmem:[#allocation251_spill] sm:$0xff]  ;;  %s7926_s23 = sshll.u32 %s366_s21, 4  ;;  %s16940_s23 = int_to_ptr.vmem [resolvable:$true] %s7926_s23 }
 0x476   : > { %v19857_v58 = vsel %vm16402_vm3, 4294967295, %v19856_v58  ;;  %vm19862_vm15 = vmand %vm19845_vm12, %vm16112_vm2  ;;  %v7859_v40 = vadd.f32 %v7858_v29, %v19863_v34  ;;  %vm19864_vm7 = vcmask 7168   ;;  %v6717_v59 = vand.u32 2147483647, %v16125_v11  ;;  %v19880_v29 = vld [vmem:[#allocation204_spill] sm:$0xff]  ;;  %v1033_v34 = vpop.f32.mrb[24].mxu1  ;;  %p9354_p1 = scmp.lt.s32.totalorder %s16940_s23, %s9352_s1 }
 0x477   : > { %19858 = vst [vmem:[#allocation110_spill] sm:$0xff] %v19857_v58  ;;  %v8519_v61 = vsel %vm19862_vm15, 1.0, %v19828_v57  ;;  %v7860_v9 = vsel %vm19864_vm7, %v8518_v16, 0.0  ;;  %vm19865_vm5 = vcmp.lt.s32.totalorder %v19463_v62, 16  ;;  %vm19866_vm14 = vnez %v19687_v12  ;;  %v19876_v16 = vld [vmem:[#allocation244_spill] sm:$0xff]  ;;  %v19899_v7 = vld [vmem:[#allocation258_spill] sm:$0xff] }
 0x478   : > { %vm16423_vm1 = vmand %vm19866_vm14, %vm19865_vm5  ;;  %v19867_v17 = vmov 0  ;;  %vm19870_vm10 = vcmp.gt.f32.partialorder %v19869_v41, 0.5  ;;  %vm19872_vm2 = vcmp.gt.f32.partialorder %v19871_v56, 0.5  ;;  %vm19875_vm7 = vnez %v19758_v35  ;;  %s9347_s15 = scalar_lea.vmem %s16940_s23, 128 }
 0x479   : > { %v19868_v17 = vsel %vm16423_vm1, 4294967295, %v19867_v17  ;;  %vm16431_vm15 = vmand %vm19872_vm2, %vm19870_vm10  ;;  %vm19877_vm12 = vnez %v19876_v16  ;;  %vm19879_vm14 = vcmask 7168   ;;  %v16447_v56 = vadd.f32 %v19880_v29, %v6510_v19  ;;  %v19901_v16 = vld [vmem:[#allocation256_spill] sm:$0xff]  ;;  %p9348_p12 = scmp.ne.s32.totalorder %s16940_s23, %s9347_s15  ;;  %p9355_p2 = scmp.lt.s32.totalorder %s9353_s2, %s9347_s15 }
 0x47a   : > { %vm19878_vm5 = vmand %vm19861_vm13, %vm19859_vm0  ;;  %v7862_v12 = vsel %vm19879_vm14, %v8519_v61, 0.0  ;;  %v6718_v41 = vand.u32 2147483647, %v16162_v22  ;;  %vm19882_vm10 = vcmp.lt.s32.totalorder %v19881_v4, 16  ;;  %vm19884_vm2 = vnez %v19883_v33  ;;  %v1035_v4 = vpop.f32.mrb[25].mxu1 }
 0x47b   : > { %v8520_v62 = vsel %vm19878_vm5, 1.0, %v19828_v57  ;;  %vm16454_vm3 = vmand %vm19884_vm2, %vm19882_vm10  ;;  %vm19888_vm1 = vcmp.gt.f32.partialorder %v19887_v15, 0.5  ;;  %vm19890_vm5 = vcmp.gt.f32.partialorder %v19889_v42, 0.5  ;;  %v19891_v61 = vmov 0  ;;  %v19895_v42 = vld [vmem:[#allocation255_spill] sm:$0xff]  ;;  %p9349_p13 = pnand %p9348_p12, %p9545_p4  ;;  %p9356_p3 = por %p9355_p2, %p9354_p1 }
 0x47c   : > { %v19886_v18 = vsel %vm16454_vm3, 4294967295, %v19885_v18  ;;  %vm16462_vm0 = vmand %vm19890_vm5, %vm19888_vm1  ;;  %v7861_v33 = vadd.f32 %v7860_v9, %v7859_v40  ;;  %v6719_v29 = vand.u32 2147483647, %v16230_v39  ;;  %v6720_v34 = vand.u32 2147483647, %v16259_v30  ;;  %v19906_v40 = vld [vmem:[#allocation257_spill] sm:$0xff] }
 0x47d   : > { %v19892_v61 = vsel %vm16462_vm0, 4294967295, %v19891_v61  ;;  %vm19893_vm14 = vmand %vm19877_vm12, %vm19875_vm7  ;;  %vm19894_vm10 = vcmp.lt.s32.totalorder %v19722_v10, 16  ;;  %vm19896_vm1 = vnez %v19895_v42  ;;  %v19897_v15 = vmov 0  ;;  %v19909_v9 = vld [vmem:[#allocation238_spill] sm:$0xff]  ;;  %v1039_v30 = vpop.f32.mrb[26].mxu1  ;;  %v19915_v39 = vld [vmem:[#allocation260_spill] sm:$0xff]  ;;  %p9350_p0 = pneg %p9349_p13 }
 0x47e   : > { %v8521_v19 = vsel %vm19893_vm14, 1.0, %v19828_v57  ;;  %vm16478_vm2 = vmand %vm19896_vm1, %vm19894_vm10  ;;  %vm19900_vm5 = vcmp.gt.f32.partialorder %v19899_v7, 0.5  ;;  %vm19902_vm13 = vcmp.gt.f32.partialorder %v19901_v16, 0.5  ;;  %v19903_v35 = vmov 0 }
 0x47f   : > { %v19898_v15 = vsel %vm16478_vm2, 4294967295, %v19897_v15  ;;  %vm16486_vm7 = vmand %vm19902_vm13, %vm19900_vm5  ;;  %vm19905_vm14 = vnez %v19776_v49  ;;  %vm19907_vm12 = vnez %v19906_v40  ;;  %vm19908_vm0 = vcmask 7168   ;;  %v19937_v40 = vld [vmem:[#allocation269_spill] sm:$0xff]  ;;  %p9357_p5 = pnand %p9356_p3, %p9350_p0 }
 0x480   : > { %v19904_v35 = vsel %vm16486_vm7, 4294967295, %v19903_v35  ;;  %v7864_v10 = vsel %vm19908_vm0, %v8520_v62, 0.0  ;;  %v16496_v4 = vadd.f32 %v6635_v53, %v19909_v9  ;;  %v6721_v42 = vand.u32 2147483647, %v16263_v51  ;;  %vm19919_vm2 = vmand %vm19907_vm12, %vm19905_vm14  ;;  %v1041_v9 = vpop.f32.mrb[27].mxu1 }
 0x481   : > { %v6722_v7 = vand.u32 2147483647, %v16267_v24  ;;  %vm19910_vm13 = vcmp.lt.s32.totalorder %v19747_v13, 16  ;;  %vm19911_vm10 = vnez %v19752_v31  ;;  %v19912_v16 = vmov 0 }
 0x482   : > { %vm16504_vm1 = vmand %vm19911_vm10, %vm19910_vm13  ;;  %vm19914_vm5 = vcmp.gt.f32.partialorder %v16181_v20, 0.5  ;;  %vm19916_vm0 = vcmp.gt.f32.partialorder %v19915_v39, 0.5  ;;  %v19917_v53 = vmov 0  ;;  %v8522_v13 = vsel %vm19919_vm2, 1.0, %v19828_v57  ;;  %v19925_v39 = vld [vmem:[#allocation265_spill] sm:$0xff] }
 0x483   : > { %v19913_v16 = vsel %vm16504_vm1, 4294967295, %v19912_v16  ;;  %vm16512_vm3 = vmand %vm19916_vm0, %vm19914_vm5  ;;  %v7863_v31 = vadd.f32 %v7862_v12, %v7861_v33  ;;  %v6723_v30 = vand.u32 2147483647, %v16288_v36  ;;  %v6724_v62 = vand.u32 2147483647, %v16292_v52  ;;  %v19929_v12 = vld [vmem:[#allocation263_spill] sm:$0xff] }
 0x484   : > { %v19918_v53 = vsel %vm16512_vm3, 4294967295, %v19917_v53  ;;  %vm19920_vm13 = vcmp.lt.s32.totalorder %v19498_v63, 16  ;;  %vm19921_vm10 = vnez %v19765_v25  ;;  %vm19924_vm0 = vcmp.gt.f32.partialorder %v16215_v54, 0.5  ;;  %v19932_v25 = vld [vmem:[#allocation240_spill] sm:$0xff]  ;;  %v19939_v52 = vld [vmem:[#allocation267_spill] sm:$0xff] }
 0x485   : > { %vm16528_vm5 = vmand %vm19921_vm10, %vm19920_vm13  ;;  %vm19926_vm1 = vcmp.gt.f32.partialorder %v19925_v39, 0.5  ;;  %v19927_v49 = vmov 0  ;;  %vm19930_vm2 = vnez %v19929_v12  ;;  %vm19931_vm3 = vcmask 7168  }
 0x486   : > { %vm16536_vm14 = vmand %vm19926_vm1, %vm19924_vm0  ;;  %v7866_v63 = vsel %vm19931_vm3, %v8521_v19, 0.0  ;;  %v16546_v33 = vadd.f32 %v6636_v0, %v19932_v25  ;;  %v6725_v9 = vand.u32 2147483647, %v16295_v6  ;;  %v6726_v54 = vand.u32 2147483647, %v16319_v60  ;;  %v1045_v60 = vpop.f32.mrb[28].mxu1 }
 0x487   : > { %v19928_v49 = vsel %vm16536_vm14, 4294967295, %v19927_v49  ;;  %vm17666_vm12 = vmand %vm19930_vm2, %vm16252_vm9  ;;  %vm19933_vm13 = vcmp.lt.s32.totalorder %v19509_v50, 16  ;;  %v19934_v39 = vmov 0  ;;  %vm19938_vm10 = vcmp.gt.f32.partialorder %v19937_v40, 0.5  ;;  %v19945_v40 = vld [vmem:[#allocation248_spill] sm:$0xff] }
 0x488   : > { %vm16554_vm1 = vmand %vm16236_vm8, %vm19933_vm13  ;;  %vm19940_vm0 = vcmp.gt.f32.partialorder %v19939_v52, 0.5  ;;  %v19941_v19 = vmov 0  ;;  %v8523_v50 = vsel %vm17666_vm12, 1.0, %v19828_v57  ;;  %v7865_v27 = vadd.f32 %v7864_v10, %v7863_v31  ;;  %v1047_v31 = vpop.f32.mrb[29].mxu1 }
 0x489   : > { %v19935_v39 = vsel %vm16554_vm1, 4294967295, %v19934_v39  ;;  %vm16562_vm3 = vmand %vm19940_vm0, %vm19938_vm10  ;;  %v6727_v0 = vand.u32 2147483647, %v16322_v32  ;;  %v6728_v25 = vand.u32 2147483647, %v16354_v47  ;;  %vm19944_vm13 = vcmask 7168  }
 0x48a   : > { %19936 = vst [vmem:[#allocation51_spill] sm:$0xff] %v19935_v39  ;;  %v19942_v19 = vsel %vm16562_vm3, 4294967295, %v19941_v19  ;;  %v7868_v52 = vsel %vm19944_vm13, %v8522_v13, 0.0  ;;  %v16581_v12 = vadd.f32 %v16351_v21, %v19945_v40  ;;  %v6729_v3 = vand.u32 2147483647, %v16357_v1  ;;  %vm19956_vm2 = vmand %vm16273_vm11, %vm16281_vm6  ;;  %v1051_v47 = vpop.f32.mrb[30].mxu1 }
 0x48b   : > { %19943 = vst [vmem:[#allocation116_spill] sm:$0xff] %v19942_v19  ;;  %vm19946_vm10 = vcmp.lt.s32.totalorder %v19532_v8, 16  ;;  %vm19947_vm0 = vnez %v19816_v44  ;;  %v19948_v60 = vmov 0  ;;  %vm19951_vm8 = vcmp.gt.f32.partialorder %v16310_v23, 0.5  ;;  %v1053_v14 = vpop.f32.mrb[31].mxu1 }
 0x48c   : > { %vm16589_vm12 = vmand %vm19947_vm0, %vm19946_vm10  ;;  %vm19952_vm13 = vcmp.gt.f32.partialorder %v16306_v26, 0.5  ;;  %v19953_v21 = vmov 0  ;;  %v8524_v8 = vsel %vm19956_vm2, 1.0, %v19828_v57  ;;  %v7867_v44 = vadd.f32 %v7866_v63, %v7865_v27 }
 0x48d   : > { %v19949_v60 = vsel %vm16589_vm12, 4294967295, %v19948_v60  ;;  %vm16597_vm9 = vmand %vm19952_vm13, %vm19951_vm8  ;;  %v19957_v40 = vand.u32 2147483647, %v16121_v37  ;;  %vm19958_vm8 = vnez %v19823_v43  ;;  %vm19959_vm0 = vcmask 7168  }
 0x48e   : > { %19950 = vst [vmem:[#allocation71_spill] sm:$0xff] %v19949_v60  ;;  %v19954_v21 = vsel %vm16597_vm9, 4294967295, %v19953_v21  ;;  %vm17676_vm10 = vmand %vm19958_vm8, %vm16336_vm4  ;;  %v7870_v26 = vsel %vm19959_vm0, %v8523_v50, 0.0  ;;  %v6749_v23 = vsub.f32 0.0, %v6717_v59  ;;  %v6750_v10 = vsub.f32 0.0, %v6718_v41 }
 0x48f   : > { %19955 = vst [vmem:[#allocation119_spill] sm:$0xff] %v19954_v21  ;;  %v6748_v31 = vsub.f32 0.0, %v19957_v40  ;;  %v6751_v1 = vsub.f32 0.0, %v6719_v29  ;;  %vm19960_vm13 = vnez %v19843_v48  ;;  %vm19961_vm2 = vnez %v19838_v55 }
 0x490   : > { %v8525_v63 = vsel %vm17676_vm10, 1.0, %v19828_v57  ;;  %v7869_v27 = vadd.f32 %v7868_v52, %v7867_v44  ;;  %v6752_v40 = vsub.f32 0.0, %v6720_v34  ;;  %v6753_v13 = vsub.f32 0.0, %v6721_v42  ;;  %vm19966_vm4 = vmand %vm19961_vm2, %vm19960_vm13 }
 0x491   : > { %vm19962_vm0 = vnez %v19857_v58  ;;  %vm19963_vm11 = vnez %v19852_v5  ;;  %vm19964_vm9 = vcmask 7168   ;;  %v6754_v41 = vsub.f32 0.0, %v6722_v7  ;;  %vm17686_vm2 = vmand %vm16528_vm5, %vm16536_vm14 }
 0x492   : > { %vm17682_vm12 = vmand %vm19963_vm11, %vm19962_vm0  ;;  %v7872_v59 = vsel %vm19964_vm9, %v8524_v8, 0.0  ;;  %v6755_v29 = vsub.f32 0.0, %v6723_v30  ;;  %v6756_v50 = vsub.f32 0.0, %v6724_v62  ;;  %vm19965_vm6 = vnez %v19868_v17 }
 0x493   : > { %v8526_v47 = vsel %vm19966_vm4, 1.0, %v19828_v57  ;;  %v8527_v34 = vsel %vm17682_vm12, 1.0, %v19828_v57  ;;  %v7871_v14 = vadd.f32 %v7870_v26, %v7869_v27  ;;  %v6793_v42 = vmul.f32 1.442695, %v6748_v31  ;;  %v1057_v26 = vpop.f32.mrb[32].mxu1 }
 0x494   : > { %vm19967_vm9 = vnez %v19892_v61  ;;  %vm19968_vm10 = vnez %v19886_v18  ;;  %vm19969_vm1 = vcmask 7168   ;;  %v6757_v30 = vsub.f32 0.0, %v6725_v9 }
 0x495   : > { %v7874_v7 = vsel %vm19969_vm1, %v8525_v63, 0.0  ;;  %v6758_v62 = vsub.f32 0.0, %v6726_v54  ;;  %v6795_v52 = vmul.f32 1.442695, %v6749_v23  ;;  %vm19970_vm4 = vnez %v19898_v15  ;;  %vm19973_vm1 = vmand %vm19965_vm6, %vm16431_vm15  ;;  %v20126_v15 = vld [vmem:[#allocation116_spill] sm:$0xff] }
 0x496   : > { %v7873_v8 = vadd.f32 %v7872_v59, %v7871_v14  ;;  %v6759_v44 = vsub.f32 0.0, %v6727_v0  ;;  %v16655_v58 = vsub.f32 0.0, %v6728_v25  ;;  %v6797_v31 = vmul.f32 1.442695, %v6750_v10  ;;  %v1059_v10 = vpop.f32.mrb[33].mxu1  ;;  %vm19976_vm0 = vmand %vm19968_vm10, %vm19967_vm9 }
 0x497   : > { %vm19971_vm12 = vnez %v19918_v53  ;;  %vm19972_vm8 = vnez %v19913_v16  ;;  %v8528_v9 = vsel %vm19973_vm1, 1.0, %v19828_v57  ;;  %vm19974_vm11 = vcmask 7168  }
 0x498   : > { %v7876_v54 = vsel %vm19974_vm11, %v8526_v47, 0.0  ;;  %vm19975_vm13 = vmmov %vm19974_vm11  ;;  %v16669_v25 = vsub.f32 0.0, %v6729_v3  ;;  %v8529_v23 = vsel %vm19976_vm0, 1.0, %v19828_v57  ;;  %v7875_v63 = vadd.f32 %v7874_v7, %v7873_v8 }
 0x499   : > { %v7878_v0 = vsel %vm19975_vm13, %v8527_v34, 0.0  ;;  %9169 = vpow2.f32 %v6793_v42  ;;  %v6799_v27 = vmul.f32 1.442695, %v6751_v1  ;;  %vm19977_vm11 = vnez %v19935_v39  ;;  %vm19978_vm0 = vmand %vm19970_vm4, %vm16486_vm7  ;;  %v1063_v42 = vpop.f32.mrb[34].mxu1 }
 0x49a   : > { %v8530_v3 = vsel %vm17686_vm2, 1.0, %v19828_v57  ;;  %v8531_v59 = vsel %vm19978_vm0, 1.0, %v19828_v57  ;;  %9171 = vpow2.f32 %v6795_v52  ;;  %v6801_v1 = vmul.f32 1.442695, %v6752_v40  ;;  %vm19979_vm1 = vmand %vm19972_vm8, %vm19971_vm12  ;;  %v1065_v10 = vpop.f32.mrb[35].mxu1 }
 0x49b   : > { %v8532_v47 = vsel %vm19979_vm1, 1.0, %v19828_v57  ;;  %v7877_v34 = vadd.f32 %v7876_v54, %v7875_v63  ;;  %9173 = vpow2.f32 %v6797_v31  ;;  %v6803_v14 = vmul.f32 1.442695, %v6753_v13  ;;  %vm19985_vm1 = vmand %vm19977_vm11, %vm16562_vm3  ;;  %v19991_v10 = vld [vmem:[#allocation182_spill] sm:$0xff] }
 0x49c   : > { %vm19980_vm2 = vnez %v19954_v21  ;;  %vm19981_vm13 = vnez %v19949_v60  ;;  %vm19982_vm7 = vcmask 7168   ;;  %v19984_v52 = vand.u32 2147483647, %v16387_v38  ;;  %v19992_v60 = vld [vmem:[#allocation30_spill] sm:$0xff]  ;;  %v19994_v21 = vld [vmem:[#allocation28_spill] sm:$0xff] }
 0x49d   : > { %v7880_v7 = vsel %vm19982_vm7, %v8528_v9, 0.0  ;;  %vm19983_vm0 = vmmov %vm19982_vm7  ;;  %v6805_v26 = vmul.f32 1.442695, %v6754_v41  ;;  %v8533_v13 = vsel %vm19985_vm1, 1.0, %v19828_v57  ;;  %v7879_v31 = vadd.f32 %v7878_v0, %v7877_v34  ;;  %v19990_v34 = vld [vmem:[#allocation189_spill] sm:$0xff] }
 0x49e   : > { %v7882_v40 = vsel %vm19983_vm0, %v8529_v23, 0.0  ;;  %v16711_v8 = vsub.f32 0.0, %v19984_v52  ;;  %9175 = vpow2.f32 %v6799_v27  ;;  %v6807_v54 = vmul.f32 1.442695, %v6755_v29  ;;  %vm19986_vm14 = vmmov %vm19983_vm0  ;;  %v1069_v27 = vpop.f32.mrb[36].mxu1 }
 0x49f   : > { %v7884_v9 = vsel %vm19986_vm14, %v8530_v3, 0.0  ;;  %vm19987_vm7 = vmmov %vm19983_vm0  ;;  %v7888_v63 = vsel %vm19983_vm0, %v8532_v47, 0.0  ;;  %9177 = vpow2.f32 %v6801_v1  ;;  %v7881_v42 = vadd.f32 %v7880_v7, %v7879_v31  ;;  %v1071_v52 = vpop.f32.mrb[37].mxu1 }
 0x4a0   : > { %v7886_v23 = vsel %vm19987_vm7, %v8531_v59, 0.0  ;;  %vm19988_vm12 = vmand %vm19981_vm13, %vm19980_vm2  ;;  %9179 = vpow2.f32 %v6803_v14  ;;  %v6809_v0 = vmul.f32 1.442695, %v6756_v50  ;;  %v6811_v3 = vmul.f32 1.442695, %v6757_v30  ;;  %v19997_v50 = vld [vmem:[#allocation169_spill] sm:$0xff] }
 0x4a1   : > { %v8534_v41 = vsel %vm19988_vm12, 1.0, %v19828_v57  ;;  %vm19989_vm1 = vmmov %vm19983_vm0  ;;  %9181 = vpow2.f32 %v6805_v26  ;;  %v6882_v59 = vmul.f32 0.6931472, %v19990_v34  ;;  %v7883_v47 = vadd.f32 %v7882_v40, %v7881_v42  ;;  %v20000_v26 = vld [vmem:[#allocation27_spill] sm:$0xff]  ;;  %v20002_v30 = vld [vmem:[#allocation25_spill] sm:$0xff]  ;;  %v1075_v52 = vpop.f32.mrb[38].mxu1 }
 0x4a2   : > { %v7890_v29 = vsel %vm19989_vm1, %v8533_v13, 0.0  ;;  %9183 = vpow2.f32 %v6807_v54  ;;  %v6813_v1 = vmul.f32 1.442695, %v6758_v62  ;;  %vm19993_vm14 = vnez %v19992_v60  ;;  %v19999_v13 = vld [vmem:[#allocation101_spill] sm:$0xff]  ;;  %v20005_v54 = vld [vmem:[#allocation167_spill] sm:$0xff] }
 0x4a3   : > { %vm19995_vm7 = vnez %v19994_v21  ;;  %v6815_v14 = vmul.f32 1.442695, %v6759_v44  ;;  %v19998_v7 = vmax.f32 %v19997_v50, 0.0  ;;  %vm20001_vm0 = vnez %v20000_v26  ;;  %v9170_v42 = vpop.eup %9169  ;;  %v20007_v21 = vld [vmem:[#allocation185_spill] sm:$0xff]  ;;  %v20012_v26 = vld [vmem:[#allocation31_spill] sm:$0xff] }
 0x4a4   : > { %vm19996_vm12 = vmand %vm19993_vm14, %vm19995_vm7  ;;  %vm20003_vm1 = vnez %v20002_v30  ;;  %vm20006_vm13 = vcmask 7168   ;;  %v7885_v60 = vadd.f32 %v7884_v9, %v7883_v47  ;;  %9185 = vpow2.f32 %v6809_v0  ;;  %v20008_v34 = vld [vmem:[#allocation261_spill] sm:$0xff]  ;;  %v20016_v47 = vld [vmem:[#allocation190_spill] sm:$0xff] }
 0x4a5   : > { %v7670_v57 = vsel %vm19996_vm12, %v19991_v10, 0.0  ;;  %v6936_v31 = vadd.f32 %v6882_v59, %v19998_v7  ;;  %vm20004_vm2 = vmand %vm20001_vm0, %vm20003_vm1  ;;  %v7706_v62 = vsel %vm20006_vm13, %v20005_v54, 0.0  ;;  %v6841_v27 = vadd.f32 1.0, %v20007_v21  ;;  %v9172_v10 = vpop.eup %9171  ;;  %v20009_v59 = vld [vmem:[#allocation186_spill] sm:$0xff]  ;;  %v20010_v7 = vld [vmem:[#allocation33_spill] sm:$0xff]  ;;  %v1077_v54 = vpop.f32.mrb[39].mxu1 }
 0x4a6   : > { %v7671_v40 = vsel %vm20004_vm2, %v19999_v13, 0.0  ;;  %v7707_v44 = vadd.f32 %v7706_v62, %v20008_v34  ;;  %9187 = vpow2.f32 %v6811_v3  ;;  %v6842_v50 = vadd.f32 1.0, %v20009_v59  ;;  %vm20015_vm12 = vmmov %vm20006_vm13  ;;  %v9174_v9 = vpop.eup %9173  ;;  %v1081_v19 = vpop.f32.mrb[40].mxu1 }
 0x4a7   : > { %vm20011_vm14 = vnez %v20010_v7  ;;  %vm20013_vm7 = vnez %v20012_v26  ;;  %v7708_v30 = vsel %vm20015_vm12, %v7670_v57, 0.0  ;;  %v7887_v0 = vadd.f32 %v7886_v23, %v7885_v60  ;;  %vm20017_vm13 = vmmov %vm20015_vm12  ;;  %v1083_v60 = vpop.f32.mrb[41].mxu1 }
 0x4a8   : > { %vm20014_vm2 = vmand %vm20011_vm14, %vm20013_vm7  ;;  %9189 = vpow2.f32 %v6813_v1  ;;  %v6843_v21 = vadd.f32 1.0, %v20016_v47  ;;  %v7709_v62 = vadd.f32 %v7708_v30, %v7707_v44  ;;  %v6844_v34 = vadd.f32 1.0, %v9170_v42  ;;  %v9176_v59 = vpop.eup %9175  ;;  %v20021_v30 = vld [vmem:[#allocation254_spill] sm:$0xff] }
 0x4a9   : > { %v7672_v13 = vsel %vm20014_vm2, %v6936_v31, 0.0  ;;  %9191 = vpow2.f32 %v6815_v14  ;;  %v7710_v3 = vsel %vm20017_vm13, %v7671_v40, 0.0  ;;  %vm20018_vm0 = vmmov %vm20015_vm12  ;;  %v7889_v7 = vadd.f32 %v7888_v63, %v7887_v0  ;;  %v9178_v57 = vpop.eup %9177 }
 0x4aa   : > { %v7712_v52 = vsel %vm20018_vm0, %v7672_v13, 0.0  ;;  %v6845_v26 = vadd.f32 1.0, %v9172_v10  ;;  %9193 = vlog2.f32 %v6841_v27  ;;  %v7711_v31 = vadd.f32 %v7710_v3, %v7709_v62  ;;  %vm20019_vm1 = vmmov %vm20018_vm0  ;;  %v9180_v14 = vpop.eup %9179 }
 0x4ab   : > { %v7892_v54 = vsel %vm20019_vm1, %v8534_v41, 0.0  ;;  %v6732_v23 = vand.u32 2147483647, %v16546_v33  ;;  %v6846_v1 = vadd.f32 1.0, %v9174_v9  ;;  %9195 = vlog2.f32 %v6842_v50  ;;  %v9182_v63 = vpop.eup %9181 }
 0x4ac   : > { %v7891_v42 = vadd.f32 %v7890_v29, %v7889_v7  ;;  %v6817_v40 = vmul.f32 1.442695, %v16655_v58  ;;  %9197 = vlog2.f32 %v6843_v21  ;;  %v16761_v44 = vadd.f32 %v7712_v52, %v7711_v31  ;;  %v9184_v41 = vpop.eup %9183  ;;  %v1087_v58 = vpop.f32.mrb[42].mxu1 }
 0x4ad   : > { %v20020_v27 = vand.u32 2147483647, %v16496_v4  ;;  %v6819_v19 = vmul.f32 1.442695, %v16669_v25  ;;  %9199 = vlog2.f32 %v6844_v34  ;;  %v16768_v50 = vadd.f32 %v16447_v56, %v20021_v30  ;;  %v1089_v21 = vpop.f32.mrb[43].mxu1  ;;  %v20022_v56 = vld [vmem:[#allocation121_spill] sm:$0xff] }
 0x4ae   : > { %v7893_v13 = vadd.f32 %v7892_v54, %v7891_v42  ;;  %v6821_v29 = vmul.f32 1.442695, %v16711_v8  ;;  %9201 = vlog2.f32 %v6845_v26  ;;  %v6733_v9 = vand.u32 2147483647, %v16581_v12  ;;  %v9186_v62 = vpop.eup %9185  ;;  %v1093_v31 = vpop.f32.mrb[44].mxu1 }
 0x4af   : > { %v6763_v10 = vsub.f32 0.0, %v20020_v27  ;;  %v6764_v0 = vsub.f32 0.0, %v6732_v23  ;;  %v6847_v47 = vadd.f32 1.0, %v9176_v59  ;;  %9203 = vlog2.f32 %v6846_v1  ;;  %v20023_v23 = vld [vmem:[#allocation173_spill] sm:$0xff]  ;;  %v1095_v42 = vpop.f32.mrb[45].mxu1 }
 0x4b0   : > { %7894 = vadd.xlane.f32.xlu0 %v7893_v13  ;;  %9205 = vpow2.f32 %v6817_v40  ;;  %v6848_v25 = vadd.f32 1.0, %v9178_v57  ;;  %v9188_v34 = vpop.eup %9187  ;;  %v6681_v7 = vmax.f32 %v20022_v56, 0.0  ;;  %v6734_v8 = vand.u32 2147483647, %v16768_v50  ;;  %v20024_v57 = vld [vmem:[#allocation78_spill] sm:$0xff] }
 0x4b1   : > { %9207 = vpow2.f32 %v6819_v19  ;;  %v6823_v3 = vmul.f32 1.442695, %v6763_v10  ;;  %v6849_v26 = vadd.f32 1.0, %v9180_v14  ;;  %v6682_v59 = vmax.f32 %v20023_v23, 0.0 }
 0x4b2   : > { %v9190_v52 = vpop.eup %9189  ;;  %9209 = vpow2.f32 %v6821_v29  ;;  %v6765_v1 = vsub.f32 0.0, %v6733_v9  ;;  %v6825_v60 = vmul.f32 1.442695, %v6764_v0  ;;  %v6683_v27 = vmax.f32 %v20024_v57, 0.0 }
 0x4b3   : > { %v9192_v54 = vpop.eup %9191  ;;  %9211 = vlog2.f32 %v6847_v47  ;;  %v6684_v10 = vmax.f32 %v16121_v37, 0.0  ;;  %v6850_v19 = vadd.f32 1.0, %v9182_v63  ;;  %v6685_v30 = vmax.f32 %v16125_v11, 0.0  ;;  %v1099_v47 = vpop.f32.mrb[46].mxu1 }
 0x4b4   : > { %v9194_v40 = vpop.eup %9193  ;;  %9213 = vlog2.f32 %v6848_v25  ;;  %v6686_v14 = vmax.f32 %v16162_v22, 0.0  ;;  %v6766_v21 = vsub.f32 0.0, %v6734_v8  ;;  %v6851_v9 = vadd.f32 1.0, %v9184_v41  ;;  %v1101_v63 = vpop.f32.mrb[47].mxu1  ;;  %v20025_v8 = vld [vmem:[#allocation32_spill] sm:$0xff]  ;;  %v20027_v41 = vld [vmem:[#allocation29_spill] sm:$0xff] }
 0x4b5   : > { %v9196_v13 = vpop.eup %9195  ;;  %9215 = vpow2.f32 %v6823_v3  ;;  %v6884_v29 = vmul.f32 0.6931472, %v9194_v40  ;;  %v6827_v31 = vmul.f32 1.442695, %v6765_v1  ;;  %v6852_v42 = vadd.f32 1.0, %v9186_v62  ;;  %v20032_v62 = vld [vmem:[#allocation37_spill] sm:$0xff] }
 0x4b6   : > { %v9198_v58 = vpop.eup %9197  ;;  %v6886_v0 = vmul.f32 0.6931472, %v9196_v13  ;;  %9217 = vlog2.f32 %v6849_v26  ;;  %v6853_v3 = vadd.f32 1.0, %v9188_v34  ;;  %vm20026_vm14 = vnez %v20025_v8  ;;  %v20030_v13 = vld [vmem:[#allocation38_spill] sm:$0xff]  ;;  %v20042_v63 = vld [vmem:[#allocation39_spill] sm:$0xff] }
 0x4b7   : > { %v9200_v56 = vpop.eup %9199  ;;  %9219 = vpow2.f32 %v6825_v60  ;;  %v6888_v23 = vmul.f32 0.6931472, %v9198_v58  ;;  %v6937_v37 = vadd.f32 %v6884_v29, %v6681_v7  ;;  %vm20028_vm7 = vnez %v20027_v41  ;;  %v20035_v58 = vld [vmem:[#allocation36_spill] sm:$0xff] }
 0x4b8   : > { %v9202_v25 = vpop.eup %9201  ;;  %v6890_v57 = vmul.f32 0.6931472, %v9200_v56  ;;  %9221 = vlog2.f32 %v6850_v19  ;;  %v6938_v11 = vadd.f32 %v6886_v0, %v6682_v59  ;;  %vm20029_vm2 = vmand %vm20026_vm14, %vm20028_vm7  ;;  %vm20031_vm12 = vnez %v20030_v13  ;;  %v1105_v19 = vpop.f32.mrb[48].mxu1  ;;  %v20037_v0 = vld [vmem:[#allocation35_spill] sm:$0xff] }
 0x4b9   : > { %v9204_v22 = vpop.eup %9203  ;;  %v6892_v40 = vmul.f32 0.6931472, %v9202_v25  ;;  %v6939_v39 = vadd.f32 %v6888_v23, %v6683_v27  ;;  %v7673_v26 = vsel %vm20029_vm2, %v6937_v37, 0.0  ;;  %9223 = vlog2.f32 %v6851_v9  ;;  %v1107_v56 = vpop.f32.mrb[49].mxu1  ;;  %v20040_v37 = vld [vmem:[#allocation40_spill] sm:$0xff] }
 0x4ba   : > { %v9206_v60 = vpop.eup %9205  ;;  %v6894_v1 = vmul.f32 0.6931472, %v9204_v22  ;;  %v6940_v7 = vadd.f32 %v6890_v57, %v6684_v10  ;;  %vm20033_vm13 = vnez %v20032_v62  ;;  %9225 = vpow2.f32 %v6827_v31  ;;  %v20055_v62 = vld [vmem:[#allocation266_spill] sm:$0xff] }
 0x4bb   : > { %vm20034_vm0 = vmand %vm20031_vm12, %vm20033_vm13  ;;  %v9208_v34 = vpop.eup %9207  ;;  %v6829_v27 = vmul.f32 1.442695, %v6766_v21  ;;  %v6941_v29 = vadd.f32 %v6892_v40, %v6685_v30  ;;  %vm20036_vm1 = vnez %v20035_v58  ;;  %vm20038_vm14 = vnez %v20037_v0  ;;  %v20046_v30 = vld [vmem:[#allocation245_spill] sm:$0xff] }
 0x4bc   : > { %v7674_v59 = vsel %vm20034_vm0, %v6938_v11, 0.0  ;;  %vm20039_vm7 = vmand %vm20036_vm1, %vm20038_vm14  ;;  %v9210_v9 = vpop.eup %9209  ;;  %v6854_v10 = vadd.f32 1.0, %v9190_v52  ;;  %9227 = vlog2.f32 %v6852_v42  ;;  %v6942_v23 = vadd.f32 %v6894_v1, %v6686_v14  ;;  %v20049_v11 = vld [vmem:[#allocation236_spill] sm:$0xff]  ;;  %v20051_v52 = vld [vmem:[#allocation249_spill] sm:$0xff]  ;;  %v1111_v42 = vpop.f32.mrb[50].mxu1 }
 0x4bd   : > { %v7675_v47 = vsel %vm20039_vm7, %v6939_v39, 0.0  ;;  %vm20041_vm2 = vnez %v20040_v37  ;;  %vm20043_vm12 = vnez %v20042_v63  ;;  %v9212_v31 = vpop.eup %9211  ;;  %9229 = vlog2.f32 %v6853_v3  ;;  %v1113_v40 = vpop.f32.mrb[51].mxu1 }
 0x4be   : > { %vm20044_vm13 = vmand %vm20041_vm2, %vm20043_vm12  ;;  %vm20045_vm0 = vnez %v19633_v28  ;;  %vm20047_vm3 = vnez %v20046_v30  ;;  %v9214_v39 = vpop.eup %9213  ;;  %v6855_v57 = vadd.f32 1.0, %v9192_v54  ;;  %vm20050_vm1 = vnez %v20049_v11  ;;  %v1117_v0 = vpop.f32.mrb[52].mxu1 }
 0x4bf   : > { %v7676_v25 = vsel %vm20044_vm13, %v6940_v7, 0.0  ;;  %vm20048_vm11 = vmand %vm20045_vm0, %vm20047_vm3  ;;  %vm20052_vm14 = vnez %v20051_v52  ;;  %v9216_v22 = vpop.eup %9215  ;;  %9231 = vpow2.f32 %v6829_v27  ;;  %v6856_v3 = vadd.f32 1.0, %v9206_v60  ;;  %v20057_v27 = vld [vmem:[#allocation270_spill] sm:$0xff]  ;;  %v1119_v37 = vpop.f32.mrb[53].mxu1 }
 0x4c0   : > { %v7677_v21 = vsel %vm20048_vm11, %v6941_v29, 0.0  ;;  %vm20053_vm7 = vmand %vm20050_vm1, %vm20052_vm14  ;;  %v9218_v8 = vpop.eup %9217  ;;  %v6896_v41 = vmul.f32 0.6931472, %v9212_v31  ;;  %9233 = vlog2.f32 %v6854_v10  ;;  %vm20054_vm2 = vcmask 7168   ;;  %v1123_v40 = vpop.f32.mrb[54].mxu1 }
 0x4c1   : > { %v7678_v14 = vsel %vm20053_vm7, %v6942_v23, 0.0  ;;  %v7714_v28 = vsel %vm20054_vm2, %v7673_v26, 0.0  ;;  %v9220_v1 = vpop.eup %9219  ;;  %v6898_v7 = vmul.f32 0.6931472, %v9214_v39  ;;  %v6687_v19 = vmax.f32 %v20055_v62, 0.0  ;;  %vm20056_vm3 = vmmov %vm20054_vm2 }
 0x4c2   : > { %v7715_v54 = vadd.f32 %v7714_v28, %v16761_v44  ;;  %v9222_v13 = vpop.eup %9221  ;;  %v6857_v29 = vadd.f32 1.0, %v9208_v34  ;;  %9235 = vlog2.f32 %v6855_v57  ;;  %v7716_v58 = vsel %vm20056_vm3, %v7674_v59, 0.0  ;;  %vm20058_vm11 = vmmov %vm20054_vm2 }
 0x4c3   : > { %v6688_v56 = vmax.f32 %v20057_v27, 0.0  ;;  %v6689_v60 = vmax.f32 %v16263_v51, 0.0  ;;  %v6900_v23 = vmul.f32 0.6931472, %v9218_v8  ;;  %v9224_v26 = vpop.eup %9223  ;;  %v6858_v63 = vadd.f32 1.0, %v9210_v9  ;;  %vm20059_vm12 = vmmov %vm20054_vm2  ;;  %v20060_v9 = vld [vmem:[#allocation272_spill] sm:$0xff] }
 0x4c4   : > { %v7717_v10 = vadd.f32 %v7716_v58, %v7715_v54  ;;  %9237 = vlog2.f32 %v6856_v3  ;;  %v6943_v31 = vadd.f32 %v6896_v41, %v6687_v19  ;;  %v7718_v44 = vsel %vm20058_vm11, %v7675_v47, 0.0  ;;  %v9226_v30 = vpop.eup %9225  ;;  %v1125_v54 = vpop.f32.mrb[55].mxu1  ;;  %vm20066_vm14 = vmmov %vm20054_vm2  ;;  %v20069_v58 = vld [vmem:[#allocation259_spill] sm:$0xff] }
 0x4c5   : > { %v6690_v34 = vmax.f32 %v16267_v24, 0.0  ;;  %v6902_v39 = vmul.f32 0.6931472, %v9222_v13  ;;  %v6944_v57 = vadd.f32 %v6898_v7, %v6688_v56  ;;  %v6691_v52 = vmax.f32 %v16288_v36, 0.0  ;;  %v20061_v24 = vld [vmem:[#allocation239_spill] sm:$0xff]  ;;  %v20063_v7 = vld [vmem:[#allocation252_spill] sm:$0xff] }
 0x4c6   : > { %v7719_v59 = vadd.f32 %v7718_v44, %v7717_v10  ;;  %v9228_v11 = vpop.eup %9227  ;;  %v6859_v42 = vadd.f32 1.0, %v9216_v22  ;;  %9239 = vlog2.f32 %v6857_v29  ;;  %v7720_v51 = vsel %vm20059_vm12, %v7676_v25, 0.0  ;;  %v20067_v29 = vld [vmem:[#allocation242_spill] sm:$0xff]  ;;  %v1129_v10 = vpop.f32.mrb[56].mxu1 }
 0x4c7   : > { %v9230_v8 = vpop.eup %9229  ;;  %v6692_v3 = vmax.f32 %v20060_v9, 0.0  ;;  %v6904_v41 = vmul.f32 0.6931472, %v9224_v26  ;;  %v6945_v28 = vadd.f32 %v6900_v23, %v6689_v60  ;;  %v6860_v62 = vadd.f32 1.0, %v9220_v1  ;;  %v20072_v26 = vld [vmem:[#allocation244_spill] sm:$0xff]  ;;  %v20084_v9 = vld [vmem:[#allocation50_spill] sm:$0xff] }
 0x4c8   : > { %v7721_v47 = vadd.f32 %v7720_v51, %v7719_v59  ;;  %9241 = vlog2.f32 %v6858_v63  ;;  %vm20062_vm13 = vnez %v20061_v24  ;;  %vm20064_vm0 = vnez %v20063_v7  ;;  %v20088_v24 = vld [vmem:[#allocation268_spill] sm:$0xff] }
 0x4c9   : > { %vm20065_vm1 = vmand %vm20062_vm13, %vm20064_vm0  ;;  %v7722_v22 = vsel %vm20066_vm14, %v7677_v21, 0.0  ;;  %v9232_v13 = vpop.eup %9231  ;;  %v6906_v25 = vmul.f32 0.6931472, %v9228_v11  ;;  %v6946_v19 = vadd.f32 %v6902_v39, %v6690_v34  ;;  %vm20068_vm7 = vnez %v20067_v29  ;;  %v20074_v21 = vld [vmem:[#allocation262_spill] sm:$0xff]  ;;  %v1131_v34 = vpop.f32.mrb[57].mxu1 }
 0x4ca   : > { %v7679_v36 = vsel %vm20065_vm1, %v6943_v31, 0.0  ;;  %vm20070_vm2 = vnez %v20069_v58  ;;  %v7723_v27 = vadd.f32 %v7722_v22, %v7721_v47  ;;  %v9234_v1 = vpop.eup %9233  ;;  %v6861_v56 = vadd.f32 1.0, %v9226_v30  ;;  %vm20077_vm1 = vmmov %vm20058_vm11  ;;  %v20092_v58 = vld [vmem:[#allocation271_spill] sm:$0xff] }
 0x4cb   : > { %vm20071_vm3 = vmand %vm20068_vm7, %vm20070_vm2  ;;  %v6908_v60 = vmul.f32 0.6931472, %v9230_v8  ;;  %9243 = vlog2.f32 %v6859_v42  ;;  %v7724_v23 = vsel %vm20058_vm11, %v7678_v14, 0.0  ;;  %v6947_v37 = vadd.f32 %v6904_v41, %v6691_v52  ;;  %v20079_v52 = vld [vmem:[#allocation257_spill] sm:$0xff]  ;;  %v20081_v42 = vld [vmem:[#allocation264_spill] sm:$0xff] }
 0x4cc   : > { %v7680_v0 = vsel %vm20071_vm3, %v6944_v57, 0.0  ;;  %vm20073_vm12 = vnez %v20072_v26  ;;  %vm20075_vm13 = vnez %v20074_v21  ;;  %v7725_v31 = vadd.f32 %v7724_v23, %v7723_v27  ;;  %v9236_v39 = vpop.eup %9235  ;;  %vm20078_vm14 = vmmov %vm20077_vm1 }
 0x4cd   : > { %vm20076_vm0 = vmand %vm20073_vm12, %vm20075_vm13  ;;  %v7726_v44 = vsel %vm20077_vm1, %v7679_v36, 0.0  ;;  %v6693_v57 = vmax.f32 %v16295_v6, 0.0  ;;  %v6862_v30 = vadd.f32 1.0, %v9232_v13  ;;  %9245 = vlog2.f32 %v6860_v62  ;;  %v1135_v6 = vpop.f32.mrb[58].mxu1  ;;  %v20086_v62 = vld [vmem:[#allocation263_spill] sm:$0xff] }
 0x4ce   : > { %v7681_v63 = vsel %vm20076_vm0, %v6945_v28, 0.0  ;;  %v7728_v59 = vsel %vm20078_vm14, %v7680_v0, 0.0  ;;  %v6910_v14 = vmul.f32 0.6931472, %v9234_v1  ;;  %v6948_v11 = vadd.f32 %v6906_v25, %v6692_v3  ;;  %v9238_v8 = vpop.eup %9237  ;;  %vm20085_vm11 = vmmov %vm20077_vm1  ;;  %v1137_v36 = vpop.f32.mrb[59].mxu1 }
 0x4cf   : > { %vm20080_vm7 = vnez %v20079_v52  ;;  %vm20082_vm2 = vnez %v20081_v42  ;;  %v7727_v40 = vadd.f32 %v7726_v44, %v7725_v31  ;;  %v6694_v41 = vmax.f32 %v20084_v9, 0.0  ;;  %v1141_v10 = vpop.f32.mrb[60].mxu1  ;;  %v20100_v31 = vld [vmem:[#allocation106_spill] sm:$0xff] }
 0x4d0   : > { %vm20083_vm3 = vmand %vm20080_vm7, %vm20082_vm2  ;;  %9247 = vlog2.f32 %v6861_v56  ;;  %v7730_v28 = vsel %vm20085_vm11, %v7681_v63, 0.0  ;;  %v6912_v47 = vmul.f32 0.6931472, %v9236_v39  ;;  %v6949_v54 = vadd.f32 %v6908_v60, %v6693_v57  ;;  %v9240_v22 = vpop.eup %9239  ;;  %v20095_v56 = vld [vmem:[#allocation59_spill] sm:$0xff]  ;;  %v1143_v21 = vpop.f32.mrb[61].mxu1 }
 0x4d1   : > { %v7682_v51 = vsel %vm20083_vm3, %v6946_v19, 0.0  ;;  %vm20087_vm12 = vnez %v20086_v62  ;;  %vm20089_vm13 = vnez %v20088_v24  ;;  %v7729_v7 = vadd.f32 %v7728_v59, %v7727_v40  ;;  %vm20096_vm3 = vmmov %vm20077_vm1 }
 0x4d2   : > { %vm20090_vm0 = vmand %vm20087_vm12, %vm20089_vm13  ;;  %v6695_v13 = vmax.f32 %v16322_v32, 0.0  ;;  %9249 = vlog2.f32 %v6862_v30  ;;  %v7732_v25 = vsel %vm20077_vm1, %v7682_v51, 0.0  ;;  %v6914_v19 = vmul.f32 0.6931472, %v9238_v8  ;;  %v9242_v1 = vpop.eup %9241  ;;  %v20107_v51 = vld [vmem:[#allocation110_spill] sm:$0xff] }
 0x4d3   : > { %v7683_v3 = vsel %vm20090_vm0, %v6947_v37, 0.0  ;;  %v6950_v29 = vadd.f32 %v6910_v14, %v6694_v41  ;;  %vm20091_vm14 = vnez %v19803_v45  ;;  %vm20093_vm7 = vnez %v20092_v58  ;;  %vm20101_vm0 = vmmov %vm20077_vm1 }
 0x4d4   : > { %vm20094_vm2 = vmand %vm20091_vm14, %vm20093_vm7  ;;  %v7731_v27 = vadd.f32 %v7730_v28, %v7729_v7  ;;  %v6696_v60 = vmax.f32 %v20095_v56, 0.0  ;;  %v7734_v23 = vsel %vm20096_vm3, %v7683_v3, 0.0  ;;  %v6916_v37 = vmul.f32 0.6931472, %v9240_v22  ;;  %v20130_v56 = vld [vmem:[#allocation71_spill] sm:$0xff] }
 0x4d5   : > { %v7684_v0 = vsel %vm20094_vm2, %v6948_v11, 0.0  ;;  %v6951_v32 = vadd.f32 %v6912_v47, %v6695_v13  ;;  %vm20097_vm11 = vnez %v19823_v43  ;;  %vm20098_vm12 = vnez %v19827_v2  ;;  %v9244_v63 = vpop.eup %9243  ;;  %vm20105_vm2 = vmmov %vm20101_vm0  ;;  %v1147_v11 = vpop.f32.mrb[62].mxu1 }
 0x4d6   : > { %vm20099_vm13 = vmand %vm20097_vm11, %vm20098_vm12  ;;  %v7733_v45 = vadd.f32 %v7732_v25, %v7731_v27  ;;  %v6697_v44 = vmax.f32 %v20100_v31, 0.0  ;;  %v7736_v34 = vsel %vm20101_vm0, %v7684_v0, 0.0  ;;  %v6918_v39 = vmul.f32 0.6931472, %v9242_v1  ;;  %v1149_v8 = vpop.f32.mrb[63].mxu1  ;;  %v20124_v0 = vld [vmem:[#allocation51_spill] sm:$0xff] }
 0x4d7   : > { %v7685_v26 = vsel %vm20099_vm13, %v6949_v54, 0.0  ;;  %v6952_v57 = vadd.f32 %v6914_v19, %v6696_v60  ;;  %vm20102_vm1 = vnez %v19838_v55  ;;  %vm20103_vm14 = vnez %v19843_v48  ;;  %v9246_v59 = vpop.eup %9245  ;;  %vm20110_vm13 = vmmov %vm20101_vm0  ;;  %v20132_v60 = vld [vmem:[#allocation119_spill] sm:$0xff] }
 0x4d8   : > { %vm20104_vm7 = vmand %vm20102_vm1, %vm20103_vm14  ;;  %v7735_v43 = vadd.f32 %v7734_v23, %v7733_v45  ;;  %v6698_v2 = vmax.f32 %v16387_v38, 0.0  ;;  %v7738_v14 = vsel %vm20105_vm2, %v7685_v26, 0.0  ;;  %v6920_v52 = vmul.f32 0.6931472, %v9244_v63 }
 0x4d9   : > { %v7686_v30 = vsel %vm20104_vm7, %v6950_v29, 0.0  ;;  %v6953_v42 = vadd.f32 %v6916_v37, %v6697_v44  ;;  %vm20106_vm3 = vnez %v19852_v5  ;;  %vm20108_vm11 = vnez %v20107_v51  ;;  %vm20111_vm0 = vmand %vm19965_vm6, %vm16431_vm15 }
 0x4da   : > { %vm20109_vm12 = vmand %vm20106_vm3, %vm20108_vm11  ;;  %v7737_v55 = vadd.f32 %v7736_v34, %v7735_v43  ;;  %v9248_v48 = vpop.eup %9247  ;;  %v6699_v9 = vmax.f32 %v16496_v4, 0.0  ;;  %v7740_v41 = vsel %vm20110_vm13, %v7686_v30, 0.0  ;;  %v6922_v28 = vmul.f32 0.6931472, %v9246_v59 }
 0x4db   : > { %v7687_v40 = vsel %vm20109_vm12, %v6951_v32, 0.0  ;;  %v6954_v38 = vadd.f32 %v6918_v39, %v6698_v2  ;;  %v7688_v6 = vsel %vm20111_vm0, %v6952_v57, 0.0  ;;  %v6700_v54 = vmax.f32 %v16546_v33, 0.0  ;;  %vm20112_vm1 = vmmov %vm20105_vm2 }
 0x4dc   : > { %v7739_v5 = vadd.f32 %v7738_v14, %v7737_v55  ;;  %v9250_v47 = vpop.eup %9249  ;;  %v7742_v62 = vsel %vm20112_vm1, %v7687_v40, 0.0  ;;  %v6924_v24 = vmul.f32 0.6931472, %v9248_v48  ;;  %v6955_v3 = vadd.f32 %v6920_v52, %v6699_v9  ;;  %vm20113_vm14 = vmand %vm19968_vm10, %vm19967_vm9 }
 0x4dd   : > { %v7689_v4 = vsel %vm20113_vm14, %v6953_v42, 0.0  ;;  %v6701_v17 = vmax.f32 %v16581_v12, 0.0  ;;  %vm20114_vm7 = vmmov %vm20112_vm1  ;;  %v6926_v36 = vmul.f32 0.6931472, %v9250_v47  ;;  %v6956_v22 = vadd.f32 %v6922_v28, %v6700_v54 }
 0x4de   : > { %v7741_v7 = vadd.f32 %v7740_v41, %v7739_v5  ;;  %v7744_v46 = vsel %vm20114_vm7, %v7688_v6, 0.0  ;;  %vm20115_vm6 = vnez %v19928_v49  ;;  %vm20117_vm2 = vmmov %vm20112_vm1  ;;  %v6702_v61 = vmax.f32 %v16768_v50, 0.0 }
 0x4df   : > { %vm20116_vm15 = vmand %vm16528_vm5, %vm20115_vm6  ;;  %v7746_v18 = vsel %vm20117_vm2, %v7689_v4, 0.0  ;;  %v6957_v25 = vadd.f32 %v6924_v24, %v6701_v17  ;;  %vm20118_vm10 = vnez %v19904_v35  ;;  %vm20121_vm5 = vnez %v19918_v53 }
 0x4e0   : > { %v7690_v33 = vsel %vm20116_vm15, %v6954_v38, 0.0  ;;  %v7743_v13 = vadd.f32 %v7742_v62, %v7741_v7  ;;  %vm20119_vm9 = vmand %vm19970_vm4, %vm20118_vm10  ;;  %v6958_v20 = vadd.f32 %v6926_v36, %v6702_v61  ;;  %vm20125_vm13 = vnez %v20124_v0 }
 0x4e1   : > { %v7691_v12 = vsel %vm20119_vm9, %v6955_v3, 0.0  ;;  %vm20120_vm3 = vmmov %vm20112_vm1  ;;  %vm20127_vm0 = vnez %v20126_v15  ;;  %vm20131_vm14 = vnez %v20130_v56  ;;  %vm20133_vm7 = vnez %v20132_v60 }
 0x4e2   : > { %v7745_v19 = vadd.f32 %v7744_v46, %v7743_v13  ;;  %v7748_v29 = vsel %vm20120_vm3, %v7690_v33, 0.0  ;;  %vm20122_vm11 = vmand %vm19972_vm8, %vm20121_vm5 }
 0x4e3   : > { %v7692_v49 = vsel %vm20122_vm11, %v6956_v22, 0.0  ;;  %vm20123_vm12 = vmmov %vm20112_vm1 }
 0x4e4   : > { %v7747_v58 = vadd.f32 %v7746_v18, %v7745_v19  ;;  %v7750_v50 = vsel %vm20123_vm12, %v7691_v12, 0.0  ;;  %vm20128_vm1 = vmand %vm20125_vm13, %vm20127_vm0 }
 0x4e5   : > { %v7693_v35 = vsel %vm20128_vm1, %v6957_v25, 0.0  ;;  %vm20129_vm4 = vmmov %vm20117_vm2 }
 0x4e6   : > { %v7749_v27 = vadd.f32 %v7748_v29, %v7747_v58  ;;  %v7752_v1 = vsel %vm20129_vm4, %v7692_v49, 0.0  ;;  %vm20134_vm6 = vmand %vm20131_vm14, %vm20133_vm7 }
 0x4e7   : > { %v7694_v16 = vsel %vm20134_vm6, %v6958_v20, 0.0  ;;  %vm20135_vm8 = vmmov %vm20117_vm2 }
 0x4e8   : > { %v7751_v53 = vadd.f32 %v7750_v50, %v7749_v27  ;;  %v7754_v23 = vsel %vm20135_vm8, %v7693_v35, 0.0  ;;  %vm20136_vm15 = vmmov %vm20117_vm2 }
 0x4e9   : > { %v7756_v37 = vsel %vm20136_vm15, %v7694_v16, 0.0 }
 0x4ea   : > { %v7753_v10 = vadd.f32 %v7752_v1, %v7751_v53 }
 0x4ec   : > { %v7755_v32 = vadd.f32 %v7754_v23, %v7753_v10 }
 0x4ee   : > { %v7757_v26 = vadd.f32 %v7756_v37, %v7755_v32 }
 0x4f0   : > { %7758 = vadd.xlane.f32.xlu1 %v7757_v26 }
 0x53d   : > { %v7895_v45 = vpop.xlane.xlu0 %7894 }
 0x53e   : > { %v7896_v21 = vrot.slane %v7895_v45, 4 }
 0x540   : > { %v7897_v63 = vadd.f32 %v7896_v21, %v7895_v45 }
 0x542   : > { %v7898_v31 = vrot.slane %v7897_v63, 2 }
 0x544   : > { %v7899_v57 = vadd.f32 %v7898_v31, %v7897_v63 }
 0x546   : > { %v7900_v59 = vrot.slane %v7899_v57, 1 }
 0x548   : > { %v7901_v11 = vadd.f32 %v7900_v59, %v7899_v57 }
 0x57d   : > { %v7759_v44 = vpop.xlane.xlu1 %7758 }
 0x57e   : > { %v7760_v34 = vrot.slane %v7759_v44, 4 }
 0x580   : > { %v7761_v39 = vadd.f32 %v7760_v34, %v7759_v44 }
 0x582   : > { %v7762_v30 = vrot.slane %v7761_v39, 2 }
 0x584   : > { %v7763_v43 = vadd.f32 %v7762_v30, %v7761_v39 }
 0x586   : > { %v7764_v2 = vrot.slane %v7763_v43, 1 }
 0x588   : > { %v7765_v14 = vadd.f32 %v7764_v2, %v7763_v43 }
 0x58a   : > { %8605 = vpush %v7765_v14 }
 0x58b   : > { %8607 = vpush %v7901_v11 }
 0x5bb   : > { %s8606_s12 = spop %8605 }
 0x5bc   : > { %v7903_v52 = vstv %s8606_s12  ;;  %s8608_s16 = spop %8607 }
 0x5bd   : > { %7904 = vst [vmem:[%s366_s21] sm:$0xff] %v7903_v52  ;;  %v7905_v42 = vstv %s8608_s16 }
 0x5be   : > { %7906 = vst [vmem:[%s373_s8] sm:$0xff] %v7905_v42 }
 0x5bf   : > { %9360 = shalt.err (!%p9357_p5)
}
 0x5c0   : > { %s9361_s8 = scalar_lea.hbm %s16938_s10, 128  ;;  %s9365_s12 = scalar_lea.hbm %s17019_s6, 256 }
 0x5c1   : > { %p9362_p6 = scmp.ne.s32.totalorder %s16938_s10, %s9361_s8  ;;  %p9366_p10 = scmp.lt.u32.totalorder %s16938_s10, %s17019_s6 }
 0x5c2   : > { %p9367_p11 = scmp.lt.u32.totalorder %s9365_s12, %s9361_s8  ;;  %p9369_p13 = scmp.lt.u32.totalorder %s9361_s8, %s16938_s10 }
 0x5c3   : > { %p9363_p7 = pnand %p9362_p6, %p9545_p4 }
 0x5c4   : > { %p9368_p12 = por %p9367_p11, %p9366_p10 }
 0x5c5   : > { %p9364_p9 = pneg %p9363_p7 }
 0x5c6   : > { %p9370_p0 = por %p9369_p13, %p9368_p12 }
 0x5c8   : > { %p9371_p1 = pnand %p9370_p0, %p9364_p9 }
 0x5ca   : > { %9374 = shalt.err (!%p9371_p1)
}
 0x5cb   : > { %8609 = dma.vmem_to_hbm [thread:$0]  (%p9545_p4), %s16940_s23, 128, %s16938_s10, %s7908_s27  }
 0x5cc   : > { %s7913_s2 = scalar_lea.sflag [#allocation9], %s16929_s17  ;;  %s9375_s18 = scalar_lea.vmem %s16933_s19, 128 }
 0x5cd   : > { %p9376_p2 = scmp.ne.s32.totalorder %s16933_s19, %s9375_s18  ;;  %s9464_s22 = smov [#allocation8]  }
 0x5ce   : > { %s9379_s15 = sshll.u32 %s9464_s22, 4  ;;  %s9380_s15 = int_to_ptr.vmem [resolvable:$false] %s9379_s15 }
 0x5cf   : > { %p9377_p3 = pnand %p9376_p2, %p9545_p4  ;;  %s9381_s20 = scalar_lea.vmem %s9380_s15, 256 }
 0x5d0   : > { %p9382_p6 = scmp.lt.s32.totalorder %s16933_s19, %s9380_s15  ;;  %p9383_p7 = scmp.lt.s32.totalorder %s9381_s20, %s9375_s18 }
 0x5d1   : > { %p9378_p5 = pneg %p9377_p3 }
 0x5d2   : > { %p9384_p9 = por %p9383_p7, %p9382_p6 }
 0x5d4   : > { %p9385_p10 = pnand %p9384_p9, %p9378_p5 }
 0x5d6   : > { %9388 = shalt.err (!%p9385_p10)
}
 0x5d7   : > { %s9389_s17 = scalar_lea.hbm %s16945_s0, 128  ;;  %s9393_s27 = scalar_lea.hbm %s17020_s7, 256 }
 0x5d8   : > { %p9390_p11 = scmp.ne.s32.totalorder %s16945_s0, %s9389_s17  ;;  %p9394_p0 = scmp.lt.u32.totalorder %s16945_s0, %s17020_s7 }
 0x5d9   : > { %p9395_p1 = scmp.lt.u32.totalorder %s9393_s27, %s9389_s17  ;;  %p9397_p3 = scmp.lt.u32.totalorder %s9389_s17, %s16945_s0 }
 0x5da   : > { %p9391_p12 = pnand %p9390_p11, %p9545_p4 }
 0x5db   : > { %p9396_p2 = por %p9395_p1, %p9394_p0 }
 0x5dc   : > { %p9392_p13 = pneg %p9391_p12 }
 0x5dd   : > { %p9398_p5 = por %p9397_p3, %p9396_p2 }
 0x5df   : > { %p9399_p6 = pnand %p9398_p5, %p9392_p13 }
 0x5e1   : > { %9402 = shalt.err (!%p9399_p6)
}
 0x5e2   : > { %8610 = dma.vmem_to_hbm [thread:$0]  (%p9545_p4), %s16933_s19, 128, %s16945_s0, %s7913_s2  }
 0x5e3 PF: > { %p8620_p7 = scmp.ge.s32.totalorder %s9457_s29, 2  ;;  %s7951_s30 = sand.u32 1, %s9437_s24  }
 0x5e4   : > { %s7952_s12 = scalar_lea.sflag [#allocation7], %s7951_s30 }
 0x5e5   : > { %p8614_p9 = pnand %p8620_p7, %p9552_p8 }
 0x5e7   : > { %9428 = dma.done.wait (!%p8614_p9), %s7952_s12, 128  }
 0x5e8   : > { %9430 = vsyncadd (!%p8614_p9), %s7952_s12, 4294967168  ;;  %s7961_s16 = scalar_lea.sflag [#allocation9], %s7951_s30 }
 0x5e9   : > { %9432 = dma.done.wait (!%p8614_p9), %s7961_s16, 128  }
 0x5ea   : > { %9434 = vsyncadd (!%p8614_p9), %s7961_s16, 4294967168  ;;  %s24_s29 = sadd.s32 1, %s9457_s29   ;;  %s20137_s24 = smov %s9441_s25 }
 0x5eb   : > { %p21_p10 = scmp.ge.s32.totalorder %s24_s29, 4   ;;  %s20138_s25 = smov %s9445_s26 }
 0x5ec   : > { %s20139_s26 = smov %s9558_s14  ;;  %s20140_s27 = smov %s9453_s28 }
 0x5ed   : > { %s20141_s28 = smov %s20143_s9  ;;  %23 = sbr.rel (!%p21_p10) target bundleno = 10 (0xa), region = 119 }
 0x5f4   :  { %7966 = vsyncpa [#allocation7], 1 }
 0x5f5   :  { %7968 = vsyncpa [#allocation7 + $0x1], 1 }
 0x5f6   :  { %7969 = vsyncpa [#allocation9], 1 }
 0x5f7   :  { %7971 = vsyncpa [#allocation9 + $0x1], 1 }

</bundles_post_ra>
